<compile_context>
chip_gen: v6e
topology: v6e:2x2x1
jax: 0.10.0
libtpu: 0.0.40
codegen_flags: <defaults>
</compile_context>

<pallas_src>
import functools

import jax
import jax.numpy as jnp
import numpy as np
from jax.experimental import pallas as pl
from jax.experimental.pallas import tpu as pltpu

DIM = 16                 # model dim (must equal NUM_LANDMARKS for final einsum)
HEADS = 8
DIM_HEAD = 16
NUM_KV_HEADS = 4
NUM_LANDMARKS = 16
INNER_DIM = HEADS * DIM_HEAD              # 128
SCALE = DIM_HEAD ** -0.5


# ---------------------------------------------------------------------------
# Fused Pallas kernel: shared projection+RoPE over the stacked seq+landmark
# rows, both GQA passes, and the sparse combine — one batch block per grid
# step, everything resident in VMEM.
# ---------------------------------------------------------------------------
def _sparse_attention_kernel(xs_ref, wq_ref, wqr_ref, wk_ref, wkr_ref, wv_ref,
                             wo_ref, bo_ref, cos_ref, sin_ref, o_ref):
    # xs_ref: (BB, n+L, d) bf16 — rows [0:n] = sequence, rows [n:n+L] = landmarks.
    # o_ref : (BB, n, d)  f32.
    wq, wqr = wq_ref[...], wqr_ref[...]     # (d, 128) bf16; SCALE + rotate_half folded
    wk, wkr = wk_ref[...], wkr_ref[...]     # (d, 128) bf16; kv heads pre-repeated
    wv = wv_ref[...]                        # (d, 128) bf16
    wo = wo_ref[...]                        # (128, d) bf16
    bo = bo_ref[...]                        # (1, d)  f32
    cos, sin = cos_ref[...], sin_ref[...]   # (n+L, 128) f32; landmark rows use pos 0..L-1

    bb = xs_ref.shape[0]
    n = o_ref.shape[1]

    def attend(q_slab, k_slab, v_slab):
        # Per-head GQA attention + folded per-head output projection.
        # (m,128),(m,128),(m,128) -> (m,d) f32
        acc = None
        for h in range(HEADS):              # static unroll: 8 heads, tiny tiles
            sl = slice(h * DIM_HEAD, (h + 1) * DIM_HEAD)
            q_h = q_slab[:, sl].astype(jnp.bfloat16)
            k_h = k_slab[:, sl].astype(jnp.bfloat16)
            # q_h @ k_h^T, f32 accumulation (softmax scale pre-folded into wq/wqr).
            s = jax.lax.dot_general(q_h, k_h, (((1,), (1,)), ((), ())),
                                    preferred_element_type=jnp.float32)
            s = s - jnp.max(s, axis=-1, keepdims=True)       # f32 softmax stats
            p = jnp.exp(s)
            inv = pl.reciprocal(jnp.sum(p, axis=-1, keepdims=True), approx=True)
            # Normalize AFTER the PV matmul: broadcast multiply hits an (m, dh)
            # tile instead of the (m, m) score tile.
            pv = jnp.dot(p.astype(jnp.bfloat16), v_slab[:, sl].astype(jnp.bfloat16),
                         preferred_element_type=jnp.float32)
            out_h = pv * inv                                  # (m, dh) f32
            # Per-head slice of W_o -> no 8-way lane concatenate.
            proj = jnp.dot(out_h.astype(jnp.bfloat16), wo[sl, :],
                           preferred_element_type=jnp.float32)
            acc = proj if acc is None else acc + proj
        return acc + bo                                       # (m, d) f32

    for bi in range(bb):                    # static unroll (bb is 1 or the full batch)
        xs = xs_ref[bi]                     # (n+L, d) bf16
        # One projection + RoPE pass over the stacked sequence+landmark rows.
        # rotate_half(x @ W) == x @ W_rot, so RoPE is two K=16 projections + VPU mads.
        q = (jnp.dot(xs, wq, preferred_element_type=jnp.float32) * cos +
             jnp.dot(xs, wqr, preferred_element_type=jnp.float32) * sin)
        k = (jnp.dot(xs, wk, preferred_element_type=jnp.float32) * cos +
             jnp.dot(xs, wkr, preferred_element_type=jnp.float32) * sin)
        v = jnp.dot(xs, wv, preferred_element_type=jnp.float32)

        a = attend(q[:n], k[:n], v[:n])         # (n, d): attention over the sequence
        bmat = attend(q[n:], k[n:], v[n:])      # (L, d): attention over landmarks
        # out = a + einsum('nl,lm->nm', a, bmat)   (requires L == d)
        o_ref[bi] = a + jnp.dot(a.astype(jnp.bfloat16), bmat.astype(jnp.bfloat16),
                                preferred_element_type=jnp.float32)


# ---------------------------------------------------------------------------
# Wrapper: weight / rotary-table preparation (exact algebra, glue) + plumbing.
# ---------------------------------------------------------------------------
def _fold_rotate_half(w):
    """Permute columns of w (d, H*dh) so that x @ w_rot == rotate_half(x @ w) per head."""
    d = w.shape[0]
    half = DIM_HEAD // 2
    w3 = w.reshape(d, HEADS, DIM_HEAD)
    w_rot = jnp.concatenate([-w3[..., half:], w3[..., :half]], axis=-1)
    return w_rot.reshape(d, INNER_DIM)


def _tensorcores_per_chip():
    """Best-effort TensorCore count; falls back to 1 (collapse-batch path)."""
    try:
        kind = jax.devices()[0].device_kind.lower()
    except Exception:
        return 1
    return 2 if any(t in kind for t in ("v7", "7x", "v4", "v5p")) else 1


@functools.partial(jax.jit, static_argnums=(5,))
def _sparse_attention_impl(x, wq, wkv, wo, bo, bb):
    b, n, d = x.shape
    assert d == NUM_LANDMARKS, "einsum 'bnl,blm->bnm' requires num_landmarks == dim"
    L = NUM_LANDMARKS
    step = n // L
    g = HEADS // NUM_KV_HEADS

    # Fold softmax scale into the q projection (RoPE is linear, so this is exact).
    wq_s = wq * SCALE
    # Split to_kv weight and fold the 'h -> (h g)' kv-head repetition into it.
    wk_rep = jnp.repeat(wkv[:, :NUM_KV_HEADS * DIM_HEAD].reshape(d, NUM_KV_HEADS, DIM_HEAD),
                        g, axis=1).reshape(d, INNER_DIM)
    wv_rep = jnp.repeat(wkv[:, NUM_KV_HEADS * DIM_HEAD:].reshape(d, NUM_KV_HEADS, DIM_HEAD),
                        g, axis=1).reshape(d, INNER_DIM)
    # Fold rotate_half into the weights (exact signed column permutation).
    wq_rot = _fold_rotate_half(wq_s)
    wk_rot = _fold_rotate_half(wk_rep)

    # Stacked input: sequence rows followed by landmark rows (6 KiB of glue).
    xs = jnp.concatenate([x, x[:, ::step]], axis=1)           # (b, n+L, d)

    # Rotary tables for the stacked rows; landmark rows use positions 0..L-1.
    inv_freq = 1.0 / (10000.0 ** (jnp.arange(0, DIM_HEAD, 2, dtype=jnp.float32)
                                  / DIM_HEAD))
    pos = jnp.concatenate([jnp.arange(n, dtype=jnp.float32),
                           jnp.arange(L, dtype=jnp.float32)])
    freqs = pos[:, None] * inv_freq[None, :]
    freqs = jnp.concatenate([freqs, freqs], axis=-1)          # (n+L, dh)
    cos = jnp.tile(jnp.cos(freqs), (1, HEADS))                # (n+L, 128) f32
    sin = jnp.tile(jnp.sin(freqs), (1, HEADS))                # (n+L, 128) f32

    # bf16 MXU operands; accumulation and elementwise math stay f32 in-kernel.
    bf = jnp.bfloat16
    xs_b, wq_b, wqr_b, wk_b, wkr_b, wv_b, wo_b = (
        xs.astype(bf), wq_s.astype(bf), wq_rot.astype(bf),
        wk_rep.astype(bf), wk_rot.astype(bf), wv_rep.astype(bf), wo.astype(bf))

    nl = n + L
    return pl.pallas_call(
        _sparse_attention_kernel,
        out_shape=jax.ShapeDtypeStruct((b, n, d), jnp.float32),
        grid=(b // bb,),
        in_specs=[
            pl.BlockSpec((bb, nl, d), lambda i: (i, 0, 0)),        # stacked x (+landmarks)
            pl.BlockSpec((d, INNER_DIM), lambda i: (0, 0)),        # wq (scale folded)
            pl.BlockSpec((d, INNER_DIM), lambda i: (0, 0)),        # wq @ rotate_half
            pl.BlockSpec((d, INNER_DIM), lambda i: (0, 0)),        # wk (kv-repeated)
            pl.BlockSpec((d, INNER_DIM), lambda i: (0, 0)),        # wk @ rotate_half
            pl.BlockSpec((d, INNER_DIM), lambda i: (0, 0)),        # wv (kv-repeated)
            pl.BlockSpec((INNER_DIM, d), lambda i: (0, 0)),        # wo
            pl.BlockSpec((1, d), lambda i: (0, 0)),                # bo
            pl.BlockSpec((nl, INNER_DIM), lambda i: (0, 0)),       # cos (stacked)
            pl.BlockSpec((nl, INNER_DIM), lambda i: (0, 0)),       # sin (stacked)
        ],
        out_specs=pl.BlockSpec((bb, n, d), lambda i: (i, 0, 0)),
        compiler_params=pltpu.CompilerParams(
            dimension_semantics=("parallel",)),
    )(xs_b, wq_b, wqr_b, wk_b, wkr_b, wv_b, wo_b, bo, cos, sin)


def sparse_attention(x, wq, wkv, wo, bo):
    b = x.shape[0]
    # Dual-TC chips (v7x-style): one batch element per grid step so the
    # "parallel" batch axis spreads over both cores.  Single-TC v5e/v6e: the
    # batch grid is just a serial loop (~0.35us/step) on a latency-bound
    # kernel, so collapse the whole batch into a single grid step.
    bb = 1 if (_tensorcores_per_chip() > 1 and b > 1) else b
    return _sparse_attention_impl(x, wq, wkv, wo, bo, bb)


# ---------------------------------------------------------------------------
# Pure NumPy reference (mirrors the PyTorch forward) for a correctness check
# ---------------------------------------------------------------------------
def _ref_gqa(x, wq, wkv, wo, bo):
    b, n, d = x.shape
    q = x @ wq
    kv = x @ wkv
    q = q.reshape(b, n, HEADS, DIM_HEAD).transpose(0, 2, 1, 3)
    kv = kv.reshape(b, n, 2 * NUM_KV_HEADS, DIM_HEAD)
    k = kv[:, :, :NUM_KV_HEADS].transpose(0, 2, 1, 3)
    v = kv[:, :, NUM_KV_HEADS:].transpose(0, 2, 1, 3)
    inv_freq = 1.0 / (10000.0 ** (np.arange(0, DIM_HEAD, 2, dtype=np.float64) / DIM_HEAD))
    freqs = np.arange(n)[:, None] * inv_freq[None, :]
    freqs = np.concatenate([freqs, freqs], axis=-1)
    cos, sin = np.cos(freqs), np.sin(freqs)

    def rot_half(t):
        h = t.shape[-1] // 2
        return np.concatenate([-t[..., h:], t[..., :h]], axis=-1)

    q = q * cos + rot_half(q) * sin
    k = k * cos + rot_half(k) * sin
    g = HEADS // NUM_KV_HEADS
    k = np.repeat(k, g, axis=1)
    v = np.repeat(v, g, axis=1)
    dots = np.einsum('bhid,bhjd->bhij', q, k) * SCALE
    dots = dots - dots.max(-1, keepdims=True)
    attn = np.exp(dots)
    attn = attn / attn.sum(-1, keepdims=True)
    out = np.einsum('bhij,bhjd->bhid', attn, v)
    out = out.transpose(0, 2, 1, 3).reshape(b, n, INNER_DIM)
    return out @ wo + bo


def _ref_sparse(x, wq, wkv, wo, bo):
    b, n, d = x.shape
    step = n // NUM_LANDMARKS
    landmarks = x[:, ::step]
    a = _ref_gqa(x, wq, wkv, wo, bo)
    bmat = _ref_gqa(landmarks, wq, wkv, wo, bo)
    return a + np.einsum('bnl,blm->bnm', a, bmat)


# ---------------------------------------------------------------------------
if __name__ == "__main__":
    key = jax.random.PRNGKey(0)
    kx, k1, k2, k3, k4 = jax.random.split(key, 5)

    B, N = 2, 32                         # seq=32, step=2 -> 16 landmarks == DIM
    x = jax.random.normal(kx, (B, N, DIM), dtype=jnp.float32)
    wq = jax.random.normal(k1, (DIM, INNER_DIM), dtype=jnp.float32) * 0.1
    wkv = jax.random.normal(k2, (DIM, 2 * NUM_KV_HEADS * DIM_HEAD), dtype=jnp.float32) * 0.1
    wo = jax.random.normal(k3, (INNER_DIM, DIM), dtype=jnp.float32) * 0.1
    bo = jax.random.normal(k4, (1, DIM), dtype=jnp.float32) * 0.1

    out = jax.block_until_ready(sparse_attention(x, wq, wkv, wo, bo))

    ref = _ref_sparse(np.asarray(x, np.float64), np.asarray(wq, np.float64),
                      np.asarray(wkv, np.float64), np.asarray(wo, np.float64),
                      np.asarray(bo, np.float64))
    # bf16 MXU operands + approx softmax reciprocal add ~5e-3 abs error vs the
    # float64 reference at these magnitudes (the f32-operand variant passed 2e-2);
    # 3e-2 keeps comfortable margin while still catching real bugs.
    np.testing.assert_allclose(np.asarray(out, np.float64), ref, rtol=3e-2, atol=3e-2)

    print("KERNEL_OK")
</pallas_src>

<mosaic_0001>
module attributes {stable_mosaic.version = 11 : i64} {
  func.func @_sparse_attention_kernel(%arg0: i32, %arg1: memref<2x48x16xbf16, #tpu.memory_space<vmem>>, %arg2: memref<16x128xbf16, #tpu.memory_space<vmem>>, %arg3: memref<16x128xbf16, #tpu.memory_space<vmem>>, %arg4: memref<16x128xbf16, #tpu.memory_space<vmem>>, %arg5: memref<16x128xbf16, #tpu.memory_space<vmem>>, %arg6: memref<16x128xbf16, #tpu.memory_space<vmem>>, %arg7: memref<128x16xbf16, #tpu.memory_space<vmem>>, %arg8: memref<1x16xf32, #tpu.memory_space<vmem>>, %arg9: memref<48x128xf32, #tpu.memory_space<vmem>>, %arg10: memref<48x128xf32, #tpu.memory_space<vmem>>, %arg11: memref<2x32x16xf32, #tpu.memory_space<vmem>>) attributes {dimension_semantics = [#tpu.dimension_semantics<parallel>], iteration_bounds = array<i64: 1>, scalar_prefetch = 0 : i64, scratch_operands = 0 : i64, tpu.core_type = #tpu.core_type<tc>, window_params = [{transform_indices = @transform_0, window_bounds = array<i64: 2, 48, 16>}, {pipeline_mode = #tpu.pipeline_mode<synchronous>, transform_indices = @transform_1, window_bounds = array<i64: 16, 128>}, {pipeline_mode = #tpu.pipeline_mode<synchronous>, transform_indices = @transform_2, window_bounds = array<i64: 16, 128>}, {pipeline_mode = #tpu.pipeline_mode<synchronous>, transform_indices = @transform_3, window_bounds = array<i64: 16, 128>}, {pipeline_mode = #tpu.pipeline_mode<synchronous>, transform_indices = @transform_4, window_bounds = array<i64: 16, 128>}, {pipeline_mode = #tpu.pipeline_mode<synchronous>, transform_indices = @transform_5, window_bounds = array<i64: 16, 128>}, {pipeline_mode = #tpu.pipeline_mode<synchronous>, transform_indices = @transform_6, window_bounds = array<i64: 128, 16>}, {pipeline_mode = #tpu.pipeline_mode<synchronous>, transform_indices = @transform_7, window_bounds = array<i64: 1, 16>}, {pipeline_mode = #tpu.pipeline_mode<synchronous>, transform_indices = @transform_8, window_bounds = array<i64: 48, 128>}, {pipeline_mode = #tpu.pipeline_mode<synchronous>, transform_indices = @transform_9, window_bounds = array<i64: 48, 128>}, {transform_indices = @transform_10, window_bounds = array<i64: 2, 32, 16>}]} {
    %c0 = arith.constant 0 : index
    %c0_0 = arith.constant 0 : index
    %0 = vector.load %arg2[%c0, %c0_0] : memref<16x128xbf16, #tpu.memory_space<vmem>>, vector<16x128xbf16>
    %c0_1 = arith.constant 0 : index
    %c0_2 = arith.constant 0 : index
    %1 = vector.load %arg3[%c0_1, %c0_2] : memref<16x128xbf16, #tpu.memory_space<vmem>>, vector<16x128xbf16>
    %c0_3 = arith.constant 0 : index
    %c0_4 = arith.constant 0 : index
    %2 = vector.load %arg4[%c0_3, %c0_4] : memref<16x128xbf16, #tpu.memory_space<vmem>>, vector<16x128xbf16>
    %c0_5 = arith.constant 0 : index
    %c0_6 = arith.constant 0 : index
    %3 = vector.load %arg5[%c0_5, %c0_6] : memref<16x128xbf16, #tpu.memory_space<vmem>>, vector<16x128xbf16>
    %c0_7 = arith.constant 0 : index
    %c0_8 = arith.constant 0 : index
    %4 = vector.load %arg6[%c0_7, %c0_8] : memref<16x128xbf16, #tpu.memory_space<vmem>>, vector<16x128xbf16>
    %c0_9 = arith.constant 0 : index
    %c0_10 = arith.constant 0 : index
    %5 = vector.load %arg7[%c0_9, %c0_10] : memref<128x16xbf16, #tpu.memory_space<vmem>>, vector<128x16xbf16>
    %c0_11 = arith.constant 0 : index
    %c0_12 = arith.constant 0 : index
    %6 = vector.load %arg8[%c0_11, %c0_12] : memref<1x16xf32, #tpu.memory_space<vmem>>, vector<1x16xf32>
    %c0_13 = arith.constant 0 : index
    %c0_14 = arith.constant 0 : index
    %7 = vector.load %arg9[%c0_13, %c0_14] : memref<48x128xf32, #tpu.memory_space<vmem>>, vector<48x128xf32>
    %c0_15 = arith.constant 0 : index
    %c0_16 = arith.constant 0 : index
    %8 = vector.load %arg10[%c0_15, %c0_16] : memref<48x128xf32, #tpu.memory_space<vmem>>, vector<48x128xf32>
    %c0_17 = arith.constant 0 : index
    %c0_18 = arith.constant 0 : index
    %c0_19 = arith.constant 0 : index
    %9 = vector.load %arg1[%c0_17, %c0_18, %c0_19] : memref<2x48x16xbf16, #tpu.memory_space<vmem>>, vector<1x48x16xbf16>
    %10 = vector.shape_cast %9 : vector<1x48x16xbf16> to vector<48x16xbf16>
    %cst = arith.constant dense<0.000000e+00> : vector<48x128xf32>
    %11 = tpu.matmul %10, %0, %cst {dimension_numbers = #tpu.dot_dimension_numbers<[1], [0], [0], [1], [0, 0, 1, 1], [], []>} : vector<48x16xbf16>, vector<16x128xbf16>, vector<48x128xf32> -> vector<48x128xf32>
    %12 = arith.mulf %11, %7 : vector<48x128xf32>
    %cst_20 = arith.constant dense<0.000000e+00> : vector<48x128xf32>
    %13 = tpu.matmul %10, %1, %cst_20 {dimension_numbers = #tpu.dot_dimension_numbers<[1], [0], [0], [1], [0, 0, 1, 1], [], []>} : vector<48x16xbf16>, vector<16x128xbf16>, vector<48x128xf32> -> vector<48x128xf32>
    %14 = arith.mulf %13, %8 : vector<48x128xf32>
    %15 = arith.addf %12, %14 : vector<48x128xf32>
    %cst_21 = arith.constant dense<0.000000e+00> : vector<48x128xf32>
    %16 = tpu.matmul %10, %2, %cst_21 {dimension_numbers = #tpu.dot_dimension_numbers<[1], [0], [0], [1], [0, 0, 1, 1], [], []>} : vector<48x16xbf16>, vector<16x128xbf16>, vector<48x128xf32> -> vector<48x128xf32>
    %17 = arith.mulf %16, %7 : vector<48x128xf32>
    %cst_22 = arith.constant dense<0.000000e+00> : vector<48x128xf32>
    %18 = tpu.matmul %10, %3, %cst_22 {dimension_numbers = #tpu.dot_dimension_numbers<[1], [0], [0], [1], [0, 0, 1, 1], [], []>} : vector<48x16xbf16>, vector<16x128xbf16>, vector<48x128xf32> -> vector<48x128xf32>
    %19 = arith.mulf %18, %8 : vector<48x128xf32>
    %20 = arith.addf %17, %19 : vector<48x128xf32>
    %cst_23 = arith.constant dense<0.000000e+00> : vector<48x128xf32>
    %21 = tpu.matmul %10, %4, %cst_23 {dimension_numbers = #tpu.dot_dimension_numbers<[1], [0], [0], [1], [0, 0, 1, 1], [], []>} : vector<48x16xbf16>, vector<16x128xbf16>, vector<48x128xf32> -> vector<48x128xf32>
    %22 = vector.extract_strided_slice %15 {offsets = [0, 0], sizes = [32, 128], strides = [1, 1]} : vector<48x128xf32> to vector<32x128xf32>
    %23 = vector.extract_strided_slice %20 {offsets = [0, 0], sizes = [32, 128], strides = [1, 1]} : vector<48x128xf32> to vector<32x128xf32>
    %24 = vector.extract_strided_slice %21 {offsets = [0, 0], sizes = [32, 128], strides = [1, 1]} : vector<48x128xf32> to vector<32x128xf32>
    %25 = vector.extract_strided_slice %22 {offsets = [0, 0], sizes = [32, 16], strides = [1, 1]} : vector<32x128xf32> to vector<32x16xf32>
    %26 = arith.truncf %25 : vector<32x16xf32> to vector<32x16xbf16>
    %27 = vector.extract_strided_slice %23 {offsets = [0, 0], sizes = [32, 16], strides = [1, 1]} : vector<32x128xf32> to vector<32x16xf32>
    %28 = arith.truncf %27 : vector<32x16xf32> to vector<32x16xbf16>
    %cst_24 = arith.constant dense<0.000000e+00> : vector<32x32xf32>
    %29 = tpu.matmul %26, %28, %cst_24 {dimension_numbers = #tpu.dot_dimension_numbers<[1], [1], [0], [0], [0, 0, 1, 0], [], []>} : vector<32x16xbf16>, vector<32x16xbf16>, vector<32x32xf32> -> vector<32x32xf32>
    %cst_25 = arith.constant dense<0xFF800000> : vector<32xf32>
    %30 = vector.multi_reduction <maximumf>, %29, %cst_25 [1] : vector<32x32xf32> to vector<32xf32>
    %31 = vector.shape_cast %30 : vector<32xf32> to vector<32x1xf32>
    %32 = vector.broadcast %31 : vector<32x1xf32> to vector<32x32xf32>
    %33 = arith.subf %29, %32 : vector<32x32xf32>
    %34 = math.exp %33 : vector<32x32xf32>
    %cst_26 = arith.constant dense<0.000000e+00> : vector<32xf32>
    %35 = vector.multi_reduction <add>, %34, %cst_26 [1] : vector<32x32xf32> to vector<32xf32>
    %36 = vector.shape_cast %35 : vector<32xf32> to vector<32x1xf32>
    %37 = tpu.reciprocal %36 {approx = true} : vector<32x1xf32> -> vector<32x1xf32>
    %38 = arith.truncf %34 : vector<32x32xf32> to vector<32x32xbf16>
    %39 = vector.extract_strided_slice %24 {offsets = [0, 0], sizes = [32, 16], strides = [1, 1]} : vector<32x128xf32> to vector<32x16xf32>
    %40 = arith.truncf %39 : vector<32x16xf32> to vector<32x16xbf16>
    %cst_27 = arith.constant dense<0.000000e+00> : vector<32x16xf32>
    %41 = tpu.matmul %38, %40, %cst_27 {dimension_numbers = #tpu.dot_dimension_numbers<[1], [0], [0], [1], [0, 0, 1, 1], [], []>} : vector<32x32xbf16>, vector<32x16xbf16>, vector<32x16xf32> -> vector<32x16xf32>
    %42 = vector.broadcast %37 : vector<32x1xf32> to vector<32x16xf32>
    %43 = arith.mulf %41, %42 : vector<32x16xf32>
    %44 = arith.truncf %43 : vector<32x16xf32> to vector<32x16xbf16>
    %45 = vector.extract_strided_slice %5 {offsets = [0, 0], sizes = [16, 16], strides = [1, 1]} : vector<128x16xbf16> to vector<16x16xbf16>
    %cst_28 = arith.constant dense<0.000000e+00> : vector<32x16xf32>
    %46 = tpu.matmul %44, %45, %cst_28 {dimension_numbers = #tpu.dot_dimension_numbers<[1], [0], [0], [1], [0, 0, 1, 1], [], []>} : vector<32x16xbf16>, vector<16x16xbf16>, vector<32x16xf32> -> vector<32x16xf32>
    %47 = vector.extract_strided_slice %22 {offsets = [0, 16], sizes = [32, 16], strides = [1, 1]} : vector<32x128xf32> to vector<32x16xf32>
    %48 = arith.truncf %47 : vector<32x16xf32> to vector<32x16xbf16>
    %49 = vector.extract_strided_slice %23 {offsets = [0, 16], sizes = [32, 16], strides = [1, 1]} : vector<32x128xf32> to vector<32x16xf32>
    %50 = arith.truncf %49 : vector<32x16xf32> to vector<32x16xbf16>
    %cst_29 = arith.constant dense<0.000000e+00> : vector<32x32xf32>
    %51 = tpu.matmul %48, %50, %cst_29 {dimension_numbers = #tpu.dot_dimension_numbers<[1], [1], [0], [0], [0, 0, 1, 0], [], []>} : vector<32x16xbf16>, vector<32x16xbf16>, vector<32x32xf32> -> vector<32x32xf32>
    %cst_30 = arith.constant dense<0xFF800000> : vector<32xf32>
    %52 = vector.multi_reduction <maximumf>, %51, %cst_30 [1] : vector<32x32xf32> to vector<32xf32>
    %53 = vector.shape_cast %52 : vector<32xf32> to vector<32x1xf32>
    %54 = vector.broadcast %53 : vector<32x1xf32> to vector<32x32xf32>
    %55 = arith.subf %51, %54 : vector<32x32xf32>
    %56 = math.exp %55 : vector<32x32xf32>
    %cst_31 = arith.constant dense<0.000000e+00> : vector<32xf32>
    %57 = vector.multi_reduction <add>, %56, %cst_31 [1] : vector<32x32xf32> to vector<32xf32>
    %58 = vector.shape_cast %57 : vector<32xf32> to vector<32x1xf32>
    %59 = tpu.reciprocal %58 {approx = true} : vector<32x1xf32> -> vector<32x1xf32>
    %60 = arith.truncf %56 : vector<32x32xf32> to vector<32x32xbf16>
    %61 = vector.extract_strided_slice %24 {offsets = [0, 16], sizes = [32, 16], strides = [1, 1]} : vector<32x128xf32> to vector<32x16xf32>
    %62 = arith.truncf %61 : vector<32x16xf32> to vector<32x16xbf16>
    %cst_32 = arith.constant dense<0.000000e+00> : vector<32x16xf32>
    %63 = tpu.matmul %60, %62, %cst_32 {dimension_numbers = #tpu.dot_dimension_numbers<[1], [0], [0], [1], [0, 0, 1, 1], [], []>} : vector<32x32xbf16>, vector<32x16xbf16>, vector<32x16xf32> -> vector<32x16xf32>
    %64 = vector.broadcast %59 : vector<32x1xf32> to vector<32x16xf32>
    %65 = arith.mulf %63, %64 : vector<32x16xf32>
    %66 = arith.truncf %65 : vector<32x16xf32> to vector<32x16xbf16>
    %67 = vector.extract_strided_slice %5 {offsets = [16, 0], sizes = [16, 16], strides = [1, 1]} : vector<128x16xbf16> to vector<16x16xbf16>
    %cst_33 = arith.constant dense<0.000000e+00> : vector<32x16xf32>
    %68 = tpu.matmul %66, %67, %cst_33 {dimension_numbers = #tpu.dot_dimension_numbers<[1], [0], [0], [1], [0, 0, 1, 1], [], []>} : vector<32x16xbf16>, vector<16x16xbf16>, vector<32x16xf32> -> vector<32x16xf32>
    %69 = arith.addf %46, %68 : vector<32x16xf32>
    %70 = vector.extract_strided_slice %22 {offsets = [0, 32], sizes = [32, 16], strides = [1, 1]} : vector<32x128xf32> to vector<32x16xf32>
    %71 = arith.truncf %70 : vector<32x16xf32> to vector<32x16xbf16>
    %72 = vector.extract_strided_slice %23 {offsets = [0, 32], sizes = [32, 16], strides = [1, 1]} : vector<32x128xf32> to vector<32x16xf32>
    %73 = arith.truncf %72 : vector<32x16xf32> to vector<32x16xbf16>
    %cst_34 = arith.constant dense<0.000000e+00> : vector<32x32xf32>
    %74 = tpu.matmul %71, %73, %cst_34 {dimension_numbers = #tpu.dot_dimension_numbers<[1], [1], [0], [0], [0, 0, 1, 0], [], []>} : vector<32x16xbf16>, vector<32x16xbf16>, vector<32x32xf32> -> vector<32x32xf32>
    %cst_35 = arith.constant dense<0xFF800000> : vector<32xf32>
    %75 = vector.multi_reduction <maximumf>, %74, %cst_35 [1] : vector<32x32xf32> to vector<32xf32>
    %76 = vector.shape_cast %75 : vector<32xf32> to vector<32x1xf32>
    %77 = vector.broadcast %76 : vector<32x1xf32> to vector<32x32xf32>
    %78 = arith.subf %74, %77 : vector<32x32xf32>
    %79 = math.exp %78 : vector<32x32xf32>
    %cst_36 = arith.constant dense<0.000000e+00> : vector<32xf32>
    %80 = vector.multi_reduction <add>, %79, %cst_36 [1] : vector<32x32xf32> to vector<32xf32>
    %81 = vector.shape_cast %80 : vector<32xf32> to vector<32x1xf32>
    %82 = tpu.reciprocal %81 {approx = true} : vector<32x1xf32> -> vector<32x1xf32>
    %83 = arith.truncf %79 : vector<32x32xf32> to vector<32x32xbf16>
    %84 = vector.extract_strided_slice %24 {offsets = [0, 32], sizes = [32, 16], strides = [1, 1]} : vector<32x128xf32> to vector<32x16xf32>
    %85 = arith.truncf %84 : vector<32x16xf32> to vector<32x16xbf16>
    %cst_37 = arith.constant dense<0.000000e+00> : vector<32x16xf32>
    %86 = tpu.matmul %83, %85, %cst_37 {dimension_numbers = #tpu.dot_dimension_numbers<[1], [0], [0], [1], [0, 0, 1, 1], [], []>} : vector<32x32xbf16>, vector<32x16xbf16>, vector<32x16xf32> -> vector<32x16xf32>
    %87 = vector.broadcast %82 : vector<32x1xf32> to vector<32x16xf32>
    %88 = arith.mulf %86, %87 : vector<32x16xf32>
    %89 = arith.truncf %88 : vector<32x16xf32> to vector<32x16xbf16>
    %90 = vector.extract_strided_slice %5 {offsets = [32, 0], sizes = [16, 16], strides = [1, 1]} : vector<128x16xbf16> to vector<16x16xbf16>
    %cst_38 = arith.constant dense<0.000000e+00> : vector<32x16xf32>
    %91 = tpu.matmul %89, %90, %cst_38 {dimension_numbers = #tpu.dot_dimension_numbers<[1], [0], [0], [1], [0, 0, 1, 1], [], []>} : vector<32x16xbf16>, vector<16x16xbf16>, vector<32x16xf32> -> vector<32x16xf32>
    %92 = arith.addf %69, %91 : vector<32x16xf32>
    %93 = vector.extract_strided_slice %22 {offsets = [0, 48], sizes = [32, 16], strides = [1, 1]} : vector<32x128xf32> to vector<32x16xf32>
    %94 = arith.truncf %93 : vector<32x16xf32> to vector<32x16xbf16>
    %95 = vector.extract_strided_slice %23 {offsets = [0, 48], sizes = [32, 16], strides = [1, 1]} : vector<32x128xf32> to vector<32x16xf32>
    %96 = arith.truncf %95 : vector<32x16xf32> to vector<32x16xbf16>
    %cst_39 = arith.constant dense<0.000000e+00> : vector<32x32xf32>
    %97 = tpu.matmul %94, %96, %cst_39 {dimension_numbers = #tpu.dot_dimension_numbers<[1], [1], [0], [0], [0, 0, 1, 0], [], []>} : vector<32x16xbf16>, vector<32x16xbf16>, vector<32x32xf32> -> vector<32x32xf32>
    %cst_40 = arith.constant dense<0xFF800000> : vector<32xf32>
    %98 = vector.multi_reduction <maximumf>, %97, %cst_40 [1] : vector<32x32xf32> to vector<32xf32>
    %99 = vector.shape_cast %98 : vector<32xf32> to vector<32x1xf32>
    %100 = vector.broadcast %99 : vector<32x1xf32> to vector<32x32xf32>
    %101 = arith.subf %97, %100 : vector<32x32xf32>
    %102 = math.exp %101 : vector<32x32xf32>
    %cst_41 = arith.constant dense<0.000000e+00> : vector<32xf32>
    %103 = vector.multi_reduction <add>, %102, %cst_41 [1] : vector<32x32xf32> to vector<32xf32>
    %104 = vector.shape_cast %103 : vector<32xf32> to vector<32x1xf32>
    %105 = tpu.reciprocal %104 {approx = true} : vector<32x1xf32> -> vector<32x1xf32>
    %106 = arith.truncf %102 : vector<32x32xf32> to vector<32x32xbf16>
    %107 = vector.extract_strided_slice %24 {offsets = [0, 48], sizes = [32, 16], strides = [1, 1]} : vector<32x128xf32> to vector<32x16xf32>
    %108 = arith.truncf %107 : vector<32x16xf32> to vector<32x16xbf16>
    %cst_42 = arith.constant dense<0.000000e+00> : vector<32x16xf32>
    %109 = tpu.matmul %106, %108, %cst_42 {dimension_numbers = #tpu.dot_dimension_numbers<[1], [0], [0], [1], [0, 0, 1, 1], [], []>} : vector<32x32xbf16>, vector<32x16xbf16>, vector<32x16xf32> -> vector<32x16xf32>
    %110 = vector.broadcast %105 : vector<32x1xf32> to vector<32x16xf32>
    %111 = arith.mulf %109, %110 : vector<32x16xf32>
    %112 = arith.truncf %111 : vector<32x16xf32> to vector<32x16xbf16>
    %113 = vector.extract_strided_slice %5 {offsets = [48, 0], sizes = [16, 16], strides = [1, 1]} : vector<128x16xbf16> to vector<16x16xbf16>
    %cst_43 = arith.constant dense<0.000000e+00> : vector<32x16xf32>
    %114 = tpu.matmul %112, %113, %cst_43 {dimension_numbers = #tpu.dot_dimension_numbers<[1], [0], [0], [1], [0, 0, 1, 1], [], []>} : vector<32x16xbf16>, vector<16x16xbf16>, vector<32x16xf32> -> vector<32x16xf32>
    %115 = arith.addf %92, %114 : vector<32x16xf32>
    %116 = vector.extract_strided_slice %22 {offsets = [0, 64], sizes = [32, 16], strides = [1, 1]} : vector<32x128xf32> to vector<32x16xf32>
    %117 = arith.truncf %116 : vector<32x16xf32> to vector<32x16xbf16>
    %118 = vector.extract_strided_slice %23 {offsets = [0, 64], sizes = [32, 16], strides = [1, 1]} : vector<32x128xf32> to vector<32x16xf32>
    %119 = arith.truncf %118 : vector<32x16xf32> to vector<32x16xbf16>
    %cst_44 = arith.constant dense<0.000000e+00> : vector<32x32xf32>
    %120 = tpu.matmul %117, %119, %cst_44 {dimension_numbers = #tpu.dot_dimension_numbers<[1], [1], [0], [0], [0, 0, 1, 0], [], []>} : vector<32x16xbf16>, vector<32x16xbf16>, vector<32x32xf32> -> vector<32x32xf32>
    %cst_45 = arith.constant dense<0xFF800000> : vector<32xf32>
    %121 = vector.multi_reduction <maximumf>, %120, %cst_45 [1] : vector<32x32xf32> to vector<32xf32>
    %122 = vector.shape_cast %121 : vector<32xf32> to vector<32x1xf32>
    %123 = vector.broadcast %122 : vector<32x1xf32> to vector<32x32xf32>
    %124 = arith.subf %120, %123 : vector<32x32xf32>
    %125 = math.exp %124 : vector<32x32xf32>
    %cst_46 = arith.constant dense<0.000000e+00> : vector<32xf32>
    %126 = vector.multi_reduction <add>, %125, %cst_46 [1] : vector<32x32xf32> to vector<32xf32>
    %127 = vector.shape_cast %126 : vector<32xf32> to vector<32x1xf32>
    %128 = tpu.reciprocal %127 {approx = true} : vector<32x1xf32> -> vector<32x1xf32>
    %129 = arith.truncf %125 : vector<32x32xf32> to vector<32x32xbf16>
    %130 = vector.extract_strided_slice %24 {offsets = [0, 64], sizes = [32, 16], strides = [1, 1]} : vector<32x128xf32> to vector<32x16xf32>
    %131 = arith.truncf %130 : vector<32x16xf32> to vector<32x16xbf16>
    %cst_47 = arith.constant dense<0.000000e+00> : vector<32x16xf32>
    %132 = tpu.matmul %129, %131, %cst_47 {dimension_numbers = #tpu.dot_dimension_numbers<[1], [0], [0], [1], [0, 0, 1, 1], [], []>} : vector<32x32xbf16>, vector<32x16xbf16>, vector<32x16xf32> -> vector<32x16xf32>
    %133 = vector.broadcast %128 : vector<32x1xf32> to vector<32x16xf32>
    %134 = arith.mulf %132, %133 : vector<32x16xf32>
    %135 = arith.truncf %134 : vector<32x16xf32> to vector<32x16xbf16>
    %136 = vector.extract_strided_slice %5 {offsets = [64, 0], sizes = [16, 16], strides = [1, 1]} : vector<128x16xbf16> to vector<16x16xbf16>
    %cst_48 = arith.constant dense<0.000000e+00> : vector<32x16xf32>
    %137 = tpu.matmul %135, %136, %cst_48 {dimension_numbers = #tpu.dot_dimension_numbers<[1], [0], [0], [1], [0, 0, 1, 1], [], []>} : vector<32x16xbf16>, vector<16x16xbf16>, vector<32x16xf32> -> vector<32x16xf32>
    %138 = arith.addf %115, %137 : vector<32x16xf32>
    %139 = vector.extract_strided_slice %22 {offsets = [0, 80], sizes = [32, 16], strides = [1, 1]} : vector<32x128xf32> to vector<32x16xf32>
    %140 = arith.truncf %139 : vector<32x16xf32> to vector<32x16xbf16>
    %141 = vector.extract_strided_slice %23 {offsets = [0, 80], sizes = [32, 16], strides = [1, 1]} : vector<32x128xf32> to vector<32x16xf32>
    %142 = arith.truncf %141 : vector<32x16xf32> to vector<32x16xbf16>
    %cst_49 = arith.constant dense<0.000000e+00> : vector<32x32xf32>
    %143 = tpu.matmul %140, %142, %cst_49 {dimension_numbers = #tpu.dot_dimension_numbers<[1], [1], [0], [0], [0, 0, 1, 0], [], []>} : vector<32x16xbf16>, vector<32x16xbf16>, vector<32x32xf32> -> vector<32x32xf32>
    %cst_50 = arith.constant dense<0xFF800000> : vector<32xf32>
    %144 = vector.multi_reduction <maximumf>, %143, %cst_50 [1] : vector<32x32xf32> to vector<32xf32>
    %145 = vector.shape_cast %144 : vector<32xf32> to vector<32x1xf32>
    %146 = vector.broadcast %145 : vector<32x1xf32> to vector<32x32xf32>
    %147 = arith.subf %143, %146 : vector<32x32xf32>
    %148 = math.exp %147 : vector<32x32xf32>
    %cst_51 = arith.constant dense<0.000000e+00> : vector<32xf32>
    %149 = vector.multi_reduction <add>, %148, %cst_51 [1] : vector<32x32xf32> to vector<32xf32>
    %150 = vector.shape_cast %149 : vector<32xf32> to vector<32x1xf32>
    %151 = tpu.reciprocal %150 {approx = true} : vector<32x1xf32> -> vector<32x1xf32>
    %152 = arith.truncf %148 : vector<32x32xf32> to vector<32x32xbf16>
    %153 = vector.extract_strided_slice %24 {offsets = [0, 80], sizes = [32, 16], strides = [1, 1]} : vector<32x128xf32> to vector<32x16xf32>
    %154 = arith.truncf %153 : vector<32x16xf32> to vector<32x16xbf16>
    %cst_52 = arith.constant dense<0.000000e+00> : vector<32x16xf32>
    %155 = tpu.matmul %152, %154, %cst_52 {dimension_numbers = #tpu.dot_dimension_numbers<[1], [0], [0], [1], [0, 0, 1, 1], [], []>} : vector<32x32xbf16>, vector<32x16xbf16>, vector<32x16xf32> -> vector<32x16xf32>
    %156 = vector.broadcast %151 : vector<32x1xf32> to vector<32x16xf32>
    %157 = arith.mulf %155, %156 : vector<32x16xf32>
    %158 = arith.truncf %157 : vector<32x16xf32> to vector<32x16xbf16>
    %159 = vector.extract_strided_slice %5 {offsets = [80, 0], sizes = [16, 16], strides = [1, 1]} : vector<128x16xbf16> to vector<16x16xbf16>
    %cst_53 = arith.constant dense<0.000000e+00> : vector<32x16xf32>
    %160 = tpu.matmul %158, %159, %cst_53 {dimension_numbers = #tpu.dot_dimension_numbers<[1], [0], [0], [1], [0, 0, 1, 1], [], []>} : vector<32x16xbf16>, vector<16x16xbf16>, vector<32x16xf32> -> vector<32x16xf32>
    %161 = arith.addf %138, %160 : vector<32x16xf32>
    %162 = vector.extract_strided_slice %22 {offsets = [0, 96], sizes = [32, 16], strides = [1, 1]} : vector<32x128xf32> to vector<32x16xf32>
    %163 = arith.truncf %162 : vector<32x16xf32> to vector<32x16xbf16>
    %164 = vector.extract_strided_slice %23 {offsets = [0, 96], sizes = [32, 16], strides = [1, 1]} : vector<32x128xf32> to vector<32x16xf32>
    %165 = arith.truncf %164 : vector<32x16xf32> to vector<32x16xbf16>
    %cst_54 = arith.constant dense<0.000000e+00> : vector<32x32xf32>
    %166 = tpu.matmul %163, %165, %cst_54 {dimension_numbers = #tpu.dot_dimension_numbers<[1], [1], [0], [0], [0, 0, 1, 0], [], []>} : vector<32x16xbf16>, vector<32x16xbf16>, vector<32x32xf32> -> vector<32x32xf32>
    %cst_55 = arith.constant dense<0xFF800000> : vector<32xf32>
    %167 = vector.multi_reduction <maximumf>, %166, %cst_55 [1] : vector<32x32xf32> to vector<32xf32>
    %168 = vector.shape_cast %167 : vector<32xf32> to vector<32x1xf32>
    %169 = vector.broadcast %168 : vector<32x1xf32> to vector<32x32xf32>
    %170 = arith.subf %166, %169 : vector<32x32xf32>
    %171 = math.exp %170 : vector<32x32xf32>
    %cst_56 = arith.constant dense<0.000000e+00> : vector<32xf32>
    %172 = vector.multi_reduction <add>, %171, %cst_56 [1] : vector<32x32xf32> to vector<32xf32>
    %173 = vector.shape_cast %172 : vector<32xf32> to vector<32x1xf32>
    %174 = tpu.reciprocal %173 {approx = true} : vector<32x1xf32> -> vector<32x1xf32>
    %175 = arith.truncf %171 : vector<32x32xf32> to vector<32x32xbf16>
    %176 = vector.extract_strided_slice %24 {offsets = [0, 96], sizes = [32, 16], strides = [1, 1]} : vector<32x128xf32> to vector<32x16xf32>
    %177 = arith.truncf %176 : vector<32x16xf32> to vector<32x16xbf16>
    %cst_57 = arith.constant dense<0.000000e+00> : vector<32x16xf32>
    %178 = tpu.matmul %175, %177, %cst_57 {dimension_numbers = #tpu.dot_dimension_numbers<[1], [0], [0], [1], [0, 0, 1, 1], [], []>} : vector<32x32xbf16>, vector<32x16xbf16>, vector<32x16xf32> -> vector<32x16xf32>
    %179 = vector.broadcast %174 : vector<32x1xf32> to vector<32x16xf32>
    %180 = arith.mulf %178, %179 : vector<32x16xf32>
    %181 = arith.truncf %180 : vector<32x16xf32> to vector<32x16xbf16>
    %182 = vector.extract_strided_slice %5 {offsets = [96, 0], sizes = [16, 16], strides = [1, 1]} : vector<128x16xbf16> to vector<16x16xbf16>
    %cst_58 = arith.constant dense<0.000000e+00> : vector<32x16xf32>
    %183 = tpu.matmul %181, %182, %cst_58 {dimension_numbers = #tpu.dot_dimension_numbers<[1], [0], [0], [1], [0, 0, 1, 1], [], []>} : vector<32x16xbf16>, vector<16x16xbf16>, vector<32x16xf32> -> vector<32x16xf32>
    %184 = arith.addf %161, %183 : vector<32x16xf32>
    %185 = vector.extract_strided_slice %22 {offsets = [0, 112], sizes = [32, 16], strides = [1, 1]} : vector<32x128xf32> to vector<32x16xf32>
    %186 = arith.truncf %185 : vector<32x16xf32> to vector<32x16xbf16>
    %187 = vector.extract_strided_slice %23 {offsets = [0, 112], sizes = [32, 16], strides = [1, 1]} : vector<32x128xf32> to vector<32x16xf32>
    %188 = arith.truncf %187 : vector<32x16xf32> to vector<32x16xbf16>
    %cst_59 = arith.constant dense<0.000000e+00> : vector<32x32xf32>
    %189 = tpu.matmul %186, %188, %cst_59 {dimension_numbers = #tpu.dot_dimension_numbers<[1], [1], [0], [0], [0, 0, 1, 0], [], []>} : vector<32x16xbf16>, vector<32x16xbf16>, vector<32x32xf32> -> vector<32x32xf32>
    %cst_60 = arith.constant dense<0xFF800000> : vector<32xf32>
    %190 = vector.multi_reduction <maximumf>, %189, %cst_60 [1] : vector<32x32xf32> to vector<32xf32>
    %191 = vector.shape_cast %190 : vector<32xf32> to vector<32x1xf32>
    %192 = vector.broadcast %191 : vector<32x1xf32> to vector<32x32xf32>
    %193 = arith.subf %189, %192 : vector<32x32xf32>
    %194 = math.exp %193 : vector<32x32xf32>
    %cst_61 = arith.constant dense<0.000000e+00> : vector<32xf32>
    %195 = vector.multi_reduction <add>, %194, %cst_61 [1] : vector<32x32xf32> to vector<32xf32>
    %196 = vector.shape_cast %195 : vector<32xf32> to vector<32x1xf32>
    %197 = tpu.reciprocal %196 {approx = true} : vector<32x1xf32> -> vector<32x1xf32>
    %198 = arith.truncf %194 : vector<32x32xf32> to vector<32x32xbf16>
    %199 = vector.extract_strided_slice %24 {offsets = [0, 112], sizes = [32, 16], strides = [1, 1]} : vector<32x128xf32> to vector<32x16xf32>
    %200 = arith.truncf %199 : vector<32x16xf32> to vector<32x16xbf16>
    %cst_62 = arith.constant dense<0.000000e+00> : vector<32x16xf32>
    %201 = tpu.matmul %198, %200, %cst_62 {dimension_numbers = #tpu.dot_dimension_numbers<[1], [0], [0], [1], [0, 0, 1, 1], [], []>} : vector<32x32xbf16>, vector<32x16xbf16>, vector<32x16xf32> -> vector<32x16xf32>
    %202 = vector.broadcast %197 : vector<32x1xf32> to vector<32x16xf32>
    %203 = arith.mulf %201, %202 : vector<32x16xf32>
    %204 = arith.truncf %203 : vector<32x16xf32> to vector<32x16xbf16>
    %205 = vector.extract_strided_slice %5 {offsets = [112, 0], sizes = [16, 16], strides = [1, 1]} : vector<128x16xbf16> to vector<16x16xbf16>
    %cst_63 = arith.constant dense<0.000000e+00> : vector<32x16xf32>
    %206 = tpu.matmul %204, %205, %cst_63 {dimension_numbers = #tpu.dot_dimension_numbers<[1], [0], [0], [1], [0, 0, 1, 1], [], []>} : vector<32x16xbf16>, vector<16x16xbf16>, vector<32x16xf32> -> vector<32x16xf32>
    %207 = arith.addf %184, %206 : vector<32x16xf32>
    %208 = vector.broadcast %6 : vector<1x16xf32> to vector<32x16xf32>
    %209 = arith.addf %207, %208 : vector<32x16xf32>
    %210 = vector.extract_strided_slice %15 {offsets = [32, 0], sizes = [16, 128], strides = [1, 1]} : vector<48x128xf32> to vector<16x128xf32>
    %211 = vector.extract_strided_slice %20 {offsets = [32, 0], sizes = [16, 128], strides = [1, 1]} : vector<48x128xf32> to vector<16x128xf32>
    %212 = vector.extract_strided_slice %21 {offsets = [32, 0], sizes = [16, 128], strides = [1, 1]} : vector<48x128xf32> to vector<16x128xf32>
    %213 = vector.extract_strided_slice %210 {offsets = [0, 0], sizes = [16, 16], strides = [1, 1]} : vector<16x128xf32> to vector<16x16xf32>
    %214 = arith.truncf %213 : vector<16x16xf32> to vector<16x16xbf16>
    %215 = vector.extract_strided_slice %211 {offsets = [0, 0], sizes = [16, 16], strides = [1, 1]} : vector<16x128xf32> to vector<16x16xf32>
    %216 = arith.truncf %215 : vector<16x16xf32> to vector<16x16xbf16>
    %cst_64 = arith.constant dense<0.000000e+00> : vector<16x16xf32>
    %217 = tpu.matmul %214, %216, %cst_64 {dimension_numbers = #tpu.dot_dimension_numbers<[1], [1], [0], [0], [0, 0, 1, 0], [], []>} : vector<16x16xbf16>, vector<16x16xbf16>, vector<16x16xf32> -> vector<16x16xf32>
    %cst_65 = arith.constant dense<0xFF800000> : vector<16xf32>
    %218 = vector.multi_reduction <maximumf>, %217, %cst_65 [1] : vector<16x16xf32> to vector<16xf32>
    %219 = vector.shape_cast %218 : vector<16xf32> to vector<16x1xf32>
    %220 = vector.broadcast %219 : vector<16x1xf32> to vector<16x16xf32>
    %221 = arith.subf %217, %220 : vector<16x16xf32>
    %222 = math.exp %221 : vector<16x16xf32>
    %cst_66 = arith.constant dense<0.000000e+00> : vector<16xf32>
    %223 = vector.multi_reduction <add>, %222, %cst_66 [1] : vector<16x16xf32> to vector<16xf32>
    %224 = vector.shape_cast %223 : vector<16xf32> to vector<16x1xf32>
    %225 = tpu.reciprocal %224 {approx = true} : vector<16x1xf32> -> vector<16x1xf32>
    %226 = arith.truncf %222 : vector<16x16xf32> to vector<16x16xbf16>
    %227 = vector.extract_strided_slice %212 {offsets = [0, 0], sizes = [16, 16], strides = [1, 1]} : vector<16x128xf32> to vector<16x16xf32>
    %228 = arith.truncf %227 : vector<16x16xf32> to vector<16x16xbf16>
    %cst_67 = arith.constant dense<0.000000e+00> : vector<16x16xf32>
    %229 = tpu.matmul %226, %228, %cst_67 {dimension_numbers = #tpu.dot_dimension_numbers<[1], [0], [0], [1], [0, 0, 1, 1], [], []>} : vector<16x16xbf16>, vector<16x16xbf16>, vector<16x16xf32> -> vector<16x16xf32>
    %230 = vector.broadcast %225 : vector<16x1xf32> to vector<16x16xf32>
    %231 = arith.mulf %229, %230 : vector<16x16xf32>
    %232 = arith.truncf %231 : vector<16x16xf32> to vector<16x16xbf16>
    %233 = vector.extract_strided_slice %5 {offsets = [0, 0], sizes = [16, 16], strides = [1, 1]} : vector<128x16xbf16> to vector<16x16xbf16>
    %cst_68 = arith.constant dense<0.000000e+00> : vector<16x16xf32>
    %234 = tpu.matmul %232, %233, %cst_68 {dimension_numbers = #tpu.dot_dimension_numbers<[1], [0], [0], [1], [0, 0, 1, 1], [], []>} : vector<16x16xbf16>, vector<16x16xbf16>, vector<16x16xf32> -> vector<16x16xf32>
    %235 = vector.extract_strided_slice %210 {offsets = [0, 16], sizes = [16, 16], strides = [1, 1]} : vector<16x128xf32> to vector<16x16xf32>
    %236 = arith.truncf %235 : vector<16x16xf32> to vector<16x16xbf16>
    %237 = vector.extract_strided_slice %211 {offsets = [0, 16], sizes = [16, 16], strides = [1, 1]} : vector<16x128xf32> to vector<16x16xf32>
    %238 = arith.truncf %237 : vector<16x16xf32> to vector<16x16xbf16>
    %cst_69 = arith.constant dense<0.000000e+00> : vector<16x16xf32>
    %239 = tpu.matmul %236, %238, %cst_69 {dimension_numbers = #tpu.dot_dimension_numbers<[1], [1], [0], [0], [0, 0, 1, 0], [], []>} : vector<16x16xbf16>, vector<16x16xbf16>, vector<16x16xf32> -> vector<16x16xf32>
    %cst_70 = arith.constant dense<0xFF800000> : vector<16xf32>
    %240 = vector.multi_reduction <maximumf>, %239, %cst_70 [1] : vector<16x16xf32> to vector<16xf32>
    %241 = vector.shape_cast %240 : vector<16xf32> to vector<16x1xf32>
    %242 = vector.broadcast %241 : vector<16x1xf32> to vector<16x16xf32>
    %243 = arith.subf %239, %242 : vector<16x16xf32>
    %244 = math.exp %243 : vector<16x16xf32>
    %cst_71 = arith.constant dense<0.000000e+00> : vector<16xf32>
    %245 = vector.multi_reduction <add>, %244, %cst_71 [1] : vector<16x16xf32> to vector<16xf32>
    %246 = vector.shape_cast %245 : vector<16xf32> to vector<16x1xf32>
    %247 = tpu.reciprocal %246 {approx = true} : vector<16x1xf32> -> vector<16x1xf32>
    %248 = arith.truncf %244 : vector<16x16xf32> to vector<16x16xbf16>
    %249 = vector.extract_strided_slice %212 {offsets = [0, 16], sizes = [16, 16], strides = [1, 1]} : vector<16x128xf32> to vector<16x16xf32>
    %250 = arith.truncf %249 : vector<16x16xf32> to vector<16x16xbf16>
    %cst_72 = arith.constant dense<0.000000e+00> : vector<16x16xf32>
    %251 = tpu.matmul %248, %250, %cst_72 {dimension_numbers = #tpu.dot_dimension_numbers<[1], [0], [0], [1], [0, 0, 1, 1], [], []>} : vector<16x16xbf16>, vector<16x16xbf16>, vector<16x16xf32> -> vector<16x16xf32>
    %252 = vector.broadcast %247 : vector<16x1xf32> to vector<16x16xf32>
    %253 = arith.mulf %251, %252 : vector<16x16xf32>
    %254 = arith.truncf %253 : vector<16x16xf32> to vector<16x16xbf16>
    %255 = vector.extract_strided_slice %5 {offsets = [16, 0], sizes = [16, 16], strides = [1, 1]} : vector<128x16xbf16> to vector<16x16xbf16>
    %cst_73 = arith.constant dense<0.000000e+00> : vector<16x16xf32>
    %256 = tpu.matmul %254, %255, %cst_73 {dimension_numbers = #tpu.dot_dimension_numbers<[1], [0], [0], [1], [0, 0, 1, 1], [], []>} : vector<16x16xbf16>, vector<16x16xbf16>, vector<16x16xf32> -> vector<16x16xf32>
    %257 = arith.addf %234, %256 : vector<16x16xf32>
    %258 = vector.extract_strided_slice %210 {offsets = [0, 32], sizes = [16, 16], strides = [1, 1]} : vector<16x128xf32> to vector<16x16xf32>
    %259 = arith.truncf %258 : vector<16x16xf32> to vector<16x16xbf16>
    %260 = vector.extract_strided_slice %211 {offsets = [0, 32], sizes = [16, 16], strides = [1, 1]} : vector<16x128xf32> to vector<16x16xf32>
    %261 = arith.truncf %260 : vector<16x16xf32> to vector<16x16xbf16>
    %cst_74 = arith.constant dense<0.000000e+00> : vector<16x16xf32>
    %262 = tpu.matmul %259, %261, %cst_74 {dimension_numbers = #tpu.dot_dimension_numbers<[1], [1], [0], [0], [0, 0, 1, 0], [], []>} : vector<16x16xbf16>, vector<16x16xbf16>, vector<16x16xf32> -> vector<16x16xf32>
    %cst_75 = arith.constant dense<0xFF800000> : vector<16xf32>
    %263 = vector.multi_reduction <maximumf>, %262, %cst_75 [1] : vector<16x16xf32> to vector<16xf32>
    %264 = vector.shape_cast %263 : vector<16xf32> to vector<16x1xf32>
    %265 = vector.broadcast %264 : vector<16x1xf32> to vector<16x16xf32>
    %266 = arith.subf %262, %265 : vector<16x16xf32>
    %267 = math.exp %266 : vector<16x16xf32>
    %cst_76 = arith.constant dense<0.000000e+00> : vector<16xf32>
    %268 = vector.multi_reduction <add>, %267, %cst_76 [1] : vector<16x16xf32> to vector<16xf32>
    %269 = vector.shape_cast %268 : vector<16xf32> to vector<16x1xf32>
    %270 = tpu.reciprocal %269 {approx = true} : vector<16x1xf32> -> vector<16x1xf32>
    %271 = arith.truncf %267 : vector<16x16xf32> to vector<16x16xbf16>
    %272 = vector.extract_strided_slice %212 {offsets = [0, 32], sizes = [16, 16], strides = [1, 1]} : vector<16x128xf32> to vector<16x16xf32>
    %273 = arith.truncf %272 : vector<16x16xf32> to vector<16x16xbf16>
    %cst_77 = arith.constant dense<0.000000e+00> : vector<16x16xf32>
    %274 = tpu.matmul %271, %273, %cst_77 {dimension_numbers = #tpu.dot_dimension_numbers<[1], [0], [0], [1], [0, 0, 1, 1], [], []>} : vector<16x16xbf16>, vector<16x16xbf16>, vector<16x16xf32> -> vector<16x16xf32>
    %275 = vector.broadcast %270 : vector<16x1xf32> to vector<16x16xf32>
    %276 = arith.mulf %274, %275 : vector<16x16xf32>
    %277 = arith.truncf %276 : vector<16x16xf32> to vector<16x16xbf16>
    %278 = vector.extract_strided_slice %5 {offsets = [32, 0], sizes = [16, 16], strides = [1, 1]} : vector<128x16xbf16> to vector<16x16xbf16>
    %cst_78 = arith.constant dense<0.000000e+00> : vector<16x16xf32>
    %279 = tpu.matmul %277, %278, %cst_78 {dimension_numbers = #tpu.dot_dimension_numbers<[1], [0], [0], [1], [0, 0, 1, 1], [], []>} : vector<16x16xbf16>, vector<16x16xbf16>, vector<16x16xf32> -> vector<16x16xf32>
    %280 = arith.addf %257, %279 : vector<16x16xf32>
    %281 = vector.extract_strided_slice %210 {offsets = [0, 48], sizes = [16, 16], strides = [1, 1]} : vector<16x128xf32> to vector<16x16xf32>
    %282 = arith.truncf %281 : vector<16x16xf32> to vector<16x16xbf16>
    %283 = vector.extract_strided_slice %211 {offsets = [0, 48], sizes = [16, 16], strides = [1, 1]} : vector<16x128xf32> to vector<16x16xf32>
    %284 = arith.truncf %283 : vector<16x16xf32> to vector<16x16xbf16>
    %cst_79 = arith.constant dense<0.000000e+00> : vector<16x16xf32>
    %285 = tpu.matmul %282, %284, %cst_79 {dimension_numbers = #tpu.dot_dimension_numbers<[1], [1], [0], [0], [0, 0, 1, 0], [], []>} : vector<16x16xbf16>, vector<16x16xbf16>, vector<16x16xf32> -> vector<16x16xf32>
    %cst_80 = arith.constant dense<0xFF800000> : vector<16xf32>
    %286 = vector.multi_reduction <maximumf>, %285, %cst_80 [1] : vector<16x16xf32> to vector<16xf32>
    %287 = vector.shape_cast %286 : vector<16xf32> to vector<16x1xf32>
    %288 = vector.broadcast %287 : vector<16x1xf32> to vector<16x16xf32>
    %289 = arith.subf %285, %288 : vector<16x16xf32>
    %290 = math.exp %289 : vector<16x16xf32>
    %cst_81 = arith.constant dense<0.000000e+00> : vector<16xf32>
    %291 = vector.multi_reduction <add>, %290, %cst_81 [1] : vector<16x16xf32> to vector<16xf32>
    %292 = vector.shape_cast %291 : vector<16xf32> to vector<16x1xf32>
    %293 = tpu.reciprocal %292 {approx = true} : vector<16x1xf32> -> vector<16x1xf32>
    %294 = arith.truncf %290 : vector<16x16xf32> to vector<16x16xbf16>
    %295 = vector.extract_strided_slice %212 {offsets = [0, 48], sizes = [16, 16], strides = [1, 1]} : vector<16x128xf32> to vector<16x16xf32>
    %296 = arith.truncf %295 : vector<16x16xf32> to vector<16x16xbf16>
    %cst_82 = arith.constant dense<0.000000e+00> : vector<16x16xf32>
    %297 = tpu.matmul %294, %296, %cst_82 {dimension_numbers = #tpu.dot_dimension_numbers<[1], [0], [0], [1], [0, 0, 1, 1], [], []>} : vector<16x16xbf16>, vector<16x16xbf16>, vector<16x16xf32> -> vector<16x16xf32>
    %298 = vector.broadcast %293 : vector<16x1xf32> to vector<16x16xf32>
    %299 = arith.mulf %297, %298 : vector<16x16xf32>
    %300 = arith.truncf %299 : vector<16x16xf32> to vector<16x16xbf16>
    %301 = vector.extract_strided_slice %5 {offsets = [48, 0], sizes = [16, 16], strides = [1, 1]} : vector<128x16xbf16> to vector<16x16xbf16>
    %cst_83 = arith.constant dense<0.000000e+00> : vector<16x16xf32>
    %302 = tpu.matmul %300, %301, %cst_83 {dimension_numbers = #tpu.dot_dimension_numbers<[1], [0], [0], [1], [0, 0, 1, 1], [], []>} : vector<16x16xbf16>, vector<16x16xbf16>, vector<16x16xf32> -> vector<16x16xf32>
    %303 = arith.addf %280, %302 : vector<16x16xf32>
    %304 = vector.extract_strided_slice %210 {offsets = [0, 64], sizes = [16, 16], strides = [1, 1]} : vector<16x128xf32> to vector<16x16xf32>
    %305 = arith.truncf %304 : vector<16x16xf32> to vector<16x16xbf16>
    %306 = vector.extract_strided_slice %211 {offsets = [0, 64], sizes = [16, 16], strides = [1, 1]} : vector<16x128xf32> to vector<16x16xf32>
    %307 = arith.truncf %306 : vector<16x16xf32> to vector<16x16xbf16>
    %cst_84 = arith.constant dense<0.000000e+00> : vector<16x16xf32>
    %308 = tpu.matmul %305, %307, %cst_84 {dimension_numbers = #tpu.dot_dimension_numbers<[1], [1], [0], [0], [0, 0, 1, 0], [], []>} : vector<16x16xbf16>, vector<16x16xbf16>, vector<16x16xf32> -> vector<16x16xf32>
    %cst_85 = arith.constant dense<0xFF800000> : vector<16xf32>
    %309 = vector.multi_reduction <maximumf>, %308, %cst_85 [1] : vector<16x16xf32> to vector<16xf32>
    %310 = vector.shape_cast %309 : vector<16xf32> to vector<16x1xf32>
    %311 = vector.broadcast %310 : vector<16x1xf32> to vector<16x16xf32>
    %312 = arith.subf %308, %311 : vector<16x16xf32>
    %313 = math.exp %312 : vector<16x16xf32>
    %cst_86 = arith.constant dense<0.000000e+00> : vector<16xf32>
    %314 = vector.multi_reduction <add>, %313, %cst_86 [1] : vector<16x16xf32> to vector<16xf32>
    %315 = vector.shape_cast %314 : vector<16xf32> to vector<16x1xf32>
    %316 = tpu.reciprocal %315 {approx = true} : vector<16x1xf32> -> vector<16x1xf32>
    %317 = arith.truncf %313 : vector<16x16xf32> to vector<16x16xbf16>
    %318 = vector.extract_strided_slice %212 {offsets = [0, 64], sizes = [16, 16], strides = [1, 1]} : vector<16x128xf32> to vector<16x16xf32>
    %319 = arith.truncf %318 : vector<16x16xf32> to vector<16x16xbf16>
    %cst_87 = arith.constant dense<0.000000e+00> : vector<16x16xf32>
    %320 = tpu.matmul %317, %319, %cst_87 {dimension_numbers = #tpu.dot_dimension_numbers<[1], [0], [0], [1], [0, 0, 1, 1], [], []>} : vector<16x16xbf16>, vector<16x16xbf16>, vector<16x16xf32> -> vector<16x16xf32>
    %321 = vector.broadcast %316 : vector<16x1xf32> to vector<16x16xf32>
    %322 = arith.mulf %320, %321 : vector<16x16xf32>
    %323 = arith.truncf %322 : vector<16x16xf32> to vector<16x16xbf16>
    %324 = vector.extract_strided_slice %5 {offsets = [64, 0], sizes = [16, 16], strides = [1, 1]} : vector<128x16xbf16> to vector<16x16xbf16>
    %cst_88 = arith.constant dense<0.000000e+00> : vector<16x16xf32>
    %325 = tpu.matmul %323, %324, %cst_88 {dimension_numbers = #tpu.dot_dimension_numbers<[1], [0], [0], [1], [0, 0, 1, 1], [], []>} : vector<16x16xbf16>, vector<16x16xbf16>, vector<16x16xf32> -> vector<16x16xf32>
    %326 = arith.addf %303, %325 : vector<16x16xf32>
    %327 = vector.extract_strided_slice %210 {offsets = [0, 80], sizes = [16, 16], strides = [1, 1]} : vector<16x128xf32> to vector<16x16xf32>
    %328 = arith.truncf %327 : vector<16x16xf32> to vector<16x16xbf16>
    %329 = vector.extract_strided_slice %211 {offsets = [0, 80], sizes = [16, 16], strides = [1, 1]} : vector<16x128xf32> to vector<16x16xf32>
    %330 = arith.truncf %329 : vector<16x16xf32> to vector<16x16xbf16>
    %cst_89 = arith.constant dense<0.000000e+00> : vector<16x16xf32>
    %331 = tpu.matmul %328, %330, %cst_89 {dimension_numbers = #tpu.dot_dimension_numbers<[1], [1], [0], [0], [0, 0, 1, 0], [], []>} : vector<16x16xbf16>, vector<16x16xbf16>, vector<16x16xf32> -> vector<16x16xf32>
    %cst_90 = arith.constant dense<0xFF800000> : vector<16xf32>
    %332 = vector.multi_reduction <maximumf>, %331, %cst_90 [1] : vector<16x16xf32> to vector<16xf32>
    %333 = vector.shape_cast %332 : vector<16xf32> to vector<16x1xf32>
    %334 = vector.broadcast %333 : vector<16x1xf32> to vector<16x16xf32>
    %335 = arith.subf %331, %334 : vector<16x16xf32>
    %336 = math.exp %335 : vector<16x16xf32>
    %cst_91 = arith.constant dense<0.000000e+00> : vector<16xf32>
    %337 = vector.multi_reduction <add>, %336, %cst_91 [1] : vector<16x16xf32> to vector<16xf32>
    %338 = vector.shape_cast %337 : vector<16xf32> to vector<16x1xf32>
    %339 = tpu.reciprocal %338 {approx = true} : vector<16x1xf32> -> vector<16x1xf32>
    %340 = arith.truncf %336 : vector<16x16xf32> to vector<16x16xbf16>
    %341 = vector.extract_strided_slice %212 {offsets = [0, 80], sizes = [16, 16], strides = [1, 1]} : vector<16x128xf32> to vector<16x16xf32>
    %342 = arith.truncf %341 : vector<16x16xf32> to vector<16x16xbf16>
    %cst_92 = arith.constant dense<0.000000e+00> : vector<16x16xf32>
    %343 = tpu.matmul %340, %342, %cst_92 {dimension_numbers = #tpu.dot_dimension_numbers<[1], [0], [0], [1], [0, 0, 1, 1], [], []>} : vector<16x16xbf16>, vector<16x16xbf16>, vector<16x16xf32> -> vector<16x16xf32>
    %344 = vector.broadcast %339 : vector<16x1xf32> to vector<16x16xf32>
    %345 = arith.mulf %343, %344 : vector<16x16xf32>
    %346 = arith.truncf %345 : vector<16x16xf32> to vector<16x16xbf16>
    %347 = vector.extract_strided_slice %5 {offsets = [80, 0], sizes = [16, 16], strides = [1, 1]} : vector<128x16xbf16> to vector<16x16xbf16>
    %cst_93 = arith.constant dense<0.000000e+00> : vector<16x16xf32>
    %348 = tpu.matmul %346, %347, %cst_93 {dimension_numbers = #tpu.dot_dimension_numbers<[1], [0], [0], [1], [0, 0, 1, 1], [], []>} : vector<16x16xbf16>, vector<16x16xbf16>, vector<16x16xf32> -> vector<16x16xf32>
    %349 = arith.addf %326, %348 : vector<16x16xf32>
    %350 = vector.extract_strided_slice %210 {offsets = [0, 96], sizes = [16, 16], strides = [1, 1]} : vector<16x128xf32> to vector<16x16xf32>
    %351 = arith.truncf %350 : vector<16x16xf32> to vector<16x16xbf16>
    %352 = vector.extract_strided_slice %211 {offsets = [0, 96], sizes = [16, 16], strides = [1, 1]} : vector<16x128xf32> to vector<16x16xf32>
    %353 = arith.truncf %352 : vector<16x16xf32> to vector<16x16xbf16>
    %cst_94 = arith.constant dense<0.000000e+00> : vector<16x16xf32>
    %354 = tpu.matmul %351, %353, %cst_94 {dimension_numbers = #tpu.dot_dimension_numbers<[1], [1], [0], [0], [0, 0, 1, 0], [], []>} : vector<16x16xbf16>, vector<16x16xbf16>, vector<16x16xf32> -> vector<16x16xf32>
    %cst_95 = arith.constant dense<0xFF800000> : vector<16xf32>
    %355 = vector.multi_reduction <maximumf>, %354, %cst_95 [1] : vector<16x16xf32> to vector<16xf32>
    %356 = vector.shape_cast %355 : vector<16xf32> to vector<16x1xf32>
    %357 = vector.broadcast %356 : vector<16x1xf32> to vector<16x16xf32>
    %358 = arith.subf %354, %357 : vector<16x16xf32>
    %359 = math.exp %358 : vector<16x16xf32>
    %cst_96 = arith.constant dense<0.000000e+00> : vector<16xf32>
    %360 = vector.multi_reduction <add>, %359, %cst_96 [1] : vector<16x16xf32> to vector<16xf32>
    %361 = vector.shape_cast %360 : vector<16xf32> to vector<16x1xf32>
    %362 = tpu.reciprocal %361 {approx = true} : vector<16x1xf32> -> vector<16x1xf32>
    %363 = arith.truncf %359 : vector<16x16xf32> to vector<16x16xbf16>
    %364 = vector.extract_strided_slice %212 {offsets = [0, 96], sizes = [16, 16], strides = [1, 1]} : vector<16x128xf32> to vector<16x16xf32>
    %365 = arith.truncf %364 : vector<16x16xf32> to vector<16x16xbf16>
    %cst_97 = arith.constant dense<0.000000e+00> : vector<16x16xf32>
    %366 = tpu.matmul %363, %365, %cst_97 {dimension_numbers = #tpu.dot_dimension_numbers<[1], [0], [0], [1], [0, 0, 1, 1], [], []>} : vector<16x16xbf16>, vector<16x16xbf16>, vector<16x16xf32> -> vector<16x16xf32>
    %367 = vector.broadcast %362 : vector<16x1xf32> to vector<16x16xf32>
    %368 = arith.mulf %366, %367 : vector<16x16xf32>
    %369 = arith.truncf %368 : vector<16x16xf32> to vector<16x16xbf16>
    %370 = vector.extract_strided_slice %5 {offsets = [96, 0], sizes = [16, 16], strides = [1, 1]} : vector<128x16xbf16> to vector<16x16xbf16>
    %cst_98 = arith.constant dense<0.000000e+00> : vector<16x16xf32>
    %371 = tpu.matmul %369, %370, %cst_98 {dimension_numbers = #tpu.dot_dimension_numbers<[1], [0], [0], [1], [0, 0, 1, 1], [], []>} : vector<16x16xbf16>, vector<16x16xbf16>, vector<16x16xf32> -> vector<16x16xf32>
    %372 = arith.addf %349, %371 : vector<16x16xf32>
    %373 = vector.extract_strided_slice %210 {offsets = [0, 112], sizes = [16, 16], strides = [1, 1]} : vector<16x128xf32> to vector<16x16xf32>
    %374 = arith.truncf %373 : vector<16x16xf32> to vector<16x16xbf16>
    %375 = vector.extract_strided_slice %211 {offsets = [0, 112], sizes = [16, 16], strides = [1, 1]} : vector<16x128xf32> to vector<16x16xf32>
    %376 = arith.truncf %375 : vector<16x16xf32> to vector<16x16xbf16>
    %cst_99 = arith.constant dense<0.000000e+00> : vector<16x16xf32>
    %377 = tpu.matmul %374, %376, %cst_99 {dimension_numbers = #tpu.dot_dimension_numbers<[1], [1], [0], [0], [0, 0, 1, 0], [], []>} : vector<16x16xbf16>, vector<16x16xbf16>, vector<16x16xf32> -> vector<16x16xf32>
    %cst_100 = arith.constant dense<0xFF800000> : vector<16xf32>
    %378 = vector.multi_reduction <maximumf>, %377, %cst_100 [1] : vector<16x16xf32> to vector<16xf32>
    %379 = vector.shape_cast %378 : vector<16xf32> to vector<16x1xf32>
    %380 = vector.broadcast %379 : vector<16x1xf32> to vector<16x16xf32>
    %381 = arith.subf %377, %380 : vector<16x16xf32>
    %382 = math.exp %381 : vector<16x16xf32>
    %cst_101 = arith.constant dense<0.000000e+00> : vector<16xf32>
    %383 = vector.multi_reduction <add>, %382, %cst_101 [1] : vector<16x16xf32> to vector<16xf32>
    %384 = vector.shape_cast %383 : vector<16xf32> to vector<16x1xf32>
    %385 = tpu.reciprocal %384 {approx = true} : vector<16x1xf32> -> vector<16x1xf32>
    %386 = arith.truncf %382 : vector<16x16xf32> to vector<16x16xbf16>
    %387 = vector.extract_strided_slice %212 {offsets = [0, 112], sizes = [16, 16], strides = [1, 1]} : vector<16x128xf32> to vector<16x16xf32>
    %388 = arith.truncf %387 : vector<16x16xf32> to vector<16x16xbf16>
    %cst_102 = arith.constant dense<0.000000e+00> : vector<16x16xf32>
    %389 = tpu.matmul %386, %388, %cst_102 {dimension_numbers = #tpu.dot_dimension_numbers<[1], [0], [0], [1], [0, 0, 1, 1], [], []>} : vector<16x16xbf16>, vector<16x16xbf16>, vector<16x16xf32> -> vector<16x16xf32>
    %390 = vector.broadcast %385 : vector<16x1xf32> to vector<16x16xf32>
    %391 = arith.mulf %389, %390 : vector<16x16xf32>
    %392 = arith.truncf %391 : vector<16x16xf32> to vector<16x16xbf16>
    %393 = vector.extract_strided_slice %5 {offsets = [112, 0], sizes = [16, 16], strides = [1, 1]} : vector<128x16xbf16> to vector<16x16xbf16>
    %cst_103 = arith.constant dense<0.000000e+00> : vector<16x16xf32>
    %394 = tpu.matmul %392, %393, %cst_103 {dimension_numbers = #tpu.dot_dimension_numbers<[1], [0], [0], [1], [0, 0, 1, 1], [], []>} : vector<16x16xbf16>, vector<16x16xbf16>, vector<16x16xf32> -> vector<16x16xf32>
    %395 = arith.addf %372, %394 : vector<16x16xf32>
    %396 = vector.broadcast %6 : vector<1x16xf32> to vector<16x16xf32>
    %397 = arith.addf %395, %396 : vector<16x16xf32>
    %398 = arith.truncf %209 : vector<32x16xf32> to vector<32x16xbf16>
    %399 = arith.truncf %397 : vector<16x16xf32> to vector<16x16xbf16>
    %cst_104 = arith.constant dense<0.000000e+00> : vector<32x16xf32>
    %400 = tpu.matmul %398, %399, %cst_104 {dimension_numbers = #tpu.dot_dimension_numbers<[1], [0], [0], [1], [0, 0, 1, 1], [], []>} : vector<32x16xbf16>, vector<16x16xbf16>, vector<32x16xf32> -> vector<32x16xf32>
    %401 = arith.addf %209, %400 : vector<32x16xf32>
    %c0_105 = arith.constant 0 : index
    %c0_106 = arith.constant 0 : index
    %c0_107 = arith.constant 0 : index
    %402 = vector.load %arg11[%c0_105, %c0_106, %c0_107] : memref<2x32x16xf32, #tpu.memory_space<vmem>>, vector<1x32x16xf32>
    %403 = vector.shape_cast %402 : vector<1x32x16xf32> to vector<32x16xf32>
    %404 = vector.shape_cast %401 : vector<32x16xf32> to vector<1x32x16xf32>
    tpu.vector_store %arg11[%c0_105, %c0_106, %c0_107], %404 {strides = array<i32>} : memref<2x32x16xf32, #tpu.memory_space<vmem>>, vector<1x32x16xf32>,
    %c1 = arith.constant 1 : index
    %c0_108 = arith.constant 0 : index
    %c0_109 = arith.constant 0 : index
    %405 = vector.load %arg1[%c1, %c0_108, %c0_109] : memref<2x48x16xbf16, #tpu.memory_space<vmem>>, vector<1x48x16xbf16>
    %406 = vector.shape_cast %405 : vector<1x48x16xbf16> to vector<48x16xbf16>
    %cst_110 = arith.constant dense<0.000000e+00> : vector<48x128xf32>
    %407 = tpu.matmul %406, %0, %cst_110 {dimension_numbers = #tpu.dot_dimension_numbers<[1], [0], [0], [1], [0, 0, 1, 1], [], []>} : vector<48x16xbf16>, vector<16x128xbf16>, vector<48x128xf32> -> vector<48x128xf32>
    %408 = arith.mulf %407, %7 : vector<48x128xf32>
    %cst_111 = arith.constant dense<0.000000e+00> : vector<48x128xf32>
    %409 = tpu.matmul %406, %1, %cst_111 {dimension_numbers = #tpu.dot_dimension_numbers<[1], [0], [0], [1], [0, 0, 1, 1], [], []>} : vector<48x16xbf16>, vector<16x128xbf16>, vector<48x128xf32> -> vector<48x128xf32>
    %410 = arith.mulf %409, %8 : vector<48x128xf32>
    %411 = arith.addf %408, %410 : vector<48x128xf32>
    %cst_112 = arith.constant dense<0.000000e+00> : vector<48x128xf32>
    %412 = tpu.matmul %406, %2, %cst_112 {dimension_numbers = #tpu.dot_dimension_numbers<[1], [0], [0], [1], [0, 0, 1, 1], [], []>} : vector<48x16xbf16>, vector<16x128xbf16>, vector<48x128xf32> -> vector<48x128xf32>
    %413 = arith.mulf %412, %7 : vector<48x128xf32>
    %cst_113 = arith.constant dense<0.000000e+00> : vector<48x128xf32>
    %414 = tpu.matmul %406, %3, %cst_113 {dimension_numbers = #tpu.dot_dimension_numbers<[1], [0], [0], [1], [0, 0, 1, 1], [], []>} : vector<48x16xbf16>, vector<16x128xbf16>, vector<48x128xf32> -> vector<48x128xf32>
    %415 = arith.mulf %414, %8 : vector<48x128xf32>
    %416 = arith.addf %413, %415 : vector<48x128xf32>
    %cst_114 = arith.constant dense<0.000000e+00> : vector<48x128xf32>
    %417 = tpu.matmul %406, %4, %cst_114 {dimension_numbers = #tpu.dot_dimension_numbers<[1], [0], [0], [1], [0, 0, 1, 1], [], []>} : vector<48x16xbf16>, vector<16x128xbf16>, vector<48x128xf32> -> vector<48x128xf32>
    %418 = vector.extract_strided_slice %411 {offsets = [0, 0], sizes = [32, 128], strides = [1, 1]} : vector<48x128xf32> to vector<32x128xf32>
    %419 = vector.extract_strided_slice %416 {offsets = [0, 0], sizes = [32, 128], strides = [1, 1]} : vector<48x128xf32> to vector<32x128xf32>
    %420 = vector.extract_strided_slice %417 {offsets = [0, 0], sizes = [32, 128], strides = [1, 1]} : vector<48x128xf32> to vector<32x128xf32>
    %421 = vector.extract_strided_slice %418 {offsets = [0, 0], sizes = [32, 16], strides = [1, 1]} : vector<32x128xf32> to vector<32x16xf32>
    %422 = arith.truncf %421 : vector<32x16xf32> to vector<32x16xbf16>
    %423 = vector.extract_strided_slice %419 {offsets = [0, 0], sizes = [32, 16], strides = [1, 1]} : vector<32x128xf32> to vector<32x16xf32>
    %424 = arith.truncf %423 : vector<32x16xf32> to vector<32x16xbf16>
    %cst_115 = arith.constant dense<0.000000e+00> : vector<32x32xf32>
    %425 = tpu.matmul %422, %424, %cst_115 {dimension_numbers = #tpu.dot_dimension_numbers<[1], [1], [0], [0], [0, 0, 1, 0], [], []>} : vector<32x16xbf16>, vector<32x16xbf16>, vector<32x32xf32> -> vector<32x32xf32>
    %cst_116 = arith.constant dense<0xFF800000> : vector<32xf32>
    %426 = vector.multi_reduction <maximumf>, %425, %cst_116 [1] : vector<32x32xf32> to vector<32xf32>
    %427 = vector.shape_cast %426 : vector<32xf32> to vector<32x1xf32>
    %428 = vector.broadcast %427 : vector<32x1xf32> to vector<32x32xf32>
    %429 = arith.subf %425, %428 : vector<32x32xf32>
    %430 = math.exp %429 : vector<32x32xf32>
    %cst_117 = arith.constant dense<0.000000e+00> : vector<32xf32>
    %431 = vector.multi_reduction <add>, %430, %cst_117 [1] : vector<32x32xf32> to vector<32xf32>
    %432 = vector.shape_cast %431 : vector<32xf32> to vector<32x1xf32>
    %433 = tpu.reciprocal %432 {approx = true} : vector<32x1xf32> -> vector<32x1xf32>
    %434 = arith.truncf %430 : vector<32x32xf32> to vector<32x32xbf16>
    %435 = vector.extract_strided_slice %420 {offsets = [0, 0], sizes = [32, 16], strides = [1, 1]} : vector<32x128xf32> to vector<32x16xf32>
    %436 = arith.truncf %435 : vector<32x16xf32> to vector<32x16xbf16>
    %cst_118 = arith.constant dense<0.000000e+00> : vector<32x16xf32>
    %437 = tpu.matmul %434, %436, %cst_118 {dimension_numbers = #tpu.dot_dimension_numbers<[1], [0], [0], [1], [0, 0, 1, 1], [], []>} : vector<32x32xbf16>, vector<32x16xbf16>, vector<32x16xf32> -> vector<32x16xf32>
    %438 = vector.broadcast %433 : vector<32x1xf32> to vector<32x16xf32>
    %439 = arith.mulf %437, %438 : vector<32x16xf32>
    %440 = arith.truncf %439 : vector<32x16xf32> to vector<32x16xbf16>
    %441 = vector.extract_strided_slice %5 {offsets = [0, 0], sizes = [16, 16], strides = [1, 1]} : vector<128x16xbf16> to vector<16x16xbf16>
    %cst_119 = arith.constant dense<0.000000e+00> : vector<32x16xf32>
    %442 = tpu.matmul %440, %441, %cst_119 {dimension_numbers = #tpu.dot_dimension_numbers<[1], [0], [0], [1], [0, 0, 1, 1], [], []>} : vector<32x16xbf16>, vector<16x16xbf16>, vector<32x16xf32> -> vector<32x16xf32>
    %443 = vector.extract_strided_slice %418 {offsets = [0, 16], sizes = [32, 16], strides = [1, 1]} : vector<32x128xf32> to vector<32x16xf32>
    %444 = arith.truncf %443 : vector<32x16xf32> to vector<32x16xbf16>
    %445 = vector.extract_strided_slice %419 {offsets = [0, 16], sizes = [32, 16], strides = [1, 1]} : vector<32x128xf32> to vector<32x16xf32>
    %446 = arith.truncf %445 : vector<32x16xf32> to vector<32x16xbf16>
    %cst_120 = arith.constant dense<0.000000e+00> : vector<32x32xf32>
    %447 = tpu.matmul %444, %446, %cst_120 {dimension_numbers = #tpu.dot_dimension_numbers<[1], [1], [0], [0], [0, 0, 1, 0], [], []>} : vector<32x16xbf16>, vector<32x16xbf16>, vector<32x32xf32> -> vector<32x32xf32>
    %cst_121 = arith.constant dense<0xFF800000> : vector<32xf32>
    %448 = vector.multi_reduction <maximumf>, %447, %cst_121 [1] : vector<32x32xf32> to vector<32xf32>
    %449 = vector.shape_cast %448 : vector<32xf32> to vector<32x1xf32>
    %450 = vector.broadcast %449 : vector<32x1xf32> to vector<32x32xf32>
    %451 = arith.subf %447, %450 : vector<32x32xf32>
    %452 = math.exp %451 : vector<32x32xf32>
    %cst_122 = arith.constant dense<0.000000e+00> : vector<32xf32>
    %453 = vector.multi_reduction <add>, %452, %cst_122 [1] : vector<32x32xf32> to vector<32xf32>
    %454 = vector.shape_cast %453 : vector<32xf32> to vector<32x1xf32>
    %455 = tpu.reciprocal %454 {approx = true} : vector<32x1xf32> -> vector<32x1xf32>
    %456 = arith.truncf %452 : vector<32x32xf32> to vector<32x32xbf16>
    %457 = vector.extract_strided_slice %420 {offsets = [0, 16], sizes = [32, 16], strides = [1, 1]} : vector<32x128xf32> to vector<32x16xf32>
    %458 = arith.truncf %457 : vector<32x16xf32> to vector<32x16xbf16>
    %cst_123 = arith.constant dense<0.000000e+00> : vector<32x16xf32>
    %459 = tpu.matmul %456, %458, %cst_123 {dimension_numbers = #tpu.dot_dimension_numbers<[1], [0], [0], [1], [0, 0, 1, 1], [], []>} : vector<32x32xbf16>, vector<32x16xbf16>, vector<32x16xf32> -> vector<32x16xf32>
    %460 = vector.broadcast %455 : vector<32x1xf32> to vector<32x16xf32>
    %461 = arith.mulf %459, %460 : vector<32x16xf32>
    %462 = arith.truncf %461 : vector<32x16xf32> to vector<32x16xbf16>
    %463 = vector.extract_strided_slice %5 {offsets = [16, 0], sizes = [16, 16], strides = [1, 1]} : vector<128x16xbf16> to vector<16x16xbf16>
    %cst_124 = arith.constant dense<0.000000e+00> : vector<32x16xf32>
    %464 = tpu.matmul %462, %463, %cst_124 {dimension_numbers = #tpu.dot_dimension_numbers<[1], [0], [0], [1], [0, 0, 1, 1], [], []>} : vector<32x16xbf16>, vector<16x16xbf16>, vector<32x16xf32> -> vector<32x16xf32>
    %465 = arith.addf %442, %464 : vector<32x16xf32>
    %466 = vector.extract_strided_slice %418 {offsets = [0, 32], sizes = [32, 16], strides = [1, 1]} : vector<32x128xf32> to vector<32x16xf32>
    %467 = arith.truncf %466 : vector<32x16xf32> to vector<32x16xbf16>
    %468 = vector.extract_strided_slice %419 {offsets = [0, 32], sizes = [32, 16], strides = [1, 1]} : vector<32x128xf32> to vector<32x16xf32>
    %469 = arith.truncf %468 : vector<32x16xf32> to vector<32x16xbf16>
    %cst_125 = arith.constant dense<0.000000e+00> : vector<32x32xf32>
    %470 = tpu.matmul %467, %469, %cst_125 {dimension_numbers = #tpu.dot_dimension_numbers<[1], [1], [0], [0], [0, 0, 1, 0], [], []>} : vector<32x16xbf16>, vector<32x16xbf16>, vector<32x32xf32> -> vector<32x32xf32>
    %cst_126 = arith.constant dense<0xFF800000> : vector<32xf32>
    %471 = vector.multi_reduction <maximumf>, %470, %cst_126 [1] : vector<32x32xf32> to vector<32xf32>
    %472 = vector.shape_cast %471 : vector<32xf32> to vector<32x1xf32>
    %473 = vector.broadcast %472 : vector<32x1xf32> to vector<32x32xf32>
    %474 = arith.subf %470, %473 : vector<32x32xf32>
    %475 = math.exp %474 : vector<32x32xf32>
    %cst_127 = arith.constant dense<0.000000e+00> : vector<32xf32>
    %476 = vector.multi_reduction <add>, %475, %cst_127 [1] : vector<32x32xf32> to vector<32xf32>
    %477 = vector.shape_cast %476 : vector<32xf32> to vector<32x1xf32>
    %478 = tpu.reciprocal %477 {approx = true} : vector<32x1xf32> -> vector<32x1xf32>
    %479 = arith.truncf %475 : vector<32x32xf32> to vector<32x32xbf16>
    %480 = vector.extract_strided_slice %420 {offsets = [0, 32], sizes = [32, 16], strides = [1, 1]} : vector<32x128xf32> to vector<32x16xf32>
    %481 = arith.truncf %480 : vector<32x16xf32> to vector<32x16xbf16>
    %cst_128 = arith.constant dense<0.000000e+00> : vector<32x16xf32>
    %482 = tpu.matmul %479, %481, %cst_128 {dimension_numbers = #tpu.dot_dimension_numbers<[1], [0], [0], [1], [0, 0, 1, 1], [], []>} : vector<32x32xbf16>, vector<32x16xbf16>, vector<32x16xf32> -> vector<32x16xf32>
    %483 = vector.broadcast %478 : vector<32x1xf32> to vector<32x16xf32>
    %484 = arith.mulf %482, %483 : vector<32x16xf32>
    %485 = arith.truncf %484 : vector<32x16xf32> to vector<32x16xbf16>
    %486 = vector.extract_strided_slice %5 {offsets = [32, 0], sizes = [16, 16], strides = [1, 1]} : vector<128x16xbf16> to vector<16x16xbf16>
    %cst_129 = arith.constant dense<0.000000e+00> : vector<32x16xf32>
    %487 = tpu.matmul %485, %486, %cst_129 {dimension_numbers = #tpu.dot_dimension_numbers<[1], [0], [0], [1], [0, 0, 1, 1], [], []>} : vector<32x16xbf16>, vector<16x16xbf16>, vector<32x16xf32> -> vector<32x16xf32>
    %488 = arith.addf %465, %487 : vector<32x16xf32>
    %489 = vector.extract_strided_slice %418 {offsets = [0, 48], sizes = [32, 16], strides = [1, 1]} : vector<32x128xf32> to vector<32x16xf32>
    %490 = arith.truncf %489 : vector<32x16xf32> to vector<32x16xbf16>
    %491 = vector.extract_strided_slice %419 {offsets = [0, 48], sizes = [32, 16], strides = [1, 1]} : vector<32x128xf32> to vector<32x16xf32>
    %492 = arith.truncf %491 : vector<32x16xf32> to vector<32x16xbf16>
    %cst_130 = arith.constant dense<0.000000e+00> : vector<32x32xf32>
    %493 = tpu.matmul %490, %492, %cst_130 {dimension_numbers = #tpu.dot_dimension_numbers<[1], [1], [0], [0], [0, 0, 1, 0], [], []>} : vector<32x16xbf16>, vector<32x16xbf16>, vector<32x32xf32> -> vector<32x32xf32>
    %cst_131 = arith.constant dense<0xFF800000> : vector<32xf32>
    %494 = vector.multi_reduction <maximumf>, %493, %cst_131 [1] : vector<32x32xf32> to vector<32xf32>
    %495 = vector.shape_cast %494 : vector<32xf32> to vector<32x1xf32>
    %496 = vector.broadcast %495 : vector<32x1xf32> to vector<32x32xf32>
    %497 = arith.subf %493, %496 : vector<32x32xf32>
    %498 = math.exp %497 : vector<32x32xf32>
    %cst_132 = arith.constant dense<0.000000e+00> : vector<32xf32>
    %499 = vector.multi_reduction <add>, %498, %cst_132 [1] : vector<32x32xf32> to vector<32xf32>
    %500 = vector.shape_cast %499 : vector<32xf32> to vector<32x1xf32>
    %501 = tpu.reciprocal %500 {approx = true} : vector<32x1xf32> -> vector<32x1xf32>
    %502 = arith.truncf %498 : vector<32x32xf32> to vector<32x32xbf16>
    %503 = vector.extract_strided_slice %420 {offsets = [0, 48], sizes = [32, 16], strides = [1, 1]} : vector<32x128xf32> to vector<32x16xf32>
    %504 = arith.truncf %503 : vector<32x16xf32> to vector<32x16xbf16>
    %cst_133 = arith.constant dense<0.000000e+00> : vector<32x16xf32>
    %505 = tpu.matmul %502, %504, %cst_133 {dimension_numbers = #tpu.dot_dimension_numbers<[1], [0], [0], [1], [0, 0, 1, 1], [], []>} : vector<32x32xbf16>, vector<32x16xbf16>, vector<32x16xf32> -> vector<32x16xf32>
    %506 = vector.broadcast %501 : vector<32x1xf32> to vector<32x16xf32>
    %507 = arith.mulf %505, %506 : vector<32x16xf32>
    %508 = arith.truncf %507 : vector<32x16xf32> to vector<32x16xbf16>
    %509 = vector.extract_strided_slice %5 {offsets = [48, 0], sizes = [16, 16], strides = [1, 1]} : vector<128x16xbf16> to vector<16x16xbf16>
    %cst_134 = arith.constant dense<0.000000e+00> : vector<32x16xf32>
    %510 = tpu.matmul %508, %509, %cst_134 {dimension_numbers = #tpu.dot_dimension_numbers<[1], [0], [0], [1], [0, 0, 1, 1], [], []>} : vector<32x16xbf16>, vector<16x16xbf16>, vector<32x16xf32> -> vector<32x16xf32>
    %511 = arith.addf %488, %510 : vector<32x16xf32>
    %512 = vector.extract_strided_slice %418 {offsets = [0, 64], sizes = [32, 16], strides = [1, 1]} : vector<32x128xf32> to vector<32x16xf32>
    %513 = arith.truncf %512 : vector<32x16xf32> to vector<32x16xbf16>
    %514 = vector.extract_strided_slice %419 {offsets = [0, 64], sizes = [32, 16], strides = [1, 1]} : vector<32x128xf32> to vector<32x16xf32>
    %515 = arith.truncf %514 : vector<32x16xf32> to vector<32x16xbf16>
    %cst_135 = arith.constant dense<0.000000e+00> : vector<32x32xf32>
    %516 = tpu.matmul %513, %515, %cst_135 {dimension_numbers = #tpu.dot_dimension_numbers<[1], [1], [0], [0], [0, 0, 1, 0], [], []>} : vector<32x16xbf16>, vector<32x16xbf16>, vector<32x32xf32> -> vector<32x32xf32>
    %cst_136 = arith.constant dense<0xFF800000> : vector<32xf32>
    %517 = vector.multi_reduction <maximumf>, %516, %cst_136 [1] : vector<32x32xf32> to vector<32xf32>
    %518 = vector.shape_cast %517 : vector<32xf32> to vector<32x1xf32>
    %519 = vector.broadcast %518 : vector<32x1xf32> to vector<32x32xf32>
    %520 = arith.subf %516, %519 : vector<32x32xf32>
    %521 = math.exp %520 : vector<32x32xf32>
    %cst_137 = arith.constant dense<0.000000e+00> : vector<32xf32>
    %522 = vector.multi_reduction <add>, %521, %cst_137 [1] : vector<32x32xf32> to vector<32xf32>
    %523 = vector.shape_cast %522 : vector<32xf32> to vector<32x1xf32>
    %524 = tpu.reciprocal %523 {approx = true} : vector<32x1xf32> -> vector<32x1xf32>
    %525 = arith.truncf %521 : vector<32x32xf32> to vector<32x32xbf16>
    %526 = vector.extract_strided_slice %420 {offsets = [0, 64], sizes = [32, 16], strides = [1, 1]} : vector<32x128xf32> to vector<32x16xf32>
    %527 = arith.truncf %526 : vector<32x16xf32> to vector<32x16xbf16>
    %cst_138 = arith.constant dense<0.000000e+00> : vector<32x16xf32>
    %528 = tpu.matmul %525, %527, %cst_138 {dimension_numbers = #tpu.dot_dimension_numbers<[1], [0], [0], [1], [0, 0, 1, 1], [], []>} : vector<32x32xbf16>, vector<32x16xbf16>, vector<32x16xf32> -> vector<32x16xf32>
    %529 = vector.broadcast %524 : vector<32x1xf32> to vector<32x16xf32>
    %530 = arith.mulf %528, %529 : vector<32x16xf32>
    %531 = arith.truncf %530 : vector<32x16xf32> to vector<32x16xbf16>
    %532 = vector.extract_strided_slice %5 {offsets = [64, 0], sizes = [16, 16], strides = [1, 1]} : vector<128x16xbf16> to vector<16x16xbf16>
    %cst_139 = arith.constant dense<0.000000e+00> : vector<32x16xf32>
    %533 = tpu.matmul %531, %532, %cst_139 {dimension_numbers = #tpu.dot_dimension_numbers<[1], [0], [0], [1], [0, 0, 1, 1], [], []>} : vector<32x16xbf16>, vector<16x16xbf16>, vector<32x16xf32> -> vector<32x16xf32>
    %534 = arith.addf %511, %533 : vector<32x16xf32>
    %535 = vector.extract_strided_slice %418 {offsets = [0, 80], sizes = [32, 16], strides = [1, 1]} : vector<32x128xf32> to vector<32x16xf32>
    %536 = arith.truncf %535 : vector<32x16xf32> to vector<32x16xbf16>
    %537 = vector.extract_strided_slice %419 {offsets = [0, 80], sizes = [32, 16], strides = [1, 1]} : vector<32x128xf32> to vector<32x16xf32>
    %538 = arith.truncf %537 : vector<32x16xf32> to vector<32x16xbf16>
    %cst_140 = arith.constant dense<0.000000e+00> : vector<32x32xf32>
    %539 = tpu.matmul %536, %538, %cst_140 {dimension_numbers = #tpu.dot_dimension_numbers<[1], [1], [0], [0], [0, 0, 1, 0], [], []>} : vector<32x16xbf16>, vector<32x16xbf16>, vector<32x32xf32> -> vector<32x32xf32>
    %cst_141 = arith.constant dense<0xFF800000> : vector<32xf32>
    %540 = vector.multi_reduction <maximumf>, %539, %cst_141 [1] : vector<32x32xf32> to vector<32xf32>
    %541 = vector.shape_cast %540 : vector<32xf32> to vector<32x1xf32>
    %542 = vector.broadcast %541 : vector<32x1xf32> to vector<32x32xf32>
    %543 = arith.subf %539, %542 : vector<32x32xf32>
    %544 = math.exp %543 : vector<32x32xf32>
    %cst_142 = arith.constant dense<0.000000e+00> : vector<32xf32>
    %545 = vector.multi_reduction <add>, %544, %cst_142 [1] : vector<32x32xf32> to vector<32xf32>
    %546 = vector.shape_cast %545 : vector<32xf32> to vector<32x1xf32>
    %547 = tpu.reciprocal %546 {approx = true} : vector<32x1xf32> -> vector<32x1xf32>
    %548 = arith.truncf %544 : vector<32x32xf32> to vector<32x32xbf16>
    %549 = vector.extract_strided_slice %420 {offsets = [0, 80], sizes = [32, 16], strides = [1, 1]} : vector<32x128xf32> to vector<32x16xf32>
    %550 = arith.truncf %549 : vector<32x16xf32> to vector<32x16xbf16>
    %cst_143 = arith.constant dense<0.000000e+00> : vector<32x16xf32>
    %551 = tpu.matmul %548, %550, %cst_143 {dimension_numbers = #tpu.dot_dimension_numbers<[1], [0], [0], [1], [0, 0, 1, 1], [], []>} : vector<32x32xbf16>, vector<32x16xbf16>, vector<32x16xf32> -> vector<32x16xf32>
    %552 = vector.broadcast %547 : vector<32x1xf32> to vector<32x16xf32>
    %553 = arith.mulf %551, %552 : vector<32x16xf32>
    %554 = arith.truncf %553 : vector<32x16xf32> to vector<32x16xbf16>
    %555 = vector.extract_strided_slice %5 {offsets = [80, 0], sizes = [16, 16], strides = [1, 1]} : vector<128x16xbf16> to vector<16x16xbf16>
    %cst_144 = arith.constant dense<0.000000e+00> : vector<32x16xf32>
    %556 = tpu.matmul %554, %555, %cst_144 {dimension_numbers = #tpu.dot_dimension_numbers<[1], [0], [0], [1], [0, 0, 1, 1], [], []>} : vector<32x16xbf16>, vector<16x16xbf16>, vector<32x16xf32> -> vector<32x16xf32>
    %557 = arith.addf %534, %556 : vector<32x16xf32>
    %558 = vector.extract_strided_slice %418 {offsets = [0, 96], sizes = [32, 16], strides = [1, 1]} : vector<32x128xf32> to vector<32x16xf32>
    %559 = arith.truncf %558 : vector<32x16xf32> to vector<32x16xbf16>
    %560 = vector.extract_strided_slice %419 {offsets = [0, 96], sizes = [32, 16], strides = [1, 1]} : vector<32x128xf32> to vector<32x16xf32>
    %561 = arith.truncf %560 : vector<32x16xf32> to vector<32x16xbf16>
    %cst_145 = arith.constant dense<0.000000e+00> : vector<32x32xf32>
    %562 = tpu.matmul %559, %561, %cst_145 {dimension_numbers = #tpu.dot_dimension_numbers<[1], [1], [0], [0], [0, 0, 1, 0], [], []>} : vector<32x16xbf16>, vector<32x16xbf16>, vector<32x32xf32> -> vector<32x32xf32>
    %cst_146 = arith.constant dense<0xFF800000> : vector<32xf32>
    %563 = vector.multi_reduction <maximumf>, %562, %cst_146 [1] : vector<32x32xf32> to vector<32xf32>
    %564 = vector.shape_cast %563 : vector<32xf32> to vector<32x1xf32>
    %565 = vector.broadcast %564 : vector<32x1xf32> to vector<32x32xf32>
    %566 = arith.subf %562, %565 : vector<32x32xf32>
    %567 = math.exp %566 : vector<32x32xf32>
    %cst_147 = arith.constant dense<0.000000e+00> : vector<32xf32>
    %568 = vector.multi_reduction <add>, %567, %cst_147 [1] : vector<32x32xf32> to vector<32xf32>
    %569 = vector.shape_cast %568 : vector<32xf32> to vector<32x1xf32>
    %570 = tpu.reciprocal %569 {approx = true} : vector<32x1xf32> -> vector<32x1xf32>
    %571 = arith.truncf %567 : vector<32x32xf32> to vector<32x32xbf16>
    %572 = vector.extract_strided_slice %420 {offsets = [0, 96], sizes = [32, 16], strides = [1, 1]} : vector<32x128xf32> to vector<32x16xf32>
    %573 = arith.truncf %572 : vector<32x16xf32> to vector<32x16xbf16>
    %cst_148 = arith.constant dense<0.000000e+00> : vector<32x16xf32>
    %574 = tpu.matmul %571, %573, %cst_148 {dimension_numbers = #tpu.dot_dimension_numbers<[1], [0], [0], [1], [0, 0, 1, 1], [], []>} : vector<32x32xbf16>, vector<32x16xbf16>, vector<32x16xf32> -> vector<32x16xf32>
    %575 = vector.broadcast %570 : vector<32x1xf32> to vector<32x16xf32>
    %576 = arith.mulf %574, %575 : vector<32x16xf32>
    %577 = arith.truncf %576 : vector<32x16xf32> to vector<32x16xbf16>
    %578 = vector.extract_strided_slice %5 {offsets = [96, 0], sizes = [16, 16], strides = [1, 1]} : vector<128x16xbf16> to vector<16x16xbf16>
    %cst_149 = arith.constant dense<0.000000e+00> : vector<32x16xf32>
    %579 = tpu.matmul %577, %578, %cst_149 {dimension_numbers = #tpu.dot_dimension_numbers<[1], [0], [0], [1], [0, 0, 1, 1], [], []>} : vector<32x16xbf16>, vector<16x16xbf16>, vector<32x16xf32> -> vector<32x16xf32>
    %580 = arith.addf %557, %579 : vector<32x16xf32>
    %581 = vector.extract_strided_slice %418 {offsets = [0, 112], sizes = [32, 16], strides = [1, 1]} : vector<32x128xf32> to vector<32x16xf32>
    %582 = arith.truncf %581 : vector<32x16xf32> to vector<32x16xbf16>
    %583 = vector.extract_strided_slice %419 {offsets = [0, 112], sizes = [32, 16], strides = [1, 1]} : vector<32x128xf32> to vector<32x16xf32>
    %584 = arith.truncf %583 : vector<32x16xf32> to vector<32x16xbf16>
    %cst_150 = arith.constant dense<0.000000e+00> : vector<32x32xf32>
    %585 = tpu.matmul %582, %584, %cst_150 {dimension_numbers = #tpu.dot_dimension_numbers<[1], [1], [0], [0], [0, 0, 1, 0], [], []>} : vector<32x16xbf16>, vector<32x16xbf16>, vector<32x32xf32> -> vector<32x32xf32>
    %cst_151 = arith.constant dense<0xFF800000> : vector<32xf32>
    %586 = vector.multi_reduction <maximumf>, %585, %cst_151 [1] : vector<32x32xf32> to vector<32xf32>
    %587 = vector.shape_cast %586 : vector<32xf32> to vector<32x1xf32>
    %588 = vector.broadcast %587 : vector<32x1xf32> to vector<32x32xf32>
    %589 = arith.subf %585, %588 : vector<32x32xf32>
    %590 = math.exp %589 : vector<32x32xf32>
    %cst_152 = arith.constant dense<0.000000e+00> : vector<32xf32>
    %591 = vector.multi_reduction <add>, %590, %cst_152 [1] : vector<32x32xf32> to vector<32xf32>
    %592 = vector.shape_cast %591 : vector<32xf32> to vector<32x1xf32>
    %593 = tpu.reciprocal %592 {approx = true} : vector<32x1xf32> -> vector<32x1xf32>
    %594 = arith.truncf %590 : vector<32x32xf32> to vector<32x32xbf16>
    %595 = vector.extract_strided_slice %420 {offsets = [0, 112], sizes = [32, 16], strides = [1, 1]} : vector<32x128xf32> to vector<32x16xf32>
    %596 = arith.truncf %595 : vector<32x16xf32> to vector<32x16xbf16>
    %cst_153 = arith.constant dense<0.000000e+00> : vector<32x16xf32>
    %597 = tpu.matmul %594, %596, %cst_153 {dimension_numbers = #tpu.dot_dimension_numbers<[1], [0], [0], [1], [0, 0, 1, 1], [], []>} : vector<32x32xbf16>, vector<32x16xbf16>, vector<32x16xf32> -> vector<32x16xf32>
    %598 = vector.broadcast %593 : vector<32x1xf32> to vector<32x16xf32>
    %599 = arith.mulf %597, %598 : vector<32x16xf32>
    %600 = arith.truncf %599 : vector<32x16xf32> to vector<32x16xbf16>
    %601 = vector.extract_strided_slice %5 {offsets = [112, 0], sizes = [16, 16], strides = [1, 1]} : vector<128x16xbf16> to vector<16x16xbf16>
    %cst_154 = arith.constant dense<0.000000e+00> : vector<32x16xf32>
    %602 = tpu.matmul %600, %601, %cst_154 {dimension_numbers = #tpu.dot_dimension_numbers<[1], [0], [0], [1], [0, 0, 1, 1], [], []>} : vector<32x16xbf16>, vector<16x16xbf16>, vector<32x16xf32> -> vector<32x16xf32>
    %603 = arith.addf %580, %602 : vector<32x16xf32>
    %604 = vector.broadcast %6 : vector<1x16xf32> to vector<32x16xf32>
    %605 = arith.addf %603, %604 : vector<32x16xf32>
    %606 = vector.extract_strided_slice %411 {offsets = [32, 0], sizes = [16, 128], strides = [1, 1]} : vector<48x128xf32> to vector<16x128xf32>
    %607 = vector.extract_strided_slice %416 {offsets = [32, 0], sizes = [16, 128], strides = [1, 1]} : vector<48x128xf32> to vector<16x128xf32>
    %608 = vector.extract_strided_slice %417 {offsets = [32, 0], sizes = [16, 128], strides = [1, 1]} : vector<48x128xf32> to vector<16x128xf32>
    %609 = vector.extract_strided_slice %606 {offsets = [0, 0], sizes = [16, 16], strides = [1, 1]} : vector<16x128xf32> to vector<16x16xf32>
    %610 = arith.truncf %609 : vector<16x16xf32> to vector<16x16xbf16>
    %611 = vector.extract_strided_slice %607 {offsets = [0, 0], sizes = [16, 16], strides = [1, 1]} : vector<16x128xf32> to vector<16x16xf32>
    %612 = arith.truncf %611 : vector<16x16xf32> to vector<16x16xbf16>
    %cst_155 = arith.constant dense<0.000000e+00> : vector<16x16xf32>
    %613 = tpu.matmul %610, %612, %cst_155 {dimension_numbers = #tpu.dot_dimension_numbers<[1], [1], [0], [0], [0, 0, 1, 0], [], []>} : vector<16x16xbf16>, vector<16x16xbf16>, vector<16x16xf32> -> vector<16x16xf32>
    %cst_156 = arith.constant dense<0xFF800000> : vector<16xf32>
    %614 = vector.multi_reduction <maximumf>, %613, %cst_156 [1] : vector<16x16xf32> to vector<16xf32>
    %615 = vector.shape_cast %614 : vector<16xf32> to vector<16x1xf32>
    %616 = vector.broadcast %615 : vector<16x1xf32> to vector<16x16xf32>
    %617 = arith.subf %613, %616 : vector<16x16xf32>
    %618 = math.exp %617 : vector<16x16xf32>
    %cst_157 = arith.constant dense<0.000000e+00> : vector<16xf32>
    %619 = vector.multi_reduction <add>, %618, %cst_157 [1] : vector<16x16xf32> to vector<16xf32>
    %620 = vector.shape_cast %619 : vector<16xf32> to vector<16x1xf32>
    %621 = tpu.reciprocal %620 {approx = true} : vector<16x1xf32> -> vector<16x1xf32>
    %622 = arith.truncf %618 : vector<16x16xf32> to vector<16x16xbf16>
    %623 = vector.extract_strided_slice %608 {offsets = [0, 0], sizes = [16, 16], strides = [1, 1]} : vector<16x128xf32> to vector<16x16xf32>
    %624 = arith.truncf %623 : vector<16x16xf32> to vector<16x16xbf16>
    %cst_158 = arith.constant dense<0.000000e+00> : vector<16x16xf32>
    %625 = tpu.matmul %622, %624, %cst_158 {dimension_numbers = #tpu.dot_dimension_numbers<[1], [0], [0], [1], [0, 0, 1, 1], [], []>} : vector<16x16xbf16>, vector<16x16xbf16>, vector<16x16xf32> -> vector<16x16xf32>
    %626 = vector.broadcast %621 : vector<16x1xf32> to vector<16x16xf32>
    %627 = arith.mulf %625, %626 : vector<16x16xf32>
    %628 = arith.truncf %627 : vector<16x16xf32> to vector<16x16xbf16>
    %629 = vector.extract_strided_slice %5 {offsets = [0, 0], sizes = [16, 16], strides = [1, 1]} : vector<128x16xbf16> to vector<16x16xbf16>
    %cst_159 = arith.constant dense<0.000000e+00> : vector<16x16xf32>
    %630 = tpu.matmul %628, %629, %cst_159 {dimension_numbers = #tpu.dot_dimension_numbers<[1], [0], [0], [1], [0, 0, 1, 1], [], []>} : vector<16x16xbf16>, vector<16x16xbf16>, vector<16x16xf32> -> vector<16x16xf32>
    %631 = vector.extract_strided_slice %606 {offsets = [0, 16], sizes = [16, 16], strides = [1, 1]} : vector<16x128xf32> to vector<16x16xf32>
    %632 = arith.truncf %631 : vector<16x16xf32> to vector<16x16xbf16>
    %633 = vector.extract_strided_slice %607 {offsets = [0, 16], sizes = [16, 16], strides = [1, 1]} : vector<16x128xf32> to vector<16x16xf32>
    %634 = arith.truncf %633 : vector<16x16xf32> to vector<16x16xbf16>
    %cst_160 = arith.constant dense<0.000000e+00> : vector<16x16xf32>
    %635 = tpu.matmul %632, %634, %cst_160 {dimension_numbers = #tpu.dot_dimension_numbers<[1], [1], [0], [0], [0, 0, 1, 0], [], []>} : vector<16x16xbf16>, vector<16x16xbf16>, vector<16x16xf32> -> vector<16x16xf32>
    %cst_161 = arith.constant dense<0xFF800000> : vector<16xf32>
    %636 = vector.multi_reduction <maximumf>, %635, %cst_161 [1] : vector<16x16xf32> to vector<16xf32>
    %637 = vector.shape_cast %636 : vector<16xf32> to vector<16x1xf32>
    %638 = vector.broadcast %637 : vector<16x1xf32> to vector<16x16xf32>
    %639 = arith.subf %635, %638 : vector<16x16xf32>
    %640 = math.exp %639 : vector<16x16xf32>
    %cst_162 = arith.constant dense<0.000000e+00> : vector<16xf32>
    %641 = vector.multi_reduction <add>, %640, %cst_162 [1] : vector<16x16xf32> to vector<16xf32>
    %642 = vector.shape_cast %641 : vector<16xf32> to vector<16x1xf32>
    %643 = tpu.reciprocal %642 {approx = true} : vector<16x1xf32> -> vector<16x1xf32>
    %644 = arith.truncf %640 : vector<16x16xf32> to vector<16x16xbf16>
    %645 = vector.extract_strided_slice %608 {offsets = [0, 16], sizes = [16, 16], strides = [1, 1]} : vector<16x128xf32> to vector<16x16xf32>
    %646 = arith.truncf %645 : vector<16x16xf32> to vector<16x16xbf16>
    %cst_163 = arith.constant dense<0.000000e+00> : vector<16x16xf32>
    %647 = tpu.matmul %644, %646, %cst_163 {dimension_numbers = #tpu.dot_dimension_numbers<[1], [0], [0], [1], [0, 0, 1, 1], [], []>} : vector<16x16xbf16>, vector<16x16xbf16>, vector<16x16xf32> -> vector<16x16xf32>
    %648 = vector.broadcast %643 : vector<16x1xf32> to vector<16x16xf32>
    %649 = arith.mulf %647, %648 : vector<16x16xf32>
    %650 = arith.truncf %649 : vector<16x16xf32> to vector<16x16xbf16>
    %651 = vector.extract_strided_slice %5 {offsets = [16, 0], sizes = [16, 16], strides = [1, 1]} : vector<128x16xbf16> to vector<16x16xbf16>
    %cst_164 = arith.constant dense<0.000000e+00> : vector<16x16xf32>
    %652 = tpu.matmul %650, %651, %cst_164 {dimension_numbers = #tpu.dot_dimension_numbers<[1], [0], [0], [1], [0, 0, 1, 1], [], []>} : vector<16x16xbf16>, vector<16x16xbf16>, vector<16x16xf32> -> vector<16x16xf32>
    %653 = arith.addf %630, %652 : vector<16x16xf32>
    %654 = vector.extract_strided_slice %606 {offsets = [0, 32], sizes = [16, 16], strides = [1, 1]} : vector<16x128xf32> to vector<16x16xf32>
    %655 = arith.truncf %654 : vector<16x16xf32> to vector<16x16xbf16>
    %656 = vector.extract_strided_slice %607 {offsets = [0, 32], sizes = [16, 16], strides = [1, 1]} : vector<16x128xf32> to vector<16x16xf32>
    %657 = arith.truncf %656 : vector<16x16xf32> to vector<16x16xbf16>
    %cst_165 = arith.constant dense<0.000000e+00> : vector<16x16xf32>
    %658 = tpu.matmul %655, %657, %cst_165 {dimension_numbers = #tpu.dot_dimension_numbers<[1], [1], [0], [0], [0, 0, 1, 0], [], []>} : vector<16x16xbf16>, vector<16x16xbf16>, vector<16x16xf32> -> vector<16x16xf32>
    %cst_166 = arith.constant dense<0xFF800000> : vector<16xf32>
    %659 = vector.multi_reduction <maximumf>, %658, %cst_166 [1] : vector<16x16xf32> to vector<16xf32>
    %660 = vector.shape_cast %659 : vector<16xf32> to vector<16x1xf32>
    %661 = vector.broadcast %660 : vector<16x1xf32> to vector<16x16xf32>
    %662 = arith.subf %658, %661 : vector<16x16xf32>
    %663 = math.exp %662 : vector<16x16xf32>
    %cst_167 = arith.constant dense<0.000000e+00> : vector<16xf32>
    %664 = vector.multi_reduction <add>, %663, %cst_167 [1] : vector<16x16xf32> to vector<16xf32>
    %665 = vector.shape_cast %664 : vector<16xf32> to vector<16x1xf32>
    %666 = tpu.reciprocal %665 {approx = true} : vector<16x1xf32> -> vector<16x1xf32>
    %667 = arith.truncf %663 : vector<16x16xf32> to vector<16x16xbf16>
    %668 = vector.extract_strided_slice %608 {offsets = [0, 32], sizes = [16, 16], strides = [1, 1]} : vector<16x128xf32> to vector<16x16xf32>
    %669 = arith.truncf %668 : vector<16x16xf32> to vector<16x16xbf16>
    %cst_168 = arith.constant dense<0.000000e+00> : vector<16x16xf32>
    %670 = tpu.matmul %667, %669, %cst_168 {dimension_numbers = #tpu.dot_dimension_numbers<[1], [0], [0], [1], [0, 0, 1, 1], [], []>} : vector<16x16xbf16>, vector<16x16xbf16>, vector<16x16xf32> -> vector<16x16xf32>
    %671 = vector.broadcast %666 : vector<16x1xf32> to vector<16x16xf32>
    %672 = arith.mulf %670, %671 : vector<16x16xf32>
    %673 = arith.truncf %672 : vector<16x16xf32> to vector<16x16xbf16>
    %674 = vector.extract_strided_slice %5 {offsets = [32, 0], sizes = [16, 16], strides = [1, 1]} : vector<128x16xbf16> to vector<16x16xbf16>
    %cst_169 = arith.constant dense<0.000000e+00> : vector<16x16xf32>
    %675 = tpu.matmul %673, %674, %cst_169 {dimension_numbers = #tpu.dot_dimension_numbers<[1], [0], [0], [1], [0, 0, 1, 1], [], []>} : vector<16x16xbf16>, vector<16x16xbf16>, vector<16x16xf32> -> vector<16x16xf32>
    %676 = arith.addf %653, %675 : vector<16x16xf32>
    %677 = vector.extract_strided_slice %606 {offsets = [0, 48], sizes = [16, 16], strides = [1, 1]} : vector<16x128xf32> to vector<16x16xf32>
    %678 = arith.truncf %677 : vector<16x16xf32> to vector<16x16xbf16>
    %679 = vector.extract_strided_slice %607 {offsets = [0, 48], sizes = [16, 16], strides = [1, 1]} : vector<16x128xf32> to vector<16x16xf32>
    %680 = arith.truncf %679 : vector<16x16xf32> to vector<16x16xbf16>
    %cst_170 = arith.constant dense<0.000000e+00> : vector<16x16xf32>
    %681 = tpu.matmul %678, %680, %cst_170 {dimension_numbers = #tpu.dot_dimension_numbers<[1], [1], [0], [0], [0, 0, 1, 0], [], []>} : vector<16x16xbf16>, vector<16x16xbf16>, vector<16x16xf32> -> vector<16x16xf32>
    %cst_171 = arith.constant dense<0xFF800000> : vector<16xf32>
    %682 = vector.multi_reduction <maximumf>, %681, %cst_171 [1] : vector<16x16xf32> to vector<16xf32>
    %683 = vector.shape_cast %682 : vector<16xf32> to vector<16x1xf32>
    %684 = vector.broadcast %683 : vector<16x1xf32> to vector<16x16xf32>
    %685 = arith.subf %681, %684 : vector<16x16xf32>
    %686 = math.exp %685 : vector<16x16xf32>
    %cst_172 = arith.constant dense<0.000000e+00> : vector<16xf32>
    %687 = vector.multi_reduction <add>, %686, %cst_172 [1] : vector<16x16xf32> to vector<16xf32>
    %688 = vector.shape_cast %687 : vector<16xf32> to vector<16x1xf32>
    %689 = tpu.reciprocal %688 {approx = true} : vector<16x1xf32> -> vector<16x1xf32>
    %690 = arith.truncf %686 : vector<16x16xf32> to vector<16x16xbf16>
    %691 = vector.extract_strided_slice %608 {offsets = [0, 48], sizes = [16, 16], strides = [1, 1]} : vector<16x128xf32> to vector<16x16xf32>
    %692 = arith.truncf %691 : vector<16x16xf32> to vector<16x16xbf16>
    %cst_173 = arith.constant dense<0.000000e+00> : vector<16x16xf32>
    %693 = tpu.matmul %690, %692, %cst_173 {dimension_numbers = #tpu.dot_dimension_numbers<[1], [0], [0], [1], [0, 0, 1, 1], [], []>} : vector<16x16xbf16>, vector<16x16xbf16>, vector<16x16xf32> -> vector<16x16xf32>
    %694 = vector.broadcast %689 : vector<16x1xf32> to vector<16x16xf32>
    %695 = arith.mulf %693, %694 : vector<16x16xf32>
    %696 = arith.truncf %695 : vector<16x16xf32> to vector<16x16xbf16>
    %697 = vector.extract_strided_slice %5 {offsets = [48, 0], sizes = [16, 16], strides = [1, 1]} : vector<128x16xbf16> to vector<16x16xbf16>
    %cst_174 = arith.constant dense<0.000000e+00> : vector<16x16xf32>
    %698 = tpu.matmul %696, %697, %cst_174 {dimension_numbers = #tpu.dot_dimension_numbers<[1], [0], [0], [1], [0, 0, 1, 1], [], []>} : vector<16x16xbf16>, vector<16x16xbf16>, vector<16x16xf32> -> vector<16x16xf32>
    %699 = arith.addf %676, %698 : vector<16x16xf32>
    %700 = vector.extract_strided_slice %606 {offsets = [0, 64], sizes = [16, 16], strides = [1, 1]} : vector<16x128xf32> to vector<16x16xf32>
    %701 = arith.truncf %700 : vector<16x16xf32> to vector<16x16xbf16>
    %702 = vector.extract_strided_slice %607 {offsets = [0, 64], sizes = [16, 16], strides = [1, 1]} : vector<16x128xf32> to vector<16x16xf32>
    %703 = arith.truncf %702 : vector<16x16xf32> to vector<16x16xbf16>
    %cst_175 = arith.constant dense<0.000000e+00> : vector<16x16xf32>
    %704 = tpu.matmul %701, %703, %cst_175 {dimension_numbers = #tpu.dot_dimension_numbers<[1], [1], [0], [0], [0, 0, 1, 0], [], []>} : vector<16x16xbf16>, vector<16x16xbf16>, vector<16x16xf32> -> vector<16x16xf32>
    %cst_176 = arith.constant dense<0xFF800000> : vector<16xf32>
    %705 = vector.multi_reduction <maximumf>, %704, %cst_176 [1] : vector<16x16xf32> to vector<16xf32>
    %706 = vector.shape_cast %705 : vector<16xf32> to vector<16x1xf32>
    %707 = vector.broadcast %706 : vector<16x1xf32> to vector<16x16xf32>
    %708 = arith.subf %704, %707 : vector<16x16xf32>
    %709 = math.exp %708 : vector<16x16xf32>
    %cst_177 = arith.constant dense<0.000000e+00> : vector<16xf32>
    %710 = vector.multi_reduction <add>, %709, %cst_177 [1] : vector<16x16xf32> to vector<16xf32>
    %711 = vector.shape_cast %710 : vector<16xf32> to vector<16x1xf32>
    %712 = tpu.reciprocal %711 {approx = true} : vector<16x1xf32> -> vector<16x1xf32>
    %713 = arith.truncf %709 : vector<16x16xf32> to vector<16x16xbf16>
    %714 = vector.extract_strided_slice %608 {offsets = [0, 64], sizes = [16, 16], strides = [1, 1]} : vector<16x128xf32> to vector<16x16xf32>
    %715 = arith.truncf %714 : vector<16x16xf32> to vector<16x16xbf16>
    %cst_178 = arith.constant dense<0.000000e+00> : vector<16x16xf32>
    %716 = tpu.matmul %713, %715, %cst_178 {dimension_numbers = #tpu.dot_dimension_numbers<[1], [0], [0], [1], [0, 0, 1, 1], [], []>} : vector<16x16xbf16>, vector<16x16xbf16>, vector<16x16xf32> -> vector<16x16xf32>
    %717 = vector.broadcast %712 : vector<16x1xf32> to vector<16x16xf32>
    %718 = arith.mulf %716, %717 : vector<16x16xf32>
    %719 = arith.truncf %718 : vector<16x16xf32> to vector<16x16xbf16>
    %720 = vector.extract_strided_slice %5 {offsets = [64, 0], sizes = [16, 16], strides = [1, 1]} : vector<128x16xbf16> to vector<16x16xbf16>
    %cst_179 = arith.constant dense<0.000000e+00> : vector<16x16xf32>
    %721 = tpu.matmul %719, %720, %cst_179 {dimension_numbers = #tpu.dot_dimension_numbers<[1], [0], [0], [1], [0, 0, 1, 1], [], []>} : vector<16x16xbf16>, vector<16x16xbf16>, vector<16x16xf32> -> vector<16x16xf32>
    %722 = arith.addf %699, %721 : vector<16x16xf32>
    %723 = vector.extract_strided_slice %606 {offsets = [0, 80], sizes = [16, 16], strides = [1, 1]} : vector<16x128xf32> to vector<16x16xf32>
    %724 = arith.truncf %723 : vector<16x16xf32> to vector<16x16xbf16>
    %725 = vector.extract_strided_slice %607 {offsets = [0, 80], sizes = [16, 16], strides = [1, 1]} : vector<16x128xf32> to vector<16x16xf32>
    %726 = arith.truncf %725 : vector<16x16xf32> to vector<16x16xbf16>
    %cst_180 = arith.constant dense<0.000000e+00> : vector<16x16xf32>
    %727 = tpu.matmul %724, %726, %cst_180 {dimension_numbers = #tpu.dot_dimension_numbers<[1], [1], [0], [0], [0, 0, 1, 0], [], []>} : vector<16x16xbf16>, vector<16x16xbf16>, vector<16x16xf32> -> vector<16x16xf32>
    %cst_181 = arith.constant dense<0xFF800000> : vector<16xf32>
    %728 = vector.multi_reduction <maximumf>, %727, %cst_181 [1] : vector<16x16xf32> to vector<16xf32>
    %729 = vector.shape_cast %728 : vector<16xf32> to vector<16x1xf32>
    %730 = vector.broadcast %729 : vector<16x1xf32> to vector<16x16xf32>
    %731 = arith.subf %727, %730 : vector<16x16xf32>
    %732 = math.exp %731 : vector<16x16xf32>
    %cst_182 = arith.constant dense<0.000000e+00> : vector<16xf32>
    %733 = vector.multi_reduction <add>, %732, %cst_182 [1] : vector<16x16xf32> to vector<16xf32>
    %734 = vector.shape_cast %733 : vector<16xf32> to vector<16x1xf32>
    %735 = tpu.reciprocal %734 {approx = true} : vector<16x1xf32> -> vector<16x1xf32>
    %736 = arith.truncf %732 : vector<16x16xf32> to vector<16x16xbf16>
    %737 = vector.extract_strided_slice %608 {offsets = [0, 80], sizes = [16, 16], strides = [1, 1]} : vector<16x128xf32> to vector<16x16xf32>
    %738 = arith.truncf %737 : vector<16x16xf32> to vector<16x16xbf16>
    %cst_183 = arith.constant dense<0.000000e+00> : vector<16x16xf32>
    %739 = tpu.matmul %736, %738, %cst_183 {dimension_numbers = #tpu.dot_dimension_numbers<[1], [0], [0], [1], [0, 0, 1, 1], [], []>} : vector<16x16xbf16>, vector<16x16xbf16>, vector<16x16xf32> -> vector<16x16xf32>
    %740 = vector.broadcast %735 : vector<16x1xf32> to vector<16x16xf32>
    %741 = arith.mulf %739, %740 : vector<16x16xf32>
    %742 = arith.truncf %741 : vector<16x16xf32> to vector<16x16xbf16>
    %743 = vector.extract_strided_slice %5 {offsets = [80, 0], sizes = [16, 16], strides = [1, 1]} : vector<128x16xbf16> to vector<16x16xbf16>
    %cst_184 = arith.constant dense<0.000000e+00> : vector<16x16xf32>
    %744 = tpu.matmul %742, %743, %cst_184 {dimension_numbers = #tpu.dot_dimension_numbers<[1], [0], [0], [1], [0, 0, 1, 1], [], []>} : vector<16x16xbf16>, vector<16x16xbf16>, vector<16x16xf32> -> vector<16x16xf32>
    %745 = arith.addf %722, %744 : vector<16x16xf32>
    %746 = vector.extract_strided_slice %606 {offsets = [0, 96], sizes = [16, 16], strides = [1, 1]} : vector<16x128xf32> to vector<16x16xf32>
    %747 = arith.truncf %746 : vector<16x16xf32> to vector<16x16xbf16>
    %748 = vector.extract_strided_slice %607 {offsets = [0, 96], sizes = [16, 16], strides = [1, 1]} : vector<16x128xf32> to vector<16x16xf32>
    %749 = arith.truncf %748 : vector<16x16xf32> to vector<16x16xbf16>
    %cst_185 = arith.constant dense<0.000000e+00> : vector<16x16xf32>
    %750 = tpu.matmul %747, %749, %cst_185 {dimension_numbers = #tpu.dot_dimension_numbers<[1], [1], [0], [0], [0, 0, 1, 0], [], []>} : vector<16x16xbf16>, vector<16x16xbf16>, vector<16x16xf32> -> vector<16x16xf32>
    %cst_186 = arith.constant dense<0xFF800000> : vector<16xf32>
    %751 = vector.multi_reduction <maximumf>, %750, %cst_186 [1] : vector<16x16xf32> to vector<16xf32>
    %752 = vector.shape_cast %751 : vector<16xf32> to vector<16x1xf32>
    %753 = vector.broadcast %752 : vector<16x1xf32> to vector<16x16xf32>
    %754 = arith.subf %750, %753 : vector<16x16xf32>
    %755 = math.exp %754 : vector<16x16xf32>
    %cst_187 = arith.constant dense<0.000000e+00> : vector<16xf32>
    %756 = vector.multi_reduction <add>, %755, %cst_187 [1] : vector<16x16xf32> to vector<16xf32>
    %757 = vector.shape_cast %756 : vector<16xf32> to vector<16x1xf32>
    %758 = tpu.reciprocal %757 {approx = true} : vector<16x1xf32> -> vector<16x1xf32>
    %759 = arith.truncf %755 : vector<16x16xf32> to vector<16x16xbf16>
    %760 = vector.extract_strided_slice %608 {offsets = [0, 96], sizes = [16, 16], strides = [1, 1]} : vector<16x128xf32> to vector<16x16xf32>
    %761 = arith.truncf %760 : vector<16x16xf32> to vector<16x16xbf16>
    %cst_188 = arith.constant dense<0.000000e+00> : vector<16x16xf32>
    %762 = tpu.matmul %759, %761, %cst_188 {dimension_numbers = #tpu.dot_dimension_numbers<[1], [0], [0], [1], [0, 0, 1, 1], [], []>} : vector<16x16xbf16>, vector<16x16xbf16>, vector<16x16xf32> -> vector<16x16xf32>
    %763 = vector.broadcast %758 : vector<16x1xf32> to vector<16x16xf32>
    %764 = arith.mulf %762, %763 : vector<16x16xf32>
    %765 = arith.truncf %764 : vector<16x16xf32> to vector<16x16xbf16>
    %766 = vector.extract_strided_slice %5 {offsets = [96, 0], sizes = [16, 16], strides = [1, 1]} : vector<128x16xbf16> to vector<16x16xbf16>
    %cst_189 = arith.constant dense<0.000000e+00> : vector<16x16xf32>
    %767 = tpu.matmul %765, %766, %cst_189 {dimension_numbers = #tpu.dot_dimension_numbers<[1], [0], [0], [1], [0, 0, 1, 1], [], []>} : vector<16x16xbf16>, vector<16x16xbf16>, vector<16x16xf32> -> vector<16x16xf32>
    %768 = arith.addf %745, %767 : vector<16x16xf32>
    %769 = vector.extract_strided_slice %606 {offsets = [0, 112], sizes = [16, 16], strides = [1, 1]} : vector<16x128xf32> to vector<16x16xf32>
    %770 = arith.truncf %769 : vector<16x16xf32> to vector<16x16xbf16>
    %771 = vector.extract_strided_slice %607 {offsets = [0, 112], sizes = [16, 16], strides = [1, 1]} : vector<16x128xf32> to vector<16x16xf32>
    %772 = arith.truncf %771 : vector<16x16xf32> to vector<16x16xbf16>
    %cst_190 = arith.constant dense<0.000000e+00> : vector<16x16xf32>
    %773 = tpu.matmul %770, %772, %cst_190 {dimension_numbers = #tpu.dot_dimension_numbers<[1], [1], [0], [0], [0, 0, 1, 0], [], []>} : vector<16x16xbf16>, vector<16x16xbf16>, vector<16x16xf32> -> vector<16x16xf32>
    %cst_191 = arith.constant dense<0xFF800000> : vector<16xf32>
    %774 = vector.multi_reduction <maximumf>, %773, %cst_191 [1] : vector<16x16xf32> to vector<16xf32>
    %775 = vector.shape_cast %774 : vector<16xf32> to vector<16x1xf32>
    %776 = vector.broadcast %775 : vector<16x1xf32> to vector<16x16xf32>
    %777 = arith.subf %773, %776 : vector<16x16xf32>
    %778 = math.exp %777 : vector<16x16xf32>
    %cst_192 = arith.constant dense<0.000000e+00> : vector<16xf32>
    %779 = vector.multi_reduction <add>, %778, %cst_192 [1] : vector<16x16xf32> to vector<16xf32>
    %780 = vector.shape_cast %779 : vector<16xf32> to vector<16x1xf32>
    %781 = tpu.reciprocal %780 {approx = true} : vector<16x1xf32> -> vector<16x1xf32>
    %782 = arith.truncf %778 : vector<16x16xf32> to vector<16x16xbf16>
    %783 = vector.extract_strided_slice %608 {offsets = [0, 112], sizes = [16, 16], strides = [1, 1]} : vector<16x128xf32> to vector<16x16xf32>
    %784 = arith.truncf %783 : vector<16x16xf32> to vector<16x16xbf16>
    %cst_193 = arith.constant dense<0.000000e+00> : vector<16x16xf32>
    %785 = tpu.matmul %782, %784, %cst_193 {dimension_numbers = #tpu.dot_dimension_numbers<[1], [0], [0], [1], [0, 0, 1, 1], [], []>} : vector<16x16xbf16>, vector<16x16xbf16>, vector<16x16xf32> -> vector<16x16xf32>
    %786 = vector.broadcast %781 : vector<16x1xf32> to vector<16x16xf32>
    %787 = arith.mulf %785, %786 : vector<16x16xf32>
    %788 = arith.truncf %787 : vector<16x16xf32> to vector<16x16xbf16>
    %789 = vector.extract_strided_slice %5 {offsets = [112, 0], sizes = [16, 16], strides = [1, 1]} : vector<128x16xbf16> to vector<16x16xbf16>
    %cst_194 = arith.constant dense<0.000000e+00> : vector<16x16xf32>
    %790 = tpu.matmul %788, %789, %cst_194 {dimension_numbers = #tpu.dot_dimension_numbers<[1], [0], [0], [1], [0, 0, 1, 1], [], []>} : vector<16x16xbf16>, vector<16x16xbf16>, vector<16x16xf32> -> vector<16x16xf32>
    %791 = arith.addf %768, %790 : vector<16x16xf32>
    %792 = vector.broadcast %6 : vector<1x16xf32> to vector<16x16xf32>
    %793 = arith.addf %791, %792 : vector<16x16xf32>
    %794 = arith.truncf %605 : vector<32x16xf32> to vector<32x16xbf16>
    %795 = arith.truncf %793 : vector<16x16xf32> to vector<16x16xbf16>
    %cst_195 = arith.constant dense<0.000000e+00> : vector<32x16xf32>
    %796 = tpu.matmul %794, %795, %cst_195 {dimension_numbers = #tpu.dot_dimension_numbers<[1], [0], [0], [1], [0, 0, 1, 1], [], []>} : vector<32x16xbf16>, vector<16x16xbf16>, vector<32x16xf32> -> vector<32x16xf32>
    %797 = arith.addf %605, %796 : vector<32x16xf32>
    %c1_196 = arith.constant 1 : index
    %c0_197 = arith.constant 0 : index
    %c0_198 = arith.constant 0 : index
    %798 = vector.load %arg11[%c1_196, %c0_197, %c0_198] : memref<2x32x16xf32, #tpu.memory_space<vmem>>, vector<1x32x16xf32>
    %799 = vector.shape_cast %798 : vector<1x32x16xf32> to vector<32x16xf32>
    %800 = vector.shape_cast %797 : vector<32x16xf32> to vector<1x32x16xf32>
    tpu.vector_store %arg11[%c1_196, %c0_197, %c0_198], %800 {strides = array<i32>} : memref<2x32x16xf32, #tpu.memory_space<vmem>>, vector<1x32x16xf32>,
    return
  }
  func.func @transform_0(%arg0: i32) -> (i32, i32, i32) {
    %c0_i32 = arith.constant 0 : i32
    %c0_i32_0 = arith.constant 0 : i32
    %c0_i32_1 = arith.constant 0 : i32
    return %arg0, %c0_i32, %c0_i32_0 : i32, i32, i32
  }
  func.func @transform_1(%arg0: i32) -> (i32, i32) {
    %c0_i32 = arith.constant 0 : i32
    %c0_i32_0 = arith.constant 0 : i32
    %c0_i32_1 = arith.constant 0 : i32
    return %c0_i32, %c0_i32_0 : i32, i32
  }
  func.func @transform_2(%arg0: i32) -> (i32, i32) {
    %c0_i32 = arith.constant 0 : i32
    %c0_i32_0 = arith.constant 0 : i32
    %c0_i32_1 = arith.constant 0 : i32
    return %c0_i32, %c0_i32_0 : i32, i32
  }
  func.func @transform_3(%arg0: i32) -> (i32, i32) {
    %c0_i32 = arith.constant 0 : i32
    %c0_i32_0 = arith.constant 0 : i32
    %c0_i32_1 = arith.constant 0 : i32
    return %c0_i32, %c0_i32_0 : i32, i32
  }
  func.func @transform_4(%arg0: i32) -> (i32, i32) {
    %c0_i32 = arith.constant 0 : i32
    %c0_i32_0 = arith.constant 0 : i32
    %c0_i32_1 = arith.constant 0 : i32
    return %c0_i32, %c0_i32_0 : i32, i32
  }
  func.func @transform_5(%arg0: i32) -> (i32, i32) {
    %c0_i32 = arith.constant 0 : i32
    %c0_i32_0 = arith.constant 0 : i32
    %c0_i32_1 = arith.constant 0 : i32
    return %c0_i32, %c0_i32_0 : i32, i32
  }
  func.func @transform_6(%arg0: i32) -> (i32, i32) {
    %c0_i32 = arith.constant 0 : i32
    %c0_i32_0 = arith.constant 0 : i32
    %c0_i32_1 = arith.constant 0 : i32
    return %c0_i32, %c0_i32_0 : i32, i32
  }
  func.func @transform_7(%arg0: i32) -> (i32, i32) {
    %c0_i32 = arith.constant 0 : i32
    %c0_i32_0 = arith.constant 0 : i32
    %c0_i32_1 = arith.constant 0 : i32
    return %c0_i32, %c0_i32_0 : i32, i32
  }
  func.func @transform_8(%arg0: i32) -> (i32, i32) {
    %c0_i32 = arith.constant 0 : i32
    %c0_i32_0 = arith.constant 0 : i32
    %c0_i32_1 = arith.constant 0 : i32
    return %c0_i32, %c0_i32_0 : i32, i32
  }
  func.func @transform_9(%arg0: i32) -> (i32, i32) {
    %c0_i32 = arith.constant 0 : i32
    %c0_i32_0 = arith.constant 0 : i32
    %c0_i32_1 = arith.constant 0 : i32
    return %c0_i32, %c0_i32_0 : i32, i32
  }
  func.func @transform_10(%arg0: i32) -> (i32, i32, i32) {
    %c0_i32 = arith.constant 0 : i32
    %c0_i32_0 = arith.constant 0 : i32
    %c0_i32_1 = arith.constant 0 : i32
    return %arg0, %c0_i32, %c0_i32_0 : i32, i32, i32
  }
}

</mosaic_0001>

<bundles_post_ra>
// kernel: _sparse_attention_impl.1
= control target key start
LH: loop header
LB: loop body
LE: loop exit
PB: predicated region body
PF: predicated region fallthrough
CT: control target
= control target key end

     0   :  { %v9261_v0 = vmov 0.0   ;;  %vm9262_vm0 = vmmov 0   ;;  %vm102_vm1 = vcmask 130048   ;;  %s9263_s25 = smov 112   ;;  %vm522_vm2 = vcmask 261120   ;;  %s9264_s16 = smov 96   ;;  %s11183_s1 = inlined_call_operand.vmem [shape: bf16[16,128], index: 1, kind: input, shape index: {}]   ;;  %s11184_s2 = inlined_call_operand.vmem [shape: bf16[16,128], index: 2, kind: input, shape index: {}]   ;;  %s11185_s0 = inlined_call_operand.vmem [shape: bf16[2,48,16], index: 0, kind: input, shape index: {}]   ;;  %s11186_s3 = inlined_call_operand.vmem [shape: bf16[16,128], index: 3, kind: input, shape index: {}]   ;;  %s11187_s4 = inlined_call_operand.vmem [shape: bf16[16,128], index: 4, kind: input, shape index: {}]   ;;  %s11188_s5 = inlined_call_operand.vmem [shape: bf16[16,128], index: 5, kind: input, shape index: {}]   ;;  %s11189_s8 = inlined_call_operand.vmem [shape: f32[48,128], index: 8, kind: input, shape index: {}]   ;;  %s11190_s9 = inlined_call_operand.vmem [shape: f32[48,128], index: 9, kind: input, shape index: {}]   ;;  %s11191_s6 = inlined_call_operand.vmem [shape: bf16[128,16], index: 6, kind: input, shape index: {}]   ;;  %s11192_s7 = inlined_call_operand.vmem [shape: f32[1,16], index: 7, kind: input, shape index: {}]   ;;  %s11193_s10 = inlined_call_operand.vmem [shape: f32[2,32,16], index: 10, kind: output, shape index: {}]  }
   0x1   :  { %7989 = vmatprep.subr.bf16.mxu0 %v9261_v0  ;;  %8003 = vmatprep.subr.bf16.mxu1 %v9261_v0  ;;  %v8822_v1 = vld [vmem:[%s11183_s1] sm:$0xff]   ;;  %v8825_v6 = vld [vmem:[%s11185_s0 + $0x8] sm:$0xff]   ;;  %v8828_v7 = vld [vmem:[%s11185_s0 + $0x10] sm:$0xff]   ;;  %s9265_s17 = smov 80   ;;  %s9266_s20 = smov 64  }
   0x2   :  { %v8823_v2 = vld [vmem:[%s11184_s2] sm:$0xff]   ;;  %7991 = vmatprep.mubr.msk.bf16.mxu0 %vm9262_vm0, %v9261_v0  ;;  %8005 = vmatprep.mubr.msk.bf16.mxu1 %vm9262_vm0, %v9261_v0  ;;  %v9412_v14 = vld [vmem:[%s11189_s8 + $0x8] sm:$0xff]  ;;  %v65_v28 = vld [vmem:[%s11189_s8 + $0x10] sm:$0xff]  ;;  %s9267_s23 = smov 48   ;;  %s9268_s27 = smov 32  }
   0x3   :  { %7990 = vmatpush3.bf16.msra.mxu0 %v8822_v1  ;;  %v8824_v3 = vld [vmem:[%s11185_s0] sm:$0xff]   ;;  %8004 = vmatpush3.bf16.msra.mxu1 %v8823_v2  ;;  %v9417_v16 = vld [vmem:[%s11190_s9 + $0x8] sm:$0xff]  ;;  %v71_v29 = vld [vmem:[%s11190_s9 + $0x10] sm:$0xff]  ;;  %s9269_s28 = smov 16  }
   0x4   :  { %8017 = vmatprep.subr.bf16.mxu0 %v9261_v0  ;;  %8031 = vmatprep.subr.bf16.mxu1 %v9261_v0  ;;  %v8826_v4 = vld [vmem:[%s11186_s3] sm:$0xff]   ;;  %v66_v33 = vld [vmem:[%s11189_s8 + $0x18] sm:$0xff]  ;;  %v9458_v54 = vld [vmem:[%s11189_s8 + $0x28] sm:$0xff] }
   0x5   :  { %v8827_v5 = vld [vmem:[%s11187_s4] sm:$0xff]   ;;  %v72_v35 = vld [vmem:[%s11190_s9 + $0x18] sm:$0xff]  ;;  %v74_v56 = vld [vmem:[%s11190_s9 + $0x28] sm:$0xff] }
   0x6   :  { %7992 = vmatmul.mubr.msk.bf16.vlgmr.msra.gmra.mxu0 %vm102_vm1, %v8824_v3  ;;  %8006 = vmatmul.mubr.msk.bf16.vlgmr.msra.gmra.mxu1 %vm102_vm1, %v8824_v3  ;;  %v8829_v8 = vld [vmem:[%s11188_s5] sm:$0xff]  }
   0x7   :  { %7995 = vmatprep.mubr.msk.bf16.mxu0 %vm9262_vm0, %v9261_v0  ;;  %8009 = vmatprep.mubr.msk.bf16.mxu1 %vm9262_vm0, %v9261_v0  ;;  %v9402_v10 = vld [vmem:[%s11189_s8] sm:$0xff] }
   0x8   :  { %8018 = vmatpush3.bf16.msra.mxu0 %v8826_v4  ;;  %8032 = vmatpush3.bf16.msra.mxu1 %v8827_v5  ;;  %v9407_v11 = vld [vmem:[%s11190_s9] sm:$0xff] }
   0x9   :  { %8045 = vmatprep.subr.bf16.mxu0 %v9261_v0  ;;  %v9444_v43 = vld [vmem:[%s11189_s8 + $0x20] sm:$0xff] }
   0xa   :  { %v9449_v45 = vld [vmem:[%s11190_s9 + $0x20] sm:$0xff] }
   0xe   :  { %7996 = vmatmul.mubr.msk.bf16.gmra.mxu0 %vm102_vm1, %v8825_v6  ;;  %8010 = vmatmul.mubr.msk.bf16.gmra.mxu1 %vm102_vm1, %v8825_v6 }
   0xf   :  { %7999 = vmatprep.mubr.msk.bf16.mxu0 %vm9262_vm0, %v9261_v0  ;;  %8013 = vmatprep.mubr.msk.bf16.mxu1 %vm9262_vm0, %v9261_v0 }
  0x16   :  { %8000 = vmatmul.mubr.msk.bf16.gmra.mxu0 %vm102_vm1, %v8828_v7  ;;  %8014 = vmatmul.mubr.msk.bf16.gmra.mxu1 %vm102_vm1, %v8828_v7 }
  0x17   :  { %8019 = vmatprep.mubr.msk.bf16.mxu0 %vm9262_vm0, %v9261_v0  ;;  %8033 = vmatprep.mubr.msk.bf16.mxu1 %vm9262_vm0, %v9261_v0 }
  0x1e   :  { %8020 = vmatmul.mubr.msk.bf16.vlgmr.msra.gmra.mxu0 %vm102_vm1, %v8824_v3  ;;  %8034 = vmatmul.mubr.msk.bf16.vlgmr.msra.gmra.mxu1 %vm102_vm1, %v8824_v3 }
  0x1f   :  { %8023 = vmatprep.mubr.msk.bf16.mxu0 %vm9262_vm0, %v9261_v0  ;;  %8037 = vmatprep.mubr.msk.bf16.mxu1 %vm9262_vm0, %v9261_v0 }
  0x20   :  { %8046 = vmatpush3.bf16.msra.mxu0 %v8829_v8 }
  0x26   :  { %8024 = vmatmul.mubr.msk.bf16.gmra.mxu0 %vm102_vm1, %v8825_v6  ;;  %8038 = vmatmul.mubr.msk.bf16.gmra.mxu1 %vm102_vm1, %v8825_v6 }
  0x27   :  { %8027 = vmatprep.mubr.msk.bf16.mxu0 %vm9262_vm0, %v9261_v0  ;;  %8041 = vmatprep.mubr.msk.bf16.mxu1 %vm9262_vm0, %v9261_v0 }
  0x2e   :  { %8028 = vmatmul.mubr.msk.bf16.gmra.mxu0 %vm102_vm1, %v8828_v7  ;;  %8042 = vmatmul.mubr.msk.bf16.gmra.mxu1 %vm102_vm1, %v8828_v7 }
  0x2f   :  { %8047 = vmatprep.mubr.msk.bf16.mxu0 %vm9262_vm0, %v9261_v0 }
  0x36   :  { %8048 = vmatmul.mubr.msk.bf16.vlgmr.msra.gmra.mxu0 %vm102_vm1, %v8824_v3 }
  0x37   :  { %8051 = vmatprep.mubr.msk.bf16.mxu0 %vm9262_vm0, %v9261_v0 }
  0x3e   :  { %8052 = vmatmul.mubr.msk.bf16.gmra.mxu0 %vm102_vm1, %v8825_v6 }
  0x3f   :  { %8055 = vmatprep.mubr.msk.bf16.mxu0 %vm9262_vm0, %v9261_v0 }
  0x46   :  { %8056 = vmatmul.mubr.msk.bf16.gmra.mxu0 %vm102_vm1, %v8828_v7 }
  0xc6   :  { %v146_v9 = vpop.f32.mrf.mxu0  ;;  %v215_v12 = vpop.f32.mrf.mxu1 }
  0xc7   :  { %v169_v17 = vmul.f32 %v146_v9, %v9402_v10  ;;  %v238_v18 = vmul.f32 %v215_v12, %v9407_v11 }
  0xc8   :  { %v7993_v13 = vpop.f32.mrf.mxu0  ;;  %v8007_v15 = vpop.f32.mrf.mxu1 }
  0xc9   :  { %v244_v25 = vadd.f32 %v238_v18, %v169_v17 }
  0xca   :  { %v149_v19 = vpop.f32.mrf.mxu0  ;;  %v218_v21 = vpop.f32.mrf.mxu1 }
  0xcb   :  { %v170_v20 = vmul.f32 %v149_v19, %v9412_v14  ;;  %v239_v22 = vmul.f32 %v218_v21, %v9417_v16 }
  0xcc   :  { %v7994_v23 = vpop.f32.mrf.mxu0  ;;  %v8008_v24 = vpop.f32.mrf.mxu1 }
  0xcd   :  { %v245_v26 = vadd.f32 %v239_v22, %v170_v20 }
  0xce   :  { %v154_v27 = vpop.f32.mrf.mxu0  ;;  %v223_v30 = vpop.f32.mrf.mxu1 }
  0xcf   :  { %v9429_v31 = vpack.c.bf16 %v245_v26, %v244_v25  ;;  %v171_v36 = vmul.f32 %v154_v27, %v65_v28  ;;  %v240_v37 = vmul.f32 %v223_v30, %v71_v29 }
  0xd0   :  { %v7997_v32 = vpop.f32.mrf.mxu0  ;;  %v8011_v34 = vpop.f32.mrf.mxu1 }
  0xd1   :  { %630 = vrot.lane.b32.xlu1 %v9429_v31, %s9263_s25  ;;  %8063 = vmatprep.mubr.msk.bf16.mxu1 %vm102_vm1, %v9429_v31  ;;  %v246_v46 = vadd.f32 %v240_v37, %v171_v36 }
  0xd2   :  { %v157_v38 = vpop.f32.mrf.mxu0  ;;  %v226_v40 = vpop.f32.mrf.mxu1 }
  0xd3   :  { %v172_v39 = vmul.f32 %v157_v38, %v66_v33  ;;  %v241_v41 = vmul.f32 %v226_v40, %v72_v35 }
  0xd4   :  { %v7998_v42 = vpop.f32.mrf.mxu0  ;;  %v8012_v44 = vpop.f32.mrf.mxu1 }
  0xd5   :  { %v247_v47 = vadd.f32 %v241_v41, %v172_v39 }
  0xd6   :  { %v162_v48 = vpop.f32.mrf.mxu0  ;;  %v231_v50 = vpop.f32.mrf.mxu1 }
  0xd7   :  { %v173_v49 = vmul.f32 %v162_v48, %v9444_v43  ;;  %v9452_v51 = vpack.c.bf16 %v247_v47, %v246_v46  ;;  %v242_v52 = vmul.f32 %v231_v50, %v9449_v45 }
  0xd8   :  { %v8001_v53 = vpop.f32.mrf.mxu0  ;;  %v8015_v55 = vpop.f32.mrf.mxu1 }
  0xd9   :  { %v248_v57 = vadd.f32 %v242_v52, %v173_v49  ;;  %632 = vrot.lane.b32.xlu1 %v9452_v51, %s9263_s25 }
  0xda   :  { %v165_v58 = vpop.f32.mrf.mxu0  ;;  %v234_v60 = vpop.f32.mrf.mxu1 }
  0xdb   :  { %v174_v59 = vmul.f32 %v165_v58, %v9458_v54  ;;  %v243_v61 = vmul.f32 %v234_v60, %v74_v56 }
  0xdc   :  { %v8002_v62 = vpop.f32.mrf.mxu0  ;;  %v8016_v63 = vpop.f32.mrf.mxu1 }
  0xdd   :  { %v249_v1 = vadd.f32 %v243_v61, %v174_v59 }
  0xde   :  { %v290_v2 = vpop.f32.mrf.mxu0  ;;  %v359_v3 = vpop.f32.mrf.mxu1 }
  0xdf   :  { %v9466_v4 = vpack.c.bf16 %v249_v1, %v248_v57  ;;  %v313_v26 = vmul.f32 %v290_v2, %v9402_v10  ;;  %v382_v27 = vmul.f32 %v359_v3, %v9407_v11 }
  0xe0   :  { %v8021_v5 = vpop.f32.mrf.mxu0  ;;  %v8035_v6 = vpop.f32.mrf.mxu1 }
  0xe1   :  { %v388_v39 = vadd.f32 %v382_v27, %v313_v26 }
  0xe2   :  { %v293_v7 = vpop.f32.mrf.mxu0  ;;  %v362_v8 = vpop.f32.mrf.mxu1 }
  0xe3   :  { %v314_v19 = vmul.f32 %v293_v7, %v9412_v14  ;;  %v383_v20 = vmul.f32 %v362_v8, %v9417_v16 }
  0xe4   :  { %v8022_v9 = vpop.f32.mrf.mxu0  ;;  %v8036_v12 = vpop.f32.mrf.mxu1 }
  0xe5   :  { %v389_v36 = vadd.f32 %v383_v20, %v314_v19 }
  0xe6   :  { %v298_v13 = vpop.f32.mrf.mxu0  ;;  %v367_v15 = vpop.f32.mrf.mxu1 }
  0xe7   :  { %v315_v21 = vmul.f32 %v298_v13, %v65_v28  ;;  %v384_v22 = vmul.f32 %v367_v15, %v71_v29  ;;  %v9474_v14 = vpack.c.bf16 %v389_v36, %v388_v39 }
  0xe8   :  { %v8025_v17 = vpop.f32.mrf.mxu0  ;;  %v8039_v18 = vpop.f32.mrf.mxu1 }
  0xe9   :  { %v390_v37 = vadd.f32 %v384_v22, %v315_v21  ;;  %v468_v29 = vsel %vm102_vm1, %v9474_v14, 0 }
  0xea   :  { %v301_v23 = vpop.f32.mrf.mxu0  ;;  %v370_v25 = vpop.f32.mrf.mxu1 }
  0xeb   :  { %v316_v24 = vmul.f32 %v301_v23, %v66_v33  ;;  %v385_v30 = vmul.f32 %v370_v25, %v72_v35 }
  0xec   :  { %v8026_v32 = vpop.f32.mrf.mxu0  ;;  %v8040_v34 = vpop.f32.mrf.mxu1 }
  0xed   :  { %v391_v38 = vadd.f32 %v385_v30, %v316_v24 }
  0xee   :  { %v375_v11 = vpop.f32.mrf.mxu1  ;;  %v306_v42 = vpop.f32.mrf.mxu0 }
  0xef   :  { %v9472_v40 = vpack.c.bf16 %v391_v38, %v390_v37  ;;  %v386_v41 = vmul.f32 %v375_v11, %v9449_v45  ;;  %v317_v44 = vmul.f32 %v306_v42, %v9444_v43 }
  0xf0   :  { %v8043_v16 = vpop.f32.mrf.mxu1  ;;  %v8029_v46 = vpop.f32.mrf.mxu0 }
  0xf1   :  { %638 = vrot.lane.b32.xlu0 %v9472_v40, %s9263_s25  ;;  %8781 = vmatprep.subr.msk.bf16.mxu1 %vm102_vm1, %v9472_v40  ;;  %v471_v10 = vsel %vm102_vm1, %v9472_v40, 0  ;;  %v392_v48 = vadd.f32 %v386_v41, %v317_v44 }
  0xf2   :  { %8060 = vmatpush3.bf16.xpose.msra.mxu1 %v471_v10  ;;  %v378_v28 = vpop.f32.mrf.mxu1  ;;  %v309_v49 = vpop.f32.mrf.mxu0 }
  0xf3   :  { %8782 = vmatprep.subr.msk.bf16.mxu1 %vm102_vm1, %v9474_v14  ;;  %v387_v47 = vmul.f32 %v378_v28, %v74_v56  ;;  %v318_v50 = vmul.f32 %v309_v49, %v9458_v54 }
  0xf4   :  { %v8044_v33 = vpop.f32.mrf.mxu1  ;;  %v8030_v52 = vpop.f32.mrf.mxu0 }
  0xf5   :  { %636 = vrot.lane.b32.xlu0 %v9474_v14, %s9263_s25  ;;  %v393_v53 = vadd.f32 %v387_v47, %v318_v50 }
  0xf6   :  { %v434_v55 = vpop.f32.mrf.mxu0 }
  0xf7   :  { %v9494_v57 = vpack.c.bf16 %v393_v53, %v392_v48 }
  0xf8   :  { %v8049_v58 = vpop.f32.mrf.mxu0 }
  0xfa   :  { %8062 = vmatpush3.bf16.xpose.msra.mxu1 %v468_v29  ;;  %v437_v59 = vpop.f32.mrf.mxu0 }
  0xfb   :  { %v9496_v63 = vpack.c.bf16 %v437_v59, %v434_v55 }
  0xfc   :  { %v8050_v60 = vpop.f32.mrf.mxu0 }
  0xfe   :  { %v442_v61 = vpop.f32.mrf.mxu0 }
 0x100   :  { %v8053_v62 = vpop.f32.mrf.mxu0 }
 0x101   :  { %8064 = vmatmul.mubr.msk.bf16.vlgmr.msra.gmra.mxu1 %vm102_vm1, %v9452_v51 }
 0x102   :  { %v445_v45 = vpop.f32.mrf.mxu0 }
 0x103   :  { %v9498_v43 = vpack.c.bf16 %v445_v45, %v442_v61 }
 0x104   :  { %v8054_v56 = vpop.f32.mrf.mxu0 }
 0x105   :  { %8067 = vmatprep.subr.bf16.mxu1 %v9498_v43 }
 0x106   :  { %8068 = vmatpush3.bf16.msra.mxu1 %v9498_v43  ;;  %v450_v54 = vpop.f32.mrf.mxu0 }
 0x107   :  { %8069 = vmatprep.subr.bf16.mxu1 %v9496_v63 }
 0x108   :  { %v8057_v3 = vpop.f32.mrf.mxu0 }
 0x10a   :  { %8070 = vmatpush3.bf16.msra.mxu1 %v9496_v63  ;;  %v453_v6 = vpop.f32.mrf.mxu0 }
 0x10b   :  { %v9507_v7 = vpack.c.bf16 %v453_v6, %v450_v54 }
 0x10c   :  { %v8058_v8 = vpop.f32.mrf.mxu0 }
 0x143   :  { %v631_v35 = vpop.permute.xlu1 %630 }
 0x144   :  { %8079 = vmatprep.mubr.msk.bf16.mxu0 %vm102_vm1, %v631_v35 }
 0x14b   :  { %v633_v12 = vpop.permute.xlu1 %632 }
 0x163   :  { %v639_v1 = vpop.permute.xlu0 %638 }
 0x164   :  { %8783 = vmatprep.subr.msk.bf16.mxu0 %vm102_vm1, %v639_v1  ;;  %v650_v2 = vsel %vm102_vm1, %v639_v1, 0 }
 0x165   :  { %8076 = vmatpush3.bf16.xpose.msra.mxu0 %v650_v2 }
 0x167   :  { %v637_v5 = vpop.permute.xlu0 %636 }
 0x168   :  { %8784 = vmatprep.subr.msk.bf16.mxu0 %vm102_vm1, %v637_v5  ;;  %v647_v9 = vsel %vm102_vm1, %v637_v5, 0 }
 0x16d   :  { %8078 = vmatpush3.bf16.xpose.msra.mxu0 %v647_v9 }
 0x174   :  { %8080 = vmatmul.mubr.msk.bf16.vlgmr.msra.gmra.mxu0 %vm102_vm1, %v633_v12 }
 0x1c1   :  { %v8065_v13 = vpop.f32.mrf.mxu1 }
 0x1c2   :  { %v529_v15 = vsel %vm522_vm2, %v8065_v13, -inf }
 0x1c3   :  { %530 = vmax.xlane.f32.xlu0 %v529_v15  ;;  %v507_v17 = vpop.f32.mrf.mxu1 }
 0x1c4   :  { %v523_v19 = vsel %vm522_vm2, %v507_v17, -inf }
 0x1c5   :  { %v8066_v18 = vpop.f32.mrf.mxu1 }
 0x1c6   :  { %v532_v22 = vsel %vm522_vm2, %v8066_v18, -inf }
 0x1c7   :  { %524 = vmax.xlane.f32.xlu0 %v523_v19  ;;  %v510_v20 = vpop.f32.mrf.mxu1  ;;  %v8830_v19 = vld [vmem:[%s11191_s6 + $0x8] sm:$0xff]  }
 0x1c8   :  { %v526_v21 = vsel %vm522_vm2, %v510_v20, -inf }
 0x1c9   :  { %527 = vmax.xlane.f32.xlu1 %v526_v21 }
 0x1cb   :  { %533 = vmax.xlane.f32.xlu0 %v532_v22 }
 0x234   :  { %v8081_v23 = vpop.f32.mrf.mxu0 }
 0x235   :  { %v707_v24 = vsel %vm522_vm2, %v8081_v23, -inf }
 0x236   :  { %708 = vmax.xlane.f32.xlu1 %v707_v24  ;;  %v686_v25 = vpop.f32.mrf.mxu0  ;;  %v8831_v24 = vld [vmem:[%s11191_s6] sm:$0xff]  }
 0x237   :  { %v701_v27 = vsel %vm522_vm2, %v686_v25, -inf  ;;  %8097 = vmatprep.subr.bf16.mxu0 %v8831_v24 }
 0x238   :  { %v8082_v26 = vpop.f32.mrf.mxu0  ;;  %8098 = vmatpush3.bf16.msra.mxu0 %v8831_v24 }
 0x239   :  { %v710_v30 = vsel %vm522_vm2, %v8082_v26, -inf }
 0x23a   :  { %702 = vmax.xlane.f32.xlu1 %v701_v27  ;;  %711 = vmax.xlane.f32.xlu0 %v710_v30  ;;  %v689_v32 = vpop.f32.mrf.mxu0 }
 0x23b   :  { %v704_v34 = vsel %vm522_vm2, %v689_v32, -inf }
 0x23e   :  { %705 = vmax.xlane.f32.xlu0 %v704_v34 }
 0x24b   :  { %747 = vrot.lane.b32.xlu1 %v9498_v43, %s9263_s25 }
 0x24c   :  { %v531_v36 = vpop.xlane.xlu0 %530 }
 0x24d   :  { %v537_v37 = vsub.f32 %v8065_v13, %v531_v36 }
 0x24f   :  { %v543_v28 = vmul.f32 1.442695, %v537_v37 }
 0x250   :  { %v525_v38 = vpop.xlane.xlu0 %524 }
 0x251   :  { %v535_v39 = vsub.f32 %v507_v17, %v525_v38 }
 0x252   :  { %v528_v10 = vpop.xlane.xlu1 %527 }
 0x253   :  { %v539_v11 = vmul.f32 1.442695, %v535_v39  ;;  %v536_v16 = vsub.f32 %v510_v20, %v528_v10 }
 0x254   :  { %v534_v29 = vpop.xlane.xlu0 %533  ;;  %745 = vrot.lane.b32.xlu0 %v9496_v63, %s9263_s25 }
 0x255   :  { %v541_v33 = vmul.f32 1.442695, %v536_v16  ;;  %v538_v35 = vsub.f32 %v8066_v18, %v534_v29  ;;  %8841 = vpow2.f32 %v539_v11 }
 0x257   :  { %8843 = vpow2.f32 %v541_v33  ;;  %v545_v41 = vmul.f32 1.442695, %v538_v35 }
 0x258   :  { %8845 = vpow2.f32 %v543_v28 }
 0x259   :  { %8847 = vpow2.f32 %v545_v41 }
 0x262   :  { %v8842_v42 = vpop.eup %8841 }
 0x263   :  { %v547_v21 = vsel %vm522_vm2, %v8842_v42, 0.0 }
 0x264   :  { %v8844_v44 = vpop.eup %8843 }
 0x265   :  { %v8846_v46 = vpop.eup %8845  ;;  %v563_v47 = vpack.c.bf16 %v8844_v44, %v8842_v42  ;;  %v550_v20 = vsel %vm522_vm2, %v8844_v44, 0.0 }
 0x266   :  { %v8848_v48 = vpop.eup %8847  ;;  %v553_v22 = vsel %vm522_vm2, %v8846_v46, 0.0 }
 0x267   :  { %8071 = vmatprep.mubr.msk.bf16.mxu1 %vm522_vm2, %v563_v47  ;;  %v564_v49 = vpack.c.bf16 %v8848_v48, %v8846_v46 }
 0x269   :  { %8072 = vmatmul.mubr.msk.bf16.vlgmr.msra.gmra.mxu1 %vm522_vm2, %v564_v49 }
 0x2bf   :  { %v709_v50 = vpop.xlane.xlu1 %708 }
 0x2c0   :  { %v715_v52 = vsub.f32 %v8081_v23, %v709_v50  ;;  %v556_v23 = vsel %vm522_vm2, %v8848_v48, 0.0 }
 0x2c2   :  { %v721_v53 = vmul.f32 1.442695, %v715_v52 }
 0x2c3   :  { %v703_v55 = vpop.xlane.xlu1 %702  ;;  %v712_v58 = vpop.xlane.xlu0 %711 }
 0x2c4   :  { %8849 = vpow2.f32 %v721_v53  ;;  %v713_v59 = vsub.f32 %v686_v25, %v703_v55  ;;  %v716_v60 = vsub.f32 %v8082_v26, %v712_v58 }
 0x2c6   :  { %v717_v61 = vmul.f32 1.442695, %v713_v59  ;;  %v723_v62 = vmul.f32 1.442695, %v716_v60 }
 0x2c7   :  { %v748_v45 = vpop.permute.xlu1 %747  ;;  %v706_v56 = vpop.xlane.xlu0 %705 }
 0x2c8   :  { %8851 = vpow2.f32 %v717_v61  ;;  %v714_v1 = vsub.f32 %v689_v32, %v706_v56  ;;  %8083 = vmatprep.subr.bf16.mxu1 %v748_v45 }
 0x2c9   :  { %8084 = vmatpush3.bf16.msra.mxu1 %v748_v45  ;;  %8853 = vpow2.f32 %v723_v62 }
 0x2ca   :  { %v719_v54 = vmul.f32 1.442695, %v714_v1 }
 0x2cb   :  { %v746_v2 = vpop.permute.xlu0 %745 }
 0x2cc   :  { %8855 = vpow2.f32 %v719_v54  ;;  %8085 = vmatprep.subr.bf16.mxu1 %v746_v2 }
 0x2cd   :  { %8086 = vmatpush3.bf16.msra.mxu1 %v746_v2 }
 0x2ce   :  { %8091 = vmatprep.subr.bf16.mxu1 %v8830_v19 }
 0x2d1   :  { %v8850_v3 = vpop.eup %8849 }
 0x2d2   :  { %v731_v5 = vsel %vm522_vm2, %v8850_v3, 0.0 }
 0x2d3   :  { %732 = vadd.xlane.f32.xlu1 %v731_v5 }
 0x2d5   :  { %v8852_v6 = vpop.eup %8851 }
 0x2d6   :  { %v725_v8 = vsel %vm522_vm2, %v8852_v6, 0.0  ;;  %v8854_v9 = vpop.eup %8853 }
 0x2d7   :  { %726 = vadd.xlane.f32.xlu1 %v725_v8  ;;  %v742_v17 = vpack.c.bf16 %v8854_v9, %v8850_v3  ;;  %v734_v18 = vsel %vm522_vm2, %v8854_v9, 0.0 }
 0x2d9   :  { %v8856_v12 = vpop.eup %8855 }
 0x2da   :  { %v728_v13 = vsel %vm522_vm2, %v8856_v12, 0.0  ;;  %v741_v15 = vpack.c.bf16 %v8856_v12, %v8852_v6 }
 0x2db   :  { %729 = vadd.xlane.f32.xlu0 %v728_v13 }
 0x2dc   :  { %8087 = vmatprep.mubr.msk.bf16.mxu1 %vm522_vm2, %v741_v15 }
 0x2dd   :  { %8088 = vmatmul.mubr.msk.bf16.vlgmr.msra.gmra.mxu1 %vm522_vm2, %v742_v17 }
 0x2de   :  { %8092 = vmatpush3.bf16.msra.mxu1 %v8830_v19 }
 0x2df   :  { %735 = vadd.xlane.f32.xlu0 %v734_v18 }
 0x2e8   :  { %940 = vrot.lane.b32.xlu1 %v9472_v40, %s9264_s16 }
 0x2ec   :  { %934 = vrot.lane.b32.xlu1 %v9429_v31, %s9264_s16 }
 0x2f0   :  { %936 = vrot.lane.b32.xlu1 %v9452_v51, %s9264_s16 }
 0x2f4   :  { %1181 = vrot.lane.b32.xlu1 %v9474_v14, %s9265_s17 }
 0x2f5   :  { %938 = vrot.lane.b32.xlu0 %v9474_v14, %s9264_s16 }
 0x2f8   :  { %1179 = vrot.lane.b32.xlu1 %v9452_v51, %s9265_s17 }
 0x2f9   :  { %1183 = vrot.lane.b32.xlu0 %v9472_v40, %s9265_s17 }
 0x2fd   :  { %1177 = vrot.lane.b32.xlu0 %v9429_v31, %s9265_s17 }
 0x31c   :  { %551 = vadd.xlane.f32.xlu1 %v550_v20  ;;  %548 = vadd.xlane.f32.xlu0 %v547_v21 }
 0x320   :  { %554 = vadd.xlane.f32.xlu0 %v553_v22 }
 0x324   :  { %557 = vadd.xlane.f32.xlu0 %v556_v23 }
 0x329   :  { %v8073_v34 = vpop.f32.mrf.mxu1 }
 0x32b   :  { %v607_v37 = vpop.f32.mrf.mxu1 }
 0x32d   :  { %v8074_v10 = vpop.f32.mrf.mxu1 }
 0x32f   :  { %v610_v16 = vpop.f32.mrf.mxu1 }
 0x35c   :  { %v733_v25 = vpop.xlane.xlu1 %732 }
 0x360   :  { %v727_v26 = vpop.xlane.xlu1 %726 }
 0x361   :  { %8857 = vrcp.f32 %v727_v26 }
 0x364   :  { %v941_v27 = vpop.permute.xlu1 %940  ;;  %v730_v30 = vpop.xlane.xlu0 %729 }
 0x365   :  { %8785 = vmatprep.subr.msk.bf16.mxu1 %vm102_vm1, %v941_v27  ;;  %v952_v62 = vsel %vm102_vm1, %v941_v27, 0 }
 0x368   :  { %v935_v32 = vpop.permute.xlu1 %934  ;;  %v736_v36 = vpop.xlane.xlu0 %735 }
 0x369   :  { %8859 = vrcp.f32 %v736_v36 }
 0x36a   :  { %8861 = vrcp.f32 %v730_v30 }
 0x36b   :  { %8863 = vrcp.f32 %v733_v25 }
 0x36c   :  { %v937_v38 = vpop.permute.xlu1 %936  ;;  %v939_v39 = vpop.permute.xlu0 %938 }
 0x36d   :  { %v949_v1 = vsel %vm102_vm1, %v939_v39, 0 }
 0x36e   :  { %v8858_v41 = vpop.eup %8857 }
 0x370   :  { %v1182_v11 = vpop.permute.xlu1 %1181  ;;  %v1184_v28 = vpop.permute.xlu0 %1183 }
 0x371   :  { %v1195_v9 = vsel %vm102_vm1, %v1184_v28, 0  ;;  %v1192_v18 = vsel %vm102_vm1, %v1182_v11, 0 }
 0x374   :  { %v1180_v35 = vpop.permute.xlu1 %1179  ;;  %v1178_v42 = vpop.permute.xlu0 %1177 }
 0x376   :  { %v8860_v46 = vpop.eup %8859 }
 0x377   :  { %v8862_v47 = vpop.eup %8861 }
 0x378   :  { %v8864_v50 = vpop.eup %8863 }
 0x39d   :  { %v8089_v29 = vpop.f32.mrf.mxu1 }
 0x39e   :  { %v808_v55 = vmul.f32 %v8864_v50, %v8089_v29 }
 0x39f   :  { %v791_v33 = vpop.f32.mrf.mxu1 }
 0x3a0   :  { %v806_v52 = vmul.f32 %v8858_v41, %v791_v33 }
 0x3a1   :  { %v8090_v44 = vpop.f32.mrf.mxu1 }
 0x3a2   :  { %v809_v48 = vmul.f32 %v8860_v46, %v8090_v44 }
 0x3a3   :  { %v794_v49 = vpop.f32.mrf.mxu1 }
 0x3a4   :  { %v807_v53 = vmul.f32 %v8862_v47, %v794_v49  ;;  %v811_v61 = vpack.c.bf16 %v809_v48, %v808_v55 }
 0x3a5   :  { %v552_v58 = vpop.xlane.xlu1 %551  ;;  %v549_v59 = vpop.xlane.xlu0 %548 }
 0x3a6   :  { %v810_v60 = vpack.c.bf16 %v807_v53, %v806_v52  ;;  %8865 = vrcp.f32 %v552_v58 }
 0x3a7   :  { %8867 = vrcp.f32 %v549_v59 }
 0x3a8   :  { %8093 = vmatprep.mubr.msk.bf16.mxu1 %vm102_vm1, %v810_v60 }
 0x3a9   :  { %8094 = vmatmul.mubr.msk.bf16.vlgmr.msra.gmra.mxu1 %vm102_vm1, %v811_v61  ;;  %v555_v45 = vpop.xlane.xlu0 %554 }
 0x3aa   :  { %8104 = vmatpush3.bf16.xpose.msra.mxu1 %v952_v62  ;;  %8107 = vmatprep.mubr.msk.bf16.mxu1 %vm102_vm1, %v935_v32  ;;  %8869 = vrcp.f32 %v555_v45 }
 0x3ab   :  { %8786 = vmatprep.subr.msk.bf16.mxu1 %vm102_vm1, %v939_v39 }
 0x3ad   :  { %v558_v56 = vpop.xlane.xlu0 %557 }
 0x3ae   :  { %8871 = vrcp.f32 %v558_v56 }
 0x3b2   :  { %8106 = vmatpush3.bf16.xpose.msra.mxu1 %v949_v1 }
 0x3b3   :  { %v8866_v54 = vpop.eup %8865  ;;  %8787 = vmatprep.subr.msk.bf16.mxu1 %vm102_vm1, %v1184_v28 }
 0x3b4   :  { %v8868_v2 = vpop.eup %8867  ;;  %v623_v3 = vmul.f32 %v8866_v54, %v610_v16 }
 0x3b5   :  { %v622_v5 = vmul.f32 %v8868_v2, %v607_v37 }
 0x3b7   :  { %v626_v6 = vpack.c.bf16 %v623_v3, %v622_v5  ;;  %v8870_v8 = vpop.eup %8869 }
 0x3b8   :  { %v624_v13 = vmul.f32 %v8870_v8, %v8073_v34 }
 0x3b9   :  { %8099 = vmatprep.mubr.msk.bf16.mxu0 %vm102_vm1, %v626_v6  ;;  %8108 = vmatmul.mubr.msk.bf16.vlgmr.msra.gmra.mxu1 %vm102_vm1, %v937_v38 }
 0x3ba   :  { %8126 = vmatpush3.bf16.xpose.msra.mxu1 %v1195_v9  ;;  %8129 = vmatprep.mubr.msk.bf16.mxu1 %vm102_vm1, %v1178_v42 }
 0x3bb   :  { %v8872_v12 = vpop.eup %8871  ;;  %8788 = vmatprep.subr.msk.bf16.mxu1 %vm102_vm1, %v1182_v11 }
 0x3bc   :  { %v625_v15 = vmul.f32 %v8872_v12, %v8074_v10 }
 0x3be   :  { %v627_v17 = vpack.c.bf16 %v625_v15, %v624_v13 }
 0x3c0   :  { %8100 = vmatmul.mubr.msk.bf16.vlgmr.msra.gmra.mxu0 %vm102_vm1, %v627_v17 }
 0x3c2   :  { %8128 = vmatpush3.bf16.xpose.msra.mxu1 %v1192_v18 }
 0x3c9   :  { %8130 = vmatmul.mubr.msk.bf16.vlgmr.msra.gmra.mxu1 %vm102_vm1, %v1180_v35 }
 0x469   :  { %v8095_v19 = vpop.f32.mrf.mxu1 }
 0x46b   :  { %v858_v20 = vpop.f32.mrf.mxu1 }
 0x46d   :  { %v8096_v21 = vpop.f32.mrf.mxu1 }
 0x46f   :  { %v9573_v22 = vpop.f32.mrf.mxu1 }
 0x479   :  { %v8109_v23 = vpop.f32.mrf.mxu1 }
 0x47a   :  { %v1009_v24 = vsel %vm522_vm2, %v8109_v23, -inf }
 0x47b   :  { %1010 = vmax.xlane.f32.xlu1 %v1009_v24  ;;  %v988_v25 = vpop.f32.mrf.mxu1 }
 0x47c   :  { %v1003_v27 = vsel %vm522_vm2, %v988_v25, -inf }
 0x47d   :  { %v8110_v26 = vpop.f32.mrf.mxu1 }
 0x47e   :  { %v1012_v30 = vsel %vm522_vm2, %v8110_v26, -inf }
 0x47f   :  { %1004 = vmax.xlane.f32.xlu1 %v1003_v27  ;;  %1013 = vmax.xlane.f32.xlu0 %v1012_v30  ;;  %v991_v32 = vpop.f32.mrf.mxu1 }
 0x480   :  { %v8101_v34 = vpop.f32.mrf.mxu0  ;;  %v1006_v37 = vsel %vm522_vm2, %v991_v32, -inf }
 0x481   :  { %v9578_v36 = vadd.f32 %v8101_v34, %v8095_v19 }
 0x482   :  { %v919_v38 = vpop.f32.mrf.mxu0 }
 0x483   :  { %1007 = vmax.xlane.f32.xlu0 %v1006_v37  ;;  %v9581_v39 = vadd.f32 %v919_v38, %v858_v20 }
 0x484   :  { %v8102_v10 = vpop.f32.mrf.mxu0 }
 0x485   :  { %v9583_v11 = vadd.f32 %v8102_v10, %v8096_v21  ;;  %v8832_v21 = vld [vmem:[%s11191_s6 + $0x10] sm:$0xff]  }
 0x489   :  { %v9597_v16 = vpop.f32.mrf.mxu1 }
 0x48a   :  { %v1252_v41 = vsel %vm522_vm2, %v9597_v16, -inf }
 0x48b   :  { %v9599_v28 = vpop.f32.mrf.mxu1 }
 0x48c   :  { %v1246_v42 = vsel %vm522_vm2, %v9599_v28, -inf }
 0x48d   :  { %v9601_v29 = vpop.f32.mrf.mxu1 }
 0x48e   :  { %v1255_v20 = vsel %vm522_vm2, %v9601_v29, -inf }
 0x48f   :  { %v9603_v33 = vpop.f32.mrf.mxu1 }
 0x490   :  { %1047 = vrot.lane.b32.xlu1 %v9498_v43, %s9264_s16  ;;  %v1249_v35 = vsel %vm522_vm2, %v9603_v33, -inf }
 0x494   :  { %1426 = vrot.lane.b32.xlu1 %v9472_v40, %s9266_s20 }
 0x498   :  { %1424 = vrot.lane.b32.xlu1 %v9474_v14, %s9266_s20 }
 0x499   :  { %1045 = vrot.lane.b32.xlu0 %v9496_v63, %s9264_s16 }
 0x49c   :  { %1422 = vrot.lane.b32.xlu1 %v9452_v51, %s9266_s20 }
 0x49d   :  { %1420 = vrot.lane.b32.xlu0 %v9429_v31, %s9266_s20 }
 0x4bc   :  { %1250 = vmax.xlane.f32.xlu0 %v1249_v35 }
 0x4c0   :  { %1253 = vmax.xlane.f32.xlu1 %v1252_v41 }
 0x4c4   :  { %1247 = vmax.xlane.f32.xlu1 %v1246_v42 }
 0x504   :  { %v1011_v44 = vpop.xlane.xlu1 %1010 }
 0x505   :  { %v1017_v46 = vsub.f32 %v8109_v23, %v1011_v44 }
 0x507   :  { %v1023_v47 = vmul.f32 1.442695, %v1017_v46 }
 0x508   :  { %v1005_v48 = vpop.xlane.xlu1 %1004  ;;  %v1014_v49 = vpop.xlane.xlu0 %1013 }
 0x509   :  { %8873 = vpow2.f32 %v1023_v47  ;;  %v1015_v50 = vsub.f32 %v988_v25, %v1005_v48  ;;  %v1018_v52 = vsub.f32 %v8110_v26, %v1014_v49 }
 0x50b   :  { %v1019_v53 = vmul.f32 1.442695, %v1015_v50  ;;  %v1025_v55 = vmul.f32 1.442695, %v1018_v52 }
 0x50c   :  { %v1048_v58 = vpop.permute.xlu1 %1047  ;;  %v1008_v59 = vpop.xlane.xlu0 %1007 }
 0x50d   :  { %8875 = vpow2.f32 %v1019_v53  ;;  %v1016_v60 = vsub.f32 %v991_v32, %v1008_v59  ;;  %8111 = vmatprep.subr.bf16.mxu0 %v1048_v58 }
 0x50e   :  { %8112 = vmatpush3.bf16.msra.mxu0 %v1048_v58  ;;  %8877 = vpow2.f32 %v1025_v55  ;;  %v9655_v58 = vpop.f32.mrf.mxu0 }
 0x50f   :  { %v1021_v61 = vmul.f32 1.442695, %v1016_v60 }
 0x510   :  { %v1427_v62 = vpop.permute.xlu1 %1426  ;;  %v1046_v45 = vpop.permute.xlu0 %1045 }
 0x511   :  { %8879 = vpow2.f32 %v1021_v61  ;;  %8113 = vmatprep.subr.bf16.mxu0 %v1046_v45  ;;  %8789 = vmatprep.subr.msk.bf16.mxu1 %vm102_vm1, %v1427_v62  ;;  %v1438_v56 = vsel %vm102_vm1, %v1427_v62, 0 }
 0x512   :  { %8114 = vmatpush3.bf16.msra.mxu0 %v1046_v45  ;;  %8148 = vmatpush3.bf16.xpose.msra.mxu1 %v1438_v56 }
 0x513   :  { %8119 = vmatprep.subr.bf16.mxu0 %v8832_v21 }
 0x514   :  { %v1425_v1 = vpop.permute.xlu1 %1424  ;;  %v1421_v54 = vpop.permute.xlu0 %1420 }
 0x515   :  { %8790 = vmatprep.subr.msk.bf16.mxu1 %vm102_vm1, %v1425_v1  ;;  %8151 = vmatprep.mubr.msk.bf16.mxu1 %vm102_vm1, %v1421_v54  ;;  %v1435_v5 = vsel %vm102_vm1, %v1425_v1, 0 }
 0x516   :  { %v8874_v2 = vpop.eup %8873 }
 0x517   :  { %v1033_v3 = vsel %vm522_vm2, %v8874_v2, 0.0 }
 0x518   :  { %1034 = vadd.xlane.f32.xlu0 %v1033_v3  ;;  %v1423_v18 = vpop.permute.xlu1 %1422 }
 0x51a   :  { %v8876_v6 = vpop.eup %8875  ;;  %8150 = vmatpush3.bf16.xpose.msra.mxu1 %v1435_v5 }
 0x51b   :  { %v1027_v8 = vsel %vm522_vm2, %v8876_v6, 0.0  ;;  %v8878_v9 = vpop.eup %8877 }
 0x51c   :  { %1028 = vadd.xlane.f32.xlu0 %v1027_v8  ;;  %v1036_v13 = vsel %vm522_vm2, %v8878_v9, 0.0  ;;  %v1044_v19 = vpack.c.bf16 %v8878_v9, %v8874_v2 }
 0x51e   :  { %v8880_v12 = vpop.eup %8879 }
 0x51f   :  { %v1030_v15 = vsel %vm522_vm2, %v8880_v12, 0.0  ;;  %v1043_v17 = vpack.c.bf16 %v8880_v12, %v8876_v6 }
 0x520   :  { %1037 = vadd.xlane.f32.xlu0 %v1036_v13  ;;  %1031 = vadd.xlane.f32.xlu1 %v1030_v15 }
 0x521   :  { %8115 = vmatprep.mubr.msk.bf16.mxu0 %vm522_vm2, %v1043_v17  ;;  %8152 = vmatmul.mubr.msk.bf16.vlgmr.msra.gmra.mxu1 %vm102_vm1, %v1423_v18 }
 0x522   :  { %8116 = vmatmul.mubr.msk.bf16.vlgmr.msra.gmra.mxu0 %vm522_vm2, %v1044_v19 }
 0x523   :  { %8120 = vmatpush3.bf16.msra.mxu0 %v8832_v21 }
 0x524   :  { %1256 = vmax.xlane.f32.xlu0 %v1255_v20 }
 0x531   :  { %1290 = vrot.lane.b32.xlu1 %v9498_v43, %s9265_s17 }
 0x535   :  { %1669 = vrot.lane.b32.xlu1 %v9472_v40, %s9267_s23 }
 0x539   :  { %1667 = vrot.lane.b32.xlu1 %v9474_v14, %s9267_s23 }
 0x53a   :  { %1288 = vrot.lane.b32.xlu0 %v9496_v63, %s9265_s17 }
 0x53d   :  { %1665 = vrot.lane.b32.xlu1 %v9452_v51, %s9267_s23 }
 0x53e   :  { %1663 = vrot.lane.b32.xlu0 %v9429_v31, %s9267_s23 }
 0x545   :  { %v1251_v23 = vpop.xlane.xlu0 %1250 }
 0x546   :  { %v1259_v47 = vsub.f32 %v9603_v33, %v1251_v23 }
 0x548   :  { %v1264_v48 = vmul.f32 1.442695, %v1259_v47 }
 0x549   :  { %v1254_v24 = vpop.xlane.xlu1 %1253 }
 0x54a   :  { %v1260_v49 = vsub.f32 %v9597_v16, %v1254_v24  ;;  %8881 = vpow2.f32 %v1264_v48 }
 0x54c   :  { %v1266_v52 = vmul.f32 1.442695, %v1260_v49 }
 0x54d   :  { %v1248_v26 = vpop.xlane.xlu1 %1247 }
 0x54e   :  { %v1258_v50 = vsub.f32 %v9599_v28, %v1248_v26 }
 0x550   :  { %v1262_v53 = vmul.f32 1.442695, %v1258_v50 }
 0x557   :  { %v8882_v62 = vpop.eup %8881 }
 0x558   :  { %v1273_v21 = vsel %vm522_vm2, %v8882_v62, 0.0 }
 0x5a1   :  { %v1035_v25 = vpop.xlane.xlu0 %1034 }
 0x5a5   :  { %v1029_v27 = vpop.xlane.xlu0 %1028 }
 0x5a6   :  { %8883 = vrcp.f32 %v1029_v27 }
 0x5a9   :  { %v1032_v30 = vpop.xlane.xlu1 %1031  ;;  %v1038_v32 = vpop.xlane.xlu0 %1037 }
 0x5aa   :  { %8885 = vrcp.f32 %v1032_v30 }
 0x5ab   :  { %8887 = vrcp.f32 %v1038_v32 }
 0x5ac   :  { %8889 = vpow2.f32 %v1266_v52 }
 0x5ad   :  { %v9640_v34 = vpop.permute.xlu1 %1290  ;;  %v1257_v37 = vpop.xlane.xlu0 %1256  ;;  %8891 = vrcp.f32 %v1035_v25 }
 0x5ae   :  { %8133 = vmatprep.subr.bf16.mxu0 %v9640_v34  ;;  %v1261_v55 = vsub.f32 %v9601_v29, %v1257_v37  ;;  %8893 = vpow2.f32 %v1262_v53 }
 0x5b0   :  { %v1268_v59 = vmul.f32 1.442695, %v1261_v55 }
 0x5b1   :  { %v1670_v38 = vpop.permute.xlu1 %1669  ;;  %v9643_v10 = vpop.permute.xlu0 %1288 }
 0x5b2   :  { %8791 = vmatprep.subr.msk.bf16.mxu1 %vm102_vm1, %v1670_v38  ;;  %v1681_v35 = vsel %vm102_vm1, %v1670_v38, 0  ;;  %8895 = vpow2.f32 %v1268_v59 }
 0x5b3   :  { %8170 = vmatpush3.bf16.xpose.msra.mxu1 %v1681_v35  ;;  %v8884_v29 = vpop.eup %8883 }
 0x5b5   :  { %v1668_v41 = vpop.permute.xlu1 %1667  ;;  %v1664_v42 = vpop.permute.xlu0 %1663 }
 0x5b6   :  { %8792 = vmatprep.subr.msk.bf16.mxu1 %vm102_vm1, %v1668_v41  ;;  %8173 = vmatprep.mubr.msk.bf16.mxu1 %vm102_vm1, %v1664_v42  ;;  %v1678_v44 = vsel %vm102_vm1, %v1668_v41, 0 }
 0x5b7   :  { %v8886_v1 = vpop.eup %8885 }
 0x5b8   :  { %v8888_v2 = vpop.eup %8887 }
 0x5b9   :  { %v1666_v46 = vpop.permute.xlu1 %1665  ;;  %v8890_v8 = vpop.eup %8889 }
 0x5ba   :  { %v8892_v15 = vpop.eup %8891  ;;  %v1276_v20 = vsel %vm522_vm2, %v8890_v8, 0.0 }
 0x5bb   :  { %8172 = vmatpush3.bf16.xpose.msra.mxu1 %v1678_v44  ;;  %v8894_v17 = vpop.eup %8893 }
 0x5bc   :  { %v1286_v24 = vpack.c.bf16 %v8882_v62, %v8894_v17  ;;  %v1270_v25 = vsel %vm522_vm2, %v8894_v17, 0.0 }
 0x5bf   :  { %v8896_v26 = vpop.eup %8895 }
 0x5c0   :  { %v1279_v27 = vsel %vm522_vm2, %v8896_v26, 0.0  ;;  %v1287_v30 = vpack.c.bf16 %v8896_v26, %v8890_v8 }
 0x5c2   :  { %8174 = vmatmul.mubr.msk.bf16.vlgmr.msra.gmra.mxu1 %vm102_vm1, %v1666_v46 }
 0x5e1   :  { %v9657_v33 = vpop.f32.mrf.mxu1 }
 0x5e2   :  { %v8117_v60 = vpop.f32.mrf.mxu0  ;;  %v1495_v5 = vsel %vm522_vm2, %v9657_v33, -inf }
 0x5e3   :  { %v9659_v16 = vpop.f32.mrf.mxu1  ;;  %v1108_v18 = vmul.f32 %v8892_v15, %v8117_v60 }
 0x5e4   :  { %v1091_v28 = vpop.f32.mrf.mxu0  ;;  %v1489_v61 = vsel %vm522_vm2, %v9659_v16, -inf }
 0x5e5   :  { %1490 = vmax.xlane.f32.xlu1 %v1489_v61  ;;  %v9663_v45 = vpop.f32.mrf.mxu1  ;;  %v1106_v9 = vmul.f32 %v8884_v29, %v1091_v28 }
 0x5e6   :  { %v8118_v56 = vpop.f32.mrf.mxu0  ;;  %v1498_v32 = vsel %vm522_vm2, %v9663_v45, -inf }
 0x5e7   :  { %v1477_v54 = vpop.f32.mrf.mxu1  ;;  %v1109_v12 = vmul.f32 %v8888_v2, %v8118_v56 }
 0x5e8   :  { %v1094_v3 = vpop.f32.mrf.mxu0  ;;  %v1492_v6 = vsel %vm522_vm2, %v1477_v54, -inf }
 0x5e9   :  { %v1107_v13 = vmul.f32 %v8886_v1, %v1094_v3  ;;  %1496 = vmax.xlane.f32.xlu1 %v1495_v5  ;;  %1493 = vmax.xlane.f32.xlu0 %v1492_v6  ;;  %v1111_v23 = vpack.c.bf16 %v1109_v12, %v1108_v18 }
 0x5eb   :  { %v1110_v19 = vpack.c.bf16 %v1107_v13, %v1106_v9 }
 0x5ed   :  { %1277 = vadd.xlane.f32.xlu0 %v1276_v20  ;;  %1274 = vadd.xlane.f32.xlu1 %v1273_v21 }
 0x5ee   :  { %8121 = vmatprep.mubr.msk.bf16.mxu0 %vm102_vm1, %v1110_v19 }
 0x5ef   :  { %8122 = vmatmul.mubr.msk.bf16.vlgmr.msra.gmra.mxu0 %vm102_vm1, %v1111_v23 }
 0x5f0   :  { %8134 = vmatpush3.bf16.msra.mxu0 %v9640_v34  ;;  %8137 = vmatprep.mubr.msk.bf16.mxu0 %vm522_vm2, %v1286_v24  ;;  %v8833_v34 = vld [vmem:[%s11191_s6 + $0x18] sm:$0xff]  }
 0x5f1   :  { %8135 = vmatprep.subr.bf16.mxu0 %v9643_v10  ;;  %1271 = vadd.xlane.f32.xlu0 %v1270_v25 }
 0x5f4   :  { %8136 = vmatpush3.bf16.msra.mxu0 %v9643_v10 }
 0x5f5   :  { %1280 = vadd.xlane.f32.xlu0 %v1279_v27  ;;  %8141 = vmatprep.subr.bf16.mxu0 %v8833_v34 }
 0x5f7   :  { %8138 = vmatmul.mubr.msk.bf16.vlgmr.msra.gmra.mxu0 %vm522_vm2, %v1287_v30 }
 0x5f8   :  { %8142 = vmatpush3.bf16.msra.mxu0 %v8833_v34 }
 0x5f9   :  { %1499 = vmax.xlane.f32.xlu0 %v1498_v32 }
 0x5fe   :  { %1533 = vrot.lane.b32.xlu1 %v9498_v43, %s9266_s20 }
 0x602   :  { %1912 = vrot.lane.b32.xlu1 %v9472_v40, %s9268_s27 }
 0x606   :  { %1910 = vrot.lane.b32.xlu1 %v9474_v14, %s9268_s27 }
 0x60a   :  { %1908 = vrot.lane.b32.xlu1 %v9452_v51, %s9268_s27 }
 0x60f   :  { %1531 = vrot.lane.b32.xlu0 %v9496_v63, %s9266_s20 }
 0x613   :  { %1906 = vrot.lane.b32.xlu0 %v9429_v31, %s9268_s27 }
 0x66e   :  { %v1491_v37 = vpop.xlane.xlu1 %1490 }
 0x66f   :  { %v1501_v47 = vsub.f32 %v9659_v16, %v1491_v37 }
 0x671   :  { %v1505_v52 = vmul.f32 1.442695, %v1501_v47 }
 0x672   :  { %v1497_v38 = vpop.xlane.xlu1 %1496  ;;  %v1494_v10 = vpop.xlane.xlu0 %1493 }
 0x673   :  { %v1503_v35 = vsub.f32 %v9657_v33, %v1497_v38  ;;  %v1502_v41 = vsub.f32 %v1477_v54, %v1494_v10 }
 0x675   :  { %v1509_v46 = vmul.f32 1.442695, %v1503_v35  ;;  %v1507_v48 = vmul.f32 1.442695, %v1502_v41 }
 0x676   :  { %v1275_v42 = vpop.xlane.xlu1 %1274  ;;  %v9697_v44 = vpop.xlane.xlu0 %1277 }
 0x677   :  { %8897 = vpow2.f32 %v1509_v46 }
 0x678   :  { %8899 = vpow2.f32 %v1507_v48 }
 0x679   :  { %8901 = vpow2.f32 %v1505_v52 }
 0x67a   :  { %v9700_v49 = vpop.permute.xlu1 %1533  ;;  %v1272_v50 = vpop.xlane.xlu0 %1271 }
 0x67b   :  { %8155 = vmatprep.subr.bf16.mxu0 %v9700_v49 }
 0x67e   :  { %v1913_v53 = vpop.permute.xlu1 %1912  ;;  %v1281_v55 = vpop.xlane.xlu0 %1280 }
 0x67f   :  { %8793 = vmatprep.subr.msk.bf16.mxu1 %vm102_vm1, %v1913_v53  ;;  %v1924_v59 = vsel %vm102_vm1, %v1913_v53, 0 }
 0x680   :  { %8192 = vmatpush3.bf16.xpose.msra.mxu1 %v1924_v59 }
 0x682   :  { %v1911_v33 = vpop.permute.xlu1 %1910  ;;  %v9705_v60 = vpop.f32.mrf.mxu1 }
 0x683   :  { %v1500_v16 = vpop.xlane.xlu0 %1499  ;;  %8794 = vmatprep.subr.msk.bf16.mxu1 %vm102_vm1, %v1911_v33  ;;  %v1921_v54 = vsel %vm102_vm1, %v1911_v33, 0 }
 0x684   :  { %v1504_v28 = vsub.f32 %v9663_v45, %v1500_v16  ;;  %v9709_v61 = vpop.f32.mrf.mxu1  ;;  %v9720_v3 = vpop.eup %8897  ;;  %v1738_v45 = vsel %vm522_vm2, %v9705_v60, -inf }
 0x685   :  { %v1732_v62 = vsel %vm522_vm2, %v9709_v61, -inf  ;;  %v8900_v6 = vpop.eup %8899  ;;  %v1519_v9 = vsel %vm522_vm2, %v9720_v3, 0.0 }
 0x686   :  { %v1511_v29 = vmul.f32 1.442695, %v1504_v28  ;;  %1733 = vmax.xlane.f32.xlu1 %v1732_v62  ;;  %v9713_v56 = vpop.f32.mrf.mxu1  ;;  %v1516_v12 = vsel %vm522_vm2, %v8900_v6, 0.0  ;;  %v8902_v13 = vpop.eup %8901 }
 0x687   :  { %v9715_v1 = vpop.permute.xlu0 %1531  ;;  %v1909_v15 = vpop.permute.xlu1 %1908  ;;  %v1513_v17 = vsel %vm522_vm2, %v8902_v13, 0.0  ;;  %v1741_v21 = vsel %vm522_vm2, %v9713_v56, -inf  ;;  %v1529_v46 = vpack.c.bf16 %v8900_v6, %v8902_v13 }
 0x688   :  { %8903 = vpow2.f32 %v1511_v29  ;;  %v9718_v2 = vpop.f32.mrf.mxu1  ;;  %8194 = vmatpush3.bf16.xpose.msra.mxu1 %v1921_v54 }
 0x689   :  { %v1735_v5 = vsel %vm522_vm2, %v9718_v2, -inf  ;;  %8905 = vrcp.f32 %v1275_v42 }
 0x68a   :  { %1739 = vmax.xlane.f32.xlu1 %v1738_v45  ;;  %1736 = vmax.xlane.f32.xlu0 %v1735_v5  ;;  %8907 = vrcp.f32 %v1281_v55 }
 0x68b   :  { %v1907_v8 = vpop.permute.xlu0 %1906  ;;  %8909 = vrcp.f32 %v1272_v50 }
 0x68c   :  { %8195 = vmatprep.mubr.msk.bf16.mxu1 %vm102_vm1, %v1907_v8  ;;  %8911 = vrcp.f32 %v9697_v44 }
 0x68e   :  { %1520 = vadd.xlane.f32.xlu0 %v1519_v9  ;;  %1517 = vadd.xlane.f32.xlu1 %v1516_v12 }
 0x68f   :  { %8196 = vmatmul.mubr.msk.bf16.vlgmr.msra.gmra.mxu1 %vm102_vm1, %v1909_v15 }
 0x692   :  { %1514 = vadd.xlane.f32.xlu0 %v1513_v17 }
 0x695   :  { %v8904_v18 = vpop.eup %8903 }
 0x696   :  { %v1522_v19 = vsel %vm522_vm2, %v8904_v18, 0.0  ;;  %v1530_v20 = vpack.c.bf16 %v8904_v18, %v9720_v3  ;;  %v8906_v30 = vpop.eup %8905 }
 0x697   :  { %1523 = vadd.xlane.f32.xlu0 %v1522_v19  ;;  %v8908_v34 = vpop.eup %8907 }
 0x698   :  { %v8910_v37 = vpop.eup %8909 }
 0x699   :  { %v8912_v35 = vpop.eup %8911 }
 0x69b   :  { %1742 = vmax.xlane.f32.xlu0 %v1741_v21 }
 0x69f   :  { %1776 = vrot.lane.b32.xlu1 %v9498_v43, %s9267_s23 }
 0x6a3   :  { %2155 = vrot.lane.b32.xlu1 %v9472_v40, %s9269_s28 }
 0x6a7   :  { %2153 = vrot.lane.b32.xlu1 %v9474_v14, %s9269_s28 }
 0x6ab   :  { %2151 = vrot.lane.b32.xlu1 %v9452_v51, %s9269_s28 }
 0x6af   :  { %v8123_v23 = vpop.f32.mrf.mxu0 }
 0x6b0   :  { %v9745_v24 = vadd.f32 %v8123_v23, %v9578_v36 }
 0x6b1   :  { %v1158_v25 = vpop.f32.mrf.mxu0  ;;  %1774 = vrot.lane.b32.xlu0 %v9496_v63, %s9267_s23 }
 0x6b2   :  { %v9751_v40 = vadd.f32 %v1158_v25, %v9581_v39 }
 0x6b3   :  { %v8124_v14 = vpop.f32.mrf.mxu0 }
 0x6b4   :  { %v9754_v26 = vadd.f32 %v8124_v14, %v9583_v11 }
 0x6b5   :  { %v9756_v51 = vpop.f32.mrf.mxu0  ;;  %2149 = vrot.lane.b32.xlu0 %v9429_v31, %s9269_s28  ;;  %v8834_v31 = vld [vmem:[%s11191_s6 + $0x20] sm:$0xff]  }
 0x6b7   :  { %v8139_v36 = vpop.f32.mrf.mxu0 }
 0x6b8   :  { %v1351_v42 = vmul.f32 %v8912_v35, %v8139_v36 }
 0x6b9   :  { %v1334_v27 = vpop.f32.mrf.mxu0 }
 0x6ba   :  { %v1349_v39 = vmul.f32 %v8910_v37, %v1334_v27 }
 0x6bb   :  { %v8140_v32 = vpop.f32.mrf.mxu0 }
 0x6bc   :  { %v1352_v38 = vmul.f32 %v8908_v34, %v8140_v32 }
 0x6bd   :  { %v1337_v10 = vpop.f32.mrf.mxu0 }
 0x6be   :  { %v1350_v41 = vmul.f32 %v8906_v30, %v1337_v10  ;;  %v1354_v11 = vpack.c.bf16 %v1352_v38, %v1351_v42 }
 0x6c0   :  { %v1353_v44 = vpack.c.bf16 %v1350_v41, %v1349_v39 }
 0x6c2   :  { %8143 = vmatprep.mubr.msk.bf16.mxu0 %vm102_vm1, %v1353_v44 }
 0x6c3   :  { %8144 = vmatmul.mubr.msk.bf16.vlgmr.msra.gmra.mxu0 %vm102_vm1, %v1354_v11 }
 0x6c4   :  { %8156 = vmatpush3.bf16.msra.mxu0 %v9700_v49  ;;  %8159 = vmatprep.mubr.msk.bf16.mxu0 %vm522_vm2, %v1529_v46 }
 0x6c5   :  { %8157 = vmatprep.subr.bf16.mxu0 %v9715_v1 }
 0x6c8   :  { %8158 = vmatpush3.bf16.msra.mxu0 %v9715_v1 }
 0x6c9   :  { %8163 = vmatprep.subr.bf16.mxu0 %v8834_v31 }
 0x6cb   :  { %8160 = vmatmul.mubr.msk.bf16.vlgmr.msra.gmra.mxu0 %vm522_vm2, %v1530_v20 }
 0x6cc   :  { %8164 = vmatpush3.bf16.msra.mxu0 %v8834_v31 }
 0x70f   :  { %v1734_v47 = vpop.xlane.xlu1 %1733 }
 0x710   :  { %v1744_v48 = vsub.f32 %v9709_v61, %v1734_v47 }
 0x712   :  { %v1748_v49 = vmul.f32 1.442695, %v1744_v48 }
 0x713   :  { %v1740_v50 = vpop.xlane.xlu1 %1739  ;;  %v1737_v52 = vpop.xlane.xlu0 %1736 }
 0x714   :  { %v1745_v53 = vsub.f32 %v9718_v2, %v1737_v52  ;;  %8913 = vpow2.f32 %v1748_v49  ;;  %v1746_v61 = vsub.f32 %v9705_v60, %v1740_v50 }
 0x716   :  { %v1750_v55 = vmul.f32 1.442695, %v1745_v53  ;;  %v1752_v2 = vmul.f32 1.442695, %v1746_v61 }
 0x717   :  { %v9772_v59 = vpop.xlane.xlu1 %1517  ;;  %v9774_v33 = vpop.xlane.xlu0 %1520 }
 0x718   :  { %8915 = vpow2.f32 %v1750_v55 }
 0x719   :  { %8917 = vpow2.f32 %v1752_v2 }
 0x71b   :  { %v9776_v16 = vpop.permute.xlu1 %1776  ;;  %v1515_v28 = vpop.xlane.xlu0 %1514 }
 0x71c   :  { %8177 = vmatprep.subr.bf16.mxu0 %v9776_v16 }
 0x71f   :  { %v2156_v62 = vpop.permute.xlu1 %2155 }
 0x720   :  { %v1524_v29 = vpop.xlane.xlu0 %1523  ;;  %8795 = vmatprep.subr.msk.bf16.mxu1 %vm102_vm1, %v2156_v62  ;;  %v2167_v1 = vsel %vm102_vm1, %v2156_v62, 0 }
 0x721   :  { %8214 = vmatpush3.bf16.xpose.msra.mxu1 %v2167_v1  ;;  %v9783_v45 = vpop.eup %8913 }
 0x722   :  { %v1756_v34 = vsel %vm522_vm2, %v9783_v45, 0.0 }
 0x723   :  { %v2154_v54 = vpop.permute.xlu1 %2153 }
 0x724   :  { %v1743_v3 = vpop.xlane.xlu0 %1742  ;;  %8796 = vmatprep.subr.msk.bf16.mxu1 %vm102_vm1, %v2154_v54  ;;  %v2164_v12 = vsel %vm102_vm1, %v2154_v54, 0 }
 0x725   :  { %v1747_v5 = vsub.f32 %v9713_v56, %v1743_v3  ;;  %v9786_v6 = vpop.eup %8915  ;;  %v2408_v56 = vsel %vm102_vm1, %v9494_v57, 0 }
 0x726   :  { %v1772_v60 = vpack.c.bf16 %v9786_v6, %v9783_v45  ;;  %v9801_v17 = vpop.eup %8917  ;;  %v1759_v32 = vsel %vm522_vm2, %v9786_v6, 0.0 }
 0x727   :  { %v1754_v8 = vmul.f32 1.442695, %v1747_v5  ;;  %v2152_v15 = vpop.permute.xlu1 %2151  ;;  %v1762_v30 = vsel %vm522_vm2, %v9801_v17, 0.0 }
 0x728   :  { %v9790_v9 = vpop.permute.xlu0 %1774 }
 0x729   :  { %8919 = vpow2.f32 %v1754_v8  ;;  %8216 = vmatpush3.bf16.xpose.msra.mxu1 %v2164_v12 }
 0x72a   :  { %8235 = vmatprep.subr.bf16.mxu1 %v9261_v0  ;;  %8921 = vrcp.f32 %v9772_v59 }
 0x72b   :  { %8923 = vrcp.f32 %v1524_v29 }
 0x72c   :  { %v2150_v13 = vpop.permute.xlu0 %2149  ;;  %8925 = vrcp.f32 %v1515_v28 }
 0x72d   :  { %8217 = vmatprep.mubr.msk.bf16.mxu1 %vm102_vm1, %v2150_v13  ;;  %8927 = vrcp.f32 %v9774_v33 }
 0x730   :  { %8218 = vmatmul.mubr.msk.bf16.vlgmr.msra.gmra.mxu1 %vm102_vm1, %v2152_v15 }
 0x731   :  { %8236 = vmatpush3.bf16.xpose.msra.mxu1 %v2408_v56  ;;  %8237 = vmatprep.mubr.msk.bf16.mxu1 %vm9262_vm0, %v9261_v0 }
 0x732   :  { %8247 = vmatprep.subr.bf16.mxu1 %v9261_v0 }
 0x736   :  { %v8920_v18 = vpop.eup %8919 }
 0x737   :  { %v1773_v19 = vpack.c.bf16 %v8920_v18, %v9801_v17  ;;  %v1765_v37 = vsel %vm522_vm2, %v8920_v18, 0.0  ;;  %v8922_v47 = vpop.eup %8921 }
 0x738   :  { %8238 = vmatmul.mubr.msk.bf16.vlgmr.msra.gmra.mxu1 %vm102_vm1, %v9466_v4  ;;  %v8924_v50 = vpop.eup %8923 }
 0x739   :  { %8249 = vmatprep.mubr.msk.bf16.mxu1 %vm9262_vm0, %v9261_v0  ;;  %v8926_v52 = vpop.eup %8925 }
 0x73a   :  { %v8928_v53 = vpop.eup %8927 }
 0x74f   :  { %v9808_v20 = vpop.f32.mrf.mxu1 }
 0x750   :  { %v1981_v36 = vsel %vm522_vm2, %v9808_v20, -inf }
 0x751   :  { %v1960_v21 = vpop.f32.mrf.mxu1 }
 0x752   :  { %v1975_v23 = vsel %vm522_vm2, %v1960_v21, -inf }
 0x753   :  { %1976 = vmax.xlane.f32.xlu1 %v1975_v23  ;;  %v9811_v25 = vpop.f32.mrf.mxu1 }
 0x754   :  { %v1984_v38 = vsel %vm522_vm2, %v9811_v25, -inf }
 0x755   :  { %v1963_v14 = vpop.f32.mrf.mxu1 }
 0x756   :  { %v1978_v27 = vsel %vm522_vm2, %v1963_v14, -inf }
 0x757   :  { %1982 = vmax.xlane.f32.xlu1 %v1981_v36  ;;  %1979 = vmax.xlane.f32.xlu0 %v1978_v27 }
 0x75b   :  { %1763 = vadd.xlane.f32.xlu0 %v1762_v30  ;;  %1760 = vadd.xlane.f32.xlu1 %v1759_v32 }
 0x75f   :  { %1757 = vadd.xlane.f32.xlu0 %v1756_v34 }
 0x763   :  { %1766 = vadd.xlane.f32.xlu0 %v1765_v37 }
 0x767   :  { %1985 = vmax.xlane.f32.xlu0 %v1984_v38 }
 0x76c   :  { %2019 = vrot.lane.b32.xlu1 %v9498_v43, %s9268_s27 }
 0x770   :  { %2524 = vrot.lane.b32.xlu1 %v9494_v57, %s9263_s25 }
 0x774   :  { %2521 = vrot.lane.b32.xlu1 %v9466_v4, %s9263_s25 }
 0x77d   :  { %2017 = vrot.lane.b32.xlu0 %v9496_v63, %s9268_s27 }
 0x783   :  { %v8145_v10 = vpop.f32.mrf.mxu0 }
 0x784   :  { %v9835_v35 = vadd.f32 %v8145_v10, %v9745_v24 }
 0x785   :  { %v1401_v39 = vpop.f32.mrf.mxu0 }
 0x786   :  { %v9839_v41 = vadd.f32 %v1401_v39, %v9751_v40 }
 0x787   :  { %v8146_v42 = vpop.f32.mrf.mxu0 }
 0x788   :  { %v9842_v44 = vadd.f32 %v8146_v42, %v9754_v26  ;;  %v9857_v26 = vld [vmem:[%s11191_s6 + $0x28] sm:$0xff]  }
 0x789   :  { %v9844_v11 = vpop.f32.mrf.mxu0 }
 0x78b   :  { %v8161_v46 = vpop.f32.mrf.mxu0 }
 0x78c   :  { %v1594_v33 = vmul.f32 %v8928_v53, %v8161_v46 }
 0x78d   :  { %v1577_v31 = vpop.f32.mrf.mxu0 }
 0x78e   :  { %v1592_v55 = vmul.f32 %v8926_v52, %v1577_v31 }
 0x78f   :  { %v8162_v48 = vpop.f32.mrf.mxu0 }
 0x790   :  { %v1595_v24 = vmul.f32 %v8924_v50, %v8162_v48 }
 0x791   :  { %v1580_v49 = vpop.f32.mrf.mxu0 }
 0x792   :  { %v1593_v59 = vmul.f32 %v8922_v47, %v1580_v49  ;;  %v1597_v28 = vpack.c.bf16 %v1595_v24, %v1594_v33 }
 0x794   :  { %v1596_v40 = vpack.c.bf16 %v1593_v59, %v1592_v55 }
 0x796   :  { %8165 = vmatprep.mubr.msk.bf16.mxu0 %vm102_vm1, %v1596_v40 }
 0x797   :  { %8166 = vmatmul.mubr.msk.bf16.vlgmr.msra.gmra.mxu0 %vm102_vm1, %v1597_v28 }
 0x798   :  { %8178 = vmatpush3.bf16.msra.mxu0 %v9776_v16  ;;  %8181 = vmatprep.mubr.msk.bf16.mxu0 %vm522_vm2, %v1772_v60 }
 0x799   :  { %8179 = vmatprep.subr.bf16.mxu0 %v9790_v9 }
 0x79c   :  { %8180 = vmatpush3.bf16.msra.mxu0 %v9790_v9 }
 0x79d   :  { %8185 = vmatprep.subr.bf16.mxu0 %v9857_v26 }
 0x79f   :  { %8182 = vmatmul.mubr.msk.bf16.vlgmr.msra.gmra.mxu0 %vm522_vm2, %v1773_v19 }
 0x7a0   :  { %8186 = vmatpush3.bf16.msra.mxu0 %v9857_v26 }
 0x7dc   :  { %v1977_v16 = vpop.xlane.xlu1 %1976 }
 0x7dd   :  { %v1987_v62 = vsub.f32 %v1960_v21, %v1977_v16 }
 0x7df   :  { %v1991_v1 = vmul.f32 1.442695, %v1987_v62 }
 0x7e0   :  { %v1983_v61 = vpop.xlane.xlu1 %1982  ;;  %v1980_v29 = vpop.xlane.xlu0 %1979 }
 0x7e1   :  { %v1988_v54 = vsub.f32 %v1963_v14, %v1980_v29  ;;  %v1989_v2 = vsub.f32 %v9808_v20, %v1983_v61  ;;  %8929 = vpow2.f32 %v1991_v1 }
 0x7e3   :  { %v1993_v3 = vmul.f32 1.442695, %v1988_v54  ;;  %v1995_v6 = vmul.f32 1.442695, %v1989_v2 }
 0x7e4   :  { %v1761_v45 = vpop.xlane.xlu1 %1760  ;;  %v1764_v5 = vpop.xlane.xlu0 %1763 }
 0x7e5   :  { %8931 = vpow2.f32 %v1993_v3 }
 0x7e6   :  { %8933 = vpow2.f32 %v1995_v6  ;;  %v9931_v6 = vld [vmem:[%s11191_s6 + $0x30] sm:$0xff]  }
 0x7e8   :  { %v9864_v8 = vpop.permute.xlu1 %2019  ;;  %v1758_v60 = vpop.xlane.xlu0 %1757 }
 0x7e9   :  { %8199 = vmatprep.subr.bf16.mxu0 %v9864_v8 }
 0x7ec   :  { %v2525_v9 = vpop.permute.xlu1 %2524  ;;  %v1767_v12 = vpop.xlane.xlu0 %1766 }
 0x7ed   :  { %v2530_v13 = vsel %vm102_vm1, %v2525_v9, 0 }
 0x7ee   :  { %8248 = vmatpush3.bf16.xpose.msra.mxu1 %v2530_v13  ;;  %v9871_v17 = vpop.eup %8929 }
 0x7ef   :  { %8259 = vmatprep.subr.bf16.mxu1 %v9261_v0  ;;  %v1999_v47 = vsel %vm522_vm2, %v9871_v17, 0.0 }
 0x7f0   :  { %v9869_v15 = vpop.f32.mrf.mxu1  ;;  %v1986_v56 = vpop.xlane.xlu0 %1985 }
 0x7f1   :  { %v1990_v18 = vsub.f32 %v9811_v25, %v1986_v56  ;;  %v2522_v23 = vpop.permute.xlu1 %2521  ;;  %v9225_v25 = vld [vmem:[%s11191_s6 + $0x8] sm:$0xff]   ;;  %v2224_v32 = vsel %vm522_vm2, %v9869_v15, -inf }
 0x7f2   :  { %v9874_v19 = vpop.f32.mrf.mxu1  ;;  %v9876_v20 = vpop.eup %8931 }
 0x7f3   :  { %v2218_v21 = vsel %vm522_vm2, %v9874_v19, -inf  ;;  %v1997_v14 = vmul.f32 1.442695, %v1990_v18  ;;  %v2015_v27 = vpack.c.bf16 %v9876_v20, %v9871_v17  ;;  %v8934_v37 = vpop.eup %8933  ;;  %v2002_v42 = vsel %vm522_vm2, %v9876_v20, 0.0 }
 0x7f4   :  { %2219 = vmax.xlane.f32.xlu1 %v2218_v21  ;;  %v9880_v36 = vpop.f32.mrf.mxu1  ;;  %v2005_v39 = vsel %vm522_vm2, %v8934_v37, 0.0 }
 0x7f5   :  { %8250 = vmatmul.mubr.msk.bf16.vlgmr.msra.gmra.mxu1 %vm102_vm1, %v2522_v23  ;;  %8935 = vpow2.f32 %v1997_v14  ;;  %v2227_v24 = vsel %vm522_vm2, %v9880_v36, -inf }
 0x7f6   :  { %v9885_v30 = vpop.f32.mrf.mxu1  ;;  %8260 = vmatpush3.bf16.msra.mxu1 %v9225_v25  ;;  %8261 = vmatprep.mubr.msk.bf16.mxu1 %vm9262_vm0, %v9261_v0  ;;  %8937 = vrcp.f32 %v1761_v45 }
 0x7f7   :  { %v2221_v34 = vsel %vm522_vm2, %v9885_v30, -inf  ;;  %8271 = vmatprep.subr.bf16.mxu1 %v9261_v0  ;;  %8939 = vrcp.f32 %v1767_v12 }
 0x7f8   :  { %2225 = vmax.xlane.f32.xlu1 %v2224_v32  ;;  %v9897_v38 = vpop.f32.mrf.mxu1  ;;  %2222 = vmax.xlane.f32.xlu0 %v2221_v34  ;;  %8941 = vrcp.f32 %v1758_v60 }
 0x7f9   :  { %8943 = vrcp.f32 %v1764_v5 }
 0x7fa   :  { %v8239_v10 = vpop.f32.mrf.mxu1 }
 0x7fc   :  { %v9902_v46 = vpop.f32.mrf.mxu1  ;;  %2006 = vadd.xlane.f32.xlu0 %v2005_v39  ;;  %2003 = vadd.xlane.f32.xlu1 %v2002_v42 }
 0x7fe   :  { %v8240_v31 = vpop.f32.mrf.mxu1 }
 0x800   :  { %2000 = vadd.xlane.f32.xlu0 %v1999_v47 }
 0x802   :  { %v8936_v48 = vpop.eup %8935 }
 0x803   :  { %v2008_v50 = vsel %vm522_vm2, %v8936_v48, 0.0  ;;  %v2016_v52 = vpack.c.bf16 %v8936_v48, %v8934_v37  ;;  %v8938_v16 = vpop.eup %8937 }
 0x804   :  { %2009 = vadd.xlane.f32.xlu0 %v2008_v50  ;;  %v8940_v61 = vpop.eup %8939 }
 0x805   :  { %v8942_v29 = vpop.eup %8941 }
 0x806   :  { %v8944_v54 = vpop.eup %8943 }
 0x808   :  { %2228 = vmax.xlane.f32.xlu0 %v2227_v24 }
 0x80d   :  { %2262 = vrot.lane.b32.xlu1 %v9498_v43, %s9269_s28 }
 0x81e   :  { %2260 = vrot.lane.b32.xlu0 %v9496_v63, %s9269_s28 }
 0x857   :  { %v8167_v49 = vpop.f32.mrf.mxu0 }
 0x858   :  { %v9914_v53 = vadd.f32 %v8167_v49, %v9835_v35 }
 0x859   :  { %v1644_v55 = vpop.f32.mrf.mxu0 }
 0x85a   :  { %v9917_v59 = vadd.f32 %v1644_v55, %v9839_v41 }
 0x85b   :  { %v8168_v33 = vpop.f32.mrf.mxu0 }
 0x85c   :  { %v9920_v40 = vadd.f32 %v8168_v33, %v9842_v44  ;;  %v2018_v44 = vpop.permute.xlu0 %2017 }
 0x85d   :  { %v9922_v43 = vpop.f32.mrf.mxu0 }
 0x85f   :  { %v8183_v28 = vpop.f32.mrf.mxu0 }
 0x860   :  { %v1837_v45 = vmul.f32 %v8944_v54, %v8183_v28 }
 0x861   :  { %v1820_v63 = vpop.f32.mrf.mxu0 }
 0x862   :  { %v1835_v2 = vmul.f32 %v8942_v29, %v1820_v63 }
 0x863   :  { %v8184_v62 = vpop.f32.mrf.mxu0 }
 0x864   :  { %v1838_v1 = vmul.f32 %v8940_v61, %v8184_v62 }
 0x865   :  { %v1823_v35 = vpop.f32.mrf.mxu0 }
 0x866   :  { %v1836_v3 = vmul.f32 %v8938_v16, %v1823_v35  ;;  %v1840_v5 = vpack.c.bf16 %v1838_v1, %v1837_v45 }
 0x868   :  { %v1839_v41 = vpack.c.bf16 %v1836_v3, %v1835_v2 }
 0x86a   :  { %8187 = vmatprep.mubr.msk.bf16.mxu0 %vm102_vm1, %v1839_v41 }
 0x86b   :  { %8188 = vmatmul.mubr.msk.bf16.vlgmr.msra.gmra.mxu0 %vm102_vm1, %v1840_v5 }
 0x86c   :  { %8200 = vmatpush3.bf16.msra.mxu0 %v9864_v8  ;;  %8203 = vmatprep.mubr.msk.bf16.mxu0 %vm522_vm2, %v2015_v27 }
 0x86d   :  { %8201 = vmatprep.subr.bf16.mxu0 %v2018_v44 }
 0x870   :  { %8202 = vmatpush3.bf16.msra.mxu0 %v2018_v44 }
 0x871   :  { %8207 = vmatprep.subr.bf16.mxu0 %v9931_v6 }
 0x873   :  { %8204 = vmatmul.mubr.msk.bf16.vlgmr.msra.gmra.mxu0 %vm522_vm2, %v2016_v52  ;;  %v2454_v52 = vsel %vm102_vm1, %v9902_v46, -inf }
 0x874   :  { %8208 = vmatpush3.bf16.msra.mxu0 %v9931_v6 }
 0x87d   :  { %v2220_v60 = vpop.xlane.xlu1 %2219 }
 0x87e   :  { %v2230_v9 = vsub.f32 %v9874_v19, %v2220_v60 }
 0x880   :  { %v2234_v12 = vmul.f32 1.442695, %v2230_v9 }
 0x881   :  { %v2226_v8 = vpop.xlane.xlu1 %2225  ;;  %v2223_v13 = vpop.xlane.xlu0 %2222 }
 0x882   :  { %v2232_v56 = vsub.f32 %v9869_v15, %v2226_v8  ;;  %v2231_v17 = vsub.f32 %v9885_v30, %v2223_v13  ;;  %8945 = vpow2.f32 %v2234_v12 }
 0x884   :  { %v2238_v18 = vmul.f32 1.442695, %v2232_v56  ;;  %v2236_v20 = vmul.f32 1.442695, %v2231_v17 }
 0x885   :  { %v2004_v21 = vpop.xlane.xlu1 %2003  ;;  %v2007_v23 = vpop.xlane.xlu0 %2006 }
 0x886   :  { %8947 = vpow2.f32 %v2238_v18 }
 0x887   :  { %8949 = vpow2.f32 %v2236_v20 }
 0x889   :  { %v9939_v14 = vpop.permute.xlu1 %2262  ;;  %v2001_v27 = vpop.xlane.xlu0 %2000 }
 0x88a   :  { %8221 = vmatprep.subr.bf16.mxu0 %v9939_v14 }
 0x88d   :  { %v2010_v19 = vpop.xlane.xlu0 %2009 }
 0x88f   :  { %v9942_v25 = vpop.eup %8945 }
 0x890   :  { %v2242_v31 = vsel %vm522_vm2, %v9942_v25, 0.0 }
 0x891   :  { %v2229_v32 = vpop.xlane.xlu0 %2228 }
 0x892   :  { %v2233_v15 = vsub.f32 %v9880_v36, %v2229_v32  ;;  %v2451_v36 = vsel %vm102_vm1, %v9897_v38, -inf }
 0x893   :  { %v9944_v34 = vpop.eup %8947 }
 0x894   :  { %v9947_v30 = vpop.eup %8949  ;;  %v2248_v37 = vsel %vm522_vm2, %v9944_v34, 0.0  ;;  %v2240_v10 = vmul.f32 1.442695, %v2233_v15 }
 0x895   :  { %2249 = vadd.xlane.f32.xlu1 %v2248_v37  ;;  %v2245_v39 = vsel %vm522_vm2, %v9947_v30, 0.0  ;;  %v2258_v42 = vpack.c.bf16 %v9947_v30, %v9942_v25  ;;  %v2261_v29 = vpop.permute.xlu0 %2260 }
 0x896   :  { %2246 = vadd.xlane.f32.xlu0 %v2245_v39  ;;  %8951 = vpow2.f32 %v2240_v10 }
 0x897   :  { %8953 = vrcp.f32 %v2004_v21 }
 0x898   :  { %8955 = vrcp.f32 %v2010_v19 }
 0x899   :  { %2243 = vadd.xlane.f32.xlu1 %v2242_v31 }
 0x89d   :  { %2452 = vmax.xlane.f32.xlu1 %v2451_v36 }
 0x8a3   :  { %v9959_v47 = vpop.eup %8951 }
 0x8a4   :  { %v2251_v48 = vsel %vm522_vm2, %v9959_v47, 0.0  ;;  %v2259_v50 = vpack.c.bf16 %v9959_v47, %v9944_v34  ;;  %v8954_v56 = vpop.eup %8953  ;;  %v10016_v34 = vld [vmem:[%s11191_s6 + $0x38] sm:$0xff]  }
 0x8a5   :  { %2252 = vadd.xlane.f32.xlu0 %v2251_v48  ;;  %v8956_v17 = vpop.eup %8955 }
 0x8a9   :  { %2455 = vmax.xlane.f32.xlu0 %v2454_v52 }
 0x8b5   :  { %v2566_v24 = vpop.f32.mrf.mxu1 }
 0x8b6   :  { %v2573_v49 = vsel %vm102_vm1, %v2566_v24, -inf }
 0x8b7   :  { %v8251_v55 = vpop.f32.mrf.mxu1  ;;  %2574 = vmax.xlane.f32.xlu1 %v2573_v49 }
 0x8b9   :  { %v2569_v33 = vpop.f32.mrf.mxu1 }
 0x8ba   :  { %v2576_v28 = vsel %vm102_vm1, %v2569_v33, -inf }
 0x8bb   :  { %v8252_v63 = vpop.f32.mrf.mxu1  ;;  %2577 = vmax.xlane.f32.xlu0 %v2576_v28 }
 0x8c8   :  { %2595 = vrot.lane.b32.xlu1 %v9507_v7, %s9263_s25 }
 0x8cc   :  { %2733 = vrot.lane.b32.xlu1 %v9466_v4, %s9264_s16 }
 0x91e   :  { %v9973_v16 = vpop.xlane.xlu1 %2249 }
 0x91f   :  { %v9978_v54 = vpop.xlane.xlu0 %2246 }
 0x922   :  { %v9975_v62 = vpop.xlane.xlu1 %2243 }
 0x926   :  { %v2453_v61 = vpop.xlane.xlu1 %2452 }
 0x927   :  { %v2457_v1 = vsub.f32 %v9897_v38, %v2453_v61 }
 0x929   :  { %v2459_v35 = vmul.f32 1.442695, %v2457_v1 }
 0x92b   :  { %8957 = vpow2.f32 %v2459_v35  ;;  %v8189_v2 = vpop.f32.mrf.mxu0 }
 0x92c   :  { %8959 = vrcp.f32 %v2001_v27  ;;  %v9981_v3 = vadd.f32 %v8189_v2, %v9914_v53 }
 0x92d   :  { %8961 = vrcp.f32 %v2007_v23  ;;  %v1887_v45 = vpop.f32.mrf.mxu0 }
 0x92e   :  { %v9984_v41 = vadd.f32 %v1887_v45, %v9917_v59  ;;  %v2253_v44 = vpop.xlane.xlu0 %2252 }
 0x92f   :  { %v8190_v5 = vpop.f32.mrf.mxu0 }
 0x930   :  { %v9987_v38 = vadd.f32 %v8190_v5, %v9920_v40 }
 0x931   :  { %v9989_v60 = vpop.f32.mrf.mxu0 }
 0x932   :  { %v2456_v12 = vpop.xlane.xlu0 %2455 }
 0x933   :  { %v8205_v9 = vpop.f32.mrf.mxu0  ;;  %v2458_v8 = vsub.f32 %v9902_v46, %v2456_v12 }
 0x935   :  { %v2063_v13 = vpop.f32.mrf.mxu0  ;;  %v2461_v53 = vmul.f32 1.442695, %v2458_v8 }
 0x937   :  { %v8206_v18 = vpop.f32.mrf.mxu0  ;;  %8963 = vpow2.f32 %v2461_v53 }
 0x938   :  { %v9992_v20 = vpop.eup %8957  ;;  %v2081_v21 = vmul.f32 %v8956_v17, %v8206_v18 }
 0x939   :  { %v8960_v59 = vpop.eup %8959  ;;  %v2066_v23 = vpop.f32.mrf.mxu0  ;;  %v2463_v40 = vsel %vm102_vm1, %v9992_v20, 0.0 }
 0x93a   :  { %v8962_v27 = vpop.eup %8961  ;;  %v2078_v19 = vmul.f32 %v8960_v59, %v2063_v13  ;;  %v2079_v32 = vmul.f32 %v8954_v56, %v2066_v23  ;;  %2464 = vadd.xlane.f32.xlu1 %v2463_v40 }
 0x93b   :  { %v2080_v15 = vmul.f32 %v8962_v27, %v8205_v9 }
 0x93c   :  { %v2082_v46 = vpack.c.bf16 %v2079_v32, %v2078_v19 }
 0x93d   :  { %v2083_v37 = vpack.c.bf16 %v2081_v21, %v2080_v15 }
 0x93e   :  { %8209 = vmatprep.mubr.msk.bf16.mxu0 %vm102_vm1, %v2082_v46 }
 0x93f   :  { %8210 = vmatmul.mubr.msk.bf16.vlgmr.msra.gmra.mxu0 %vm102_vm1, %v2083_v37 }
 0x940   :  { %8222 = vmatpush3.bf16.msra.mxu0 %v9939_v14  ;;  %8225 = vmatprep.mubr.msk.bf16.mxu0 %vm522_vm2, %v2258_v42  ;;  %v2575_v10 = vpop.xlane.xlu1 %2574 }
 0x941   :  { %8223 = vmatprep.subr.bf16.mxu0 %v2261_v29  ;;  %v2579_v39 = vsub.f32 %v2566_v24, %v2575_v10 }
 0x943   :  { %v2581_v31 = vmul.f32 1.442695, %v2579_v39 }
 0x944   :  { %8224 = vmatpush3.bf16.msra.mxu0 %v2261_v29  ;;  %v2578_v36 = vpop.xlane.xlu0 %2577  ;;  %v8964_v48 = vpop.eup %8963 }
 0x945   :  { %8965 = vpow2.f32 %v2581_v31  ;;  %v2580_v52 = vsub.f32 %v2569_v33, %v2578_v36  ;;  %v2471_v49 = vpack.c.bf16 %v8964_v48, %v9992_v20  ;;  %v2466_v33 = vsel %vm102_vm1, %v8964_v48, 0.0  ;;  %8229 = vmatprep.subr.bf16.mxu0 %v10016_v34 }
 0x947   :  { %v2583_v55 = vmul.f32 1.442695, %v2580_v52  ;;  %8226 = vmatmul.mubr.msk.bf16.vlgmr.msra.gmra.mxu0 %vm522_vm2, %v2259_v50 }
 0x948   :  { %8230 = vmatpush3.bf16.msra.mxu0 %v10016_v34 }
 0x949   :  { %8967 = vpow2.f32 %v2583_v55  ;;  %8241 = vmatprep.subr.bf16.mxu0 %v9261_v0 }
 0x94a   :  { %8969 = vrcp.f32 %v9978_v54 }
 0x94b   :  { %8971 = vrcp.f32 %v2253_v44 }
 0x94c   :  { %8973 = vrcp.f32 %v9975_v62 }
 0x94d   :  { %8975 = vrcp.f32 %v9973_v16 }
 0x952   :  { %v8966_v14 = vpop.eup %8965 }
 0x953   :  { %v2585_v25 = vsel %vm102_vm1, %v8966_v14, 0.0 }
 0x954   :  { %2586 = vadd.xlane.f32.xlu0 %v2585_v25 }
 0x956   :  { %v8968_v30 = vpop.eup %8967 }
 0x957   :  { %v2588_v42 = vsel %vm102_vm1, %v8968_v30, 0.0  ;;  %v2593_v24 = vpack.c.bf16 %v8968_v30, %v8966_v14  ;;  %v8970_v45 = vpop.eup %8969 }
 0x958   :  { %2589 = vadd.xlane.f32.xlu0 %v2588_v42  ;;  %v8972_v5 = vpop.eup %8971 }
 0x959   :  { %v8974_v44 = vpop.eup %8973 }
 0x95a   :  { %v8976_v12 = vpop.eup %8975 }
 0x96e   :  { %2735 = vrot.lane.b32.xlu0 %v9494_v57, %s9264_s16 }
 0x98d   :  { %2467 = vadd.xlane.f32.xlu0 %v2466_v33 }
 0x9a3   :  { %2805 = vrot.lane.b32.xlu0 %v9507_v7, %s9264_s16 }
 0x9dd   :  { %v2587_v53 = vpop.xlane.xlu0 %2586 }
 0x9e1   :  { %v2590_v17 = vpop.xlane.xlu0 %2589 }
 0x9e5   :  { %v2736_v20 = vpop.permute.xlu0 %2735 }
 0x9ff   :  { %v8211_v47 = vpop.f32.mrf.mxu0 }
 0xa00   :  { %v2147_v50 = vadd.f32 %v8211_v47, %v9981_v3 }
 0xa01   :  { %v2130_v28 = vpop.f32.mrf.mxu0 }
 0xa02   :  { %v2145_v63 = vadd.f32 %v2130_v28, %v9984_v41  ;;  %v2596_v41 = vpop.permute.xlu1 %2595 }
 0xa03   :  { %v8212_v61 = vpop.f32.mrf.mxu0 }
 0xa04   :  { %v2148_v29 = vadd.f32 %v8212_v61, %v9987_v38  ;;  %v9226_v38 = vld [vmem:[%s11191_s6] sm:$0xff]   ;;  %v2741_v61 = vsel %vm102_vm1, %v2736_v20, 0 }
 0xa05   :  { %v10029_v1 = vpop.f32.mrf.mxu0 }
 0xa06   :  { %v2734_v18 = vpop.permute.xlu1 %2733 }
 0xa07   :  { %v8227_v35 = vpop.f32.mrf.mxu0 }
 0xa08   :  { %v2323_v16 = vmul.f32 %v8976_v12, %v8227_v35 }
 0xa09   :  { %v2306_v2 = vpop.f32.mrf.mxu0 }
 0xa0a   :  { %v2321_v3 = vmul.f32 %v8974_v44, %v2306_v2  ;;  %v2465_v59 = vpop.xlane.xlu1 %2464 }
 0xa0b   :  { %v8228_v54 = vpop.f32.mrf.mxu0  ;;  %8977 = vrcp.f32 %v2465_v59 }
 0xa0c   :  { %v2324_v9 = vmul.f32 %v8972_v5, %v8228_v54 }
 0xa0d   :  { %v2309_v62 = vpop.f32.mrf.mxu0 }
 0xa0e   :  { %v2322_v8 = vmul.f32 %v8970_v45, %v2309_v62  ;;  %v2326_v56 = vpack.c.bf16 %v2324_v9, %v2323_v16 }
 0xa10   :  { %v2325_v13 = vpack.c.bf16 %v2322_v8, %v2321_v3 }
 0xa12   :  { %8231 = vmatprep.mubr.msk.bf16.mxu0 %vm102_vm1, %v2325_v13 }
 0xa13   :  { %8232 = vmatmul.mubr.msk.bf16.vlgmr.msra.gmra.mxu0 %vm102_vm1, %v2326_v56 }
 0xa14   :  { %8242 = vmatpush3.bf16.msra.mxu0 %v9507_v7  ;;  %8243 = vmatprep.mubr.msk.bf16.mxu0 %vm9262_vm0, %v9261_v0 }
 0xa15   :  { %8253 = vmatprep.subr.bf16.mxu0 %v9261_v0 }
 0xa16   :  { %v2468_v21 = vpop.xlane.xlu0 %2467 }
 0xa17   :  { %8979 = vrcp.f32 %v2468_v21 }
 0xa18   :  { %8981 = vrcp.f32 %v2587_v53  ;;  %v8978_v39 = vpop.eup %8977 }
 0xa19   :  { %8983 = vrcp.f32 %v2590_v17 }
 0xa1a   :  { %v2806_v25 = vpop.permute.xlu0 %2805 }
 0xa1b   :  { %8244 = vmatmul.mubr.msk.bf16.vlgmr.msra.gmra.mxu0 %vm102_vm1, %v2471_v49 }
 0xa1c   :  { %8254 = vmatpush3.bf16.msra.mxu0 %v2596_v41  ;;  %8255 = vmatprep.mubr.msk.bf16.mxu0 %vm9262_vm0, %v9261_v0 }
 0xa1d   :  { %8265 = vmatprep.subr.bf16.mxu0 %v9261_v0 }
 0xa23   :  { %8256 = vmatmul.mubr.msk.bf16.vlgmr.msra.gmra.mxu0 %vm102_vm1, %v2593_v24 }
 0xa24   :  { %8266 = vmatpush3.bf16.msra.mxu0 %v9226_v38  ;;  %8267 = vmatprep.mubr.msk.bf16.mxu0 %vm9262_vm0, %v9261_v0  ;;  %v8980_v31 = vpop.eup %8979 }
 0xa25   :  { %8277 = vmatprep.subr.bf16.mxu0 %v9261_v0  ;;  %v8982_v42 = vpop.eup %8981 }
 0xa26   :  { %v8984_v24 = vpop.eup %8983 }
 0xad3   :  { %v8233_v23 = vpop.f32.mrf.mxu0 }
 0xad4   :  { %v10048_v40 = vadd.f32 %v8233_v23, %v2147_v50 }
 0xad5   :  { %v2373_v27 = vpop.f32.mrf.mxu0 }
 0xad6   :  { %v10050_v19 = vadd.f32 %v2373_v27, %v2145_v63 }
 0xad7   :  { %v8234_v32 = vpop.f32.mrf.mxu0 }
 0xad8   :  { %v10052_v15 = vadd.f32 %v8234_v32, %v2148_v29  ;;  %v9227_v29 = vld [vmem:[%s11191_s6 + $0x10] sm:$0xff]  }
 0xad9   :  { %v10054_v46 = vpop.f32.mrf.mxu0 }
 0xadb   :  { %v2510_v37 = vpop.f32.mrf.mxu0 }
 0xadc   :  { %v2517_v48 = vmul.f32 %v8978_v39, %v2510_v37 }
 0xadd   :  { %v8245_v10 = vpop.f32.mrf.mxu0 }
 0xadf   :  { %v2513_v36 = vpop.f32.mrf.mxu0 }
 0xae0   :  { %v2518_v52 = vmul.f32 %v8980_v31, %v2513_v36 }
 0xae1   :  { %v8246_v49 = vpop.f32.mrf.mxu0 }
 0xae2   :  { %v2519_v55 = vpack.c.bf16 %v2518_v52, %v2517_v48  ;;  %v9228_v48 = vld [vmem:[%s11191_s6 + $0x18] sm:$0xff]  }
 0xae3   :  { %v2635_v14 = vpop.f32.mrf.mxu0 }
 0xae4   :  { %8268 = vmatmul.mubr.msk.bf16.vlgmr.msra.gmra.mxu0 %vm102_vm1, %v2519_v55  ;;  %v2642_v47 = vmul.f32 %v8982_v42, %v2635_v14 }
 0xae5   :  { %8278 = vmatpush3.bf16.msra.mxu0 %v2806_v25  ;;  %v8257_v30 = vpop.f32.mrf.mxu0  ;;  %8279 = vmatprep.mubr.msk.bf16.mxu0 %vm9262_vm0, %v9261_v0 }
 0xae6   :  { %8289 = vmatprep.subr.bf16.mxu0 %v9261_v0 }
 0xae7   :  { %v2638_v33 = vpop.f32.mrf.mxu0 }
 0xae8   :  { %v2643_v50 = vmul.f32 %v8984_v24, %v2638_v33 }
 0xae9   :  { %v8258_v28 = vpop.f32.mrf.mxu0 }
 0xaea   :  { %v2644_v63 = vpack.c.bf16 %v2643_v50, %v2642_v47 }
 0xaec   :  { %8262 = vmatmul.mubr.msk.bf16.vlgmr.msra.gmra.mxu1 %vm102_vm1, %v2644_v63 }
 0xaed   :  { %8272 = vmatpush3.bf16.xpose.msra.mxu1 %v2741_v61  ;;  %8273 = vmatprep.mubr.msk.bf16.mxu1 %vm9262_vm0, %v9261_v0 }
 0xaee   :  { %8283 = vmatprep.subr.bf16.mxu1 %v9261_v0 }
 0xaf4   :  { %8274 = vmatmul.mubr.msk.bf16.vlgmr.msra.gmra.mxu1 %vm102_vm1, %v2734_v18 }
 0xaf5   :  { %8284 = vmatpush3.bf16.msra.mxu1 %v9227_v29  ;;  %8285 = vmatprep.mubr.msk.bf16.mxu1 %vm9262_vm0, %v9261_v0 }
 0xaf6   :  { %8295 = vmatprep.subr.bf16.mxu1 %v9261_v0 }
 0xba4   :  { %v2726_v35 = vpop.f32.mrf.mxu0 }
 0xba6   :  { %v8269_v2 = vpop.f32.mrf.mxu0 }
 0xba8   :  { %v2729_v45 = vpop.f32.mrf.mxu0 }
 0xbaa   :  { %v8270_v54 = vpop.f32.mrf.mxu0 }
 0xbac   :  { %v2682_v5 = vpop.f32.mrf.mxu1 }
 0xbad   :  { %v10072_v44 = vadd.f32 %v2726_v35, %v2682_v5 }
 0xbae   :  { %v8263_v9 = vpop.f32.mrf.mxu1 }
 0xbb0   :  { %v2685_v62 = vpop.f32.mrf.mxu1 }
 0xbb1   :  { %v10074_v12 = vadd.f32 %v2729_v45, %v2685_v62 }
 0xbb2   :  { %v8264_v3 = vpop.f32.mrf.mxu1 }
 0xbb4   :  { %v2777_v8 = vpop.f32.mrf.mxu1 }
 0xbb5   :  { %v2784_v16 = vsel %vm102_vm1, %v2777_v8, -inf }
 0xbb6   :  { %2785 = vmax.xlane.f32.xlu1 %v2784_v16  ;;  %v8275_v13 = vpop.f32.mrf.mxu1 }
 0xbb8   :  { %v2780_v56 = vpop.f32.mrf.mxu1 }
 0xbb9   :  { %v2787_v41 = vsel %vm102_vm1, %v2780_v56, -inf }
 0xbba   :  { %2788 = vmax.xlane.f32.xlu1 %v2787_v41  ;;  %v8276_v38 = vpop.f32.mrf.mxu1 }
 0xbcb   :  { %2903 = vrot.lane.b32.xlu1 %v9494_v57, %s9265_s17 }
 0xbcf   :  { %2901 = vrot.lane.b32.xlu1 %v9466_v4, %s9265_s17 }
 0xc3f   :  { %v2786_v53 = vpop.xlane.xlu1 %2785 }
 0xc40   :  { %v2790_v17 = vsub.f32 %v2777_v8, %v2786_v53 }
 0xc42   :  { %v2792_v18 = vmul.f32 1.442695, %v2790_v17 }
 0xc43   :  { %v2789_v20 = vpop.xlane.xlu1 %2788 }
 0xc44   :  { %8985 = vpow2.f32 %v2792_v18  ;;  %v2791_v59 = vsub.f32 %v2780_v56, %v2789_v20  ;;  %v9229_v20 = vld [vmem:[%s11191_s6 + $0x20] sm:$0xff]  }
 0xc46   :  { %v2794_v21 = vmul.f32 1.442695, %v2791_v59 }
 0xc47   :  { %v2904_v37 = vpop.permute.xlu1 %2903 }
 0xc48   :  { %8987 = vpow2.f32 %v2794_v21  ;;  %v2909_v31 = vsel %vm102_vm1, %v2904_v37, 0 }
 0xc4b   :  { %v2902_v36 = vpop.permute.xlu1 %2901 }
 0xc51   :  { %v8986_v23 = vpop.eup %8985 }
 0xc52   :  { %v2796_v27 = vsel %vm102_vm1, %v8986_v23, 0.0 }
 0xc53   :  { %2797 = vadd.xlane.f32.xlu0 %v2796_v27 }
 0xc55   :  { %v8988_v32 = vpop.eup %8987 }
 0xc56   :  { %v2799_v10 = vsel %vm102_vm1, %v8988_v32, 0.0  ;;  %v2804_v39 = vpack.c.bf16 %v8988_v32, %v8986_v23 }
 0xc57   :  { %2800 = vadd.xlane.f32.xlu1 %v2799_v10 }
 0xc58   :  { %8280 = vmatmul.mubr.msk.bf16.vlgmr.msra.gmra.mxu0 %vm102_vm1, %v2804_v39 }
 0xc59   :  { %8290 = vmatpush3.bf16.xpose.msra.mxu0 %v2909_v31  ;;  %8291 = vmatprep.mubr.msk.bf16.mxu0 %vm9262_vm0, %v9261_v0 }
 0xc5a   :  { %8301 = vmatprep.subr.bf16.mxu0 %v9261_v0 }
 0xc60   :  { %8292 = vmatmul.mubr.msk.bf16.vlgmr.msra.gmra.mxu0 %vm102_vm1, %v2902_v36 }
 0xc61   :  { %8302 = vmatpush3.bf16.msra.mxu0 %v9228_v48  ;;  %8303 = vmatprep.mubr.msk.bf16.mxu0 %vm9262_vm0, %v9261_v0 }
 0xc62   :  { %8313 = vmatprep.subr.bf16.mxu0 %v9261_v0 }
 0xc68   :  { %2973 = vrot.lane.b32.xlu1 %v9507_v7, %s9265_s17 }
 0xc6c   :  { %3069 = vrot.lane.b32.xlu1 %v9466_v4, %s9266_s20 }
 0xcdc   :  { %v2798_v52 = vpop.xlane.xlu0 %2797 }
 0xcdd   :  { %8989 = vrcp.f32 %v2798_v52 }
 0xce0   :  { %v2801_v49 = vpop.xlane.xlu1 %2800 }
 0xce1   :  { %8991 = vrcp.f32 %v2801_v49 }
 0xce4   :  { %v2974_v63 = vpop.permute.xlu1 %2973 }
 0xce8   :  { %v3070_v18 = vpop.permute.xlu1 %3069 }
 0xcea   :  { %v8990_v25 = vpop.eup %8989 }
 0xcee   :  { %v8992_v30 = vpop.eup %8991 }
 0xd18   :  { %v2845_v55 = vpop.f32.mrf.mxu0 }
 0xd19   :  { %v2852_v24 = vmul.f32 %v8990_v25, %v2845_v55 }
 0xd1a   :  { %v8281_v14 = vpop.f32.mrf.mxu0 }
 0xd1c   :  { %v2848_v42 = vpop.f32.mrf.mxu0 }
 0xd1d   :  { %v2853_v33 = vmul.f32 %v8992_v30, %v2848_v42 }
 0xd1e   :  { %v8282_v47 = vpop.f32.mrf.mxu0 }
 0xd1f   :  { %v2854_v50 = vpack.c.bf16 %v2853_v33, %v2852_v24 }
 0xd20   :  { %v2945_v28 = vpop.f32.mrf.mxu0 }
 0xd21   :  { %8286 = vmatmul.mubr.msk.bf16.vlgmr.msra.gmra.mxu1 %vm102_vm1, %v2854_v50  ;;  %v2952_v61 = vsel %vm102_vm1, %v2945_v28, -inf }
 0xd22   :  { %8296 = vmatpush3.bf16.msra.mxu1 %v2974_v63  ;;  %2953 = vmax.xlane.f32.xlu0 %v2952_v61  ;;  %v8293_v29 = vpop.f32.mrf.mxu0 }
 0xd23   :  { %8297 = vmatprep.mubr.msk.bf16.mxu1 %vm9262_vm0, %v9261_v0  ;;  %8307 = vmatprep.subr.bf16.mxu1 %v9261_v0 }
 0xd24   :  { %v2948_v35 = vpop.f32.mrf.mxu0 }
 0xd25   :  { %v2955_v2 = vsel %vm102_vm1, %v2948_v35, -inf }
 0xd26   :  { %2956 = vmax.xlane.f32.xlu0 %v2955_v2  ;;  %v8294_v45 = vpop.f32.mrf.mxu0 }
 0xd3c   :  { %3071 = vrot.lane.b32.xlu0 %v9494_v57, %s9266_s20 }
 0xdab   :  { %v2954_v54 = vpop.xlane.xlu0 %2953 }
 0xdac   :  { %v2958_v5 = vsub.f32 %v2945_v28, %v2954_v54 }
 0xdae   :  { %v2960_v9 = vmul.f32 1.442695, %v2958_v5 }
 0xdaf   :  { %v2957_v62 = vpop.xlane.xlu0 %2956 }
 0xdb0   :  { %8993 = vpow2.f32 %v2960_v9  ;;  %v2959_v3 = vsub.f32 %v2948_v35, %v2957_v62 }
 0xdb2   :  { %v2962_v8 = vmul.f32 1.442695, %v2959_v3 }
 0xdb3   :  { %v3072_v41 = vpop.permute.xlu0 %3071 }
 0xdb4   :  { %8995 = vpow2.f32 %v2962_v8  ;;  %v3077_v17 = vsel %vm102_vm1, %v3072_v41, 0 }
 0xdbd   :  { %v8994_v16 = vpop.eup %8993 }
 0xdbe   :  { %v2964_v13 = vsel %vm102_vm1, %v8994_v16, 0.0 }
 0xdbf   :  { %2965 = vadd.xlane.f32.xlu1 %v2964_v13 }
 0xdc1   :  { %v8996_v56 = vpop.eup %8995 }
 0xdc2   :  { %v2967_v38 = vsel %vm102_vm1, %v8996_v56, 0.0  ;;  %v2972_v53 = vpack.c.bf16 %v8996_v56, %v8994_v16 }
 0xdc3   :  { %2968 = vadd.xlane.f32.xlu0 %v2967_v38 }
 0xdc4   :  { %8298 = vmatmul.mubr.msk.bf16.vlgmr.msra.gmra.mxu1 %vm102_vm1, %v2972_v53 }
 0xdc5   :  { %8308 = vmatpush3.bf16.xpose.msra.mxu1 %v3077_v17  ;;  %8309 = vmatprep.mubr.msk.bf16.mxu1 %vm9262_vm0, %v9261_v0 }
 0xdc6   :  { %8319 = vmatprep.subr.bf16.mxu1 %v9261_v0 }
 0xdcc   :  { %8310 = vmatmul.mubr.msk.bf16.vlgmr.msra.gmra.mxu1 %vm102_vm1, %v3070_v18 }
 0xdcd   :  { %8320 = vmatpush3.bf16.msra.mxu1 %v9229_v20  ;;  %8321 = vmatprep.mubr.msk.bf16.mxu1 %vm9262_vm0, %v9261_v0 }
 0xdce   :  { %8331 = vmatprep.subr.bf16.mxu1 %v9261_v0 }
 0xde1   :  { %v2892_v59 = vpop.f32.mrf.mxu1 }
 0xde2   :  { %v10123_v21 = vadd.f32 %v2892_v59, %v10072_v44 }
 0xde3   :  { %v8287_v23 = vpop.f32.mrf.mxu1 }
 0xde5   :  { %v2895_v27 = vpop.f32.mrf.mxu1 }
 0xde6   :  { %v10126_v32 = vadd.f32 %v2895_v27, %v10074_v12 }
 0xde7   :  { %v8288_v37 = vpop.f32.mrf.mxu1 }
 0xe48   :  { %v2966_v10 = vpop.xlane.xlu1 %2965 }
 0xe49   :  { %8997 = vrcp.f32 %v2966_v10 }
 0xe4c   :  { %v2969_v39 = vpop.xlane.xlu0 %2968 }
 0xe4d   :  { %8999 = vrcp.f32 %v2969_v39 }
 0xe56   :  { %v8998_v48 = vpop.eup %8997 }
 0xe5a   :  { %v9000_v52 = vpop.eup %8999 }
 0xe84   :  { %v3013_v31 = vpop.f32.mrf.mxu1 }
 0xe85   :  { %v3020_v55 = vmul.f32 %v8998_v48, %v3013_v31 }
 0xe86   :  { %v8299_v36 = vpop.f32.mrf.mxu1 }
 0xe88   :  { %v3016_v49 = vpop.f32.mrf.mxu1 }
 0xe89   :  { %v3021_v14 = vmul.f32 %v9000_v52, %v3016_v49 }
 0xe8a   :  { %v8300_v25 = vpop.f32.mrf.mxu1 }
 0xe8b   :  { %v3022_v44 = vpack.c.bf16 %v3021_v14, %v3020_v55 }
 0xe8c   :  { %v3113_v30 = vpop.f32.mrf.mxu1 }
 0xe8d   :  { %8304 = vmatmul.mubr.msk.bf16.vlgmr.msra.gmra.mxu0 %vm102_vm1, %v3022_v44  ;;  %v3120_v12 = vsel %vm102_vm1, %v3113_v30, -inf }
 0xe8e   :  { %3121 = vmax.xlane.f32.xlu0 %v3120_v12  ;;  %v8311_v42 = vpop.f32.mrf.mxu1  ;;  %8315 = vmatprep.mubr.msk.bf16.mxu0 %vm9262_vm0, %v9261_v0 }
 0xe90   :  { %v3116_v24 = vpop.f32.mrf.mxu1 }
 0xe91   :  { %v3123_v33 = vsel %vm102_vm1, %v3116_v24, -inf }
 0xe92   :  { %3124 = vmax.xlane.f32.xlu1 %v3123_v33  ;;  %v8312_v47 = vpop.f32.mrf.mxu1 }
 0xea3   :  { %3239 = vrot.lane.b32.xlu1 %v9494_v57, %s9267_s23 }
 0xea4   :  { %3141 = vrot.lane.b32.xlu0 %v9507_v7, %s9266_s20 }
 0xea7   :  { %3237 = vrot.lane.b32.xlu1 %v9466_v4, %s9267_s23 }
 0xf17   :  { %v3122_v50 = vpop.xlane.xlu0 %3121 }
 0xf18   :  { %v3126_v28 = vsub.f32 %v3113_v30, %v3122_v50 }
 0xf1a   :  { %v3128_v63 = vmul.f32 1.442695, %v3126_v28 }
 0xf1b   :  { %v3125_v61 = vpop.xlane.xlu1 %3124  ;;  %v3142_v29 = vpop.permute.xlu0 %3141 }
 0xf1c   :  { %9001 = vpow2.f32 %v3128_v63  ;;  %v3127_v35 = vsub.f32 %v3116_v24, %v3125_v61  ;;  %8314 = vmatpush3.bf16.msra.mxu0 %v3142_v29 }
 0xf1d   :  { %8325 = vmatprep.subr.bf16.mxu0 %v9261_v0 }
 0xf1e   :  { %v3130_v2 = vmul.f32 1.442695, %v3127_v35 }
 0xf1f   :  { %v3240_v9 = vpop.permute.xlu1 %3239 }
 0xf20   :  { %9003 = vpow2.f32 %v3130_v2  ;;  %v3245_v8 = vsel %vm102_vm1, %v3240_v9, 0 }
 0xf23   :  { %v3238_v16 = vpop.permute.xlu1 %3237 }
 0xf29   :  { %v9002_v45 = vpop.eup %9001 }
 0xf2a   :  { %v3132_v54 = vsel %vm102_vm1, %v9002_v45, 0.0 }
 0xf2b   :  { %3133 = vadd.xlane.f32.xlu0 %v3132_v54 }
 0xf2d   :  { %v9004_v5 = vpop.eup %9003 }
 0xf2e   :  { %v3140_v62 = vpack.c.bf16 %v9004_v5, %v9002_v45  ;;  %v3135_v3 = vsel %vm102_vm1, %v9004_v5, 0.0 }
 0xf2f   :  { %3136 = vadd.xlane.f32.xlu1 %v3135_v3 }
 0xf30   :  { %8316 = vmatmul.mubr.msk.bf16.vlgmr.msra.gmra.mxu0 %vm102_vm1, %v3140_v62 }
 0xf31   :  { %8326 = vmatpush3.bf16.xpose.msra.mxu0 %v3245_v8  ;;  %8327 = vmatprep.mubr.msk.bf16.mxu0 %vm9262_vm0, %v9261_v0 }
 0xf32   :  { %8337 = vmatprep.subr.bf16.mxu0 %v9261_v0 }
 0xf38   :  { %8328 = vmatmul.mubr.msk.bf16.vlgmr.msra.gmra.mxu0 %vm102_vm1, %v3238_v16 }
 0xf39   :  { %8338 = vmatpush3.bf16.msra.mxu0 %v9857_v26  ;;  %8339 = vmatprep.mubr.msk.bf16.mxu0 %vm9262_vm0, %v9261_v0 }
 0xf3a   :  { %8349 = vmatprep.subr.bf16.mxu0 %v9261_v0 }
 0xf40   :  { %3309 = vrot.lane.b32.xlu1 %v9507_v7, %s9267_s23 }
 0xf44   :  { %3405 = vrot.lane.b32.xlu1 %v9466_v4, %s9268_s27 }
 0xf4d   :  { %v3060_v13 = vpop.f32.mrf.mxu0 }
 0xf4e   :  { %v3067_v56 = vadd.f32 %v3060_v13, %v10123_v21 }
 0xf4f   :  { %v8305_v41 = vpop.f32.mrf.mxu0 }
 0xf51   :  { %v3063_v38 = vpop.f32.mrf.mxu0 }
 0xf52   :  { %v3068_v53 = vadd.f32 %v3063_v38, %v10126_v32 }
 0xf53   :  { %v8306_v17 = vpop.f32.mrf.mxu0 }
 0xfb4   :  { %v3134_v26 = vpop.xlane.xlu0 %3133 }
 0xfb5   :  { %9005 = vrcp.f32 %v3134_v26 }
 0xfb8   :  { %v3137_v18 = vpop.xlane.xlu1 %3136 }
 0xfb9   :  { %9007 = vrcp.f32 %v3137_v18 }
 0xfbc   :  { %v3310_v21 = vpop.permute.xlu1 %3309 }
 0xfc0   :  { %v3406_v35 = vpop.permute.xlu1 %3405 }
 0xfc2   :  { %v9006_v23 = vpop.eup %9005 }
 0xfc6   :  { %v9008_v27 = vpop.eup %9007 }
 0xff0   :  { %v3181_v20 = vpop.f32.mrf.mxu0 }
 0xff1   :  { %v3188_v10 = vmul.f32 %v9006_v23, %v3181_v20 }
 0xff2   :  { %v8317_v59 = vpop.f32.mrf.mxu0 }
 0xff4   :  { %v3184_v37 = vpop.f32.mrf.mxu0 }
 0xff5   :  { %v3189_v39 = vmul.f32 %v9008_v27, %v3184_v37 }
 0xff6   :  { %v8318_v31 = vpop.f32.mrf.mxu0 }
 0xff7   :  { %v3190_v36 = vpack.c.bf16 %v3189_v39, %v3188_v10 }
 0xff8   :  { %v3281_v48 = vpop.f32.mrf.mxu0 }
 0xff9   :  { %8322 = vmatmul.mubr.msk.bf16.vlgmr.msra.gmra.mxu1 %vm102_vm1, %v3190_v36  ;;  %v3288_v32 = vsel %vm102_vm1, %v3281_v48, -inf }
 0xffa   :  { %8332 = vmatpush3.bf16.msra.mxu1 %v3310_v21  ;;  %3289 = vmax.xlane.f32.xlu0 %v3288_v32  ;;  %v8329_v52 = vpop.f32.mrf.mxu0 }
 0xffb   :  { %8333 = vmatprep.mubr.msk.bf16.mxu1 %vm9262_vm0, %v9261_v0  ;;  %8343 = vmatprep.subr.bf16.mxu1 %v9261_v0 }
 0xffc   :  { %v3284_v49 = vpop.f32.mrf.mxu0 }
 0xffd   :  { %v3291_v55 = vsel %vm102_vm1, %v3284_v49, -inf }
 0xffe   :  { %3292 = vmax.xlane.f32.xlu0 %v3291_v55  ;;  %v8330_v14 = vpop.f32.mrf.mxu0 }
0x1014   :  { %3407 = vrot.lane.b32.xlu0 %v9494_v57, %s9268_s27 }
0x1083   :  { %v3290_v25 = vpop.xlane.xlu0 %3289 }
0x1084   :  { %v3294_v44 = vsub.f32 %v3281_v48, %v3290_v25 }
0x1086   :  { %v3296_v30 = vmul.f32 1.442695, %v3294_v44 }
0x1087   :  { %v3293_v12 = vpop.xlane.xlu0 %3292 }
0x1088   :  { %9009 = vpow2.f32 %v3296_v30  ;;  %v3295_v42 = vsub.f32 %v3284_v49, %v3293_v12 }
0x108a   :  { %v3298_v24 = vmul.f32 1.442695, %v3295_v42 }
0x108b   :  { %v3408_v28 = vpop.permute.xlu0 %3407 }
0x108c   :  { %9011 = vpow2.f32 %v3298_v24  ;;  %v3413_v29 = vsel %vm102_vm1, %v3408_v28, 0 }
0x1095   :  { %v9010_v33 = vpop.eup %9009 }
0x1096   :  { %v3300_v47 = vsel %vm102_vm1, %v9010_v33, 0.0 }
0x1097   :  { %3301 = vadd.xlane.f32.xlu1 %v3300_v47 }
0x1099   :  { %v9012_v50 = vpop.eup %9011 }
0x109a   :  { %v3303_v63 = vsel %vm102_vm1, %v9012_v50, 0.0  ;;  %v3308_v61 = vpack.c.bf16 %v9012_v50, %v9010_v33 }
0x109b   :  { %3304 = vadd.xlane.f32.xlu0 %v3303_v63 }
0x109c   :  { %8334 = vmatmul.mubr.msk.bf16.vlgmr.msra.gmra.mxu1 %vm102_vm1, %v3308_v61 }
0x109d   :  { %8344 = vmatpush3.bf16.xpose.msra.mxu1 %v3413_v29  ;;  %8345 = vmatprep.mubr.msk.bf16.mxu1 %vm9262_vm0, %v9261_v0 }
0x109e   :  { %8355 = vmatprep.subr.bf16.mxu1 %v9261_v0 }
0x10a4   :  { %8346 = vmatmul.mubr.msk.bf16.vlgmr.msra.gmra.mxu1 %vm102_vm1, %v3406_v35 }
0x10a5   :  { %8356 = vmatpush3.bf16.msra.mxu1 %v9931_v6  ;;  %8357 = vmatprep.mubr.msk.bf16.mxu1 %vm9262_vm0, %v9261_v0 }
0x10a6   :  { %8367 = vmatprep.subr.bf16.mxu1 %v9261_v0 }
0x10b9   :  { %v3228_v2 = vpop.f32.mrf.mxu1 }
0x10ba   :  { %v3235_v45 = vadd.f32 %v3228_v2, %v3067_v56 }
0x10bb   :  { %v8323_v54 = vpop.f32.mrf.mxu1 }
0x10bd   :  { %v3231_v5 = vpop.f32.mrf.mxu1 }
0x10be   :  { %v3236_v9 = vadd.f32 %v3231_v5, %v3068_v53 }
0x10bf   :  { %v8324_v62 = vpop.f32.mrf.mxu1 }
0x1120   :  { %v3302_v3 = vpop.xlane.xlu1 %3301 }
0x1121   :  { %9013 = vrcp.f32 %v3302_v3 }
0x1124   :  { %v3305_v8 = vpop.xlane.xlu0 %3304 }
0x1125   :  { %9015 = vrcp.f32 %v3305_v8 }
0x112e   :  { %v9014_v41 = vpop.eup %9013 }
0x1132   :  { %v9016_v38 = vpop.eup %9015 }
0x115c   :  { %v3349_v16 = vpop.f32.mrf.mxu1 }
0x115d   :  { %v3356_v17 = vmul.f32 %v9014_v41, %v3349_v16 }
0x115e   :  { %v8335_v13 = vpop.f32.mrf.mxu1 }
0x1160   :  { %v3352_v6 = vpop.f32.mrf.mxu1 }
0x1161   :  { %v3357_v26 = vmul.f32 %v9016_v38, %v3352_v6 }
0x1162   :  { %v8336_v18 = vpop.f32.mrf.mxu1 }
0x1163   :  { %v3358_v20 = vpack.c.bf16 %v3357_v26, %v3356_v17  ;;  %v923_v17 = vadd.f32 %v9655_v58, %v9573_v22  ;;  %v10220_v22 = vld [vmem:[%s11192_s7] ss:$0 sm:$0xff] }
0x1164   :  { %v3449_v59 = vpop.f32.mrf.mxu1 }
0x1165   :  { %8340 = vmatmul.mubr.msk.bf16.vlgmr.msra.gmra.mxu0 %vm102_vm1, %v3358_v20  ;;  %v3456_v56 = vsel %vm102_vm1, %v3449_v59, -inf  ;;  %v1174_v20 = vadd.f32 %v9756_v51, %v923_v17 }
0x1166   :  { %3457 = vmax.xlane.f32.xlu0 %v3456_v56  ;;  %v8347_v53 = vpop.f32.mrf.mxu1  ;;  %8351 = vmatprep.mubr.msk.bf16.mxu0 %vm9262_vm0, %v9261_v0 }
0x1167   :  { %v1417_v56 = vadd.f32 %v9844_v11, %v1174_v20 }
0x1168   :  { %v3452_v23 = vpop.f32.mrf.mxu1 }
0x1169   :  { %v3459_v27 = vsel %vm102_vm1, %v3452_v23, -inf  ;;  %v1660_v53 = vadd.f32 %v9922_v43, %v1417_v56  ;;  %v10228_v43 = vadd.f32 %v10220_v22, %v10050_v19 }
0x116a   :  { %3460 = vmax.xlane.f32.xlu1 %v3459_v27  ;;  %v8348_v37 = vpop.f32.mrf.mxu1 }
0x117b   :  { %3575 = vrot.lane.b32.xlu1 %v9494_v57, %s9269_s28 }
0x117c   :  { %3477 = vrot.lane.b32.xlu0 %v9507_v7, %s9268_s27 }
0x117f   :  { %3573 = vrot.lane.b32.xlu1 %v9466_v4, %s9269_s28 }
0x11ef   :  { %v3458_v10 = vpop.xlane.xlu0 %3457 }
0x11f0   :  { %v3462_v39 = vsub.f32 %v3449_v59, %v3458_v10 }
0x11f2   :  { %v3464_v31 = vmul.f32 1.442695, %v3462_v39 }
0x11f3   :  { %v3461_v36 = vpop.xlane.xlu1 %3460  ;;  %v3478_v48 = vpop.permute.xlu0 %3477 }
0x11f4   :  { %9017 = vpow2.f32 %v3464_v31  ;;  %v3463_v21 = vsub.f32 %v3452_v23, %v3461_v36  ;;  %8350 = vmatpush3.bf16.msra.mxu0 %v3478_v48  ;;  %v1903_v23 = vadd.f32 %v9989_v60, %v1660_v53 }
0x11f5   :  { %8361 = vmatprep.subr.bf16.mxu0 %v9261_v0 }
0x11f6   :  { %v3466_v32 = vmul.f32 1.442695, %v3463_v21  ;;  %v2146_v27 = vadd.f32 %v10029_v1, %v1903_v23 }
0x11f7   :  { %v3576_v55 = vpop.permute.xlu1 %3575 }
0x11f8   :  { %9019 = vpow2.f32 %v3466_v32  ;;  %v3581_v25 = vsel %vm102_vm1, %v3576_v55, 0  ;;  %v2389_v37 = vadd.f32 %v10054_v46, %v2146_v27 }
0x11fa   :  { %v10224_v51 = vadd.f32 %v10220_v22, %v2389_v37 }
0x11fb   :  { %v3574_v44 = vpop.permute.xlu1 %3573 }
0x11fc   :  { %v3743_v46 = vpack.c.bf16 %v10224_v51, %v10228_v43 }
0x1201   :  { %v9018_v52 = vpop.eup %9017 }
0x1202   :  { %v3468_v57 = vsel %vm102_vm1, %v9018_v52, 0.0 }
0x1203   :  { %3469 = vadd.xlane.f32.xlu0 %v3468_v57 }
0x1205   :  { %v9020_v49 = vpop.eup %9019 }
0x1206   :  { %v3476_v14 = vpack.c.bf16 %v9020_v49, %v9018_v52  ;;  %v3471_v4 = vsel %vm102_vm1, %v9020_v49, 0.0 }
0x1207   :  { %3472 = vadd.xlane.f32.xlu1 %v3471_v4 }
0x1208   :  { %8352 = vmatmul.mubr.msk.bf16.vlgmr.msra.gmra.mxu0 %vm102_vm1, %v3476_v14 }
0x1209   :  { %8362 = vmatpush3.bf16.xpose.msra.mxu0 %v3581_v25  ;;  %8363 = vmatprep.mubr.msk.bf16.mxu0 %vm9262_vm0, %v9261_v0 }
0x120a   :  { %8373 = vmatprep.subr.bf16.mxu0 %v9261_v0 }
0x1210   :  { %8364 = vmatmul.mubr.msk.bf16.vlgmr.msra.gmra.mxu0 %vm102_vm1, %v3574_v44 }
0x1211   :  { %8374 = vmatpush3.bf16.msra.mxu0 %v10016_v34  ;;  %8375 = vmatprep.mubr.msk.bf16.mxu0 %vm9262_vm0, %v9261_v0 }
0x1212   :  { %8385 = vmatprep.subr.bf16.mxu0 %v9261_v0 }
0x1218   :  { %3645 = vrot.lane.b32.xlu1 %v9507_v7, %s9269_s28 }
0x1225   :  { %v3396_v30 = vpop.f32.mrf.mxu0 }
0x1226   :  { %v3403_v12 = vadd.f32 %v3396_v30, %v3235_v45 }
0x1227   :  { %v8341_v42 = vpop.f32.mrf.mxu0 }
0x1229   :  { %v3399_v24 = vpop.f32.mrf.mxu0 }
0x122a   :  { %v3404_v33 = vadd.f32 %v3399_v24, %v3236_v9  ;;  %v8838_v24 = vld [vmem:[%s11185_s0 + $0x18] sm:$0xff]  }
0x122b   :  { %v8342_v47 = vpop.f32.mrf.mxu0 }
0x122c   :  { %v8839_v47 = vld [vmem:[%s11185_s0 + $0x20] sm:$0xff]  }
0x128c   :  { %v3470_v50 = vpop.xlane.xlu0 %3469 }
0x128d   :  { %9021 = vrcp.f32 %v3470_v50  ;;  %v8840_v50 = vld [vmem:[%s11185_s0 + $0x28] sm:$0xff]  }
0x1290   :  { %v3473_v28 = vpop.xlane.xlu1 %3472 }
0x1291   :  { %9023 = vrcp.f32 %v3473_v28  ;;  %v9232_v28 = vld [vmem:[%s11188_s5] sm:$0xff]  }
0x1294   :  { %v3646_v3 = vpop.permute.xlu1 %3645 }
0x129a   :  { %v9022_v61 = vpop.eup %9021 }
0x129e   :  { %v9024_v29 = vpop.eup %9023 }
0x12c8   :  { %v3517_v63 = vpop.f32.mrf.mxu0 }
0x12c9   :  { %v3524_v2 = vmul.f32 %v9022_v61, %v3517_v63 }
0x12ca   :  { %v8353_v34 = vpop.f32.mrf.mxu0 }
0x12cc   :  { %v3520_v35 = vpop.f32.mrf.mxu0 }
0x12cd   :  { %v3525_v54 = vmul.f32 %v9024_v29, %v3520_v35 }
0x12ce   :  { %v8354_v5 = vpop.f32.mrf.mxu0 }
0x12cf   :  { %v3526_v62 = vpack.c.bf16 %v3525_v54, %v3524_v2 }
0x12d0   :  { %v3617_v7 = vpop.f32.mrf.mxu0 }
0x12d1   :  { %8358 = vmatmul.mubr.msk.bf16.vlgmr.msra.gmra.mxu1 %vm102_vm1, %v3526_v62  ;;  %v3624_v45 = vsel %vm102_vm1, %v3617_v7, -inf  ;;  %v2401_v62 = vadd.f32 %v10220_v22, %v10052_v15 }
0x12d2   :  { %8368 = vmatpush3.bf16.msra.mxu1 %v3646_v3  ;;  %3625 = vmax.xlane.f32.xlu0 %v3624_v45  ;;  %v8365_v9 = vpop.f32.mrf.mxu0  ;;  %v2400_v3 = vadd.f32 %v10220_v22, %v10048_v40  ;;  %v9234_v40 = vld [vmem:[%s11187_s4] sm:$0xff]  }
0x12d3   :  { %8369 = vmatprep.mubr.msk.bf16.mxu1 %vm9262_vm0, %v9261_v0  ;;  %v9233_v9 = vld [vmem:[%s11184_s2] sm:$0xff]  }
0x12d4   :  { %v3620_v8 = vpop.f32.mrf.mxu0  ;;  %v3744_v45 = vpack.c.bf16 %v2401_v62, %v2400_v3 }
0x12d5   :  { %v3627_v16 = vsel %vm102_vm1, %v3620_v8, -inf }
0x12d6   :  { %3628 = vmax.xlane.f32.xlu0 %v3627_v16  ;;  %v8366_v13 = vpop.f32.mrf.mxu0 }
0x135b   :  { %v3626_v41 = vpop.xlane.xlu0 %3625 }
0x135c   :  { %v3630_v38 = vsub.f32 %v3617_v7, %v3626_v41 }
0x135e   :  { %v3632_v6 = vmul.f32 1.442695, %v3630_v38 }
0x135f   :  { %v3629_v26 = vpop.xlane.xlu0 %3628 }
0x1360   :  { %9025 = vpow2.f32 %v3632_v6  ;;  %v3631_v18 = vsub.f32 %v3620_v8, %v3629_v26 }
0x1362   :  { %v3634_v59 = vmul.f32 1.442695, %v3631_v18 }
0x1364   :  { %9027 = vpow2.f32 %v3634_v59 }
0x136d   :  { %v9026_v10 = vpop.eup %9025 }
0x136e   :  { %v3636_v58 = vsel %vm102_vm1, %v9026_v10, 0.0 }
0x136f   :  { %3637 = vadd.xlane.f32.xlu0 %v3636_v58 }
0x1371   :  { %v9028_v11 = vpop.eup %9027 }
0x1372   :  { %v3639_v60 = vsel %vm102_vm1, %v9028_v11, 0.0  ;;  %v3644_v1 = vpack.c.bf16 %v9028_v11, %v9026_v10 }
0x1373   :  { %3640 = vadd.xlane.f32.xlu0 %v3639_v60 }
0x1374   :  { %8370 = vmatmul.mubr.msk.bf16.vlgmr.msra.gmra.mxu1 %vm102_vm1, %v3644_v1 }
0x1375   :  { %8381 = vmatprep.mubr.msk.bf16.mxu1 %vm102_vm1, %v3743_v46 }
0x1391   :  { %v3564_v39 = vpop.f32.mrf.mxu1 }
0x1392   :  { %v3571_v31 = vadd.f32 %v3564_v39, %v3403_v12  ;;  %v9230_v12 = vld [vmem:[%s11183_s1] sm:$0xff]  }
0x1393   :  { %v8359_v36 = vpop.f32.mrf.mxu1 }
0x1395   :  { %v3567_v48 = vpop.f32.mrf.mxu1 }
0x1396   :  { %v3572_v21 = vadd.f32 %v3567_v48, %v3404_v33  ;;  %v9231_v33 = vld [vmem:[%s11186_s3] sm:$0xff]  }
0x1397   :  { %v8360_v32 = vpop.f32.mrf.mxu1 }
0x1398   :  { %v9235_v32 = vld [vmem:[%s11189_s8] sm:$0xff] }
0x13f8   :  { %v3638_v52 = vpop.xlane.xlu0 %3637 }
0x13f9   :  { %9029 = vrcp.f32 %v3638_v52 }
0x13fc   :  { %v3641_v19 = vpop.xlane.xlu0 %3640 }
0x13fd   :  { %9031 = vrcp.f32 %v3641_v19  ;;  %v9236_v19 = vld [vmem:[%s11190_s9] sm:$0xff] }
0x1406   :  { %v9030_v55 = vpop.eup %9029 }
0x140a   :  { %v9032_v14 = vpop.eup %9031 }
0x1434   :  { %v3685_v57 = vpop.f32.mrf.mxu1 }
0x1435   :  { %v3692_v25 = vmul.f32 %v9030_v55, %v3685_v57 }
0x1436   :  { %v8371_v49 = vpop.f32.mrf.mxu1 }
0x1438   :  { %v3688_v4 = vpop.f32.mrf.mxu1 }
0x1439   :  { %v3693_v44 = vmul.f32 %v9032_v14, %v3688_v4  ;;  %v9238_v14 = vld [vmem:[%s11190_s9 + $0x8] sm:$0xff] }
0x143a   :  { %v8372_v30 = vpop.f32.mrf.mxu1 }
0x143b   :  { %v3694_v42 = vpack.c.bf16 %v3693_v44, %v3692_v25 }
0x143d   :  { %8376 = vmatmul.mubr.msk.bf16.vlgmr.msra.gmra.mxu0 %vm102_vm1, %v3694_v42 }
0x143e   :  { %8386 = vmatpush3.bf16.msra.mxu0 %v9230_v12  ;;  %8387 = vmatprep.mubr.msk.bf16.mxu0 %vm9262_vm0, %v9261_v0 }
0x143f   :  { %8413 = vmatprep.subr.bf16.mxu0 %v9261_v0 }
0x1445   :  { %8388 = vmatmul.mubr.msk.bf16.vlgmr.msra.gmra.mxu0 %vm102_vm1, %v8838_v24 }
0x1446   :  { %8391 = vmatprep.mubr.msk.bf16.mxu0 %vm9262_vm0, %v9261_v0  ;;  %8414 = vmatpush3.bf16.msra.mxu0 %v9231_v33  ;;  %v9239_v33 = vld [vmem:[%s11189_s8 + $0x10] sm:$0xff] }
0x1447   :  { %8441 = vmatprep.subr.bf16.mxu0 %v9261_v0 }
0x144d   :  { %8392 = vmatmul.mubr.msk.bf16.gmra.mxu0 %vm102_vm1, %v8839_v47 }
0x144e   :  { %8395 = vmatprep.mubr.msk.bf16.mxu0 %vm9262_vm0, %v9261_v0 }
0x1455   :  { %8396 = vmatmul.mubr.msk.bf16.gmra.mxu0 %vm102_vm1, %v8840_v50 }
0x1456   :  { %8415 = vmatprep.mubr.msk.bf16.mxu0 %vm9262_vm0, %v9261_v0 }
0x145d   :  { %8416 = vmatmul.mubr.msk.bf16.vlgmr.msra.gmra.mxu0 %vm102_vm1, %v8838_v24 }
0x145e   :  { %8419 = vmatprep.mubr.msk.bf16.mxu0 %vm9262_vm0, %v9261_v0  ;;  %8442 = vmatpush3.bf16.msra.mxu0 %v9232_v28 }
0x1465   :  { %8420 = vmatmul.mubr.msk.bf16.gmra.mxu0 %vm102_vm1, %v8839_v47 }
0x1466   :  { %8423 = vmatprep.mubr.msk.bf16.mxu0 %vm9262_vm0, %v9261_v0 }
0x146d   :  { %8424 = vmatmul.mubr.msk.bf16.gmra.mxu0 %vm102_vm1, %v8840_v50 }
0x146e   :  { %8443 = vmatprep.mubr.msk.bf16.mxu0 %vm9262_vm0, %v9261_v0 }
0x1475   :  { %8444 = vmatmul.mubr.msk.bf16.vlgmr.msra.gmra.mxu0 %vm102_vm1, %v8838_v24 }
0x1476   :  { %8447 = vmatprep.mubr.msk.bf16.mxu0 %vm9262_vm0, %v9261_v0 }
0x147d   :  { %8448 = vmatmul.mubr.msk.bf16.gmra.mxu0 %vm102_vm1, %v8839_v47 }
0x147e   :  { %8451 = vmatprep.mubr.msk.bf16.mxu0 %vm9262_vm0, %v9261_v0 }
0x1485   :  { %8452 = vmatmul.mubr.msk.bf16.gmra.mxu0 %vm102_vm1, %v8840_v50 }
0x14fd   :  { %v3732_v63 = vpop.f32.mrf.mxu0 }
0x14fe   :  { %v3739_v61 = vadd.f32 %v3732_v63, %v3571_v31 }
0x14ff   :  { %v8377_v34 = vpop.f32.mrf.mxu0 }
0x1500   :  { %v3741_v54 = vadd.f32 %v10220_v22, %v3739_v61  ;;  %v9241_v34 = vld [vmem:[%s11189_s8 + $0x18] sm:$0xff] }
0x1501   :  { %v3735_v29 = vpop.f32.mrf.mxu0 }
0x1502   :  { %v3740_v35 = vadd.f32 %v3735_v29, %v3572_v21  ;;  %v9242_v29 = vld [vmem:[%s11190_s9 + $0x18] sm:$0xff] }
0x1503   :  { %v8378_v2 = vpop.f32.mrf.mxu0 }
0x1504   :  { %v3742_v5 = vadd.f32 %v10220_v22, %v3740_v35 }
0x1505   :  { %v3874_v15 = vpop.f32.mrf.mxu0 }
0x1506   :  { %v3745_v7 = vpack.c.bf16 %v3742_v5, %v3741_v54  ;;  %v3897_v52 = vmul.f32 %v9235_v32, %v3874_v15  ;;  %v9243_v5 = vld [vmem:[%s11189_s8 + $0x20] sm:$0xff] }
0x1507   :  { %v8389_v8 = vpop.f32.mrf.mxu0 }
0x1508   :  { %8379 = vmatprep.subr.bf16.mxu1 %v3745_v7 }
0x1509   :  { %8380 = vmatpush3.bf16.msra.mxu1 %v3745_v7  ;;  %v3877_v16 = vpop.f32.mrf.mxu0 }
0x150a   :  { %8399 = vmatprep.subr.bf16.mxu1 %v9261_v0 }
0x150b   :  { %v8390_v13 = vpop.f32.mrf.mxu0 }
0x150c   :  { %8382 = vmatmul.mubr.msk.bf16.vlgmr.msra.gmra.mxu1 %vm102_vm1, %v3744_v45  ;;  %v9245_v13 = vld [vmem:[%s11189_s8 + $0x28] sm:$0xff] }
0x150d   :  { %8400 = vmatpush3.bf16.msra.mxu1 %v9233_v9  ;;  %8401 = vmatprep.mubr.msk.bf16.mxu1 %vm9262_vm0, %v9261_v0  ;;  %v3882_v41 = vpop.f32.mrf.mxu0  ;;  %v9244_v9 = vld [vmem:[%s11190_s9 + $0x20] sm:$0xff] }
0x150e   :  { %8427 = vmatprep.subr.bf16.mxu1 %v9261_v0 }
0x150f   :  { %v8393_v38 = vpop.f32.mrf.mxu0 }
0x1510   :  { %v9246_v38 = vld [vmem:[%s11190_s9 + $0x28] sm:$0xff] }
0x1511   :  { %v3885_v6 = vpop.f32.mrf.mxu0 }
0x1512   :  { %v3900_v61 = vmul.f32 %v9241_v34, %v3885_v6 }
0x1513   :  { %v8394_v17 = vpop.f32.mrf.mxu0 }
0x1514   :  { %8402 = vmatmul.mubr.msk.bf16.vlgmr.msra.gmra.mxu1 %vm102_vm1, %v8838_v24 }
0x1515   :  { %8405 = vmatprep.mubr.msk.bf16.mxu1 %vm9262_vm0, %v9261_v0  ;;  %8428 = vmatpush3.bf16.msra.mxu1 %v9234_v40  ;;  %v3890_v26 = vpop.f32.mrf.mxu0 }
0x1517   :  { %v8397_v18 = vpop.f32.mrf.mxu0 }
0x1519   :  { %v10316_v20 = vpop.f32.mrf.mxu0 }
0x151b   :  { %v8398_v59 = vpop.f32.mrf.mxu0 }
0x151c   :  { %8406 = vmatmul.mubr.msk.bf16.gmra.mxu1 %vm102_vm1, %v8839_v47 }
0x151d   :  { %8409 = vmatprep.mubr.msk.bf16.mxu1 %vm9262_vm0, %v9261_v0  ;;  %v10318_v56 = vpop.f32.mrf.mxu0 }
0x151f   :  { %v8417_v53 = vpop.f32.mrf.mxu0 }
0x1521   :  { %v10320_v23 = vpop.f32.mrf.mxu0 }
0x1523   :  { %v8418_v27 = vpop.f32.mrf.mxu0 }
0x1524   :  { %8410 = vmatmul.mubr.msk.bf16.gmra.mxu1 %vm102_vm1, %v8840_v50  ;;  %v4029_v27 = vmul.f32 %v9235_v32, %v10318_v56 }
0x1525   :  { %8429 = vmatprep.mubr.msk.bf16.mxu1 %vm9262_vm0, %v9261_v0  ;;  %v10322_v37 = vpop.f32.mrf.mxu0 }
0x1527   :  { %v8421_v10 = vpop.f32.mrf.mxu0 }
0x1529   :  { %v10324_v22 = vpop.f32.mrf.mxu0 }
0x152a   :  { %v4032_v56 = vmul.f32 %v9241_v34, %v10324_v22 }
0x152b   :  { %v8422_v58 = vpop.f32.mrf.mxu0 }
0x152c   :  { %8430 = vmatmul.mubr.msk.bf16.vlgmr.msra.gmra.mxu1 %vm102_vm1, %v8838_v24 }
0x152d   :  { %8433 = vmatprep.mubr.msk.bf16.mxu1 %vm9262_vm0, %v9261_v0 }
0x1534   :  { %8434 = vmatmul.mubr.msk.bf16.gmra.mxu1 %vm102_vm1, %v8839_v47  ;;  %v3899_v47 = vmul.f32 %v9239_v33, %v3882_v41  ;;  %v3902_v41 = vmul.f32 %v9245_v13, %v10316_v20 }
0x1535   :  { %8437 = vmatprep.mubr.msk.bf16.mxu1 %vm9262_vm0, %v9261_v0 }
0x153c   :  { %8438 = vmatmul.mubr.msk.bf16.gmra.mxu1 %vm102_vm1, %v8840_v50  ;;  %v9240_v50 = vld [vmem:[%s11190_s9 + $0x10] sm:$0xff] }
0x15cc   :  { %v8383_v11 = vpop.f32.mrf.mxu1 }
0x15cd   :  { %v3803_v60 = vadd.f32 %v8383_v11, %v2400_v3 }
0x15ce   :  { %v3786_v1 = vpop.f32.mrf.mxu1 }
0x15cf   :  { %3807 = vst.msk [vmem:[%s11193_s10 + $0x10] sm:$0xff] %vm102_vm1, %v3803_v60  ;;  %v3801_v46 = vadd.f32 %v3786_v1, %v10228_v43 }
0x15d0   :  { %v8384_v39 = vpop.f32.mrf.mxu1 }
0x15d1   :  { %3805 = vst.msk [vmem:[%s11193_s10] sm:$0xff] %vm102_vm1, %v3801_v46  ;;  %v3804_v31 = vadd.f32 %v8384_v39, %v2401_v62  ;;  %v3901_v62 = vmul.f32 %v9243_v5, %v3890_v26 }
0x15d2   :  { %v3789_v36 = vpop.f32.mrf.mxu1 }
0x15d3   :  { %3808 = vst.msk [vmem:[%s11193_s10 + $0x18] sm:$0xff] %vm102_vm1, %v3804_v31  ;;  %v3802_v48 = vadd.f32 %v3789_v36, %v10224_v51  ;;  %v9237_v51 = vld [vmem:[%s11189_s8 + $0x8] sm:$0xff] }
0x15d4   :  { %v3937_v21 = vpop.f32.mrf.mxu1  ;;  %v3898_v55 = vmul.f32 %v9237_v51, %v3877_v16  ;;  %v4030_v11 = vmul.f32 %v9237_v51, %v10320_v23 }
0x15d5   :  { %3806 = vst.msk [vmem:[%s11193_s10 + $0x8] sm:$0xff] %vm102_vm1, %v3802_v48  ;;  %v3960_v57 = vmul.f32 %v9236_v19, %v3937_v21  ;;  %v4031_v48 = vmul.f32 %v9239_v33, %v10322_v37 }
0x15d6   :  { %v8403_v43 = vpop.f32.mrf.mxu1 }
0x15d7   :  { %v3966_v44 = vadd.f32 %v3960_v57, %v3897_v52 }
0x15d8   :  { %v3940_v49 = vpop.f32.mrf.mxu1 }
0x15d9   :  { %v3961_v4 = vmul.f32 %v9238_v14, %v3940_v49 }
0x15da   :  { %v8404_v25 = vpop.f32.mrf.mxu1 }
0x15db   :  { %v3967_v30 = vadd.f32 %v3961_v4, %v3898_v55  ;;  %v4022_v25 = vpop.f32.mrf.mxu0 }
0x15dc   :  { %v3945_v42 = vpop.f32.mrf.mxu1 }
0x15dd   :  { %v10356_v12 = vpack.c.bf16 %v3967_v30, %v3966_v44  ;;  %v3962_v28 = vmul.f32 %v9240_v50, %v3945_v42  ;;  %v4033_v44 = vmul.f32 %v9243_v5, %v4022_v25  ;;  %v8425_v30 = vpop.f32.mrf.mxu0 }
0x15de   :  { %v8407_v24 = vpop.f32.mrf.mxu1 }
0x15df   :  { %8459 = vmatprep.mubr.msk.bf16.mxu1 %vm102_vm1, %v10356_v12  ;;  %v3968_v54 = vadd.f32 %v3962_v28, %v3899_v47  ;;  %v4025_v33 = vpop.f32.mrf.mxu0 }
0x15e0   :  { %v3948_v63 = vpop.f32.mrf.mxu1  ;;  %v4034_v47 = vmul.f32 %v9245_v13, %v4025_v33 }
0x15e1   :  { %v3963_v35 = vmul.f32 %v9242_v29, %v3948_v63 }
0x15e2   :  { %v8408_v2 = vpop.f32.mrf.mxu1 }
0x15e3   :  { %v3969_v7 = vadd.f32 %v3963_v35, %v3900_v61 }
0x15e4   :  { %v3953_v3 = vpop.f32.mrf.mxu1 }
0x15e5   :  { %v10375_v45 = vpack.c.bf16 %v3969_v7, %v3968_v54  ;;  %v3964_v40 = vmul.f32 %v9244_v9, %v3953_v3 }
0x15e6   :  { %v8411_v15 = vpop.f32.mrf.mxu1 }
0x15e7   :  { %v3970_v8 = vadd.f32 %v3964_v40, %v3901_v62 }
0x15e8   :  { %v3956_v16 = vpop.f32.mrf.mxu1 }
0x15e9   :  { %v3965_v6 = vmul.f32 %v9246_v38, %v3956_v16 }
0x15ea   :  { %v8412_v17 = vpop.f32.mrf.mxu1 }
0x15eb   :  { %v3971_v26 = vadd.f32 %v3965_v6, %v3902_v41 }
0x15ec   :  { %v4069_v18 = vpop.f32.mrf.mxu1 }
0x15ed   :  { %v10387_v59 = vpack.c.bf16 %v3971_v26, %v3970_v8  ;;  %v4092_v10 = vmul.f32 %v9236_v19, %v4069_v18  ;;  %v9247_v26 = vld [vmem:[%s11191_s6] sm:$0xff]  }
0x15ee   :  { %v8431_v53 = vpop.f32.mrf.mxu1 }
0x15ef   :  { %v4098_v20 = vadd.f32 %v4092_v10, %v4029_v27 }
0x15f0   :  { %v4072_v58 = vpop.f32.mrf.mxu1 }
0x15f1   :  { %v4093_v60 = vmul.f32 %v9238_v14, %v4072_v58 }
0x15f2   :  { %v8432_v1 = vpop.f32.mrf.mxu1 }
0x15f3   :  { %v4099_v46 = vadd.f32 %v4093_v60, %v4030_v11 }
0x15f4   :  { %v4077_v39 = vpop.f32.mrf.mxu1 }
0x15f5   :  { %v10391_v31 = vpack.c.bf16 %v4099_v46, %v4098_v20  ;;  %v4094_v21 = vmul.f32 %v9240_v50, %v4077_v39  ;;  %v8426_v50 = vpop.f32.mrf.mxu0 }
0x15f6   :  { %v8435_v36 = vpop.f32.mrf.mxu1 }
0x15f7   :  { %4339 = vrot.lane.b32.xlu1 %v10391_v31, %s9263_s25  ;;  %v4100_v23 = vadd.f32 %v4094_v21, %v4031_v48  ;;  %v4172_v55 = vsel %vm102_vm1, %v10391_v31, 0  ;;  %v4138_v63 = vpop.f32.mrf.mxu0 }
0x15f8   :  { %v4080_v43 = vpop.f32.mrf.mxu1 }
0x15f9   :  { %v4095_v32 = vmul.f32 %v9242_v29, %v4080_v43  ;;  %v8445_v61 = vpop.f32.mrf.mxu0 }
0x15fa   :  { %v8436_v52 = vpop.f32.mrf.mxu1 }
0x15fb   :  { %v4101_v19 = vadd.f32 %v4095_v32, %v4032_v56  ;;  %4333 = vrot.lane.b32.xlu1 %v10356_v12, %s9263_s25  ;;  %v4141_v29 = vpop.f32.mrf.mxu0 }
0x15fc   :  { %v4085_v22 = vpop.f32.mrf.mxu1 }
0x15fd   :  { %v10399_v57 = vpack.c.bf16 %v4101_v19, %v4100_v23  ;;  %v4096_v4 = vmul.f32 %v9244_v9, %v4085_v22  ;;  %v8446_v35 = vpop.f32.mrf.mxu0  ;;  %v10417_v9 = vpack.c.bf16 %v4141_v29, %v4138_v63 }
0x15fe   :  { %v8439_v49 = vpop.f32.mrf.mxu1 }
0x15ff   :  { %4335 = vrot.lane.b32.xlu1 %v10375_v45, %s9263_s25  ;;  %4341 = vrot.lane.b32.xlu0 %v10399_v57, %s9263_s25  ;;  %v4175_v37 = vsel %vm102_vm1, %v10399_v57, 0  ;;  %v4102_v24 = vadd.f32 %v4096_v4, %v4033_v44  ;;  %v4146_v2 = vpop.f32.mrf.mxu0 }
0x1600   :  { %8797 = vmatprep.subr.msk.bf16.mxu1 %vm102_vm1, %v10399_v57  ;;  %v4088_v51 = vpop.f32.mrf.mxu1 }
0x1601   :  { %8456 = vmatpush3.bf16.xpose.msra.mxu1 %v4175_v37  ;;  %v4097_v42 = vmul.f32 %v9246_v38, %v4088_v51  ;;  %v8449_v62 = vpop.f32.mrf.mxu0 }
0x1602   :  { %8798 = vmatprep.subr.msk.bf16.mxu1 %vm102_vm1, %v10391_v31  ;;  %v8440_v14 = vpop.f32.mrf.mxu1 }
0x1603   :  { %v4103_v28 = vadd.f32 %v4097_v42, %v4034_v47  ;;  %v4149_v7 = vpop.f32.mrf.mxu0 }
0x1604   :  { %v10419_v5 = vpack.c.bf16 %v4149_v7, %v4146_v2 }
0x1605   :  { %v10415_v34 = vpack.c.bf16 %v4103_v28, %v4102_v24  ;;  %v8450_v40 = vpop.f32.mrf.mxu0 }
0x1607   :  { %v4154_v15 = vpop.f32.mrf.mxu0 }
0x1609   :  { %8458 = vmatpush3.bf16.xpose.msra.mxu1 %v4172_v55  ;;  %v8453_v13 = vpop.f32.mrf.mxu0 }
0x160a   :  { %8463 = vmatprep.subr.bf16.mxu1 %v10419_v5  ;;  %v9248_v13 = vld [vmem:[%s11191_s6 + $0x8] sm:$0xff]  }
0x160b   :  { %v4157_v41 = vpop.f32.mrf.mxu0 }
0x160c   :  { %v10429_v38 = vpack.c.bf16 %v4157_v41, %v4154_v15 }
0x160d   :  { %v8454_v6 = vpop.f32.mrf.mxu0 }
0x1610   :  { %8460 = vmatmul.mubr.msk.bf16.vlgmr.msra.gmra.mxu1 %vm102_vm1, %v10375_v45 }
0x1611   :  { %8464 = vmatpush3.bf16.msra.mxu1 %v10419_v5 }
0x1612   :  { %8465 = vmatprep.subr.bf16.mxu1 %v10417_v9 }
0x1615   :  { %8466 = vmatpush3.bf16.msra.mxu1 %v10417_v9 }
0x1669   :  { %v4340_v54 = vpop.permute.xlu1 %4339 }
0x166a   :  { %v4350_v17 = vsel %vm102_vm1, %v4340_v54, 0 }
0x166d   :  { %v4334_v3 = vpop.permute.xlu1 %4333 }
0x166e   :  { %8475 = vmatprep.mubr.msk.bf16.mxu0 %vm102_vm1, %v4334_v3 }
0x1671   :  { %v4342_v8 = vpop.permute.xlu0 %4341  ;;  %v4336_v18 = vpop.permute.xlu1 %4335 }
0x1672   :  { %8799 = vmatprep.subr.msk.bf16.mxu0 %vm102_vm1, %v4342_v8  ;;  %v4353_v16 = vsel %vm102_vm1, %v4342_v8, 0 }
0x1673   :  { %8472 = vmatpush3.bf16.xpose.msra.mxu0 %v4353_v16 }
0x1674   :  { %8800 = vmatprep.subr.msk.bf16.mxu0 %vm102_vm1, %v4340_v54 }
0x167b   :  { %8474 = vmatpush3.bf16.xpose.msra.mxu0 %v4350_v17 }
0x167c   :  { %8493 = vmatprep.subr.bf16.mxu0 %v9247_v26 }
0x1682   :  { %8476 = vmatmul.mubr.msk.bf16.vlgmr.msra.gmra.mxu0 %vm102_vm1, %v4336_v18 }
0x1683   :  { %8494 = vmatpush3.bf16.msra.mxu0 %v9247_v26 }
0x16d0   :  { %v8461_v53 = vpop.f32.mrf.mxu1 }
0x16d1   :  { %v4232_v27 = vsel %vm522_vm2, %v8461_v53, -inf }
0x16d2   :  { %4233 = vmax.xlane.f32.xlu0 %v4232_v27  ;;  %v4211_v10 = vpop.f32.mrf.mxu1 }
0x16d3   :  { %v4226_v58 = vsel %vm522_vm2, %v4211_v10, -inf }
0x16d4   :  { %4227 = vmax.xlane.f32.xlu1 %v4226_v58  ;;  %v8462_v11 = vpop.f32.mrf.mxu1 }
0x16d5   :  { %v4235_v1 = vsel %vm522_vm2, %v8462_v11, -inf }
0x16d6   :  { %v4214_v60 = vpop.f32.mrf.mxu1 }
0x16d7   :  { %v4229_v20 = vsel %vm522_vm2, %v4214_v60, -inf }
0x16d8   :  { %4236 = vmax.xlane.f32.xlu1 %v4235_v1  ;;  %4230 = vmax.xlane.f32.xlu0 %v4229_v20 }
0x1742   :  { %v8477_v46 = vpop.f32.mrf.mxu0 }
0x1743   :  { %v4410_v39 = vsel %vm522_vm2, %v8477_v46, -inf }
0x1744   :  { %4411 = vmax.xlane.f32.xlu0 %v4410_v39  ;;  %v4389_v36 = vpop.f32.mrf.mxu0 }
0x1745   :  { %v4404_v21 = vsel %vm522_vm2, %v4389_v36, -inf }
0x1746   :  { %v8478_v48 = vpop.f32.mrf.mxu0 }
0x1747   :  { %v4413_v43 = vsel %vm522_vm2, %v8478_v48, -inf }
0x1748   :  { %4405 = vmax.xlane.f32.xlu0 %v4404_v21  ;;  %4414 = vmax.xlane.f32.xlu1 %v4413_v43  ;;  %v4392_v56 = vpop.f32.mrf.mxu0 }
0x1749   :  { %v4407_v32 = vsel %vm522_vm2, %v4392_v56, -inf }
0x174c   :  { %4408 = vmax.xlane.f32.xlu1 %v4407_v32 }
0x175b   :  { %v4234_v52 = vpop.xlane.xlu0 %4233 }
0x175c   :  { %v4240_v23 = vsub.f32 %v8461_v53, %v4234_v52 }
0x175d   :  { %v4228_v19 = vpop.xlane.xlu1 %4227  ;;  %4448 = vrot.lane.b32.xlu1 %v10417_v9, %s9263_s25 }
0x175e   :  { %v4238_v37 = vsub.f32 %v4211_v10, %v4228_v19  ;;  %4450 = vrot.lane.b32.xlu0 %v10419_v5, %s9263_s25  ;;  %v4246_v22 = vmul.f32 1.442695, %v4240_v23 }
0x1760   :  { %v4242_v49 = vmul.f32 1.442695, %v4238_v37  ;;  %9033 = vpow2.f32 %v4246_v22 }
0x1761   :  { %v4237_v51 = vpop.xlane.xlu1 %4236  ;;  %v4231_v55 = vpop.xlane.xlu0 %4230 }
0x1762   :  { %v4241_v14 = vsub.f32 %v8462_v11, %v4237_v51  ;;  %v4239_v4 = vsub.f32 %v4214_v60, %v4231_v55  ;;  %9035 = vpow2.f32 %v4242_v49 }
0x1764   :  { %v4248_v25 = vmul.f32 1.442695, %v4241_v14  ;;  %v4244_v44 = vmul.f32 1.442695, %v4239_v4 }
0x1766   :  { %9037 = vpow2.f32 %v4248_v25 }
0x1767   :  { %9039 = vpow2.f32 %v4244_v44 }
0x176d   :  { %v9034_v30 = vpop.eup %9033 }
0x176f   :  { %v9036_v42 = vpop.eup %9035 }
0x1770   :  { %v4250_v60 = vsel %vm522_vm2, %v9036_v42, 0.0 }
0x1773   :  { %v9038_v24 = vpop.eup %9037 }
0x1774   :  { %v9040_v33 = vpop.eup %9039  ;;  %v4267_v47 = vpack.c.bf16 %v9038_v24, %v9034_v30  ;;  %v4259_v20 = vsel %vm522_vm2, %v9038_v24, 0.0 }
0x1775   :  { %v4266_v50 = vpack.c.bf16 %v9040_v33, %v9036_v42  ;;  %v4253_v1 = vsel %vm522_vm2, %v9040_v33, 0.0 }
0x1777   :  { %8467 = vmatprep.mubr.msk.bf16.mxu1 %vm522_vm2, %v4266_v50 }
0x1778   :  { %8468 = vmatmul.mubr.msk.bf16.vlgmr.msra.gmra.mxu1 %vm522_vm2, %v4267_v47 }
0x17cd   :  { %v4412_v28 = vpop.xlane.xlu0 %4411 }
0x17ce   :  { %v4418_v63 = vsub.f32 %v8477_v46, %v4412_v28  ;;  %v4256_v46 = vsel %vm522_vm2, %v9034_v30, 0.0 }
0x17d0   :  { %v4424_v61 = vmul.f32 1.442695, %v4418_v63 }
0x17d1   :  { %v4406_v29 = vpop.xlane.xlu0 %4405  ;;  %v4415_v35 = vpop.xlane.xlu1 %4414 }
0x17d2   :  { %9041 = vpow2.f32 %v4424_v61  ;;  %v4416_v2 = vsub.f32 %v4389_v36, %v4406_v29  ;;  %v4419_v54 = vsub.f32 %v8478_v48, %v4415_v35 }
0x17d4   :  { %v4420_v62 = vmul.f32 1.442695, %v4416_v2  ;;  %v4426_v7 = vmul.f32 1.442695, %v4419_v54 }
0x17d5   :  { %v4451_v3 = vpop.permute.xlu0 %4450  ;;  %v4409_v40 = vpop.xlane.xlu1 %4408 }
0x17d6   :  { %9043 = vpow2.f32 %v4420_v62  ;;  %v4417_v15 = vsub.f32 %v4392_v56, %v4409_v40  ;;  %8479 = vmatprep.subr.bf16.mxu1 %v4451_v3 }
0x17d7   :  { %8480 = vmatpush3.bf16.msra.mxu1 %v4451_v3  ;;  %9045 = vpow2.f32 %v4426_v7 }
0x17d8   :  { %v4422_v8 = vmul.f32 1.442695, %v4417_v15 }
0x17d9   :  { %v4449_v16 = vpop.permute.xlu1 %4448 }
0x17da   :  { %9047 = vpow2.f32 %v4422_v8  ;;  %8481 = vmatprep.subr.bf16.mxu1 %v4449_v16 }
0x17db   :  { %8482 = vmatpush3.bf16.msra.mxu1 %v4449_v16 }
0x17dc   :  { %8487 = vmatprep.subr.bf16.mxu1 %v9248_v13 }
0x17df   :  { %v9042_v41 = vpop.eup %9041 }
0x17e0   :  { %v4434_v6 = vsel %vm522_vm2, %v9042_v41, 0.0 }
0x17e1   :  { %4435 = vadd.xlane.f32.xlu0 %v4434_v6 }
0x17e3   :  { %v9044_v17 = vpop.eup %9043 }
0x17e4   :  { %v4428_v26 = vsel %vm522_vm2, %v9044_v17, 0.0  ;;  %v9046_v18 = vpop.eup %9045 }
0x17e5   :  { %4429 = vadd.xlane.f32.xlu1 %v4428_v26  ;;  %v4437_v27 = vsel %vm522_vm2, %v9046_v18, 0.0  ;;  %v4445_v11 = vpack.c.bf16 %v9046_v18, %v9042_v41 }
0x17e7   :  { %v9048_v53 = vpop.eup %9047 }
0x17e8   :  { %v4431_v10 = vsel %vm522_vm2, %v9048_v53, 0.0  ;;  %v4444_v58 = vpack.c.bf16 %v9048_v53, %v9044_v17 }
0x17e9   :  { %4438 = vadd.xlane.f32.xlu1 %v4437_v27  ;;  %4432 = vadd.xlane.f32.xlu0 %v4431_v10 }
0x17ea   :  { %8483 = vmatprep.mubr.msk.bf16.mxu1 %vm522_vm2, %v4444_v58 }
0x17eb   :  { %8484 = vmatmul.mubr.msk.bf16.vlgmr.msra.gmra.mxu1 %vm522_vm2, %v4445_v11 }
0x17ec   :  { %8488 = vmatpush3.bf16.msra.mxu1 %v9248_v13 }
0x17fa   :  { %4629 = vrot.lane.b32.xlu1 %v10391_v31, %s9264_s16 }
0x17fe   :  { %4625 = vrot.lane.b32.xlu1 %v10356_v12, %s9264_s16 }
0x17ff   :  { %4631 = vrot.lane.b32.xlu0 %v10399_v57, %s9264_s16 }
0x1802   :  { %4868 = vrot.lane.b32.xlu1 %v10399_v57, %s9265_s17 }
0x1803   :  { %4627 = vrot.lane.b32.xlu0 %v10375_v45, %s9264_s16 }
0x1806   :  { %4862 = vrot.lane.b32.xlu1 %v10356_v12, %s9265_s17 }
0x1807   :  { %4866 = vrot.lane.b32.xlu0 %v10391_v31, %s9265_s17 }
0x180b   :  { %4864 = vrot.lane.b32.xlu0 %v10375_v45, %s9265_s17 }
0x182a   :  { %4251 = vadd.xlane.f32.xlu1 %v4250_v60  ;;  %4254 = vadd.xlane.f32.xlu0 %v4253_v1 }
0x182e   :  { %4260 = vadd.xlane.f32.xlu1 %v4259_v20  ;;  %4257 = vadd.xlane.f32.xlu0 %v4256_v46 }
0x1838   :  { %v8469_v56 = vpop.f32.mrf.mxu1 }
0x183a   :  { %v4310_v52 = vpop.f32.mrf.mxu1 }
0x183c   :  { %v8470_v37 = vpop.f32.mrf.mxu1 }
0x183e   :  { %v4313_v49 = vpop.f32.mrf.mxu1 }
0x186a   :  { %v4436_v39 = vpop.xlane.xlu0 %4435 }
0x186e   :  { %v4430_v21 = vpop.xlane.xlu1 %4429 }
0x186f   :  { %9049 = vrcp.f32 %v4430_v21 }
0x1872   :  { %v4433_v36 = vpop.xlane.xlu0 %4432  ;;  %v4439_v43 = vpop.xlane.xlu1 %4438 }
0x1873   :  { %9051 = vrcp.f32 %v4439_v43 }
0x1874   :  { %9053 = vrcp.f32 %v4433_v36 }
0x1875   :  { %9055 = vrcp.f32 %v4436_v39 }
0x1876   :  { %v4632_v48 = vpop.permute.xlu0 %4631  ;;  %v4630_v32 = vpop.permute.xlu1 %4629 }
0x1877   :  { %8801 = vmatprep.subr.msk.bf16.mxu1 %vm102_vm1, %v4632_v48  ;;  %v4643_v7 = vsel %vm102_vm1, %v4632_v48, 0  ;;  %v4640_v40 = vsel %vm102_vm1, %v4630_v32, 0 }
0x187a   :  { %v4628_v23 = vpop.permute.xlu0 %4627  ;;  %v4626_v19 = vpop.permute.xlu1 %4625 }
0x187c   :  { %v9050_v25 = vpop.eup %9049 }
0x187e   :  { %v4867_v22 = vpop.permute.xlu0 %4866  ;;  %v4869_v51 = vpop.permute.xlu1 %4868 }
0x187f   :  { %v4880_v53 = vsel %vm102_vm1, %v4869_v51, 0  ;;  %v4877_v10 = vsel %vm102_vm1, %v4867_v22, 0 }
0x1880   :  { %v9052_v42 = vpop.eup %9051 }
0x1881   :  { %v9054_v24 = vpop.eup %9053 }
0x1882   :  { %v4865_v4 = vpop.permute.xlu0 %4864  ;;  %v4863_v44 = vpop.permute.xlu1 %4862 }
0x1883   :  { %v9056_v50 = vpop.eup %9055 }
0x18ab   :  { %v8485_v55 = vpop.f32.mrf.mxu1 }
0x18ac   :  { %v4511_v61 = vmul.f32 %v9056_v50, %v8485_v55 }
0x18ad   :  { %v4494_v14 = vpop.f32.mrf.mxu1 }
0x18ae   :  { %v4509_v28 = vmul.f32 %v9050_v25, %v4494_v14 }
0x18af   :  { %v8486_v30 = vpop.f32.mrf.mxu1 }
0x18b0   :  { %v4512_v33 = vmul.f32 %v9052_v42, %v8486_v30 }
0x18b1   :  { %v4497_v47 = vpop.f32.mrf.mxu1 }
0x18b2   :  { %v4510_v63 = vmul.f32 %v9054_v24, %v4497_v47  ;;  %v4514_v54 = vpack.c.bf16 %v4512_v33, %v4511_v61 }
0x18b3   :  { %v4255_v29 = vpop.xlane.xlu0 %4254  ;;  %v4252_v35 = vpop.xlane.xlu1 %4251 }
0x18b4   :  { %v4513_v2 = vpack.c.bf16 %v4510_v63, %v4509_v28  ;;  %9057 = vrcp.f32 %v4255_v29 }
0x18b5   :  { %9059 = vrcp.f32 %v4252_v35 }
0x18b6   :  { %8489 = vmatprep.mubr.msk.bf16.mxu1 %vm102_vm1, %v4513_v2 }
0x18b7   :  { %v4258_v62 = vpop.xlane.xlu0 %4257  ;;  %8490 = vmatmul.mubr.msk.bf16.vlgmr.msra.gmra.mxu1 %vm102_vm1, %v4514_v54  ;;  %v4261_v3 = vpop.xlane.xlu1 %4260 }
0x18b8   :  { %9061 = vrcp.f32 %v4258_v62  ;;  %8500 = vmatpush3.bf16.xpose.msra.mxu1 %v4643_v7  ;;  %8503 = vmatprep.mubr.msk.bf16.mxu1 %vm102_vm1, %v4626_v19 }
0x18b9   :  { %9063 = vrcp.f32 %v4261_v3  ;;  %8802 = vmatprep.subr.msk.bf16.mxu1 %vm102_vm1, %v4630_v32  ;;  %v9249_v3 = vld [vmem:[%s11191_s6 + $0x10] sm:$0xff]  }
0x18c0   :  { %8502 = vmatpush3.bf16.xpose.msra.mxu1 %v4640_v40 }
0x18c1   :  { %v9058_v15 = vpop.eup %9057  ;;  %8803 = vmatprep.subr.msk.bf16.mxu1 %vm102_vm1, %v4869_v51 }
0x18c2   :  { %v9060_v8 = vpop.eup %9059  ;;  %v4326_v16 = vmul.f32 %v9058_v15, %v4313_v49 }
0x18c3   :  { %v4325_v13 = vmul.f32 %v9060_v8, %v4310_v52 }
0x18c5   :  { %v9062_v41 = vpop.eup %9061  ;;  %v4329_v6 = vpack.c.bf16 %v4326_v16, %v4325_v13 }
0x18c6   :  { %v9064_v17 = vpop.eup %9063  ;;  %v4327_v26 = vmul.f32 %v9062_v41, %v8469_v56 }
0x18c7   :  { %v4328_v18 = vmul.f32 %v9064_v17, %v8470_v37  ;;  %8495 = vmatprep.mubr.msk.bf16.mxu0 %vm102_vm1, %v4329_v6  ;;  %8504 = vmatmul.mubr.msk.bf16.vlgmr.msra.gmra.mxu1 %vm102_vm1, %v4628_v23 }
0x18c8   :  { %8522 = vmatpush3.bf16.xpose.msra.mxu1 %v4880_v53  ;;  %8525 = vmatprep.mubr.msk.bf16.mxu1 %vm102_vm1, %v4863_v44 }
0x18c9   :  { %8804 = vmatprep.subr.msk.bf16.mxu1 %vm102_vm1, %v4867_v22  ;;  %v4330_v27 = vpack.c.bf16 %v4328_v18, %v4327_v26 }
0x18cb   :  { %8496 = vmatmul.mubr.msk.bf16.vlgmr.msra.gmra.mxu0 %vm102_vm1, %v4330_v27 }
0x18d0   :  { %8524 = vmatpush3.bf16.xpose.msra.mxu1 %v4877_v10 }
0x18d7   :  { %8526 = vmatmul.mubr.msk.bf16.vlgmr.msra.gmra.mxu1 %vm102_vm1, %v4865_v4 }
0x1977   :  { %v8491_v58 = vpop.f32.mrf.mxu1 }
0x1979   :  { %v4555_v11 = vpop.f32.mrf.mxu1 }
0x197b   :  { %v8492_v60 = vpop.f32.mrf.mxu1 }
0x197d   :  { %v10495_v1 = vpop.f32.mrf.mxu1 }
0x1987   :  { %v8505_v20 = vpop.f32.mrf.mxu1 }
0x1988   :  { %v4700_v46 = vsel %vm522_vm2, %v8505_v20, -inf }
0x1989   :  { %4701 = vmax.xlane.f32.xlu0 %v4700_v46  ;;  %v4679_v39 = vpop.f32.mrf.mxu1 }
0x198a   :  { %v4694_v43 = vsel %vm522_vm2, %v4679_v39, -inf }
0x198b   :  { %v8497_v36 = vpop.f32.mrf.mxu0  ;;  %v8506_v48 = vpop.f32.mrf.mxu1 }
0x198c   :  { %v10498_v21 = vadd.f32 %v8497_v36, %v8491_v58  ;;  %v4703_v56 = vsel %vm522_vm2, %v8506_v48, -inf }
0x198d   :  { %4695 = vmax.xlane.f32.xlu0 %v4694_v43  ;;  %4704 = vmax.xlane.f32.xlu1 %v4703_v56  ;;  %v4610_v32 = vpop.f32.mrf.mxu0  ;;  %v4682_v52 = vpop.f32.mrf.mxu1 }
0x198e   :  { %v10502_v23 = vadd.f32 %v4610_v32, %v4555_v11  ;;  %v4697_v22 = vsel %vm522_vm2, %v4682_v52, -inf }
0x198f   :  { %v8498_v19 = vpop.f32.mrf.mxu0 }
0x1990   :  { %v10504_v37 = vadd.f32 %v8498_v19, %v8492_v60 }
0x1991   :  { %4698 = vmax.xlane.f32.xlu1 %v4697_v22 }
0x1997   :  { %v10519_v49 = vpop.f32.mrf.mxu1 }
0x1998   :  { %v4937_v55 = vsel %vm522_vm2, %v10519_v49, -inf }
0x1999   :  { %v10521_v51 = vpop.f32.mrf.mxu1 }
0x199a   :  { %v4931_v4 = vsel %vm522_vm2, %v10521_v51, -inf }
0x199b   :  { %v10525_v14 = vpop.f32.mrf.mxu1 }
0x199c   :  { %v4940_v25 = vsel %vm522_vm2, %v10525_v14, -inf }
0x199d   :  { %v10531_v44 = vpop.f32.mrf.mxu1 }
0x199e   :  { %v4934_v30 = vsel %vm522_vm2, %v10531_v44, -inf }
0x19a2   :  { %4736 = vrot.lane.b32.xlu1 %v10417_v9, %s9264_s16 }
0x19a3   :  { %4738 = vrot.lane.b32.xlu0 %v10419_v5, %s9264_s16 }
0x19a6   :  { %5105 = vrot.lane.b32.xlu1 %v10399_v57, %s9266_s20 }
0x19a7   :  { %5103 = vrot.lane.b32.xlu0 %v10391_v31, %s9266_s20 }
0x19aa   :  { %5099 = vrot.lane.b32.xlu1 %v10356_v12, %s9266_s20 }
0x19ab   :  { %5101 = vrot.lane.b32.xlu0 %v10375_v45, %s9266_s20 }
0x19ca   :  { %4938 = vmax.xlane.f32.xlu0 %v4937_v55 }
0x19ce   :  { %4932 = vmax.xlane.f32.xlu0 %v4931_v4  ;;  %4941 = vmax.xlane.f32.xlu1 %v4940_v25 }
0x19d2   :  { %4935 = vmax.xlane.f32.xlu1 %v4934_v30 }
0x1a12   :  { %v4702_v42 = vpop.xlane.xlu0 %4701 }
0x1a13   :  { %v4708_v24 = vsub.f32 %v8505_v20, %v4702_v42 }
0x1a15   :  { %v4714_v33 = vmul.f32 1.442695, %v4708_v24 }
0x1a16   :  { %v4696_v47 = vpop.xlane.xlu0 %4695  ;;  %v4705_v50 = vpop.xlane.xlu1 %4704 }
0x1a17   :  { %9065 = vpow2.f32 %v4714_v33  ;;  %v4706_v28 = vsub.f32 %v4679_v39, %v4696_v47  ;;  %v4709_v63 = vsub.f32 %v8506_v48, %v4705_v50 }
0x1a19   :  { %v4710_v61 = vmul.f32 1.442695, %v4706_v28  ;;  %v4716_v29 = vmul.f32 1.442695, %v4709_v63 }
0x1a1a   :  { %v4739_v35 = vpop.permute.xlu0 %4738  ;;  %v4699_v2 = vpop.xlane.xlu1 %4698 }
0x1a1b   :  { %9067 = vpow2.f32 %v4710_v61  ;;  %v4707_v54 = vsub.f32 %v4682_v52, %v4699_v2  ;;  %8507 = vmatprep.subr.bf16.mxu0 %v4739_v35 }
0x1a1c   :  { %8508 = vmatpush3.bf16.msra.mxu0 %v4739_v35  ;;  %9069 = vpow2.f32 %v4716_v29  ;;  %v10574_v29 = vpop.f32.mrf.mxu0 }
0x1a1d   :  { %v4712_v62 = vmul.f32 1.442695, %v4707_v54 }
0x1a1e   :  { %v4737_v7 = vpop.permute.xlu1 %4736  ;;  %v5104_v16 = vpop.permute.xlu0 %5103 }
0x1a1f   :  { %9071 = vpow2.f32 %v4712_v62  ;;  %8509 = vmatprep.subr.bf16.mxu0 %v4737_v7  ;;  %v5114_v18 = vsel %vm102_vm1, %v5104_v16, 0 }
0x1a20   :  { %8510 = vmatpush3.bf16.msra.mxu0 %v4737_v7 }
0x1a21   :  { %8515 = vmatprep.subr.bf16.mxu0 %v9249_v3 }
0x1a22   :  { %v5106_v40 = vpop.permute.xlu1 %5105  ;;  %v5102_v60 = vpop.permute.xlu0 %5101 }
0x1a23   :  { %8805 = vmatprep.subr.msk.bf16.mxu1 %vm102_vm1, %v5106_v40  ;;  %v5117_v15 = vsel %vm102_vm1, %v5106_v40, 0 }
0x1a24   :  { %v9066_v8 = vpop.eup %9065  ;;  %8544 = vmatpush3.bf16.xpose.msra.mxu1 %v5117_v15 }
0x1a25   :  { %8806 = vmatprep.subr.msk.bf16.mxu1 %vm102_vm1, %v5104_v16  ;;  %v4724_v13 = vsel %vm522_vm2, %v9066_v8, 0.0 }
0x1a26   :  { %4725 = vadd.xlane.f32.xlu0 %v4724_v13  ;;  %v5100_v41 = vpop.permute.xlu1 %5099 }
0x1a27   :  { %8547 = vmatprep.mubr.msk.bf16.mxu1 %vm102_vm1, %v5100_v41 }
0x1a28   :  { %v9068_v6 = vpop.eup %9067 }
0x1a29   :  { %v4718_v17 = vsel %vm522_vm2, %v9068_v6, 0.0  ;;  %v9070_v26 = vpop.eup %9069 }
0x1a2a   :  { %4719 = vadd.xlane.f32.xlu1 %v4718_v17  ;;  %v4727_v27 = vsel %vm522_vm2, %v9070_v26, 0.0  ;;  %v4735_v11 = vpack.c.bf16 %v9070_v26, %v9066_v8 }
0x1a2c   :  { %v9072_v53 = vpop.eup %9071  ;;  %8546 = vmatpush3.bf16.xpose.msra.mxu1 %v5114_v18 }
0x1a2d   :  { %v4721_v10 = vsel %vm522_vm2, %v9072_v53, 0.0  ;;  %v4734_v58 = vpack.c.bf16 %v9072_v53, %v9068_v6 }
0x1a2e   :  { %4728 = vadd.xlane.f32.xlu1 %v4727_v27  ;;  %4722 = vadd.xlane.f32.xlu0 %v4721_v10 }
0x1a2f   :  { %8511 = vmatprep.mubr.msk.bf16.mxu0 %vm522_vm2, %v4734_v58 }
0x1a30   :  { %8512 = vmatmul.mubr.msk.bf16.vlgmr.msra.gmra.mxu0 %vm522_vm2, %v4735_v11 }
0x1a31   :  { %8516 = vmatpush3.bf16.msra.mxu0 %v9249_v3 }
0x1a33   :  { %8548 = vmatmul.mubr.msk.bf16.vlgmr.msra.gmra.mxu1 %vm102_vm1, %v5102_v60 }
0x1a3f   :  { %4973 = vrot.lane.b32.xlu1 %v10417_v9, %s9265_s17 }
0x1a43   :  { %5342 = vrot.lane.b32.xlu1 %v10399_v57, %s9267_s23 }
0x1a44   :  { %4975 = vrot.lane.b32.xlu0 %v10419_v5, %s9265_s17 }
0x1a47   :  { %5336 = vrot.lane.b32.xlu1 %v10356_v12, %s9267_s23 }
0x1a48   :  { %5340 = vrot.lane.b32.xlu0 %v10391_v31, %s9267_s23 }
0x1a4c   :  { %5338 = vrot.lane.b32.xlu0 %v10375_v45, %s9267_s23 }
0x1a53   :  { %v4939_v20 = vpop.xlane.xlu0 %4938 }
0x1a54   :  { %v4945_v33 = vsub.f32 %v10519_v49, %v4939_v20 }
0x1a56   :  { %v4951_v28 = vmul.f32 1.442695, %v4945_v33 }
0x1a57   :  { %v4942_v46 = vpop.xlane.xlu1 %4941  ;;  %v4933_v39 = vpop.xlane.xlu0 %4932 }
0x1a58   :  { %v4943_v47 = vsub.f32 %v10521_v51, %v4933_v39  ;;  %v4946_v61 = vsub.f32 %v10525_v14, %v4942_v46 }
0x1a5a   :  { %v4947_v63 = vmul.f32 1.442695, %v4943_v47  ;;  %v4953_v35 = vmul.f32 1.442695, %v4946_v61 }
0x1a5b   :  { %v4936_v36 = vpop.xlane.xlu1 %4935 }
0x1a5c   :  { %v4944_v24 = vsub.f32 %v10531_v44, %v4936_v36 }
0x1a5e   :  { %v4949_v50 = vmul.f32 1.442695, %v4944_v24 }
0x1aaf   :  { %v4726_v48 = vpop.xlane.xlu0 %4725 }
0x1ab3   :  { %v4720_v43 = vpop.xlane.xlu1 %4719 }
0x1ab4   :  { %9073 = vrcp.f32 %v4720_v43 }
0x1ab7   :  { %v4723_v56 = vpop.xlane.xlu0 %4722  ;;  %v4729_v32 = vpop.xlane.xlu1 %4728 }
0x1ab8   :  { %9075 = vrcp.f32 %v4723_v56  ;;  %v9250_v56 = vld [vmem:[%s11191_s6 + $0x18] sm:$0xff]  }
0x1ab9   :  { %9077 = vrcp.f32 %v4729_v32 }
0x1aba   :  { %9079 = vrcp.f32 %v4726_v48 }
0x1abb   :  { %v4976_v52 = vpop.permute.xlu0 %4975  ;;  %v10562_v19 = vpop.permute.xlu1 %4973  ;;  %9081 = vpow2.f32 %v4949_v50 }
0x1abc   :  { %8529 = vmatprep.subr.bf16.mxu0 %v4976_v52  ;;  %9083 = vpow2.f32 %v4951_v28 }
0x1abd   :  { %9085 = vpow2.f32 %v4947_v63 }
0x1abe   :  { %9087 = vpow2.f32 %v4953_v35 }
0x1abf   :  { %v5343_v22 = vpop.permute.xlu1 %5342  ;;  %v5341_v4 = vpop.permute.xlu0 %5340 }
0x1ac0   :  { %8807 = vmatprep.subr.msk.bf16.mxu1 %vm102_vm1, %v5343_v22  ;;  %v5354_v55 = vsel %vm102_vm1, %v5343_v22, 0  ;;  %v5351_v30 = vsel %vm102_vm1, %v5341_v4, 0 }
0x1ac1   :  { %8566 = vmatpush3.bf16.xpose.msra.mxu1 %v5354_v55  ;;  %v9074_v51 = vpop.eup %9073 }
0x1ac2   :  { %8808 = vmatprep.subr.msk.bf16.mxu1 %vm102_vm1, %v5341_v4 }
0x1ac3   :  { %v5337_v25 = vpop.permute.xlu1 %5336  ;;  %v5339_v42 = vpop.permute.xlu0 %5338 }
0x1ac4   :  { %8569 = vmatprep.mubr.msk.bf16.mxu1 %vm102_vm1, %v5337_v25 }
0x1ac5   :  { %v9076_v62 = vpop.eup %9075 }
0x1ac6   :  { %v9078_v3 = vpop.eup %9077 }
0x1ac7   :  { %v9080_v41 = vpop.eup %9079 }
0x1ac8   :  { %v9082_v6 = vpop.eup %9081 }
0x1ac9   :  { %8568 = vmatpush3.bf16.xpose.msra.mxu1 %v5351_v30  ;;  %v9084_v53 = vpop.eup %9083  ;;  %v4958_v36 = vsel %vm522_vm2, %v9082_v6, 0.0 }
0x1aca   :  { %v9086_v58 = vpop.eup %9085  ;;  %v4961_v20 = vsel %vm522_vm2, %v9084_v53, 0.0 }
0x1acb   :  { %v4971_v60 = vpack.c.bf16 %v9082_v6, %v9086_v58  ;;  %v9088_v39 = vpop.eup %9087  ;;  %v4955_v43 = vsel %vm522_vm2, %v9086_v58, 0.0 }
0x1acc   :  { %v4972_v48 = vpack.c.bf16 %v9088_v39, %v9084_v53  ;;  %v4964_v32 = vsel %vm522_vm2, %v9088_v39, 0.0 }
0x1ad0   :  { %8570 = vmatmul.mubr.msk.bf16.vlgmr.msra.gmra.mxu1 %vm102_vm1, %v5339_v42 }
0x1af0   :  { %v8513_v44 = vpop.f32.mrf.mxu0 }
0x1af1   :  { %v4799_v17 = vmul.f32 %v9080_v41, %v8513_v44 }
0x1af2   :  { %v4782_v2 = vpop.f32.mrf.mxu0 }
0x1af3   :  { %v8549_v49 = vpop.f32.mrf.mxu1  ;;  %v4797_v14 = vmul.f32 %v9074_v51, %v4782_v2 }
0x1af4   :  { %v8514_v54 = vpop.f32.mrf.mxu0  ;;  %v5174_v27 = vsel %vm522_vm2, %v8549_v49, -inf }
0x1af5   :  { %v5153_v7 = vpop.f32.mrf.mxu1  ;;  %v4800_v8 = vmul.f32 %v9078_v3, %v8514_v54 }
0x1af6   :  { %v4785_v40 = vpop.f32.mrf.mxu0  ;;  %v5168_v15 = vsel %vm522_vm2, %v5153_v7, -inf }
0x1af7   :  { %v4798_v16 = vmul.f32 %v9076_v62, %v4785_v40  ;;  %5169 = vmax.xlane.f32.xlu0 %v5168_v15  ;;  %v8550_v13 = vpop.f32.mrf.mxu1  ;;  %v4802_v11 = vpack.c.bf16 %v4800_v8, %v4799_v17 }
0x1af8   :  { %v5177_v46 = vsel %vm522_vm2, %v8550_v13, -inf }
0x1af9   :  { %v4801_v26 = vpack.c.bf16 %v4798_v16, %v4797_v14  ;;  %v5156_v18 = vpop.f32.mrf.mxu1 }
0x1afa   :  { %v5171_v10 = vsel %vm522_vm2, %v5156_v18, -inf }
0x1afb   :  { %5175 = vmax.xlane.f32.xlu0 %v5174_v27  ;;  %5172 = vmax.xlane.f32.xlu1 %v5171_v10 }
0x1afc   :  { %8517 = vmatprep.mubr.msk.bf16.mxu0 %vm102_vm1, %v4801_v26 }
0x1afd   :  { %8518 = vmatmul.mubr.msk.bf16.vlgmr.msra.gmra.mxu0 %vm102_vm1, %v4802_v11 }
0x1afe   :  { %8530 = vmatpush3.bf16.msra.mxu0 %v4976_v52  ;;  %8533 = vmatprep.mubr.msk.bf16.mxu0 %vm522_vm2, %v4971_v60 }
0x1aff   :  { %8531 = vmatprep.subr.bf16.mxu0 %v10562_v19  ;;  %4962 = vadd.xlane.f32.xlu0 %v4961_v20 }
0x1b00   :  { %5178 = vmax.xlane.f32.xlu1 %v5177_v46 }
0x1b02   :  { %8532 = vmatpush3.bf16.msra.mxu0 %v10562_v19 }
0x1b03   :  { %4959 = vadd.xlane.f32.xlu0 %v4958_v36  ;;  %8537 = vmatprep.subr.bf16.mxu0 %v9250_v56  ;;  %v4614_v36 = vadd.f32 %v10574_v29, %v10495_v1  ;;  %v9251_v29 = vld [vmem:[%s11191_s6 + $0x20] sm:$0xff]  }
0x1b04   :  { %4956 = vadd.xlane.f32.xlu1 %v4955_v43 }
0x1b05   :  { %8534 = vmatmul.mubr.msk.bf16.vlgmr.msra.gmra.mxu0 %vm522_vm2, %v4972_v48 }
0x1b06   :  { %8538 = vmatpush3.bf16.msra.mxu0 %v9250_v56 }
0x1b08   :  { %4965 = vadd.xlane.f32.xlu1 %v4964_v32 }
0x1b19   :  { %5210 = vrot.lane.b32.xlu1 %v10417_v9, %s9266_s20  ;;  %5212 = vrot.lane.b32.xlu0 %v10419_v5, %s9266_s20 }
0x1b1d   :  { %5579 = vrot.lane.b32.xlu1 %v10399_v57, %s9268_s27  ;;  %5577 = vrot.lane.b32.xlu0 %v10391_v31, %s9268_s27 }
0x1b21   :  { %5573 = vrot.lane.b32.xlu1 %v10356_v12, %s9268_s27  ;;  %5575 = vrot.lane.b32.xlu0 %v10375_v45, %s9268_s27 }
0x1b80   :  { %v5170_v52 = vpop.xlane.xlu0 %5169 }
0x1b81   :  { %v5180_v30 = vsub.f32 %v5153_v7, %v5170_v52 }
0x1b83   :  { %v5184_v50 = vmul.f32 1.442695, %v5180_v30 }
0x1b84   :  { %v5176_v19 = vpop.xlane.xlu0 %5175  ;;  %v5173_v22 = vpop.xlane.xlu1 %5172 }
0x1b85   :  { %v5182_v55 = vsub.f32 %v8549_v49, %v5176_v19  ;;  %v5181_v25 = vsub.f32 %v5156_v18, %v5173_v22 }
0x1b87   :  { %v5188_v4 = vmul.f32 1.442695, %v5182_v55  ;;  %v5186_v47 = vmul.f32 1.442695, %v5181_v25 }
0x1b88   :  { %v10605_v42 = vpop.xlane.xlu0 %4962 }
0x1b89   :  { %v5179_v24 = vpop.xlane.xlu1 %5178  ;;  %9089 = vpow2.f32 %v5188_v4 }
0x1b8a   :  { %v5183_v33 = vsub.f32 %v8550_v13, %v5179_v24 }
0x1b8c   :  { %v5190_v28 = vmul.f32 1.442695, %v5183_v33  ;;  %v4960_v63 = vpop.xlane.xlu0 %4959 }
0x1b8d   :  { %v4957_v61 = vpop.xlane.xlu1 %4956 }
0x1b8e   :  { %9091 = vpow2.f32 %v5190_v28 }
0x1b8f   :  { %9093 = vpow2.f32 %v5186_v47 }
0x1b90   :  { %9095 = vpow2.f32 %v5184_v50  ;;  %v10607_v35 = vpop.permute.xlu0 %5212  ;;  %v10609_v44 = vpop.f32.mrf.mxu1 }
0x1b91   :  { %v4966_v2 = vpop.xlane.xlu1 %4965  ;;  %8551 = vmatprep.subr.bf16.mxu0 %v10607_v35  ;;  %v5411_v3 = vsel %vm522_vm2, %v10609_v44, -inf  ;;  %9097 = vrcp.f32 %v4960_v63 }
0x1b92   :  { %v10612_v49 = vpop.f32.mrf.mxu1  ;;  %9099 = vrcp.f32 %v4966_v2 }
0x1b93   :  { %v5405_v51 = vsel %vm522_vm2, %v10612_v49, -inf  ;;  %9101 = vrcp.f32 %v4957_v61 }
0x1b94   :  { %5406 = vmax.xlane.f32.xlu0 %v5405_v51  ;;  %v10616_v54 = vpop.f32.mrf.mxu1  ;;  %v5578_v13 = vpop.permute.xlu0 %5577  ;;  %9103 = vrcp.f32 %v10605_v42 }
0x1b95   :  { %v10618_v62 = vpop.permute.xlu1 %5210  ;;  %v5414_v26 = vsel %vm522_vm2, %v10616_v54, -inf  ;;  %v5588_v58 = vsel %vm102_vm1, %v5578_v13, 0 }
0x1b96   :  { %v10620_v7 = vpop.f32.mrf.mxu1  ;;  %v10626_v15 = vpop.eup %9089 }
0x1b97   :  { %v5408_v40 = vsel %vm522_vm2, %v10620_v7, -inf  ;;  %v5198_v41 = vsel %vm522_vm2, %v10626_v15, 0.0 }
0x1b98   :  { %5412 = vmax.xlane.f32.xlu0 %v5411_v3  ;;  %5409 = vmax.xlane.f32.xlu1 %v5408_v40  ;;  %v5576_v60 = vpop.permute.xlu0 %5575 }
0x1b99   :  { %v5580_v14 = vpop.permute.xlu1 %5579 }
0x1b9a   :  { %v5591_v8 = vsel %vm102_vm1, %v5580_v14, 0  ;;  %8809 = vmatprep.subr.msk.bf16.mxu1 %vm102_vm1, %v5580_v14 }
0x1b9b   :  { %v10630_v16 = vpop.eup %9091  ;;  %8588 = vmatpush3.bf16.xpose.msra.mxu1 %v5591_v8 }
0x1b9c   :  { %v9094_v6 = vpop.eup %9093  ;;  %v5209_v17 = vpack.c.bf16 %v10630_v16, %v10626_v15  ;;  %8810 = vmatprep.subr.msk.bf16.mxu1 %vm102_vm1, %v5578_v13  ;;  %5199 = vadd.xlane.f32.xlu0 %v5198_v41  ;;  %v5201_v11 = vsel %vm522_vm2, %v10630_v16, 0.0 }
0x1b9d   :  { %v9096_v18 = vpop.eup %9095  ;;  %5415 = vmax.xlane.f32.xlu1 %v5414_v26  ;;  %v5574_v53 = vpop.permute.xlu1 %5573  ;;  %v5195_v27 = vsel %vm522_vm2, %v9094_v6, 0.0 }
0x1b9e   :  { %8591 = vmatprep.mubr.msk.bf16.mxu1 %vm102_vm1, %v5574_v53  ;;  %v5192_v10 = vsel %vm522_vm2, %v9096_v18, 0.0  ;;  %v9098_v32 = vpop.eup %9097 }
0x1b9f   :  { %v9100_v52 = vpop.eup %9099 }
0x1ba0   :  { %5196 = vadd.xlane.f32.xlu0 %v5195_v27  ;;  %v9102_v19 = vpop.eup %9101 }
0x1ba1   :  { %5193 = vadd.xlane.f32.xlu1 %v5192_v10 }
0x1ba3   :  { %8590 = vmatpush3.bf16.xpose.msra.mxu1 %v5588_v58  ;;  %v6057_v58 = vsel %vm102_vm1, %v10415_v34, 0 }
0x1ba5   :  { %5202 = vadd.xlane.f32.xlu1 %v5201_v11 }
0x1baa   :  { %8592 = vmatmul.mubr.msk.bf16.vlgmr.msra.gmra.mxu1 %vm102_vm1, %v5576_v60 }
0x1bb6   :  { %5447 = vrot.lane.b32.xlu1 %v10417_v9, %s9267_s23  ;;  %5449 = vrot.lane.b32.xlu0 %v10419_v5, %s9267_s23 }
0x1bba   :  { %5816 = vrot.lane.b32.xlu1 %v10399_v57, %s9269_s28  ;;  %5814 = vrot.lane.b32.xlu0 %v10391_v31, %s9269_s28 }
0x1bbd   :  { %v8519_v20 = vpop.f32.mrf.mxu0 }
0x1bbe   :  { %v10655_v46 = vadd.f32 %v8519_v20, %v10498_v21  ;;  %5810 = vrot.lane.b32.xlu1 %v10356_v12, %s9269_s28  ;;  %5812 = vrot.lane.b32.xlu0 %v10375_v45, %s9269_s28 }
0x1bbf   :  { %v4843_v39 = vpop.f32.mrf.mxu0 }
0x1bc0   :  { %v10663_v57 = vadd.f32 %v4843_v39, %v10502_v23  ;;  %v9104_v23 = vpop.eup %9103 }
0x1bc1   :  { %v8520_v31 = vpop.f32.mrf.mxu0 }
0x1bc2   :  { %v10668_v48 = vadd.f32 %v8520_v31, %v10504_v37  ;;  %v5208_v37 = vpack.c.bf16 %v9094_v6, %v9096_v18 }
0x1bc3   :  { %v4846_v21 = vpop.f32.mrf.mxu0 }
0x1bc4   :  { %v10670_v43 = vadd.f32 %v4846_v21, %v4614_v36 }
0x1bc5   :  { %v8535_v12 = vpop.f32.mrf.mxu0 }
0x1bc6   :  { %v5036_v30 = vmul.f32 %v9104_v23, %v8535_v12 }
0x1bc7   :  { %v5019_v56 = vpop.f32.mrf.mxu0 }
0x1bc8   :  { %v5034_v4 = vmul.f32 %v9102_v19, %v5019_v56 }
0x1bc9   :  { %v8536_v45 = vpop.f32.mrf.mxu0 }
0x1bca   :  { %v5037_v22 = vmul.f32 %v9100_v52, %v8536_v45 }
0x1bcb   :  { %v5022_v55 = vpop.f32.mrf.mxu0 }
0x1bcc   :  { %v5035_v25 = vmul.f32 %v9098_v32, %v5022_v55  ;;  %v5039_v1 = vpack.c.bf16 %v5037_v22, %v5036_v30 }
0x1bce   :  { %v5038_v42 = vpack.c.bf16 %v5035_v25, %v5034_v4 }
0x1bd0   :  { %8539 = vmatprep.mubr.msk.bf16.mxu0 %vm102_vm1, %v5038_v42 }
0x1bd1   :  { %8540 = vmatmul.mubr.msk.bf16.vlgmr.msra.gmra.mxu0 %vm102_vm1, %v5039_v1 }
0x1bd2   :  { %8552 = vmatpush3.bf16.msra.mxu0 %v10607_v35  ;;  %8555 = vmatprep.mubr.msk.bf16.mxu0 %vm522_vm2, %v5208_v37 }
0x1bd3   :  { %8553 = vmatprep.subr.bf16.mxu0 %v10618_v62 }
0x1bd6   :  { %8554 = vmatpush3.bf16.msra.mxu0 %v10618_v62 }
0x1bd7   :  { %8559 = vmatprep.subr.bf16.mxu0 %v9251_v29 }
0x1bd9   :  { %8556 = vmatmul.mubr.msk.bf16.vlgmr.msra.gmra.mxu0 %vm522_vm2, %v5209_v17 }
0x1bda   :  { %8560 = vmatpush3.bf16.msra.mxu0 %v9251_v29 }
0x1c1d   :  { %v5407_v24 = vpop.xlane.xlu0 %5406 }
0x1c1e   :  { %v5417_v33 = vsub.f32 %v10612_v49, %v5407_v24 }
0x1c20   :  { %v5421_v28 = vmul.f32 1.442695, %v5417_v33 }
0x1c21   :  { %v5413_v47 = vpop.xlane.xlu0 %5412  ;;  %v5410_v50 = vpop.xlane.xlu1 %5409 }
0x1c22   :  { %v5419_v63 = vsub.f32 %v10609_v44, %v5413_v47  ;;  %v5418_v61 = vsub.f32 %v10620_v7, %v5410_v50  ;;  %9105 = vpow2.f32 %v5421_v28 }
0x1c24   :  { %v5423_v35 = vmul.f32 1.442695, %v5418_v61  ;;  %v5425_v51 = vmul.f32 1.442695, %v5419_v63 }
0x1c25   :  { %v5200_v2 = vpop.xlane.xlu0 %5199 }
0x1c26   :  { %v5416_v62 = vpop.xlane.xlu1 %5415  ;;  %9107 = vpow2.f32 %v5423_v35 }
0x1c27   :  { %v5420_v3 = vsub.f32 %v10616_v54, %v5416_v62  ;;  %9109 = vpow2.f32 %v5425_v51 }
0x1c29   :  { %v5427_v40 = vmul.f32 1.442695, %v5420_v3  ;;  %v5197_v15 = vpop.xlane.xlu0 %5196 }
0x1c2a   :  { %v5194_v14 = vpop.xlane.xlu1 %5193 }
0x1c2b   :  { %9111 = vpow2.f32 %v5427_v40 }
0x1c2c   :  { %9113 = vrcp.f32 %v5200_v2 }
0x1c2d   :  { %v10686_v49 = vpop.permute.xlu0 %5449 }
0x1c2e   :  { %v5203_v8 = vpop.xlane.xlu1 %5202  ;;  %8573 = vmatprep.subr.bf16.mxu0 %v10686_v49 }
0x1c2f   :  { %v10691_v7 = vpop.eup %9105  ;;  %9115 = vrcp.f32 %v5203_v8 }
0x1c30   :  { %v5429_v32 = vsel %vm522_vm2, %v10691_v7, 0.0  ;;  %9117 = vrcp.f32 %v5197_v15 }
0x1c31   :  { %v5815_v26 = vpop.permute.xlu0 %5814  ;;  %9119 = vrcp.f32 %v5194_v14 }
0x1c32   :  { %v10689_v44 = vpop.permute.xlu1 %5447  ;;  %v5825_v27 = vsel %vm102_vm1, %v5815_v26, 0 }
0x1c33   :  { %v10693_v16 = vpop.eup %9107 }
0x1c34   :  { %v5445_v13 = vpack.c.bf16 %v10693_v16, %v10691_v7  ;;  %v10697_v41 = vpop.eup %9109  ;;  %v5432_v45 = vsel %vm522_vm2, %v10693_v16, 0.0 }
0x1c35   :  { %v5813_v10 = vpop.permute.xlu0 %5812  ;;  %v5435_v12 = vsel %vm522_vm2, %v10697_v41, 0.0 }
0x1c36   :  { %v5817_v54 = vpop.permute.xlu1 %5816 }
0x1c37   :  { %v5828_v6 = vsel %vm102_vm1, %v5817_v54, 0  ;;  %8811 = vmatprep.subr.msk.bf16.mxu1 %vm102_vm1, %v5817_v54 }
0x1c38   :  { %v10701_v17 = vpop.eup %9111  ;;  %8610 = vmatpush3.bf16.xpose.msra.mxu1 %v5828_v6 }
0x1c39   :  { %v5446_v18 = vpack.c.bf16 %v10701_v17, %v10697_v41  ;;  %8812 = vmatprep.subr.msk.bf16.mxu1 %vm102_vm1, %v5815_v26  ;;  %v5438_v52 = vsel %vm522_vm2, %v10701_v17, 0.0  ;;  %v9114_v37 = vpop.eup %9113 }
0x1c3a   :  { %v5811_v53 = vpop.permute.xlu1 %5810 }
0x1c3b   :  { %8613 = vmatprep.mubr.msk.bf16.mxu1 %vm102_vm1, %v5811_v53 }
0x1c3c   :  { %v9116_v29 = vpop.eup %9115 }
0x1c3d   :  { %v9118_v33 = vpop.eup %9117 }
0x1c3e   :  { %v9120_v50 = vpop.eup %9119 }
0x1c40   :  { %8612 = vmatpush3.bf16.xpose.msra.mxu1 %v5825_v27 }
0x1c41   :  { %8631 = vmatprep.subr.bf16.mxu1 %v9261_v0 }
0x1c47   :  { %8614 = vmatmul.mubr.msk.bf16.vlgmr.msra.gmra.mxu1 %vm102_vm1, %v5813_v10 }
0x1c48   :  { %8632 = vmatpush3.bf16.xpose.msra.mxu1 %v6057_v58  ;;  %8633 = vmatprep.mubr.msk.bf16.mxu1 %vm9262_vm0, %v9261_v0 }
0x1c49   :  { %8643 = vmatprep.subr.bf16.mxu1 %v9261_v0 }
0x1c4f   :  { %8634 = vmatmul.mubr.msk.bf16.vlgmr.msra.gmra.mxu1 %vm102_vm1, %v10387_v59 }
0x1c50   :  { %8645 = vmatprep.mubr.msk.bf16.mxu1 %vm9262_vm0, %v9261_v0 }
0x1c6a   :  { %v10719_v11 = vpop.f32.mrf.mxu1 }
0x1c6b   :  { %v5648_v36 = vsel %vm522_vm2, %v10719_v11, -inf }
0x1c6c   :  { %v10721_v60 = vpop.f32.mrf.mxu1 }
0x1c6d   :  { %v5642_v20 = vsel %vm522_vm2, %v10721_v60, -inf }
0x1c6e   :  { %5643 = vmax.xlane.f32.xlu0 %v5642_v20  ;;  %v10725_v39 = vpop.f32.mrf.mxu1 }
0x1c6f   :  { %v5651_v56 = vsel %vm522_vm2, %v10725_v39, -inf }
0x1c70   :  { %v10727_v31 = vpop.f32.mrf.mxu1 }
0x1c71   :  { %v5645_v21 = vsel %vm522_vm2, %v10727_v31, -inf }
0x1c72   :  { %5649 = vmax.xlane.f32.xlu0 %v5648_v36  ;;  %5646 = vmax.xlane.f32.xlu1 %v5645_v21 }
0x1c76   :  { %5436 = vadd.xlane.f32.xlu0 %v5435_v12  ;;  %5652 = vmax.xlane.f32.xlu1 %v5651_v56 }
0x1c7a   :  { %5430 = vadd.xlane.f32.xlu1 %v5429_v32  ;;  %5433 = vadd.xlane.f32.xlu0 %v5432_v45 }
0x1c7e   :  { %5439 = vadd.xlane.f32.xlu1 %v5438_v52 }
0x1c8f   :  { %5684 = vrot.lane.b32.xlu1 %v10417_v9, %s9268_s27 }
0x1c90   :  { %5686 = vrot.lane.b32.xlu0 %v10419_v5, %s9268_s27 }
0x1c91   :  { %v8541_v19 = vpop.f32.mrf.mxu0 }
0x1c92   :  { %v10748_v22 = vadd.f32 %v8541_v19, %v10655_v46 }
0x1c93   :  { %v5080_v55 = vpop.f32.mrf.mxu0  ;;  %6173 = vrot.lane.b32.xlu1 %v10415_v34, %s9263_s25 }
0x1c94   :  { %v10753_v23 = vadd.f32 %v5080_v55, %v10663_v57  ;;  %6170 = vrot.lane.b32.xlu0 %v10387_v59, %s9263_s25 }
0x1c95   :  { %v8542_v4 = vpop.f32.mrf.mxu0 }
0x1c96   :  { %v10758_v25 = vadd.f32 %v8542_v4, %v10668_v48  ;;  %v10775_v48 = vld [vmem:[%s11191_s6 + $0x28] sm:$0xff]  }
0x1c97   :  { %v5083_v30 = vpop.f32.mrf.mxu0 }
0x1c98   :  { %v10761_v42 = vadd.f32 %v5083_v30, %v10670_v43 }
0x1c99   :  { %v8557_v46 = vpop.f32.mrf.mxu0 }
0x1c9a   :  { %v5273_v47 = vmul.f32 %v9114_v37, %v8557_v46 }
0x1c9b   :  { %v5256_v1 = vpop.f32.mrf.mxu0 }
0x1c9c   :  { %v5271_v63 = vmul.f32 %v9120_v50, %v5256_v1 }
0x1c9d   :  { %v8558_v24 = vpop.f32.mrf.mxu0 }
0x1c9e   :  { %v5274_v57 = vmul.f32 %v9116_v29, %v8558_v24  ;;  %v9253_v24 = vld [vmem:[%s11191_s6 + $0x8] sm:$0xff]  }
0x1c9f   :  { %v5259_v28 = vpop.f32.mrf.mxu0 }
0x1ca0   :  { %v5276_v61 = vpack.c.bf16 %v5274_v57, %v5273_v47  ;;  %v5272_v35 = vmul.f32 %v9118_v33, %v5259_v28 }
0x1ca2   :  { %v5275_v2 = vpack.c.bf16 %v5272_v35, %v5271_v63 }
0x1ca4   :  { %8561 = vmatprep.mubr.msk.bf16.mxu0 %vm102_vm1, %v5275_v2 }
0x1ca5   :  { %8562 = vmatmul.mubr.msk.bf16.vlgmr.msra.gmra.mxu0 %vm102_vm1, %v5276_v61 }
0x1ca6   :  { %8574 = vmatpush3.bf16.msra.mxu0 %v10686_v49  ;;  %8577 = vmatprep.mubr.msk.bf16.mxu0 %vm522_vm2, %v5445_v13 }
0x1ca7   :  { %8575 = vmatprep.subr.bf16.mxu0 %v10689_v44 }
0x1caa   :  { %8576 = vmatpush3.bf16.msra.mxu0 %v10689_v44 }
0x1cab   :  { %8581 = vmatprep.subr.bf16.mxu0 %v10775_v48 }
0x1cad   :  { %8578 = vmatmul.mubr.msk.bf16.vlgmr.msra.gmra.mxu0 %vm522_vm2, %v5446_v18 }
0x1cae   :  { %8582 = vmatpush3.bf16.msra.mxu0 %v10775_v48 }
0x1cf7   :  { %v5644_v43 = vpop.xlane.xlu0 %5643 }
0x1cf8   :  { %v5654_v51 = vsub.f32 %v10721_v60, %v5644_v43 }
0x1cfa   :  { %v5658_v40 = vmul.f32 1.442695, %v5654_v51 }
0x1cfb   :  { %v5650_v62 = vpop.xlane.xlu0 %5649  ;;  %v5647_v3 = vpop.xlane.xlu1 %5646 }
0x1cfc   :  { %v5656_v15 = vsub.f32 %v10719_v11, %v5650_v62  ;;  %v5655_v14 = vsub.f32 %v10727_v31, %v5647_v3  ;;  %9121 = vpow2.f32 %v5658_v40 }
0x1cfe   :  { %v5662_v49 = vmul.f32 1.442695, %v5656_v15  ;;  %v5660_v8 = vmul.f32 1.442695, %v5655_v14 }
0x1cff   :  { %v5437_v44 = vpop.xlane.xlu0 %5436  ;;  %v5653_v7 = vpop.xlane.xlu1 %5652 }
0x1d00   :  { %v5657_v16 = vsub.f32 %v10725_v39, %v5653_v7  ;;  %9123 = vpow2.f32 %v5660_v8 }
0x1d01   :  { %9125 = vpow2.f32 %v5662_v49 }
0x1d02   :  { %v5664_v13 = vmul.f32 1.442695, %v5657_v16 }
0x1d03   :  { %v5434_v54 = vpop.xlane.xlu0 %5433  ;;  %v5431_v41 = vpop.xlane.xlu1 %5430 }
0x1d04   :  { %9127 = vpow2.f32 %v5664_v13 }
0x1d05   :  { %9129 = vrcp.f32 %v5437_v44 }
0x1d07   :  { %v10787_v6 = vpop.permute.xlu0 %5686  ;;  %v10789_v17 = vpop.f32.mrf.mxu1 }
0x1d08   :  { %v5440_v26 = vpop.xlane.xlu1 %5439  ;;  %8595 = vmatprep.subr.bf16.mxu0 %v10787_v6  ;;  %v5885_v20 = vsel %vm522_vm2, %v10789_v17, -inf }
0x1d09   :  { %v10792_v18 = vpop.f32.mrf.mxu1  ;;  %v10800_v58 = vpop.eup %9121  ;;  %9131 = vrcp.f32 %v5440_v26 }
0x1d0a   :  { %v5879_v53 = vsel %vm522_vm2, %v10792_v18, -inf  ;;  %v5666_v46 = vsel %vm522_vm2, %v10800_v58, 0.0  ;;  %9133 = vrcp.f32 %v5434_v54 }
0x1d0b   :  { %5880 = vmax.xlane.f32.xlu0 %v5879_v53  ;;  %v10796_v27 = vpop.f32.mrf.mxu1  ;;  %v6171_v37 = vpop.permute.xlu0 %6170  ;;  %9135 = vrcp.f32 %v5431_v41 }
0x1d0c   :  { %v10798_v10 = vpop.permute.xlu1 %5684  ;;  %v5888_v55 = vsel %vm522_vm2, %v10796_v27, -inf }
0x1d0d   :  { %v10802_v11 = vpop.f32.mrf.mxu1  ;;  %v10804_v60 = vpop.eup %9123 }
0x1d0e   :  { %v5882_v39 = vsel %vm522_vm2, %v10802_v11, -inf  ;;  %v10810_v31 = vpop.eup %9125  ;;  %v5682_v21 = vpack.c.bf16 %v10804_v60, %v10800_v58  ;;  %v5669_v1 = vsel %vm522_vm2, %v10804_v60, 0.0 }
0x1d0f   :  { %5886 = vmax.xlane.f32.xlu0 %v5885_v20  ;;  %v10812_v36 = vpop.f32.mrf.mxu1  ;;  %5883 = vmax.xlane.f32.xlu1 %v5882_v39  ;;  %v5672_v19 = vsel %vm522_vm2, %v10810_v31, 0.0 }
0x1d10   :  { %v6174_v12 = vpop.permute.xlu1 %6173 }
0x1d11   :  { %v9128_v56 = vpop.eup %9127  ;;  %v6179_v32 = vsel %vm102_vm1, %v6174_v12, 0  ;;  %v8635_v45 = vpop.f32.mrf.mxu1 }
0x1d12   :  { %v5683_v52 = vpack.c.bf16 %v9128_v56, %v10810_v31  ;;  %8644 = vmatpush3.bf16.xpose.msra.mxu1 %v6179_v32  ;;  %v5675_v29 = vsel %vm522_vm2, %v9128_v56, 0.0  ;;  %v9130_v2 = vpop.eup %9129 }
0x1d13   :  { %5673 = vadd.xlane.f32.xlu0 %v5672_v19  ;;  %v10822_v4 = vpop.f32.mrf.mxu1  ;;  %5889 = vmax.xlane.f32.xlu1 %v5888_v55  ;;  %v6100_v19 = vsel %vm102_vm1, %v10812_v36, -inf }
0x1d14   :  { %8655 = vmatprep.subr.bf16.mxu1 %v9261_v0 }
0x1d15   :  { %v8636_v30 = vpop.f32.mrf.mxu1 }
0x1d16   :  { %v9132_v43 = vpop.eup %9131 }
0x1d17   :  { %5667 = vadd.xlane.f32.xlu1 %v5666_v46  ;;  %5670 = vadd.xlane.f32.xlu0 %v5669_v1  ;;  %v9134_v62 = vpop.eup %9133 }
0x1d18   :  { %v9136_v40 = vpop.eup %9135 }
0x1d19   :  { %8646 = vmatmul.mubr.msk.bf16.vlgmr.msra.gmra.mxu1 %vm102_vm1, %v6171_v37 }
0x1d1a   :  { %8656 = vmatpush3.bf16.msra.mxu1 %v9253_v24  ;;  %8657 = vmatprep.mubr.msk.bf16.mxu1 %vm9262_vm0, %v9261_v0 }
0x1d1b   :  { %5676 = vadd.xlane.f32.xlu1 %v5675_v29  ;;  %8667 = vmatprep.subr.bf16.mxu1 %v9261_v0 }
0x1d2c   :  { %5921 = vrot.lane.b32.xlu1 %v10417_v9, %s9269_s28 }
0x1d2d   :  { %5923 = vrot.lane.b32.xlu0 %v10419_v5, %s9269_s28 }
0x1d65   :  { %v8563_v33 = vpop.f32.mrf.mxu0 }
0x1d66   :  { %v10842_v47 = vadd.f32 %v8563_v33, %v10748_v22 }
0x1d67   :  { %v5317_v57 = vpop.f32.mrf.mxu0 }
0x1d68   :  { %v10845_v50 = vadd.f32 %v5317_v57, %v10753_v23 }
0x1d69   :  { %v8564_v28 = vpop.f32.mrf.mxu0 }
0x1d6a   :  { %v10848_v63 = vadd.f32 %v8564_v28, %v10758_v25  ;;  %v10862_v25 = vld [vmem:[%s11191_s6 + $0x30] sm:$0xff]  }
0x1d6b   :  { %v5320_v9 = vpop.f32.mrf.mxu0 }
0x1d6c   :  { %v10851_v61 = vadd.f32 %v5320_v9, %v10761_v42 }
0x1d6d   :  { %v8579_v5 = vpop.f32.mrf.mxu0 }
0x1d6e   :  { %v5510_v22 = vmul.f32 %v9130_v2, %v8579_v5 }
0x1d6f   :  { %v5493_v35 = vpop.f32.mrf.mxu0 }
0x1d70   :  { %v5508_v23 = vmul.f32 %v9136_v40, %v5493_v35 }
0x1d71   :  { %v8580_v51 = vpop.f32.mrf.mxu0 }
0x1d72   :  { %v5511_v3 = vmul.f32 %v9132_v43, %v8580_v51 }
0x1d73   :  { %v5496_v15 = vpop.f32.mrf.mxu0 }
0x1d74   :  { %v5513_v14 = vpack.c.bf16 %v5511_v3, %v5510_v22  ;;  %v5509_v49 = vmul.f32 %v9134_v62, %v5496_v15 }
0x1d76   :  { %v5512_v8 = vpack.c.bf16 %v5509_v49, %v5508_v23 }
0x1d78   :  { %8583 = vmatprep.mubr.msk.bf16.mxu0 %vm102_vm1, %v5512_v8 }
0x1d79   :  { %8584 = vmatmul.mubr.msk.bf16.vlgmr.msra.gmra.mxu0 %vm102_vm1, %v5513_v14 }
0x1d7a   :  { %8596 = vmatpush3.bf16.msra.mxu0 %v10787_v6  ;;  %8599 = vmatprep.mubr.msk.bf16.mxu0 %vm522_vm2, %v5682_v21 }
0x1d7b   :  { %8597 = vmatprep.subr.bf16.mxu0 %v10798_v10 }
0x1d7e   :  { %8598 = vmatpush3.bf16.msra.mxu0 %v10798_v10 }
0x1d7f   :  { %8603 = vmatprep.subr.bf16.mxu0 %v10862_v25 }
0x1d81   :  { %8600 = vmatmul.mubr.msk.bf16.vlgmr.msra.gmra.mxu0 %vm522_vm2, %v5683_v52  ;;  %v6103_v52 = vsel %vm102_vm1, %v10822_v4, -inf }
0x1d82   :  { %8604 = vmatpush3.bf16.msra.mxu0 %v10862_v25 }
0x1d94   :  { %v5881_v42 = vpop.xlane.xlu0 %5880 }
0x1d95   :  { %v5891_v44 = vsub.f32 %v10792_v18, %v5881_v42 }
0x1d97   :  { %v5895_v7 = vmul.f32 1.442695, %v5891_v44 }
0x1d98   :  { %v5887_v16 = vpop.xlane.xlu0 %5886  ;;  %v5884_v13 = vpop.xlane.xlu1 %5883 }
0x1d99   :  { %9137 = vpow2.f32 %v5895_v7  ;;  %v5893_v54 = vsub.f32 %v10789_v17, %v5887_v16  ;;  %v5892_v41 = vsub.f32 %v10802_v11, %v5884_v13 }
0x1d9b   :  { %v5897_v6 = vmul.f32 1.442695, %v5892_v41  ;;  %v5899_v26 = vmul.f32 1.442695, %v5893_v54 }
0x1d9c   :  { %v5674_v53 = vpop.xlane.xlu0 %5673  ;;  %v5890_v10 = vpop.xlane.xlu1 %5889 }
0x1d9d   :  { %v5894_v58 = vsub.f32 %v10796_v27, %v5890_v10  ;;  %9139 = vpow2.f32 %v5897_v6 }
0x1d9e   :  { %9141 = vpow2.f32 %v5899_v26 }
0x1d9f   :  { %v5901_v60 = vmul.f32 1.442695, %v5894_v58 }
0x1da0   :  { %v5671_v20 = vpop.xlane.xlu0 %5670  ;;  %v5668_v24 = vpop.xlane.xlu1 %5667 }
0x1da1   :  { %9143 = vpow2.f32 %v5901_v60 }
0x1da2   :  { %9145 = vrcp.f32 %v5671_v20 }
0x1da4   :  { %v10871_v18 = vpop.permute.xlu0 %5923  ;;  %v5677_v33 = vpop.xlane.xlu1 %5676 }
0x1da5   :  { %8617 = vmatprep.subr.bf16.mxu0 %v10871_v18  ;;  %9147 = vrcp.f32 %v5677_v33 }
0x1da6   :  { %v10874_v39 = vpop.eup %9137  ;;  %9149 = vrcp.f32 %v5668_v24 }
0x1da7   :  { %v5903_v17 = vsel %vm522_vm2, %v10874_v39, 0.0  ;;  %9151 = vrcp.f32 %v5674_v53 }
0x1da8   :  { %5904 = vadd.xlane.f32.xlu1 %v5903_v17  ;;  %v5922_v57 = vpop.permute.xlu1 %5921 }
0x1daa   :  { %v10878_v11 = vpop.eup %9139 }
0x1dab   :  { %v5906_v27 = vsel %vm522_vm2, %v10878_v11, 0.0  ;;  %v5919_v31 = vpack.c.bf16 %v10878_v11, %v10874_v39  ;;  %v10884_v21 = vpop.eup %9141 }
0x1dac   :  { %5907 = vadd.xlane.f32.xlu0 %v5906_v27  ;;  %v5909_v45 = vsel %vm522_vm2, %v10884_v21, 0.0 }
0x1dae   :  { %v10886_v12 = vpop.eup %9143 }
0x1daf   :  { %v5920_v56 = vpack.c.bf16 %v10886_v12, %v10884_v21  ;;  %v5912_v32 = vsel %vm522_vm2, %v10886_v12, 0.0  ;;  %v9146_v7 = vpop.eup %9145 }
0x1db0   :  { %5913 = vadd.xlane.f32.xlu1 %v5912_v32  ;;  %5910 = vadd.xlane.f32.xlu0 %v5909_v45 }
0x1db2   :  { %v9148_v13 = vpop.eup %9147 }
0x1db4   :  { %6104 = vmax.xlane.f32.xlu1 %v6103_v52  ;;  %6101 = vmax.xlane.f32.xlu0 %v6100_v19 }
0x1dd9   :  { %v10898_v55 = vpop.f32.mrf.mxu1 }
0x1dda   :  { %v6222_v30 = vsel %vm102_vm1, %v10898_v55, -inf }
0x1ddb   :  { %v8647_v46 = vpop.f32.mrf.mxu1  ;;  %6223 = vmax.xlane.f32.xlu0 %v6222_v30 }
0x1ddd   :  { %v10902_v1 = vpop.f32.mrf.mxu1 }
0x1dde   :  { %v6225_v37 = vsel %vm102_vm1, %v10902_v1, -inf }
0x1ddf   :  { %v8648_v29 = vpop.f32.mrf.mxu1  ;;  %6226 = vmax.xlane.f32.xlu1 %v6225_v37 }
0x1df1   :  { %6244 = vrot.lane.b32.xlu0 %v10429_v38, %s9263_s25 }
0x1df5   :  { %6382 = vrot.lane.b32.xlu0 %v10387_v59, %s9264_s16 }
0x1e31   :  { %v10910_v28 = vpop.xlane.xlu1 %5904 }
0x1e35   :  { %v10912_v9 = vpop.xlane.xlu0 %5907 }
0x1e39   :  { %v8585_v5 = vpop.f32.mrf.mxu0  ;;  %v10914_v35 = vpop.xlane.xlu1 %5913 }
0x1e3a   :  { %v10917_v2 = vadd.f32 %v8585_v5, %v10842_v47  ;;  %v10919_v43 = vpop.xlane.xlu0 %5910 }
0x1e3b   :  { %v5554_v51 = vpop.f32.mrf.mxu0 }
0x1e3c   :  { %v10922_v62 = vadd.f32 %v5554_v51, %v10845_v50 }
0x1e3d   :  { %v8586_v22 = vpop.f32.mrf.mxu0  ;;  %v6105_v3 = vpop.xlane.xlu1 %6104 }
0x1e3e   :  { %v10925_v40 = vadd.f32 %v8586_v22, %v10848_v63  ;;  %v6102_v15 = vpop.xlane.xlu0 %6101  ;;  %v6107_v23 = vsub.f32 %v10822_v4, %v6105_v3  ;;  %v9150_v63 = vpop.eup %9149 }
0x1e3f   :  { %v6106_v14 = vsub.f32 %v10812_v36, %v6102_v15  ;;  %v5557_v49 = vpop.f32.mrf.mxu0  ;;  %v9152_v6 = vpop.eup %9151 }
0x1e40   :  { %v6110_v47 = vmul.f32 1.442695, %v6107_v23  ;;  %v10930_v8 = vadd.f32 %v5557_v49, %v10851_v61  ;;  %v9256_v49 = vld [vmem:[%s11191_s6] sm:$0xff]  }
0x1e41   :  { %v6108_v42 = vmul.f32 1.442695, %v6106_v14  ;;  %v8601_v44 = vpop.f32.mrf.mxu0 }
0x1e42   :  { %9153 = vpow2.f32 %v6110_v47  ;;  %v5747_v36 = vmul.f32 %v9152_v6, %v8601_v44 }
0x1e43   :  { %9155 = vpow2.f32 %v6108_v42  ;;  %v5730_v50 = vpop.f32.mrf.mxu0 }
0x1e44   :  { %v5745_v4 = vmul.f32 %v9150_v63, %v5730_v50 }
0x1e45   :  { %v8602_v16 = vpop.f32.mrf.mxu0 }
0x1e46   :  { %v5748_v54 = vmul.f32 %v9148_v13, %v8602_v16 }
0x1e47   :  { %v5733_v41 = vpop.f32.mrf.mxu0 }
0x1e48   :  { %v5746_v26 = vmul.f32 %v9146_v7, %v5733_v41  ;;  %v5750_v10 = vpack.c.bf16 %v5748_v54, %v5747_v36 }
0x1e4a   :  { %v5749_v53 = vpack.c.bf16 %v5746_v26, %v5745_v4 }
0x1e4c   :  { %8605 = vmatprep.mubr.msk.bf16.mxu0 %vm102_vm1, %v5749_v53 }
0x1e4d   :  { %8606 = vmatmul.mubr.msk.bf16.vlgmr.msra.gmra.mxu0 %vm102_vm1, %v5750_v10 }
0x1e4e   :  { %8618 = vmatpush3.bf16.msra.mxu0 %v10871_v18  ;;  %8621 = vmatprep.mubr.msk.bf16.mxu0 %vm522_vm2, %v5919_v31  ;;  %v10950_v18 = vld [vmem:[%s11191_s6 + $0x38] sm:$0xff]  }
0x1e4f   :  { %v10939_v61 = vpop.eup %9153  ;;  %8619 = vmatprep.subr.bf16.mxu0 %v5922_v57 }
0x1e50   :  { %v10941_v58 = vpop.eup %9155  ;;  %v6115_v19 = vsel %vm102_vm1, %v10939_v61, 0.0 }
0x1e51   :  { %v6120_v60 = vpack.c.bf16 %v10939_v61, %v10941_v58  ;;  %v6112_v20 = vsel %vm102_vm1, %v10941_v58, 0.0 }
0x1e52   :  { %6113 = vadd.xlane.f32.xlu0 %v6112_v20  ;;  %8620 = vmatpush3.bf16.msra.mxu0 %v5922_v57 }
0x1e53   :  { %8625 = vmatprep.subr.bf16.mxu0 %v10950_v18 }
0x1e55   :  { %8622 = vmatmul.mubr.msk.bf16.vlgmr.msra.gmra.mxu0 %vm522_vm2, %v5920_v56 }
0x1e56   :  { %8626 = vmatpush3.bf16.msra.mxu0 %v10950_v18 }
0x1e57   :  { %8637 = vmatprep.subr.bf16.mxu0 %v9261_v0 }
0x1e64   :  { %v6224_v39 = vpop.xlane.xlu0 %6223 }
0x1e65   :  { %v6228_v17 = vsub.f32 %v10898_v55, %v6224_v39 }
0x1e67   :  { %v6230_v11 = vmul.f32 1.442695, %v6228_v17 }
0x1e68   :  { %v6227_v27 = vpop.xlane.xlu1 %6226 }
0x1e69   :  { %9157 = vpow2.f32 %v6230_v11  ;;  %v6229_v31 = vsub.f32 %v10902_v1, %v6227_v27 }
0x1e6b   :  { %v6232_v32 = vmul.f32 1.442695, %v6229_v31 }
0x1e6d   :  { %9159 = vpow2.f32 %v6232_v32 }
0x1e6e   :  { %9161 = vrcp.f32 %v10914_v35 }
0x1e6f   :  { %9163 = vrcp.f32 %v10919_v43 }
0x1e70   :  { %9165 = vrcp.f32 %v10910_v28 }
0x1e71   :  { %9167 = vrcp.f32 %v10912_v9 }
0x1e76   :  { %v9158_v45 = vpop.eup %9157 }
0x1e77   :  { %v6234_v52 = vsel %vm102_vm1, %v9158_v45, 0.0 }
0x1e78   :  { %6235 = vadd.xlane.f32.xlu1 %v6234_v52 }
0x1e7a   :  { %v9160_v21 = vpop.eup %9159 }
0x1e7b   :  { %v6242_v12 = vpack.c.bf16 %v9160_v21, %v9158_v45  ;;  %v6237_v56 = vsel %vm102_vm1, %v9160_v21, 0.0  ;;  %v9162_v35 = vpop.eup %9161 }
0x1e7c   :  { %6238 = vadd.xlane.f32.xlu1 %v6237_v56  ;;  %v9164_v43 = vpop.eup %9163 }
0x1e7d   :  { %v9166_v28 = vpop.eup %9165 }
0x1e7e   :  { %v9168_v9 = vpop.eup %9167 }
0x1e8d   :  { %6384 = vrot.lane.b32.xlu1 %v10415_v34, %s9264_s16 }
0x1eb1   :  { %6116 = vadd.xlane.f32.xlu1 %v6115_v19 }
0x1ec2   :  { %6454 = vrot.lane.b32.xlu1 %v10429_v38, %s9264_s16 }
0x1ec6   :  { %6550 = vrot.lane.b32.xlu1 %v10387_v59, %s9265_s17 }
0x1f01   :  { %v6236_v47 = vpop.xlane.xlu1 %6235 }
0x1f0d   :  { %v8607_v55 = vpop.f32.mrf.mxu0 }
0x1f0e   :  { %v5808_v30 = vadd.f32 %v8607_v55, %v10917_v2 }
0x1f0f   :  { %v5791_v46 = vpop.f32.mrf.mxu0 }
0x1f10   :  { %v5806_v1 = vadd.f32 %v5791_v46, %v10922_v62 }
0x1f11   :  { %v8608_v37 = vpop.f32.mrf.mxu0 }
0x1f12   :  { %v5809_v29 = vadd.f32 %v8608_v37, %v10925_v40  ;;  %v6245_v40 = vpop.permute.xlu0 %6244 }
0x1f13   :  { %v5794_v24 = vpop.f32.mrf.mxu0 }
0x1f14   :  { %v5807_v33 = vadd.f32 %v5794_v24, %v10930_v8  ;;  %v6239_v8 = vpop.xlane.xlu1 %6238 }
0x1f15   :  { %v8623_v57 = vpop.f32.mrf.mxu0 }
0x1f16   :  { %v5984_v22 = vmul.f32 %v9164_v43, %v8623_v57  ;;  %v6383_v42 = vpop.permute.xlu0 %6382 }
0x1f17   :  { %v5967_v5 = vpop.f32.mrf.mxu0 }
0x1f18   :  { %v5982_v2 = vmul.f32 %v9166_v28, %v5967_v5  ;;  %v6385_v44 = vpop.permute.xlu1 %6384 }
0x1f19   :  { %v8624_v51 = vpop.f32.mrf.mxu0  ;;  %v6390_v55 = vsel %vm102_vm1, %v6385_v44, 0 }
0x1f1a   :  { %v5985_v3 = vmul.f32 %v9162_v35, %v8624_v51  ;;  %v6114_v50 = vpop.xlane.xlu0 %6113 }
0x1f1b   :  { %v5970_v15 = vpop.f32.mrf.mxu0  ;;  %9169 = vrcp.f32 %v6114_v50 }
0x1f1c   :  { %v5987_v23 = vpack.c.bf16 %v5985_v3, %v5984_v22  ;;  %v5983_v14 = vmul.f32 %v9168_v9, %v5970_v15 }
0x1f1e   :  { %v5986_v62 = vpack.c.bf16 %v5983_v14, %v5982_v2 }
0x1f20   :  { %8627 = vmatprep.mubr.msk.bf16.mxu0 %vm102_vm1, %v5986_v62 }
0x1f21   :  { %8628 = vmatmul.mubr.msk.bf16.vlgmr.msra.gmra.mxu0 %vm102_vm1, %v5987_v23 }
0x1f22   :  { %8638 = vmatpush3.bf16.msra.mxu0 %v10429_v38  ;;  %8639 = vmatprep.mubr.msk.bf16.mxu0 %vm9262_vm0, %v9261_v0 }
0x1f23   :  { %8649 = vmatprep.subr.bf16.mxu0 %v9261_v0 }
0x1f28   :  { %v9170_v10 = vpop.eup %9169 }
0x1f29   :  { %8640 = vmatmul.mubr.msk.bf16.vlgmr.msra.gmra.mxu0 %vm102_vm1, %v6120_v60 }
0x1f2a   :  { %8650 = vmatpush3.bf16.msra.mxu0 %v6245_v40  ;;  %8651 = vmatprep.mubr.msk.bf16.mxu0 %vm9262_vm0, %v9261_v0 }
0x1f2b   :  { %8661 = vmatprep.subr.bf16.mxu0 %v9261_v0 }
0x1f31   :  { %8652 = vmatmul.mubr.msk.bf16.vlgmr.msra.gmra.mxu0 %vm102_vm1, %v6242_v12 }
0x1f32   :  { %8662 = vmatpush3.bf16.msra.mxu0 %v9256_v49  ;;  %8663 = vmatprep.mubr.msk.bf16.mxu0 %vm9262_vm0, %v9261_v0 }
0x1f33   :  { %8673 = vmatprep.subr.bf16.mxu0 %v9261_v0 }
0x1f3a   :  { %v6117_v7 = vpop.xlane.xlu1 %6116 }
0x1f3b   :  { %9171 = vrcp.f32 %v6117_v7 }
0x1f3c   :  { %9173 = vrcp.f32 %v6236_v47 }
0x1f3d   :  { %9175 = vrcp.f32 %v6239_v8 }
0x1f3e   :  { %v6455_v27 = vpop.permute.xlu1 %6454 }
0x1f48   :  { %v9172_v61 = vpop.eup %9171 }
0x1f49   :  { %v9174_v32 = vpop.eup %9173 }
0x1f4a   :  { %v9176_v45 = vpop.eup %9175 }
0x1fe1   :  { %v8629_v16 = vpop.f32.mrf.mxu0 }
0x1fe2   :  { %v10996_v13 = vadd.f32 %v8629_v16, %v5808_v30  ;;  %v9257_v30 = vld [vmem:[%s11191_s6 + $0x10] sm:$0xff]  }
0x1fe3   :  { %v6028_v63 = vpop.f32.mrf.mxu0 }
0x1fe4   :  { %v10998_v54 = vadd.f32 %v6028_v63, %v5806_v1  ;;  %v6551_v63 = vpop.permute.xlu1 %6550 }
0x1fe5   :  { %v8630_v41 = vpop.f32.mrf.mxu0 }
0x1fe6   :  { %v11000_v6 = vadd.f32 %v8630_v41, %v5809_v29  ;;  %v9258_v41 = vld [vmem:[%s11191_s6 + $0x18] sm:$0xff]  }
0x1fe7   :  { %v6031_v4 = vpop.f32.mrf.mxu0 }
0x1fe8   :  { %v11002_v26 = vadd.f32 %v6031_v4, %v5807_v33 }
0x1fe9   :  { %v6159_v36 = vpop.f32.mrf.mxu0 }
0x1fea   :  { %v6166_v60 = vmul.f32 %v9170_v10, %v6159_v36 }
0x1feb   :  { %v8641_v53 = vpop.f32.mrf.mxu0 }
0x1fed   :  { %v6162_v58 = vpop.f32.mrf.mxu0 }
0x1fee   :  { %v6167_v20 = vmul.f32 %v9172_v61, %v6162_v58 }
0x1fef   :  { %v8642_v39 = vpop.f32.mrf.mxu0 }
0x1ff0   :  { %v6168_v17 = vpack.c.bf16 %v6167_v20, %v6166_v60 }
0x1ff1   :  { %v6284_v11 = vpop.f32.mrf.mxu0 }
0x1ff2   :  { %8664 = vmatmul.mubr.msk.bf16.vlgmr.msra.gmra.mxu0 %vm102_vm1, %v6168_v17  ;;  %v6291_v21 = vmul.f32 %v9174_v32, %v6284_v11 }
0x1ff3   :  { %8674 = vmatpush3.bf16.msra.mxu0 %v6455_v27  ;;  %v8653_v31 = vpop.f32.mrf.mxu0  ;;  %8675 = vmatprep.mubr.msk.bf16.mxu0 %vm9262_vm0, %v9261_v0 }
0x1ff4   :  { %8685 = vmatprep.subr.bf16.mxu0 %v9261_v0 }
0x1ff5   :  { %v6287_v52 = vpop.f32.mrf.mxu0 }
0x1ff6   :  { %v6292_v12 = vmul.f32 %v9176_v45, %v6287_v52 }
0x1ff7   :  { %v8654_v56 = vpop.f32.mrf.mxu0 }
0x1ff8   :  { %v6293_v19 = vpack.c.bf16 %v6292_v12, %v6291_v21 }
0x1ffa   :  { %8658 = vmatmul.mubr.msk.bf16.vlgmr.msra.gmra.mxu1 %vm102_vm1, %v6293_v19 }
0x1ffb   :  { %8668 = vmatpush3.bf16.xpose.msra.mxu1 %v6390_v55  ;;  %8669 = vmatprep.mubr.msk.bf16.mxu1 %vm9262_vm0, %v9261_v0 }
0x1ffc   :  { %8679 = vmatprep.subr.bf16.mxu1 %v9261_v0 }
0x2002   :  { %8670 = vmatmul.mubr.msk.bf16.vlgmr.msra.gmra.mxu1 %vm102_vm1, %v6383_v42 }
0x2003   :  { %8680 = vmatpush3.bf16.msra.mxu1 %v9257_v30  ;;  %8681 = vmatprep.mubr.msk.bf16.mxu1 %vm9262_vm0, %v9261_v0 }
0x2004   :  { %8691 = vmatprep.subr.bf16.mxu1 %v9261_v0 }
0x20b2   :  { %v6375_v46 = vpop.f32.mrf.mxu0 }
0x20b4   :  { %v8665_v1 = vpop.f32.mrf.mxu0 }
0x20b6   :  { %v6378_v37 = vpop.f32.mrf.mxu0 }
0x20b8   :  { %v8666_v29 = vpop.f32.mrf.mxu0 }
0x20ba   :  { %v6331_v24 = vpop.f32.mrf.mxu1 }
0x20bb   :  { %v11020_v33 = vadd.f32 %v6375_v46, %v6331_v24 }
0x20bc   :  { %v8659_v57 = vpop.f32.mrf.mxu1 }
0x20be   :  { %v6334_v5 = vpop.f32.mrf.mxu1 }
0x20bf   :  { %v11022_v35 = vadd.f32 %v6378_v37, %v6334_v5 }
0x20c0   :  { %v8660_v43 = vpop.f32.mrf.mxu1 }
0x20c2   :  { %v6426_v51 = vpop.f32.mrf.mxu1 }
0x20c3   :  { %v6433_v28 = vsel %vm102_vm1, %v6426_v51, -inf }
0x20c4   :  { %6434 = vmax.xlane.f32.xlu0 %v6433_v28  ;;  %v8671_v22 = vpop.f32.mrf.mxu1 }
0x20c5   :  { %v9259_v22 = vld [vmem:[%s11191_s6 + $0x20] sm:$0xff]  }
0x20c6   :  { %v6429_v3 = vpop.f32.mrf.mxu1 }
0x20c7   :  { %v6436_v9 = vsel %vm102_vm1, %v6429_v3, -inf }
0x20c8   :  { %6437 = vmax.xlane.f32.xlu0 %v6436_v9  ;;  %v8672_v15 = vpop.f32.mrf.mxu1 }
0x20de   :  { %6552 = vrot.lane.b32.xlu0 %v10415_v34, %s9265_s17 }
0x214d   :  { %v6435_v2 = vpop.xlane.xlu0 %6434 }
0x214e   :  { %v6439_v23 = vsub.f32 %v6426_v51, %v6435_v2 }
0x2150   :  { %v6441_v14 = vmul.f32 1.442695, %v6439_v23 }
0x2151   :  { %v6438_v62 = vpop.xlane.xlu0 %6437 }
0x2152   :  { %9177 = vpow2.f32 %v6441_v14  ;;  %v6440_v40 = vsub.f32 %v6429_v3, %v6438_v62 }
0x2154   :  { %v6443_v49 = vmul.f32 1.442695, %v6440_v40 }
0x2155   :  { %v6553_v44 = vpop.permute.xlu0 %6552 }
0x2156   :  { %9179 = vpow2.f32 %v6443_v49  ;;  %v6558_v16 = vsel %vm102_vm1, %v6553_v44, 0 }
0x215f   :  { %v9178_v47 = vpop.eup %9177 }
0x2160   :  { %v6445_v8 = vsel %vm102_vm1, %v9178_v47, 0.0 }
0x2161   :  { %6446 = vadd.xlane.f32.xlu1 %v6445_v8 }
0x2163   :  { %v9180_v42 = vpop.eup %9179 }
0x2164   :  { %v6453_v50 = vpack.c.bf16 %v9180_v42, %v9178_v47  ;;  %v6448_v7 = vsel %vm102_vm1, %v9180_v42, 0.0 }
0x2165   :  { %6449 = vadd.xlane.f32.xlu0 %v6448_v7 }
0x2166   :  { %8676 = vmatmul.mubr.msk.bf16.vlgmr.msra.gmra.mxu0 %vm102_vm1, %v6453_v50 }
0x2167   :  { %8686 = vmatpush3.bf16.xpose.msra.mxu0 %v6558_v16  ;;  %8687 = vmatprep.mubr.msk.bf16.mxu0 %vm9262_vm0, %v9261_v0 }
0x2168   :  { %8697 = vmatprep.subr.bf16.mxu0 %v9261_v0 }
0x216e   :  { %8688 = vmatmul.mubr.msk.bf16.vlgmr.msra.gmra.mxu0 %vm102_vm1, %v6551_v63 }
0x216f   :  { %8698 = vmatpush3.bf16.msra.mxu0 %v9258_v41  ;;  %8699 = vmatprep.mubr.msk.bf16.mxu0 %vm9262_vm0, %v9261_v0 }
0x2170   :  { %8709 = vmatprep.subr.bf16.mxu0 %v9261_v0 }
0x21ea   :  { %v6447_v4 = vpop.xlane.xlu1 %6446 }
0x21eb   :  { %9181 = vrcp.f32 %v6447_v4 }
0x21ee   :  { %v6450_v36 = vpop.xlane.xlu0 %6449 }
0x21ef   :  { %9183 = vrcp.f32 %v6450_v36 }
0x21f8   :  { %v9182_v61 = vpop.eup %9181 }
0x21fc   :  { %v9184_v58 = vpop.eup %9183 }
0x2226   :  { %v6494_v53 = vpop.f32.mrf.mxu0 }
0x2227   :  { %v6501_v20 = vmul.f32 %v9182_v61, %v6494_v53 }
0x2228   :  { %v8677_v10 = vpop.f32.mrf.mxu0 }
0x222a   :  { %v6497_v60 = vpop.f32.mrf.mxu0 }
0x222b   :  { %v6502_v39 = vmul.f32 %v9184_v58, %v6497_v60 }
0x222c   :  { %v8678_v17 = vpop.f32.mrf.mxu0 }
0x222d   :  { %v6503_v11 = vpack.c.bf16 %v6502_v39, %v6501_v20 }
0x222e   :  { %v6594_v27 = vpop.f32.mrf.mxu0 }
0x222f   :  { %8682 = vmatmul.mubr.msk.bf16.vlgmr.msra.gmra.mxu1 %vm102_vm1, %v6503_v11  ;;  %v6601_v31 = vsel %vm102_vm1, %v6594_v27, -inf }
0x2230   :  { %6602 = vmax.xlane.f32.xlu0 %v6601_v31  ;;  %v8689_v32 = vpop.f32.mrf.mxu0  ;;  %8693 = vmatprep.mubr.msk.bf16.mxu1 %vm9262_vm0, %v9261_v0 }
0x2232   :  { %v6597_v45 = vpop.f32.mrf.mxu0 }
0x2233   :  { %v6604_v52 = vsel %vm102_vm1, %v6597_v45, -inf }
0x2234   :  { %6605 = vmax.xlane.f32.xlu1 %v6604_v52  ;;  %v8690_v21 = vpop.f32.mrf.mxu0 }
0x2245   :  { %6720 = vrot.lane.b32.xlu1 %v10415_v34, %s9266_s20 }
0x2246   :  { %6622 = vrot.lane.b32.xlu0 %v10429_v38, %s9265_s17 }
0x2249   :  { %6718 = vrot.lane.b32.xlu1 %v10387_v59, %s9266_s20 }
0x22b9   :  { %v6603_v12 = vpop.xlane.xlu0 %6602 }
0x22ba   :  { %v6607_v56 = vsub.f32 %v6594_v27, %v6603_v12 }
0x22bc   :  { %v6609_v19 = vmul.f32 1.442695, %v6607_v56 }
0x22bd   :  { %v6623_v55 = vpop.permute.xlu0 %6622  ;;  %v6606_v30 = vpop.xlane.xlu1 %6605 }
0x22be   :  { %9185 = vpow2.f32 %v6609_v19  ;;  %v6608_v46 = vsub.f32 %v6597_v45, %v6606_v30  ;;  %8692 = vmatpush3.bf16.msra.mxu1 %v6623_v55 }
0x22bf   :  { %8703 = vmatprep.subr.bf16.mxu1 %v9261_v0 }
0x22c0   :  { %v6611_v1 = vmul.f32 1.442695, %v6608_v46 }
0x22c1   :  { %v6721_v57 = vpop.permute.xlu1 %6720 }
0x22c2   :  { %9187 = vpow2.f32 %v6611_v1  ;;  %v6726_v51 = vsel %vm102_vm1, %v6721_v57, 0 }
0x22c5   :  { %v6719_v28 = vpop.permute.xlu1 %6718 }
0x22cb   :  { %v9186_v37 = vpop.eup %9185 }
0x22cc   :  { %v6613_v29 = vsel %vm102_vm1, %v9186_v37, 0.0 }
0x22cd   :  { %6614 = vadd.xlane.f32.xlu0 %v6613_v29 }
0x22cf   :  { %v9188_v24 = vpop.eup %9187 }
0x22d0   :  { %v6621_v5 = vpack.c.bf16 %v9188_v24, %v9186_v37  ;;  %v6616_v43 = vsel %vm102_vm1, %v9188_v24, 0.0 }
0x22d1   :  { %6617 = vadd.xlane.f32.xlu1 %v6616_v43 }
0x22d2   :  { %8694 = vmatmul.mubr.msk.bf16.vlgmr.msra.gmra.mxu1 %vm102_vm1, %v6621_v5 }
0x22d3   :  { %8704 = vmatpush3.bf16.xpose.msra.mxu1 %v6726_v51  ;;  %8705 = vmatprep.mubr.msk.bf16.mxu1 %vm9262_vm0, %v9261_v0 }
0x22d4   :  { %8715 = vmatprep.subr.bf16.mxu1 %v9261_v0 }
0x22da   :  { %8706 = vmatmul.mubr.msk.bf16.vlgmr.msra.gmra.mxu1 %vm102_vm1, %v6719_v28 }
0x22db   :  { %8716 = vmatpush3.bf16.msra.mxu1 %v9259_v22  ;;  %8717 = vmatprep.mubr.msk.bf16.mxu1 %vm9262_vm0, %v9261_v0 }
0x22dc   :  { %8727 = vmatprep.subr.bf16.mxu1 %v9261_v0 }
0x22e2   :  { %6790 = vrot.lane.b32.xlu1 %v10429_v38, %s9266_s20 }
0x22e6   :  { %6886 = vrot.lane.b32.xlu1 %v10387_v59, %s9267_s23 }
0x22ef   :  { %v6541_v3 = vpop.f32.mrf.mxu1 }
0x22f0   :  { %v6548_v9 = vadd.f32 %v6541_v3, %v11020_v33 }
0x22f1   :  { %v8683_v15 = vpop.f32.mrf.mxu1 }
0x22f3   :  { %v6544_v2 = vpop.f32.mrf.mxu1 }
0x22f4   :  { %v6549_v23 = vadd.f32 %v6544_v2, %v11022_v35 }
0x22f5   :  { %v8684_v14 = vpop.f32.mrf.mxu1 }
0x2356   :  { %v6615_v62 = vpop.xlane.xlu0 %6614 }
0x2357   :  { %9189 = vrcp.f32 %v6615_v62 }
0x235a   :  { %v6618_v40 = vpop.xlane.xlu1 %6617 }
0x235b   :  { %9191 = vrcp.f32 %v6618_v40 }
0x235e   :  { %v6791_v33 = vpop.permute.xlu1 %6790 }
0x2362   :  { %v6887_v12 = vpop.permute.xlu1 %6886 }
0x2364   :  { %v9190_v8 = vpop.eup %9189 }
0x2368   :  { %v9192_v42 = vpop.eup %9191 }
0x2392   :  { %v6662_v49 = vpop.f32.mrf.mxu1 }
0x2393   :  { %v6669_v50 = vmul.f32 %v9190_v8, %v6662_v49 }
0x2394   :  { %v8695_v47 = vpop.f32.mrf.mxu1 }
0x2396   :  { %v6665_v44 = vpop.f32.mrf.mxu1 }
0x2397   :  { %v6670_v7 = vmul.f32 %v9192_v42, %v6665_v44 }
0x2398   :  { %v8696_v16 = vpop.f32.mrf.mxu1 }
0x2399   :  { %v6671_v63 = vpack.c.bf16 %v6670_v7, %v6669_v50 }
0x239a   :  { %v6762_v41 = vpop.f32.mrf.mxu1 }
0x239b   :  { %8700 = vmatmul.mubr.msk.bf16.vlgmr.msra.gmra.mxu0 %vm102_vm1, %v6671_v63  ;;  %v6769_v35 = vsel %vm102_vm1, %v6762_v41, -inf }
0x239c   :  { %8710 = vmatpush3.bf16.msra.mxu0 %v6791_v33  ;;  %6770 = vmax.xlane.f32.xlu0 %v6769_v35  ;;  %v8707_v4 = vpop.f32.mrf.mxu1 }
0x239d   :  { %8711 = vmatprep.mubr.msk.bf16.mxu0 %vm9262_vm0, %v9261_v0  ;;  %8721 = vmatprep.subr.bf16.mxu0 %v9261_v0 }
0x239e   :  { %v6765_v36 = vpop.f32.mrf.mxu1 }
0x239f   :  { %v6772_v53 = vsel %vm102_vm1, %v6765_v36, -inf }
0x23a0   :  { %6773 = vmax.xlane.f32.xlu0 %v6772_v53  ;;  %v8708_v10 = vpop.f32.mrf.mxu1 }
0x23b6   :  { %6888 = vrot.lane.b32.xlu0 %v10415_v34, %s9267_s23 }
0x2425   :  { %v6771_v61 = vpop.xlane.xlu0 %6770 }
0x2426   :  { %v6775_v58 = vsub.f32 %v6762_v41, %v6771_v61 }
0x2428   :  { %v6777_v60 = vmul.f32 1.442695, %v6775_v58 }
0x2429   :  { %v6774_v20 = vpop.xlane.xlu0 %6773 }
0x242a   :  { %9193 = vpow2.f32 %v6777_v60  ;;  %v6776_v39 = vsub.f32 %v6765_v36, %v6774_v20 }
0x242c   :  { %v6779_v17 = vmul.f32 1.442695, %v6776_v39 }
0x242d   :  { %v6889_v32 = vpop.permute.xlu0 %6888 }
0x242e   :  { %9195 = vpow2.f32 %v6779_v17  ;;  %v6894_v21 = vsel %vm102_vm1, %v6889_v32, 0 }
0x2437   :  { %v9194_v11 = vpop.eup %9193 }
0x2438   :  { %v6781_v27 = vsel %vm102_vm1, %v9194_v11, 0.0 }
0x2439   :  { %6782 = vadd.xlane.f32.xlu1 %v6781_v27 }
0x243b   :  { %v9196_v31 = vpop.eup %9195 }
0x243c   :  { %v6789_v45 = vpack.c.bf16 %v9196_v31, %v9194_v11  ;;  %v6784_v52 = vsel %vm102_vm1, %v9196_v31, 0.0 }
0x243d   :  { %6785 = vadd.xlane.f32.xlu0 %v6784_v52 }
0x243e   :  { %8712 = vmatmul.mubr.msk.bf16.vlgmr.msra.gmra.mxu0 %vm102_vm1, %v6789_v45 }
0x243f   :  { %8722 = vmatpush3.bf16.xpose.msra.mxu0 %v6894_v21  ;;  %8723 = vmatprep.mubr.msk.bf16.mxu0 %vm9262_vm0, %v9261_v0 }
0x2440   :  { %8733 = vmatprep.subr.bf16.mxu0 %v9261_v0 }
0x2446   :  { %8724 = vmatmul.mubr.msk.bf16.vlgmr.msra.gmra.mxu0 %vm102_vm1, %v6887_v12 }
0x2447   :  { %8734 = vmatpush3.bf16.msra.mxu0 %v10775_v48  ;;  %8735 = vmatprep.mubr.msk.bf16.mxu0 %vm9262_vm0, %v9261_v0 }
0x2448   :  { %8745 = vmatprep.subr.bf16.mxu0 %v9261_v0 }
0x245b   :  { %v6709_v56 = vpop.f32.mrf.mxu0 }
0x245c   :  { %v11094_v19 = vadd.f32 %v6709_v56, %v6548_v9 }
0x245d   :  { %v8701_v55 = vpop.f32.mrf.mxu0 }
0x245f   :  { %v6712_v30 = vpop.f32.mrf.mxu0 }
0x2460   :  { %v11096_v46 = vadd.f32 %v6712_v30, %v6549_v23 }
0x2461   :  { %v8702_v1 = vpop.f32.mrf.mxu0 }
0x24c2   :  { %v6783_v37 = vpop.xlane.xlu1 %6782 }
0x24c3   :  { %9197 = vrcp.f32 %v6783_v37 }
0x24c6   :  { %v6786_v29 = vpop.xlane.xlu0 %6785 }
0x24c7   :  { %9199 = vrcp.f32 %v6786_v29 }
0x24d0   :  { %v9198_v48 = vpop.eup %9197 }
0x24d4   :  { %v9200_v5 = vpop.eup %9199 }
0x24fe   :  { %v6830_v24 = vpop.f32.mrf.mxu0 }
0x24ff   :  { %v6837_v51 = vmul.f32 %v9198_v48, %v6830_v24 }
0x2500   :  { %v8713_v57 = vpop.f32.mrf.mxu0 }
0x2502   :  { %v6833_v43 = vpop.f32.mrf.mxu0 }
0x2503   :  { %v6838_v28 = vmul.f32 %v9200_v5, %v6833_v43 }
0x2504   :  { %v8714_v22 = vpop.f32.mrf.mxu0 }
0x2505   :  { %v6839_v3 = vpack.c.bf16 %v6838_v28, %v6837_v51 }
0x2506   :  { %v6930_v9 = vpop.f32.mrf.mxu0 }
0x2507   :  { %8718 = vmatmul.mubr.msk.bf16.vlgmr.msra.gmra.mxu1 %vm102_vm1, %v6839_v3  ;;  %v6937_v15 = vsel %vm102_vm1, %v6930_v9, -inf }
0x2508   :  { %6938 = vmax.xlane.f32.xlu0 %v6937_v15  ;;  %v8725_v2 = vpop.f32.mrf.mxu0  ;;  %8729 = vmatprep.mubr.msk.bf16.mxu1 %vm9262_vm0, %v9261_v0 }
0x250a   :  { %v6933_v23 = vpop.f32.mrf.mxu0 }
0x250b   :  { %v6940_v14 = vsel %vm102_vm1, %v6933_v23, -inf }
0x250c   :  { %6941 = vmax.xlane.f32.xlu1 %v6940_v14  ;;  %v8726_v62 = vpop.f32.mrf.mxu0 }
0x251d   :  { %7056 = vrot.lane.b32.xlu1 %v10415_v34, %s9268_s27 }
0x251e   :  { %6958 = vrot.lane.b32.xlu0 %v10429_v38, %s9267_s23 }
0x2521   :  { %7054 = vrot.lane.b32.xlu1 %v10387_v59, %s9268_s27 }
0x2591   :  { %v6939_v40 = vpop.xlane.xlu0 %6938 }
0x2592   :  { %v6943_v49 = vsub.f32 %v6930_v9, %v6939_v40 }
0x2594   :  { %v6945_v47 = vmul.f32 1.442695, %v6943_v49 }
0x2595   :  { %v6959_v8 = vpop.permute.xlu0 %6958  ;;  %v6942_v42 = vpop.xlane.xlu1 %6941 }
0x2596   :  { %9201 = vpow2.f32 %v6945_v47  ;;  %v6944_v44 = vsub.f32 %v6933_v23, %v6942_v42  ;;  %8728 = vmatpush3.bf16.msra.mxu1 %v6959_v8 }
0x2597   :  { %8739 = vmatprep.subr.bf16.mxu1 %v9261_v0 }
0x2598   :  { %v6947_v50 = vmul.f32 1.442695, %v6944_v44 }
0x2599   :  { %v7057_v41 = vpop.permute.xlu1 %7056 }
0x259a   :  { %9203 = vpow2.f32 %v6947_v50  ;;  %v7062_v4 = vsel %vm102_vm1, %v7057_v41, 0 }
0x259d   :  { %v7055_v36 = vpop.permute.xlu1 %7054 }
0x25a3   :  { %v9202_v7 = vpop.eup %9201 }
0x25a4   :  { %v6949_v16 = vsel %vm102_vm1, %v9202_v7, 0.0 }
0x25a5   :  { %6950 = vadd.xlane.f32.xlu0 %v6949_v16 }
0x25a7   :  { %v9204_v63 = vpop.eup %9203 }
0x25a8   :  { %v6957_v33 = vpack.c.bf16 %v9204_v63, %v9202_v7  ;;  %v6952_v35 = vsel %vm102_vm1, %v9204_v63, 0.0 }
0x25a9   :  { %6953 = vadd.xlane.f32.xlu1 %v6952_v35 }
0x25aa   :  { %8730 = vmatmul.mubr.msk.bf16.vlgmr.msra.gmra.mxu1 %vm102_vm1, %v6957_v33 }
0x25ab   :  { %8740 = vmatpush3.bf16.xpose.msra.mxu1 %v7062_v4  ;;  %8741 = vmatprep.mubr.msk.bf16.mxu1 %vm9262_vm0, %v9261_v0 }
0x25ac   :  { %8751 = vmatprep.subr.bf16.mxu1 %v9261_v0 }
0x25b2   :  { %8742 = vmatmul.mubr.msk.bf16.vlgmr.msra.gmra.mxu1 %vm102_vm1, %v7055_v36 }
0x25b3   :  { %8752 = vmatpush3.bf16.msra.mxu1 %v10862_v25  ;;  %8753 = vmatprep.mubr.msk.bf16.mxu1 %vm9262_vm0, %v9261_v0 }
0x25b4   :  { %8763 = vmatprep.subr.bf16.mxu1 %v9261_v0 }
0x25ba   :  { %7126 = vrot.lane.b32.xlu1 %v10429_v38, %s9268_s27 }
0x25be   :  { %7222 = vrot.lane.b32.xlu1 %v10387_v59, %s9269_s28 }
0x25c7   :  { %v6877_v53 = vpop.f32.mrf.mxu1 }
0x25c8   :  { %v6884_v10 = vadd.f32 %v6877_v53, %v11094_v19 }
0x25c9   :  { %v8719_v61 = vpop.f32.mrf.mxu1 }
0x25cb   :  { %v6880_v58 = vpop.f32.mrf.mxu1 }
0x25cc   :  { %v6885_v60 = vadd.f32 %v6880_v58, %v11096_v46 }
0x25cd   :  { %v8720_v20 = vpop.f32.mrf.mxu1 }
0x262e   :  { %v6951_v25 = vpop.xlane.xlu0 %6950 }
0x262f   :  { %9205 = vrcp.f32 %v6951_v25 }
0x2632   :  { %v6954_v39 = vpop.xlane.xlu1 %6953 }
0x2633   :  { %9207 = vrcp.f32 %v6954_v39 }
0x2636   :  { %v7127_v56 = vpop.permute.xlu1 %7126 }
0x263a   :  { %v7223_v15 = vpop.permute.xlu1 %7222 }
0x263c   :  { %v9206_v27 = vpop.eup %9205 }
0x2640   :  { %v9208_v31 = vpop.eup %9207 }
0x266a   :  { %v6998_v17 = vpop.f32.mrf.mxu1 }
0x266b   :  { %v7005_v45 = vmul.f32 %v9206_v27, %v6998_v17 }
0x266c   :  { %v8731_v11 = vpop.f32.mrf.mxu1 }
0x266e   :  { %v7001_v32 = vpop.f32.mrf.mxu1 }
0x266f   :  { %v7006_v52 = vmul.f32 %v9208_v31, %v7001_v32  ;;  %v9260_v31 = vld [vmem:[%s11192_s7] ss:$0 sm:$0xff] }
0x2670   :  { %v8732_v59 = vpop.f32.mrf.mxu1  ;;  %v6048_v32 = vadd.f32 %v9260_v31, %v11002_v26 }
0x2671   :  { %v7007_v21 = vpack.c.bf16 %v7006_v52, %v7005_v45  ;;  %v6047_v45 = vadd.f32 %v9260_v31, %v10998_v54 }
0x2672   :  { %v7098_v12 = vpop.f32.mrf.mxu1 }
0x2673   :  { %8736 = vmatmul.mubr.msk.bf16.vlgmr.msra.gmra.mxu0 %vm102_vm1, %v7007_v21  ;;  %v7105_v19 = vsel %vm102_vm1, %v7098_v12, -inf  ;;  %v7392_v21 = vpack.c.bf16 %v6048_v32, %v6047_v45 }
0x2674   :  { %8746 = vmatpush3.bf16.msra.mxu0 %v7127_v56  ;;  %7106 = vmax.xlane.f32.xlu0 %v7105_v19  ;;  %v8743_v55 = vpop.f32.mrf.mxu1 }
0x2675   :  { %8747 = vmatprep.mubr.msk.bf16.mxu0 %vm9262_vm0, %v9261_v0  ;;  %8757 = vmatprep.subr.bf16.mxu0 %v9261_v0 }
0x2676   :  { %v7101_v30 = vpop.f32.mrf.mxu1 }
0x2677   :  { %v7108_v46 = vsel %vm102_vm1, %v7101_v30, -inf }
0x2678   :  { %7109 = vmax.xlane.f32.xlu0 %v7108_v46  ;;  %v8744_v1 = vpop.f32.mrf.mxu1 }
0x268e   :  { %7224 = vrot.lane.b32.xlu0 %v10415_v34, %s9269_s28 }
0x26fd   :  { %v7107_v37 = vpop.xlane.xlu0 %7106 }
0x26fe   :  { %v7111_v29 = vsub.f32 %v7098_v12, %v7107_v37 }
0x2700   :  { %v7113_v24 = vmul.f32 1.442695, %v7111_v29 }
0x2701   :  { %v7110_v57 = vpop.xlane.xlu0 %7109 }
0x2702   :  { %9209 = vpow2.f32 %v7113_v24  ;;  %v7112_v48 = vsub.f32 %v7101_v30, %v7110_v57 }
0x2704   :  { %v7115_v5 = vmul.f32 1.442695, %v7112_v48 }
0x2705   :  { %v7225_v22 = vpop.permute.xlu0 %7224 }
0x2706   :  { %9211 = vpow2.f32 %v7115_v5  ;;  %v7230_v34 = vsel %vm102_vm1, %v7225_v22, 0 }
0x270f   :  { %v9210_v43 = vpop.eup %9209 }
0x2710   :  { %v7117_v51 = vsel %vm102_vm1, %v9210_v43, 0.0 }
0x2711   :  { %7118 = vadd.xlane.f32.xlu1 %v7117_v51 }
0x2713   :  { %v9212_v28 = vpop.eup %9211 }
0x2714   :  { %v7125_v3 = vpack.c.bf16 %v9212_v28, %v9210_v43  ;;  %v7120_v9 = vsel %vm102_vm1, %v9212_v28, 0.0 }
0x2715   :  { %7121 = vadd.xlane.f32.xlu0 %v7120_v9 }
0x2716   :  { %8748 = vmatmul.mubr.msk.bf16.vlgmr.msra.gmra.mxu0 %vm102_vm1, %v7125_v3 }
0x2717   :  { %8758 = vmatpush3.bf16.xpose.msra.mxu0 %v7230_v34  ;;  %8759 = vmatprep.mubr.msk.bf16.mxu0 %vm9262_vm0, %v9261_v0 }
0x2718   :  { %8769 = vmatprep.subr.bf16.mxu0 %v9261_v0 }
0x271e   :  { %8760 = vmatmul.mubr.msk.bf16.vlgmr.msra.gmra.mxu0 %vm102_vm1, %v7223_v15 }
0x271f   :  { %8770 = vmatpush3.bf16.msra.mxu0 %v10950_v18  ;;  %8771 = vmatprep.mubr.msk.bf16.mxu0 %vm9262_vm0, %v9261_v0 }
0x2733   :  { %v7045_v2 = vpop.f32.mrf.mxu0 }
0x2734   :  { %v7052_v23 = vadd.f32 %v7045_v2, %v6884_v10 }
0x2735   :  { %v8737_v14 = vpop.f32.mrf.mxu0 }
0x2736   :  { %v6050_v14 = vadd.f32 %v9260_v31, %v11000_v6 }
0x2737   :  { %v7048_v62 = vpop.f32.mrf.mxu0 }
0x2738   :  { %v7053_v40 = vadd.f32 %v7048_v62, %v6885_v60 }
0x2739   :  { %v8738_v49 = vpop.f32.mrf.mxu0 }
0x279a   :  { %v7119_v47 = vpop.xlane.xlu1 %7118 }
0x279b   :  { %9213 = vrcp.f32 %v7119_v47 }
0x279e   :  { %v7122_v8 = vpop.xlane.xlu0 %7121 }
0x279f   :  { %9215 = vrcp.f32 %v7122_v8 }
0x27a8   :  { %v9214_v50 = vpop.eup %9213 }
0x27ac   :  { %v9216_v7 = vpop.eup %9215 }
0x27d6   :  { %v7166_v42 = vpop.f32.mrf.mxu0 }
0x27d7   :  { %v7173_v63 = vmul.f32 %v9214_v50, %v7166_v42 }
0x27d8   :  { %v8749_v44 = vpop.f32.mrf.mxu0 }
0x27da   :  { %v7169_v16 = vpop.f32.mrf.mxu0 }
0x27db   :  { %v7174_v18 = vmul.f32 %v9216_v7, %v7169_v16 }
0x27dc   :  { %v8750_v41 = vpop.f32.mrf.mxu0 }
0x27dd   :  { %v7175_v33 = vpack.c.bf16 %v7174_v18, %v7173_v63 }
0x27de   :  { %v7266_v35 = vpop.f32.mrf.mxu0 }
0x27df   :  { %8754 = vmatmul.mubr.msk.bf16.vlgmr.msra.gmra.mxu1 %vm102_vm1, %v7175_v33  ;;  %v7273_v4 = vsel %vm102_vm1, %v7266_v35, -inf }
0x27e0   :  { %7274 = vmax.xlane.f32.xlu0 %v7273_v4  ;;  %v8761_v36 = vpop.f32.mrf.mxu0  ;;  %8765 = vmatprep.mubr.msk.bf16.mxu1 %vm9262_vm0, %v9261_v0 }
0x27e2   :  { %v7269_v53 = vpop.f32.mrf.mxu0 }
0x27e3   :  { %v7276_v10 = vsel %vm102_vm1, %v7269_v53, -inf }
0x27e4   :  { %7277 = vmax.xlane.f32.xlu1 %v7276_v10  ;;  %v8762_v61 = vpop.f32.mrf.mxu0 }
0x27f6   :  { %7294 = vrot.lane.b32.xlu0 %v10429_v38, %s9269_s28 }
0x2869   :  { %v7275_v58 = vpop.xlane.xlu0 %7274 }
0x286a   :  { %v7279_v60 = vsub.f32 %v7266_v35, %v7275_v58 }
0x286c   :  { %v7281_v20 = vmul.f32 1.442695, %v7279_v60 }
0x286d   :  { %v7295_v25 = vpop.permute.xlu0 %7294  ;;  %v7278_v39 = vpop.xlane.xlu1 %7277 }
0x286e   :  { %9217 = vpow2.f32 %v7281_v20  ;;  %v7280_v17 = vsub.f32 %v7269_v53, %v7278_v39  ;;  %8764 = vmatpush3.bf16.msra.mxu1 %v7295_v25 }
0x2870   :  { %v7283_v11 = vmul.f32 1.442695, %v7280_v17 }
0x2872   :  { %9219 = vpow2.f32 %v7283_v11 }
0x287b   :  { %v9218_v27 = vpop.eup %9217 }
0x287c   :  { %v7285_v0 = vsel %vm102_vm1, %v9218_v27, 0.0 }
0x287d   :  { %7286 = vadd.xlane.f32.xlu1 %v7285_v0 }
0x287f   :  { %v9220_v38 = vpop.eup %9219 }
0x2880   :  { %v7293_v52 = vpack.c.bf16 %v9220_v38, %v9218_v27  ;;  %v7288_v59 = vsel %vm102_vm1, %v9220_v38, 0.0 }
0x2881   :  { %7289 = vadd.xlane.f32.xlu1 %v7288_v59 }
0x2882   :  { %8766 = vmatmul.mubr.msk.bf16.vlgmr.msra.gmra.mxu1 %vm102_vm1, %v7293_v52 }
0x2883   :  { %8777 = vmatprep.mubr.msk.bf16.mxu1 %vm102_vm1, %v7392_v21 }
0x289f   :  { %v7213_v12 = vpop.f32.mrf.mxu1 }
0x28a0   :  { %v7220_v56 = vadd.f32 %v7213_v12, %v7052_v23 }
0x28a1   :  { %v8755_v19 = vpop.f32.mrf.mxu1 }
0x28a3   :  { %v7216_v55 = vpop.f32.mrf.mxu1 }
0x28a4   :  { %v7221_v30 = vadd.f32 %v7216_v55, %v7053_v40  ;;  %v6049_v40 = vadd.f32 %v9260_v31, %v10996_v13 }
0x28a5   :  { %v8756_v46 = vpop.f32.mrf.mxu1 }
0x28a6   :  { %v7393_v49 = vpack.c.bf16 %v6050_v14, %v6049_v40 }
0x2906   :  { %v7287_v26 = vpop.xlane.xlu1 %7286 }
0x2907   :  { %9221 = vrcp.f32 %v7287_v26 }
0x290a   :  { %v7290_v1 = vpop.xlane.xlu1 %7289 }
0x290b   :  { %9223 = vrcp.f32 %v7290_v1 }
0x2914   :  { %v9222_v29 = vpop.eup %9221 }
0x2918   :  { %v9224_v24 = vpop.eup %9223 }
0x2942   :  { %v7334_v54 = vpop.f32.mrf.mxu1 }
0x2943   :  { %v7341_v48 = vmul.f32 %v9222_v29, %v7334_v54 }
0x2944   :  { %v8767_v37 = vpop.f32.mrf.mxu1 }
0x2946   :  { %v7337_v57 = vpop.f32.mrf.mxu1 }
0x2947   :  { %v7342_v5 = vmul.f32 %v9224_v24, %v7337_v57 }
0x2948   :  { %v8768_v43 = vpop.f32.mrf.mxu1 }
0x2949   :  { %v7343_v51 = vpack.c.bf16 %v7342_v5, %v7341_v48 }
0x294b   :  { %8772 = vmatmul.mubr.msk.bf16.vlgmr.msra.gmra.mxu0 %vm102_vm1, %v7343_v51 }
0x2a0b   :  { %v7381_v28 = vpop.f32.mrf.mxu0 }
0x2a0c   :  { %v7388_v3 = vadd.f32 %v7381_v28, %v7220_v56 }
0x2a0d   :  { %v8773_v22 = vpop.f32.mrf.mxu0 }
0x2a0e   :  { %v7390_v2 = vadd.f32 %v9260_v31, %v7388_v3 }
0x2a0f   :  { %v7384_v9 = vpop.f32.mrf.mxu0 }
0x2a10   :  { %v7389_v34 = vadd.f32 %v7384_v9, %v7221_v30 }
0x2a11   :  { %v8774_v15 = vpop.f32.mrf.mxu0 }
0x2a12   :  { %v7391_v23 = vadd.f32 %v9260_v31, %v7389_v34 }
0x2a14   :  { %v7394_v62 = vpack.c.bf16 %v7391_v23, %v7390_v2 }
0x2a16   :  { %8775 = vmatprep.subr.bf16.mxu1 %v7394_v62 }
0x2a17   :  { %8776 = vmatpush3.bf16.msra.mxu1 %v7394_v62 }
0x2a1a   :  { %8778 = vmatmul.mubr.msk.bf16.vlgmr.msra.gmra.mxu1 %vm102_vm1, %v7393_v49 }
0x2ada   :  { %v8779_v47 = vpop.f32.mrf.mxu1 }
0x2adb   :  { %v7452_v8 = vadd.f32 %v8779_v47, %v6049_v40 }
0x2adc   :  { %v7435_v42 = vpop.f32.mrf.mxu1 }
0x2add   :  { %7669 = vst.msk [vmem:[%s11193_s10 + $0x30] sm:$0xff] %vm102_vm1, %v7452_v8  ;;  %v7450_v44 = vadd.f32 %v7435_v42, %v6047_v45 }
0x2ade   :  { %v8780_v50 = vpop.f32.mrf.mxu1 }
0x2adf   :  { %7667 = vst.msk [vmem:[%s11193_s10 + $0x20] sm:$0xff] %vm102_vm1, %v7450_v44  ;;  %v7453_v13 = vadd.f32 %v8780_v50, %v6050_v14 }
0x2ae0   :  { %v7438_v6 = vpop.f32.mrf.mxu1 }
0x2ae1   :  { %7670 = vst.msk [vmem:[%s11193_s10 + $0x38] sm:$0xff] %vm102_vm1, %v7453_v13  ;;  %v7451_v7 = vadd.f32 %v7438_v6, %v6048_v32 }
0x2ae3   :  { %7668 = vst.msk [vmem:[%s11193_s10 + $0x28] sm:$0xff] %vm102_vm1, %v7451_v7 }

</bundles_post_ra>
